<compile_context>
chip_gen: v5e
topology: v5e:2x2
jax: 0.10.0
libtpu: 0.0.40
codegen_flags: <defaults>
</compile_context>

<pallas_src>
import functools

import jax
import jax.numpy as jnp
from jax.experimental import pallas as pl
from jax.experimental.pallas import tpu as pltpu


def _round_up(x: int, m: int) -> int:
    return ((x + m - 1) // m) * m


def _cdiv(a: int, b: int) -> int:
    return -(-a // b)


def _elu(x):
    # F.elu with alpha=1:  x if x > 0 else exp(x) - 1
    # (jnp.where discards the unselected branch; exp overflow is harmless.)
    return jnp.where(x > 0, x, jnp.exp(x) - 1.0)


# --------------------------------------------------------------------------
# Kernel
# --------------------------------------------------------------------------
def _hedge_mlp_kernel(*refs, n_inputs: int, n_layers: int, d_out: int,
                      h_pad: int, d_pad: int, output_softmax: bool,
                      compute_dtype, matmul_precision):
    """Per-layer predictions for one batch tile; weights stay VMEM-resident.

    refs layout:
        x_0 [, x_1], W0, b0, [Wfused, bfused], Wo_last, bo_last,
        out_0 [, out_1]
    Wfused[i] = [Wh_{i+1} | Wo_i]  (shape (h_pad, h_pad + d_pad)).
    """
    idx = 0
    x_refs = refs[idx: idx + n_inputs]; idx += n_inputs
    w0_ref, b0_ref = refs[idx], refs[idx + 1]; idx += 2
    if n_layers > 1:
        wf_ref, bf_ref = refs[idx], refs[idx + 1]; idx += 2
    else:
        wf_ref = bf_ref = None
    wl_ref, bl_ref = refs[idx], refs[idx + 1]; idx += 2
    out_refs = refs[idx: idx + n_inputs]

    exact = (jnp.dtype(compute_dtype) == jnp.dtype(jnp.float32))

    # Hoisted softmax lane mask (JAX does not CSE broadcast_in_dim): built
    # once, reused for every layer and both inputs.
    if output_softmax and d_out < d_pad:
        lane = jax.lax.broadcasted_iota(jnp.int32, (1, d_pad), 1)
        valid = lane < d_out
    else:
        valid = None

    def softmax(p):
        if valid is not None:
            p = jnp.where(valid, p, -1e30)     # padded logits cannot win max/sum
        m = jnp.max(p, axis=-1, keepdims=True)
        e = jnp.exp(p - m)
        s = jnp.sum(e, axis=-1, keepdims=True)
        if exact:
            return e / s
        return e * pl.reciprocal(s, approx=True)

    dot = functools.partial(jnp.dot, preferred_element_type=jnp.float32,
                            precision=matmul_precision)

    w0 = w0_ref[...]
    b0 = b0_ref[...]
    wl = wl_ref[...]
    bl = bl_ref[...]

    for xi in range(n_inputs):
        # Layer 0 hidden activation (f32 accumulation, f32 bias / ELU).
        h = _elu(dot(x_refs[xi][...].astype(compute_dtype), w0) + b0)
        for layer in range(n_layers):
            if layer < n_layers - 1:
                # One fused matmul: [h_{layer+1} pre-act | pred_layer].
                fused = dot(h.astype(compute_dtype), wf_ref[layer]) + bf_ref[layer]
                pred = fused[:, h_pad:]
                h_next = _elu(fused[:, :h_pad])
            else:
                pred = dot(h.astype(compute_dtype), wl) + bl
                h_next = None
            if output_softmax:
                pred = softmax(pred)
            # Store only the real d_out columns (HBM-write-bound kernel).
            out_refs[xi][layer] = pred[:, :d_out].astype(out_refs[xi].dtype)
            if h_next is not None:
                h = h_next


# --------------------------------------------------------------------------
# Tiling / VMEM bookkeeping
# --------------------------------------------------------------------------
def _vmem_capacity_bytes() -> int:
    try:
        return int(pltpu.get_tpu_info().vmem_capacity_bytes)
    except Exception:
        return 64 * 1024 * 1024        # v7x per-TensorCore floor


def _pick_batch_tile(n_rows, d_in, n_layers, h_pad, d_pad, d_out, n_inputs,
                     cbytes, vmem_data_budget, max_tile=2048):
    """Largest MXU-friendly batch tile whose working set fits the budget."""
    # Weights may end up double-buffered (fallback path) -> count them twice.
    weight_bytes = 2 * (
        (d_in * h_pad
         + max(n_layers - 1, 0) * h_pad * (h_pad + d_pad)
         + h_pad * d_pad) * cbytes
        + (h_pad + max(n_layers - 1, 0) * (h_pad + d_pad) + d_pad) * 4)

    def fits(tb):
        x_io = n_inputs * 2 * tb * d_in * 4                 # f32 x tiles, 2x buffered
        out_io = n_inputs * 2 * n_layers * tb * d_out * 4   # f32 out tiles, 2x buffered
        live = n_inputs * tb * (2 * h_pad + 2 * (h_pad + d_pad)) * 4
        live += n_inputs * tb * (h_pad + d_in) * cbytes     # compute-dtype casts
        return weight_bytes + x_io + out_io + live <= vmem_data_budget

    # >= 2 grid steps whenever the batch allows it (two TensorCores on v7x).
    if n_rows >= 512:
        target_steps = max(2, _cdiv(n_rows, max_tile))
    else:
        target_steps = max(1, _cdiv(n_rows, max_tile))
    tb = _cdiv(n_rows, target_steps)
    tb = _round_up(tb, 256) if tb >= 256 else _round_up(tb, 8)
    tb = min(tb, _round_up(max_tile, 256))

    while tb > 8 and not fits(tb):
        tb = tb - 256 if tb > 256 else max(8, ((tb // 2) // 8) * 8)
    return max(tb, 8)


# --------------------------------------------------------------------------
# pallas_call wrapper
# --------------------------------------------------------------------------
_SINGLE_BUFFER_WEIGHTS = {"mode": None}   # probed once: True / False


def _hedge_call(xs, padded_params, *, n_layers, d_out, h_pad, d_pad,
                output_softmax, compute_dtype, matmul_precision, tb, rows_pad,
                vmem_limit, single_buffer_weights):
    n_inputs = len(xs)
    w0p, b0p, wfp, bfp, wlp, blp = padded_params
    d_in = xs[0].shape[1]
    grid = (rows_pad // tb,)

    def w_spec(shape):
        ndim = len(shape)
        idx_map = lambda i, _n=ndim: (0,) * _n
        if single_buffer_weights:
            # Constant block index -> no second pipeline buffer needed.
            return pl.BlockSpec(shape, idx_map, pipeline_mode=pl.Buffered(1))
        return pl.BlockSpec(shape, idx_map)

    in_specs = [pl.BlockSpec((tb, d_in), lambda i: (i, 0))
                for _ in range(n_inputs)]
    args = list(xs)
    in_specs += [w_spec(w0p.shape), w_spec(b0p.shape)]
    args += [w0p, b0p]
    if n_layers > 1:
        in_specs += [w_spec(wfp.shape), w_spec(bfp.shape)]
        args += [wfp, bfp]
    in_specs += [w_spec(wlp.shape), w_spec(blp.shape)]
    args += [wlp, blp]

    out_specs = tuple(pl.BlockSpec((n_layers, tb, d_out), lambda i: (0, i, 0))
                      for _ in range(n_inputs))
    out_shape = tuple(jax.ShapeDtypeStruct((n_layers, rows_pad, d_out),
                                           jnp.float32)
                      for _ in range(n_inputs))

    kernel = functools.partial(
        _hedge_mlp_kernel,
        n_inputs=n_inputs, n_layers=n_layers, d_out=d_out,
        h_pad=h_pad, d_pad=d_pad, output_softmax=output_softmax,
        compute_dtype=compute_dtype, matmul_precision=matmul_precision)

    return pl.pallas_call(
        kernel,
        out_shape=out_shape,
        grid=grid,
        in_specs=in_specs,
        out_specs=out_specs,
        compiler_params=pltpu.CompilerParams(
            dimension_semantics=("parallel",),
            vmem_limit_bytes=vmem_limit),
    )(*args)


def hedge_apply_multi(x_list, params, *, output_softmax=False,
                      compute_dtype=jnp.bfloat16, max_batch_tile=2048):
    """Runs the hedge MLP on each x in x_list (all shaped (B, D_in)) through a
    single fused pallas_call.  Returns one (L, B, D_out) f32 array per input."""
    w0, b0, wh, bh, wo, bo = params
    n_layers = wo.shape[0]
    n_rows, d_in = x_list[0].shape
    for x in x_list:
        assert x.shape == (n_rows, d_in)
    hidden = w0.shape[1]
    d_out = wo.shape[-1]

    h_pad = _round_up(hidden, 128)
    d_pad = _round_up(d_out, 128)
    cdt = jnp.dtype(compute_dtype)
    cbytes = cdt.itemsize
    matmul_precision = (jax.lax.Precision.HIGHEST
                        if cdt == jnp.dtype(jnp.float32) else None)

    # ---- zero-pad feature dims (mathematically inert) and pack weights ----
    w0p = jnp.pad(w0, ((0, 0), (0, h_pad - hidden))).astype(compute_dtype)
    b0p = jnp.pad(b0, ((0, 0), (0, h_pad - hidden))).astype(jnp.float32)
    wo_p = jnp.pad(wo, ((0, 0), (0, h_pad - hidden), (0, d_pad - d_out)))
    bo_p = jnp.pad(bo, ((0, 0), (0, 0), (0, d_pad - d_out)))
    if n_layers > 1:
        wh_p = jnp.pad(wh[:n_layers - 1],
                       ((0, 0), (0, h_pad - hidden), (0, h_pad - hidden)))
        bh_p = jnp.pad(bh[:n_layers - 1], ((0, 0), (0, 0), (0, h_pad - hidden)))
        # Fuse Wh_{i+1} with Wo_i (they share LHS h_i) -> one matmul / layer.
        wfp = jnp.concatenate([wh_p, wo_p[:n_layers - 1]],
                              axis=-1).astype(compute_dtype)
        bfp = jnp.concatenate([bh_p, bo_p[:n_layers - 1]],
                              axis=-1).astype(jnp.float32)
    else:
        wfp = bfp = None
    wlp = wo_p[n_layers - 1].astype(compute_dtype)
    blp = bo_p[n_layers - 1].astype(jnp.float32)

    # ---- generation-aware tiling / VMEM budget ----
    vmem_cap = _vmem_capacity_bytes()
    data_budget = int(0.60 * vmem_cap)
    vmem_limit = int(0.85 * vmem_cap)
    tb = _pick_batch_tile(n_rows, d_in, n_layers, h_pad, d_pad, d_out,
                          len(x_list), cbytes, data_budget,
                          max_tile=max_batch_tile)
    rows_pad = _round_up(n_rows, tb)

    xs = []
    for x in x_list:
        x = x.astype(jnp.float32)     # keep x f32 in HBM; cast in-kernel
        if rows_pad != n_rows:
            x = jnp.pad(x, ((0, rows_pad - n_rows), (0, 0)))
        xs.append(x)

    padded_params = (w0p, b0p, wfp, bfp, wlp, blp)
    call = functools.partial(
        _hedge_call, xs, padded_params,
        n_layers=n_layers, d_out=d_out, h_pad=h_pad, d_pad=d_pad,
        output_softmax=output_softmax, compute_dtype=compute_dtype,
        matmul_precision=matmul_precision, tb=tb, rows_pad=rows_pad,
        vmem_limit=vmem_limit)

    mode = _SINGLE_BUFFER_WEIGHTS["mode"]
    if mode is None:
        try:
            outs = jax.block_until_ready(call(single_buffer_weights=True))
            _SINGLE_BUFFER_WEIGHTS["mode"] = True
        except Exception:
            # Older JAX without pipeline_mode / Buffered(1): default buffering.
            _SINGLE_BUFFER_WEIGHTS["mode"] = False
            outs = call(single_buffer_weights=False)
    else:
        outs = call(single_buffer_weights=mode)

    if rows_pad != n_rows:
        outs = tuple(o[:, :n_rows, :] for o in outs)
    return tuple(outs)


def hedge_partial_forward(x, params, *, output_softmax=False,
                          compute_dtype=jnp.bfloat16, max_batch_tile=2048):
    """Mirrors partial_forward for a single input: returns (L, B, D_out)."""
    (pred,) = hedge_apply_multi([x], params, output_softmax=output_softmax,
                                compute_dtype=compute_dtype,
                                max_batch_tile=max_batch_tile)
    return pred


def hedge_forward(x_list, params, *, output_softmax=False,
                  compute_dtype=jnp.bfloat16, max_batch_tile=2048):
    """Mirrors HedgeVAMPNetEstimator.forward: x_list = [x_0, x_tau].

    Both inputs run through ONE pallas_call (shared weights are DMA'd once).
    Returns two stacked arrays of shape (L, B, D_out)."""
    pred_0, pred_tau = hedge_apply_multi(
        [x_list[0], x_list[1]], params, output_softmax=output_softmax,
        compute_dtype=compute_dtype, max_batch_tile=max_batch_tile)
    return pred_0, pred_tau


# --------------------------------------------------------------------------
# Parameter init + pure-JAX reference
# --------------------------------------------------------------------------
def init_params(key, input_dim, output_dim, n_hidden_layers, hidden_width):
    """Deterministic init matching nn.Linear default (U[-1/sqrt(fan_in), ...])."""
    ks = jax.random.split(key, 6)
    n_layers = n_hidden_layers
    hidden = hidden_width

    def uni(k, shape, fan_in):
        lim = 1.0 / jnp.sqrt(float(fan_in))
        return jax.random.uniform(k, shape, jnp.float32, -lim, lim)

    w0 = uni(ks[0], (input_dim, hidden), input_dim)
    b0 = uni(ks[1], (1, hidden), input_dim)
    if n_layers > 1:
        wh = uni(ks[2], (n_layers - 1, hidden, hidden), hidden)
        bh = uni(ks[3], (n_layers - 1, 1, hidden), hidden)
    else:
        wh = jnp.zeros((0, hidden, hidden), jnp.float32)
        bh = jnp.zeros((0, 1, hidden), jnp.float32)
    wo = uni(ks[4], (n_layers, hidden, output_dim), hidden)
    bo = uni(ks[5], (n_layers, 1, output_dim), hidden)
    return (w0, b0, wh, bh, wo, bo)


def reference_forward(x_list, params, output_softmax=False):
    """Pure-JAX (f32, highest precision) reference for correctness checking."""
    w0, b0, wh, bh, wo, bo = params
    n_layers = wo.shape[0]

    def mm(a, b):
        return jnp.dot(a, b, precision=jax.lax.Precision.HIGHEST)

    def one(x):
        h = jax.nn.elu(mm(x, w0) + b0)
        preds = []
        for i in range(n_layers):
            if i > 0:
                h = jax.nn.elu(mm(h, wh[i - 1]) + bh[i - 1])
            p = mm(h, wo[i]) + bo[i]
            if output_softmax:
                p = jax.nn.softmax(p, axis=-1)
            preds.append(p)
        return jnp.stack(preds)

    return one(x_list[0]), one(x_list[1])


# TODO(synk): loss_per_layer / update_weights / partial_fit (online hedge
# backprop + alpha updates) are training-time host logic, not part of the
# forward pass, and are not translated to Pallas.

if __name__ == "__main__":
    # Small shapes consistent with the module's constructor.
    batch = 8
    input_dim = 16
    hidden_width = 32
    output_dim = 8
    n_hidden_layers = 3

    key = jax.random.PRNGKey(0)
    k_x0, k_xt, k_p = jax.random.split(key, 3)
    x_0 = jax.random.normal(k_x0, (batch, input_dim), jnp.float32)
    x_tau = jax.random.normal(k_xt, (batch, input_dim), jnp.float32)
    params = init_params(k_p, input_dim, output_dim, n_hidden_layers,
                         hidden_width)

    ok = True
    for softmax in (False, True):
        ref_0, ref_tau = reference_forward([x_0, x_tau], params,
                                           output_softmax=softmax)
        for cdt, tol in ((jnp.float32, dict(atol=1e-4, rtol=1e-4)),
                         (jnp.bfloat16, dict(atol=5e-2, rtol=5e-2))):
            pred_0, pred_tau = hedge_forward([x_0, x_tau], params,
                                             output_softmax=softmax,
                                             compute_dtype=cdt)
            pred_0, pred_tau = jax.block_until_ready((pred_0, pred_tau))
            ok &= bool(jnp.allclose(pred_0, ref_0, **tol))
            ok &= bool(jnp.allclose(pred_tau, ref_tau, **tol))

    # Exercise the single-input partial_forward path as well (f32, tight tol).
    p0 = hedge_partial_forward(x_0, params, output_softmax=False,
                               compute_dtype=jnp.float32)
    jax.block_until_ready(p0)
    ref_p0, _ = reference_forward([x_0, x_0], params, output_softmax=False)
    ok &= bool(jnp.allclose(p0, ref_p0, atol=1e-4, rtol=1e-4))

    assert ok, "kernel output mismatch vs. pure-JAX reference"
    print("KERNEL_OK")
</pallas_src>

<mosaic_0001>
module attributes {stable_mosaic.version = 11 : i64} {
  func.func @_hedge_mlp_kernel(%arg0: i32, %arg1: memref<8x16xf32, #tpu.memory_space<vmem>>, %arg2: memref<8x16xf32, #tpu.memory_space<vmem>>, %arg3: memref<16x128xf32, #tpu.memory_space<vmem>>, %arg4: memref<1x128xf32, #tpu.memory_space<vmem>>, %arg5: memref<2x128x256xf32, #tpu.memory_space<vmem>>, %arg6: memref<2x1x256xf32, #tpu.memory_space<vmem>>, %arg7: memref<128x128xf32, #tpu.memory_space<vmem>>, %arg8: memref<1x128xf32, #tpu.memory_space<vmem>>, %arg9: memref<3x8x8xf32, #tpu.memory_space<vmem>>, %arg10: memref<3x8x8xf32, #tpu.memory_space<vmem>>) attributes {dimension_semantics = [#tpu.dimension_semantics<parallel>], iteration_bounds = array<i64: 1>, scalar_prefetch = 0 : i64, scratch_operands = 0 : i64, tpu.core_type = #tpu.core_type<tc>, window_params = [{transform_indices = @transform_0, window_bounds = array<i64: 8, 16>}, {transform_indices = @transform_1, window_bounds = array<i64: 8, 16>}, {pipeline_mode = #tpu.pipeline_mode<synchronous>, transform_indices = @transform_2, window_bounds = array<i64: 16, 128>}, {pipeline_mode = #tpu.pipeline_mode<synchronous>, transform_indices = @transform_3, window_bounds = array<i64: 1, 128>}, {pipeline_mode = #tpu.pipeline_mode<synchronous>, transform_indices = @transform_4, window_bounds = array<i64: 2, 128, 256>}, {pipeline_mode = #tpu.pipeline_mode<synchronous>, transform_indices = @transform_5, window_bounds = array<i64: 2, 1, 256>}, {pipeline_mode = #tpu.pipeline_mode<synchronous>, transform_indices = @transform_6, window_bounds = array<i64: 128, 128>}, {pipeline_mode = #tpu.pipeline_mode<synchronous>, transform_indices = @transform_7, window_bounds = array<i64: 1, 128>}, {transform_indices = @transform_8, window_bounds = array<i64: 3, 8, 8>}, {transform_indices = @transform_9, window_bounds = array<i64: 3, 8, 8>}]} {
    %c0 = arith.constant 0 : index
    %c0_0 = arith.constant 0 : index
    %0 = vector.load %arg3[%c0, %c0_0] : memref<16x128xf32, #tpu.memory_space<vmem>>, vector<16x128xf32>
    %c0_1 = arith.constant 0 : index
    %c0_2 = arith.constant 0 : index
    %1 = vector.load %arg4[%c0_1, %c0_2] : memref<1x128xf32, #tpu.memory_space<vmem>>, vector<1x128xf32>
    %c0_3 = arith.constant 0 : index
    %c0_4 = arith.constant 0 : index
    %2 = vector.load %arg7[%c0_3, %c0_4] : memref<128x128xf32, #tpu.memory_space<vmem>>, vector<128x128xf32>
    %c0_5 = arith.constant 0 : index
    %c0_6 = arith.constant 0 : index
    %3 = vector.load %arg8[%c0_5, %c0_6] : memref<1x128xf32, #tpu.memory_space<vmem>>, vector<1x128xf32>
    %c0_7 = arith.constant 0 : index
    %c0_8 = arith.constant 0 : index
    %4 = vector.load %arg1[%c0_7, %c0_8] : memref<8x16xf32, #tpu.memory_space<vmem>>, vector<8x16xf32>
    %cst = arith.constant dense<0.000000e+00> : vector<8x128xf32>
    %5 = tpu.matmul %4, %0, %cst {dimension_numbers = #tpu.dot_dimension_numbers<[1], [0], [0], [1], [0, 0, 1, 1], [], []>, precision = #tpu.contract_precision<fp32>} : vector<8x16xf32>, vector<16x128xf32>, vector<8x128xf32> -> vector<8x128xf32>
    %6 = vector.broadcast %1 : vector<1x128xf32> to vector<8x128xf32>
    %7 = arith.addf %5, %6 : vector<8x128xf32>
    %cst_9 = arith.constant 0.000000e+00 : f32
    %8 = vector.broadcast %cst_9 : f32 to vector<8x128xf32>
    %9 = arith.cmpf ogt, %7, %8 : vector<8x128xf32>
    %10 = math.exp %7 : vector<8x128xf32>
    %cst_10 = arith.constant 1.000000e+00 : f32
    %11 = vector.broadcast %cst_10 : f32 to vector<8x128xf32>
    %12 = arith.subf %10, %11 : vector<8x128xf32>
    %13 = arith.select %9, %7, %12 : vector<8x128xi1>, vector<8x128xf32>
    %c0_11 = arith.constant 0 : index
    %c0_12 = arith.constant 0 : index
    %c0_13 = arith.constant 0 : index
    %14 = vector.load %arg5[%c0_11, %c0_12, %c0_13] : memref<2x128x256xf32, #tpu.memory_space<vmem>>, vector<1x128x256xf32>
    %15 = vector.shape_cast %14 : vector<1x128x256xf32> to vector<128x256xf32>
    %cst_14 = arith.constant dense<0.000000e+00> : vector<8x256xf32>
    %16 = tpu.matmul %13, %15, %cst_14 {dimension_numbers = #tpu.dot_dimension_numbers<[1], [0], [0], [1], [0, 0, 1, 1], [], []>, precision = #tpu.contract_precision<fp32>} : vector<8x128xf32>, vector<128x256xf32>, vector<8x256xf32> -> vector<8x256xf32>
    %c0_15 = arith.constant 0 : index
    %c0_16 = arith.constant 0 : index
    %c0_17 = arith.constant 0 : index
    %17 = vector.load %arg6[%c0_15, %c0_16, %c0_17] : memref<2x1x256xf32, #tpu.memory_space<vmem>>, vector<1x1x256xf32>
    %18 = vector.shape_cast %17 : vector<1x1x256xf32> to vector<1x256xf32>
    %19 = vector.broadcast %18 : vector<1x256xf32> to vector<8x256xf32>
    %20 = arith.addf %16, %19 : vector<8x256xf32>
    %21 = vector.extract_strided_slice %20 {offsets = [0, 128], sizes = [8, 128], strides = [1, 1]} : vector<8x256xf32> to vector<8x128xf32>
    %22 = vector.extract_strided_slice %20 {offsets = [0, 0], sizes = [8, 128], strides = [1, 1]} : vector<8x256xf32> to vector<8x128xf32>
    %cst_18 = arith.constant 0.000000e+00 : f32
    %23 = vector.broadcast %cst_18 : f32 to vector<8x128xf32>
    %24 = arith.cmpf ogt, %22, %23 : vector<8x128xf32>
    %25 = math.exp %22 : vector<8x128xf32>
    %cst_19 = arith.constant 1.000000e+00 : f32
    %26 = vector.broadcast %cst_19 : f32 to vector<8x128xf32>
    %27 = arith.subf %25, %26 : vector<8x128xf32>
    %28 = arith.select %24, %22, %27 : vector<8x128xi1>, vector<8x128xf32>
    %29 = vector.extract_strided_slice %21 {offsets = [0, 0], sizes = [8, 8], strides = [1, 1]} : vector<8x128xf32> to vector<8x8xf32>
    %c0_20 = arith.constant 0 : index
    %c0_21 = arith.constant 0 : index
    %c0_22 = arith.constant 0 : index
    %30 = vector.load %arg9[%c0_20, %c0_21, %c0_22] : memref<3x8x8xf32, #tpu.memory_space<vmem>>, vector<1x8x8xf32>
    %31 = vector.shape_cast %30 : vector<1x8x8xf32> to vector<8x8xf32>
    %32 = vector.shape_cast %29 : vector<8x8xf32> to vector<1x8x8xf32>
    tpu.vector_store %arg9[%c0_20, %c0_21, %c0_22], %32 {strides = array<i32>} : memref<3x8x8xf32, #tpu.memory_space<vmem>>, vector<1x8x8xf32>,
    %c1 = arith.constant 1 : index
    %c0_23 = arith.constant 0 : index
    %c0_24 = arith.constant 0 : index
    %33 = vector.load %arg5[%c1, %c0_23, %c0_24] : memref<2x128x256xf32, #tpu.memory_space<vmem>>, vector<1x128x256xf32>
    %34 = vector.shape_cast %33 : vector<1x128x256xf32> to vector<128x256xf32>
    %cst_25 = arith.constant dense<0.000000e+00> : vector<8x256xf32>
    %35 = tpu.matmul %28, %34, %cst_25 {dimension_numbers = #tpu.dot_dimension_numbers<[1], [0], [0], [1], [0, 0, 1, 1], [], []>, precision = #tpu.contract_precision<fp32>} : vector<8x128xf32>, vector<128x256xf32>, vector<8x256xf32> -> vector<8x256xf32>
    %c1_26 = arith.constant 1 : index
    %c0_27 = arith.constant 0 : index
    %c0_28 = arith.constant 0 : index
    %36 = vector.load %arg6[%c1_26, %c0_27, %c0_28] : memref<2x1x256xf32, #tpu.memory_space<vmem>>, vector<1x1x256xf32>
    %37 = vector.shape_cast %36 : vector<1x1x256xf32> to vector<1x256xf32>
    %38 = vector.broadcast %37 : vector<1x256xf32> to vector<8x256xf32>
    %39 = arith.addf %35, %38 : vector<8x256xf32>
    %40 = vector.extract_strided_slice %39 {offsets = [0, 128], sizes = [8, 128], strides = [1, 1]} : vector<8x256xf32> to vector<8x128xf32>
    %41 = vector.extract_strided_slice %39 {offsets = [0, 0], sizes = [8, 128], strides = [1, 1]} : vector<8x256xf32> to vector<8x128xf32>
    %cst_29 = arith.constant 0.000000e+00 : f32
    %42 = vector.broadcast %cst_29 : f32 to vector<8x128xf32>
    %43 = arith.cmpf ogt, %41, %42 : vector<8x128xf32>
    %44 = math.exp %41 : vector<8x128xf32>
    %cst_30 = arith.constant 1.000000e+00 : f32
    %45 = vector.broadcast %cst_30 : f32 to vector<8x128xf32>
    %46 = arith.subf %44, %45 : vector<8x128xf32>
    %47 = arith.select %43, %41, %46 : vector<8x128xi1>, vector<8x128xf32>
    %48 = vector.extract_strided_slice %40 {offsets = [0, 0], sizes = [8, 8], strides = [1, 1]} : vector<8x128xf32> to vector<8x8xf32>
    %c1_31 = arith.constant 1 : index
    %c0_32 = arith.constant 0 : index
    %c0_33 = arith.constant 0 : index
    %49 = vector.load %arg9[%c1_31, %c0_32, %c0_33] : memref<3x8x8xf32, #tpu.memory_space<vmem>>, vector<1x8x8xf32>
    %50 = vector.shape_cast %49 : vector<1x8x8xf32> to vector<8x8xf32>
    %51 = vector.shape_cast %48 : vector<8x8xf32> to vector<1x8x8xf32>
    tpu.vector_store %arg9[%c1_31, %c0_32, %c0_33], %51 {strides = array<i32>} : memref<3x8x8xf32, #tpu.memory_space<vmem>>, vector<1x8x8xf32>,
    %cst_34 = arith.constant dense<0.000000e+00> : vector<8x128xf32>
    %52 = tpu.matmul %47, %2, %cst_34 {dimension_numbers = #tpu.dot_dimension_numbers<[1], [0], [0], [1], [0, 0, 1, 1], [], []>, precision = #tpu.contract_precision<fp32>} : vector<8x128xf32>, vector<128x128xf32>, vector<8x128xf32> -> vector<8x128xf32>
    %53 = vector.broadcast %3 : vector<1x128xf32> to vector<8x128xf32>
    %54 = arith.addf %52, %53 : vector<8x128xf32>
    %55 = vector.extract_strided_slice %54 {offsets = [0, 0], sizes = [8, 8], strides = [1, 1]} : vector<8x128xf32> to vector<8x8xf32>
    %c2 = arith.constant 2 : index
    %c0_35 = arith.constant 0 : index
    %c0_36 = arith.constant 0 : index
    %56 = vector.load %arg9[%c2, %c0_35, %c0_36] : memref<3x8x8xf32, #tpu.memory_space<vmem>>, vector<1x8x8xf32>
    %57 = vector.shape_cast %56 : vector<1x8x8xf32> to vector<8x8xf32>
    %58 = vector.shape_cast %55 : vector<8x8xf32> to vector<1x8x8xf32>
    tpu.vector_store %arg9[%c2, %c0_35, %c0_36], %58 {strides = array<i32>} : memref<3x8x8xf32, #tpu.memory_space<vmem>>, vector<1x8x8xf32>,
    %c0_37 = arith.constant 0 : index
    %c0_38 = arith.constant 0 : index
    %59 = vector.load %arg2[%c0_37, %c0_38] : memref<8x16xf32, #tpu.memory_space<vmem>>, vector<8x16xf32>
    %cst_39 = arith.constant dense<0.000000e+00> : vector<8x128xf32>
    %60 = tpu.matmul %59, %0, %cst_39 {dimension_numbers = #tpu.dot_dimension_numbers<[1], [0], [0], [1], [0, 0, 1, 1], [], []>, precision = #tpu.contract_precision<fp32>} : vector<8x16xf32>, vector<16x128xf32>, vector<8x128xf32> -> vector<8x128xf32>
    %61 = vector.broadcast %1 : vector<1x128xf32> to vector<8x128xf32>
    %62 = arith.addf %60, %61 : vector<8x128xf32>
    %cst_40 = arith.constant 0.000000e+00 : f32
    %63 = vector.broadcast %cst_40 : f32 to vector<8x128xf32>
    %64 = arith.cmpf ogt, %62, %63 : vector<8x128xf32>
    %65 = math.exp %62 : vector<8x128xf32>
    %cst_41 = arith.constant 1.000000e+00 : f32
    %66 = vector.broadcast %cst_41 : f32 to vector<8x128xf32>
    %67 = arith.subf %65, %66 : vector<8x128xf32>
    %68 = arith.select %64, %62, %67 : vector<8x128xi1>, vector<8x128xf32>
    %c0_42 = arith.constant 0 : index
    %c0_43 = arith.constant 0 : index
    %c0_44 = arith.constant 0 : index
    %69 = vector.load %arg5[%c0_42, %c0_43, %c0_44] : memref<2x128x256xf32, #tpu.memory_space<vmem>>, vector<1x128x256xf32>
    %70 = vector.shape_cast %69 : vector<1x128x256xf32> to vector<128x256xf32>
    %cst_45 = arith.constant dense<0.000000e+00> : vector<8x256xf32>
    %71 = tpu.matmul %68, %70, %cst_45 {dimension_numbers = #tpu.dot_dimension_numbers<[1], [0], [0], [1], [0, 0, 1, 1], [], []>, precision = #tpu.contract_precision<fp32>} : vector<8x128xf32>, vector<128x256xf32>, vector<8x256xf32> -> vector<8x256xf32>
    %c0_46 = arith.constant 0 : index
    %c0_47 = arith.constant 0 : index
    %c0_48 = arith.constant 0 : index
    %72 = vector.load %arg6[%c0_46, %c0_47, %c0_48] : memref<2x1x256xf32, #tpu.memory_space<vmem>>, vector<1x1x256xf32>
    %73 = vector.shape_cast %72 : vector<1x1x256xf32> to vector<1x256xf32>
    %74 = vector.broadcast %73 : vector<1x256xf32> to vector<8x256xf32>
    %75 = arith.addf %71, %74 : vector<8x256xf32>
    %76 = vector.extract_strided_slice %75 {offsets = [0, 128], sizes = [8, 128], strides = [1, 1]} : vector<8x256xf32> to vector<8x128xf32>
    %77 = vector.extract_strided_slice %75 {offsets = [0, 0], sizes = [8, 128], strides = [1, 1]} : vector<8x256xf32> to vector<8x128xf32>
    %cst_49 = arith.constant 0.000000e+00 : f32
    %78 = vector.broadcast %cst_49 : f32 to vector<8x128xf32>
    %79 = arith.cmpf ogt, %77, %78 : vector<8x128xf32>
    %80 = math.exp %77 : vector<8x128xf32>
    %cst_50 = arith.constant 1.000000e+00 : f32
    %81 = vector.broadcast %cst_50 : f32 to vector<8x128xf32>
    %82 = arith.subf %80, %81 : vector<8x128xf32>
    %83 = arith.select %79, %77, %82 : vector<8x128xi1>, vector<8x128xf32>
    %84 = vector.extract_strided_slice %76 {offsets = [0, 0], sizes = [8, 8], strides = [1, 1]} : vector<8x128xf32> to vector<8x8xf32>
    %c0_51 = arith.constant 0 : index
    %c0_52 = arith.constant 0 : index
    %c0_53 = arith.constant 0 : index
    %85 = vector.load %arg10[%c0_51, %c0_52, %c0_53] : memref<3x8x8xf32, #tpu.memory_space<vmem>>, vector<1x8x8xf32>
    %86 = vector.shape_cast %85 : vector<1x8x8xf32> to vector<8x8xf32>
    %87 = vector.shape_cast %84 : vector<8x8xf32> to vector<1x8x8xf32>
    tpu.vector_store %arg10[%c0_51, %c0_52, %c0_53], %87 {strides = array<i32>} : memref<3x8x8xf32, #tpu.memory_space<vmem>>, vector<1x8x8xf32>,
    %c1_54 = arith.constant 1 : index
    %c0_55 = arith.constant 0 : index
    %c0_56 = arith.constant 0 : index
    %88 = vector.load %arg5[%c1_54, %c0_55, %c0_56] : memref<2x128x256xf32, #tpu.memory_space<vmem>>, vector<1x128x256xf32>
    %89 = vector.shape_cast %88 : vector<1x128x256xf32> to vector<128x256xf32>
    %cst_57 = arith.constant dense<0.000000e+00> : vector<8x256xf32>
    %90 = tpu.matmul %83, %89, %cst_57 {dimension_numbers = #tpu.dot_dimension_numbers<[1], [0], [0], [1], [0, 0, 1, 1], [], []>, precision = #tpu.contract_precision<fp32>} : vector<8x128xf32>, vector<128x256xf32>, vector<8x256xf32> -> vector<8x256xf32>
    %c1_58 = arith.constant 1 : index
    %c0_59 = arith.constant 0 : index
    %c0_60 = arith.constant 0 : index
    %91 = vector.load %arg6[%c1_58, %c0_59, %c0_60] : memref<2x1x256xf32, #tpu.memory_space<vmem>>, vector<1x1x256xf32>
    %92 = vector.shape_cast %91 : vector<1x1x256xf32> to vector<1x256xf32>
    %93 = vector.broadcast %92 : vector<1x256xf32> to vector<8x256xf32>
    %94 = arith.addf %90, %93 : vector<8x256xf32>
    %95 = vector.extract_strided_slice %94 {offsets = [0, 128], sizes = [8, 128], strides = [1, 1]} : vector<8x256xf32> to vector<8x128xf32>
    %96 = vector.extract_strided_slice %94 {offsets = [0, 0], sizes = [8, 128], strides = [1, 1]} : vector<8x256xf32> to vector<8x128xf32>
    %cst_61 = arith.constant 0.000000e+00 : f32
    %97 = vector.broadcast %cst_61 : f32 to vector<8x128xf32>
    %98 = arith.cmpf ogt, %96, %97 : vector<8x128xf32>
    %99 = math.exp %96 : vector<8x128xf32>
    %cst_62 = arith.constant 1.000000e+00 : f32
    %100 = vector.broadcast %cst_62 : f32 to vector<8x128xf32>
    %101 = arith.subf %99, %100 : vector<8x128xf32>
    %102 = arith.select %98, %96, %101 : vector<8x128xi1>, vector<8x128xf32>
    %103 = vector.extract_strided_slice %95 {offsets = [0, 0], sizes = [8, 8], strides = [1, 1]} : vector<8x128xf32> to vector<8x8xf32>
    %c1_63 = arith.constant 1 : index
    %c0_64 = arith.constant 0 : index
    %c0_65 = arith.constant 0 : index
    %104 = vector.load %arg10[%c1_63, %c0_64, %c0_65] : memref<3x8x8xf32, #tpu.memory_space<vmem>>, vector<1x8x8xf32>
    %105 = vector.shape_cast %104 : vector<1x8x8xf32> to vector<8x8xf32>
    %106 = vector.shape_cast %103 : vector<8x8xf32> to vector<1x8x8xf32>
    tpu.vector_store %arg10[%c1_63, %c0_64, %c0_65], %106 {strides = array<i32>} : memref<3x8x8xf32, #tpu.memory_space<vmem>>, vector<1x8x8xf32>,
    %cst_66 = arith.constant dense<0.000000e+00> : vector<8x128xf32>
    %107 = tpu.matmul %102, %2, %cst_66 {dimension_numbers = #tpu.dot_dimension_numbers<[1], [0], [0], [1], [0, 0, 1, 1], [], []>, precision = #tpu.contract_precision<fp32>} : vector<8x128xf32>, vector<128x128xf32>, vector<8x128xf32> -> vector<8x128xf32>
    %108 = vector.broadcast %3 : vector<1x128xf32> to vector<8x128xf32>
    %109 = arith.addf %107, %108 : vector<8x128xf32>
    %110 = vector.extract_strided_slice %109 {offsets = [0, 0], sizes = [8, 8], strides = [1, 1]} : vector<8x128xf32> to vector<8x8xf32>
    %c2_67 = arith.constant 2 : index
    %c0_68 = arith.constant 0 : index
    %c0_69 = arith.constant 0 : index
    %111 = vector.load %arg10[%c2_67, %c0_68, %c0_69] : memref<3x8x8xf32, #tpu.memory_space<vmem>>, vector<1x8x8xf32>
    %112 = vector.shape_cast %111 : vector<1x8x8xf32> to vector<8x8xf32>
    %113 = vector.shape_cast %110 : vector<8x8xf32> to vector<1x8x8xf32>
    tpu.vector_store %arg10[%c2_67, %c0_68, %c0_69], %113 {strides = array<i32>} : memref<3x8x8xf32, #tpu.memory_space<vmem>>, vector<1x8x8xf32>,
    return
  }
  func.func @transform_0(%arg0: i32) -> (i32, i32) {
    %c0_i32 = arith.constant 0 : i32
    %c0_i32_0 = arith.constant 0 : i32
    return %arg0, %c0_i32 : i32, i32
  }
  func.func @transform_1(%arg0: i32) -> (i32, i32) {
    %c0_i32 = arith.constant 0 : i32
    %c0_i32_0 = arith.constant 0 : i32
    return %arg0, %c0_i32 : i32, i32
  }
  func.func @transform_2(%arg0: i32) -> (i32, i32) {
    %c0_i32 = arith.constant 0 : i32
    %c0_i32_0 = arith.constant 0 : i32
    %c0_i32_1 = arith.constant 0 : i32
    return %c0_i32, %c0_i32_0 : i32, i32
  }
  func.func @transform_3(%arg0: i32) -> (i32, i32) {
    %c0_i32 = arith.constant 0 : i32
    %c0_i32_0 = arith.constant 0 : i32
    %c0_i32_1 = arith.constant 0 : i32
    return %c0_i32, %c0_i32_0 : i32, i32
  }
  func.func @transform_4(%arg0: i32) -> (i32, i32, i32) {
    %c0_i32 = arith.constant 0 : i32
    %c0_i32_0 = arith.constant 0 : i32
    %c0_i32_1 = arith.constant 0 : i32
    %c0_i32_2 = arith.constant 0 : i32
    return %c0_i32, %c0_i32_0, %c0_i32_1 : i32, i32, i32
  }
  func.func @transform_5(%arg0: i32) -> (i32, i32, i32) {
    %c0_i32 = arith.constant 0 : i32
    %c0_i32_0 = arith.constant 0 : i32
    %c0_i32_1 = arith.constant 0 : i32
    %c0_i32_2 = arith.constant 0 : i32
    return %c0_i32, %c0_i32_0, %c0_i32_1 : i32, i32, i32
  }
  func.func @transform_6(%arg0: i32) -> (i32, i32) {
    %c0_i32 = arith.constant 0 : i32
    %c0_i32_0 = arith.constant 0 : i32
    %c0_i32_1 = arith.constant 0 : i32
    return %c0_i32, %c0_i32_0 : i32, i32
  }
  func.func @transform_7(%arg0: i32) -> (i32, i32) {
    %c0_i32 = arith.constant 0 : i32
    %c0_i32_0 = arith.constant 0 : i32
    %c0_i32_1 = arith.constant 0 : i32
    return %c0_i32, %c0_i32_0 : i32, i32
  }
  func.func @transform_8(%arg0: i32) -> (i32, i32, i32) {
    %c0_i32 = arith.constant 0 : i32
    %c0_i32_0 = arith.constant 0 : i32
    %c0_i32_1 = arith.constant 0 : i32
    return %c0_i32, %arg0, %c0_i32_0 : i32, i32, i32
  }
  func.func @transform_9(%arg0: i32) -> (i32, i32, i32) {
    %c0_i32 = arith.constant 0 : i32
    %c0_i32_0 = arith.constant 0 : i32
    %c0_i32_1 = arith.constant 0 : i32
    return %c0_i32, %arg0, %c0_i32_0 : i32, i32, i32
  }
}

module attributes {stable_mosaic.version = 11 : i64} {
  func.func @_hedge_mlp_kernel(%arg0: i32, %arg1: memref<8x16xf32, #tpu.memory_space<vmem>>, %arg2: memref<8x16xf32, #tpu.memory_space<vmem>>, %arg3: memref<16x128xf32, #tpu.memory_space<vmem>>, %arg4: memref<1x128xf32, #tpu.memory_space<vmem>>, %arg5: memref<2x128x256xf32, #tpu.memory_space<vmem>>, %arg6: memref<2x1x256xf32, #tpu.memory_space<vmem>>, %arg7: memref<128x128xf32, #tpu.memory_space<vmem>>, %arg8: memref<1x128xf32, #tpu.memory_space<vmem>>, %arg9: memref<3x8x8xf32, #tpu.memory_space<vmem>>, %arg10: memref<3x8x8xf32, #tpu.memory_space<vmem>>) attributes {dimension_semantics = [#tpu.dimension_semantics<parallel>], iteration_bounds = array<i64: 1>, scalar_prefetch = 0 : i64, scratch_operands = 0 : i64, tpu.core_type = #tpu.core_type<tc>, window_params = [{transform_indices = @transform_0, window_bounds = array<i64: 8, 16>}, {transform_indices = @transform_1, window_bounds = array<i64: 8, 16>}, {pipeline_mode = #tpu.pipeline_mode<synchronous>, transform_indices = @transform_2, window_bounds = array<i64: 16, 128>}, {pipeline_mode = #tpu.pipeline_mode<synchronous>, transform_indices = @transform_3, window_bounds = array<i64: 1, 128>}, {pipeline_mode = #tpu.pipeline_mode<synchronous>, transform_indices = @transform_4, window_bounds = array<i64: 2, 128, 256>}, {pipeline_mode = #tpu.pipeline_mode<synchronous>, transform_indices = @transform_5, window_bounds = array<i64: 2, 1, 256>}, {pipeline_mode = #tpu.pipeline_mode<synchronous>, transform_indices = @transform_6, window_bounds = array<i64: 128, 128>}, {pipeline_mode = #tpu.pipeline_mode<synchronous>, transform_indices = @transform_7, window_bounds = array<i64: 1, 128>}, {transform_indices = @transform_8, window_bounds = array<i64: 3, 8, 8>}, {transform_indices = @transform_9, window_bounds = array<i64: 3, 8, 8>}]} {
    %c0 = arith.constant 0 : index
    %c0_0 = arith.constant 0 : index
    %0 = vector.load %arg3[%c0, %c0_0] : memref<16x128xf32, #tpu.memory_space<vmem>>, vector<16x128xf32>
    %c0_1 = arith.constant 0 : index
    %c0_2 = arith.constant 0 : index
    %1 = vector.load %arg4[%c0_1, %c0_2] : memref<1x128xf32, #tpu.memory_space<vmem>>, vector<1x128xf32>
    %c0_3 = arith.constant 0 : index
    %c0_4 = arith.constant 0 : index
    %2 = vector.load %arg7[%c0_3, %c0_4] : memref<128x128xf32, #tpu.memory_space<vmem>>, vector<128x128xf32>
    %c0_5 = arith.constant 0 : index
    %c0_6 = arith.constant 0 : index
    %3 = vector.load %arg8[%c0_5, %c0_6] : memref<1x128xf32, #tpu.memory_space<vmem>>, vector<1x128xf32>
    %c0_7 = arith.constant 0 : index
    %c0_8 = arith.constant 0 : index
    %4 = vector.load %arg1[%c0_7, %c0_8] : memref<8x16xf32, #tpu.memory_space<vmem>>, vector<8x16xf32>
    %cst = arith.constant dense<0.000000e+00> : vector<8x128xf32>
    %5 = tpu.matmul %4, %0, %cst {dimension_numbers = #tpu.dot_dimension_numbers<[1], [0], [0], [1], [0, 0, 1, 1], [], []>, precision = #tpu.contract_precision<fp32>} : vector<8x16xf32>, vector<16x128xf32>, vector<8x128xf32> -> vector<8x128xf32>
    %6 = vector.broadcast %1 : vector<1x128xf32> to vector<8x128xf32>
    %7 = arith.addf %5, %6 : vector<8x128xf32>
    %cst_9 = arith.constant 0.000000e+00 : f32
    %8 = vector.broadcast %cst_9 : f32 to vector<8x128xf32>
    %9 = arith.cmpf ogt, %7, %8 : vector<8x128xf32>
    %10 = math.exp %7 : vector<8x128xf32>
    %cst_10 = arith.constant 1.000000e+00 : f32
    %11 = vector.broadcast %cst_10 : f32 to vector<8x128xf32>
    %12 = arith.subf %10, %11 : vector<8x128xf32>
    %13 = arith.select %9, %7, %12 : vector<8x128xi1>, vector<8x128xf32>
    %c0_11 = arith.constant 0 : index
    %c0_12 = arith.constant 0 : index
    %c0_13 = arith.constant 0 : index
    %14 = vector.load %arg5[%c0_11, %c0_12, %c0_13] : memref<2x128x256xf32, #tpu.memory_space<vmem>>, vector<1x128x256xf32>
    %15 = vector.shape_cast %14 : vector<1x128x256xf32> to vector<128x256xf32>
    %cst_14 = arith.constant dense<0.000000e+00> : vector<8x256xf32>
    %16 = tpu.matmul %13, %15, %cst_14 {dimension_numbers = #tpu.dot_dimension_numbers<[1], [0], [0], [1], [0, 0, 1, 1], [], []>, precision = #tpu.contract_precision<fp32>} : vector<8x128xf32>, vector<128x256xf32>, vector<8x256xf32> -> vector<8x256xf32>
    %c0_15 = arith.constant 0 : index
    %c0_16 = arith.constant 0 : index
    %c0_17 = arith.constant 0 : index
    %17 = vector.load %arg6[%c0_15, %c0_16, %c0_17] : memref<2x1x256xf32, #tpu.memory_space<vmem>>, vector<1x1x256xf32>
    %18 = vector.shape_cast %17 : vector<1x1x256xf32> to vector<1x256xf32>
    %19 = vector.broadcast %18 : vector<1x256xf32> to vector<8x256xf32>
    %20 = arith.addf %16, %19 : vector<8x256xf32>
    %21 = vector.extract_strided_slice %20 {offsets = [0, 128], sizes = [8, 128], strides = [1, 1]} : vector<8x256xf32> to vector<8x128xf32>
    %22 = vector.extract_strided_slice %20 {offsets = [0, 0], sizes = [8, 128], strides = [1, 1]} : vector<8x256xf32> to vector<8x128xf32>
    %cst_18 = arith.constant 0.000000e+00 : f32
    %23 = vector.broadcast %cst_18 : f32 to vector<8x128xf32>
    %24 = arith.cmpf ogt, %22, %23 : vector<8x128xf32>
    %25 = math.exp %22 : vector<8x128xf32>
    %cst_19 = arith.constant 1.000000e+00 : f32
    %26 = vector.broadcast %cst_19 : f32 to vector<8x128xf32>
    %27 = arith.subf %25, %26 : vector<8x128xf32>
    %28 = arith.select %24, %22, %27 : vector<8x128xi1>, vector<8x128xf32>
    %29 = vector.extract_strided_slice %21 {offsets = [0, 0], sizes = [8, 8], strides = [1, 1]} : vector<8x128xf32> to vector<8x8xf32>
    %c0_20 = arith.constant 0 : index
    %c0_21 = arith.constant 0 : index
    %c0_22 = arith.constant 0 : index
    %30 = vector.load %arg9[%c0_20, %c0_21, %c0_22] : memref<3x8x8xf32, #tpu.memory_space<vmem>>, vector<1x8x8xf32>
    %31 = vector.shape_cast %30 : vector<1x8x8xf32> to vector<8x8xf32>
    %32 = vector.shape_cast %29 : vector<8x8xf32> to vector<1x8x8xf32>
    tpu.vector_store %arg9[%c0_20, %c0_21, %c0_22], %32 {strides = array<i32>} : memref<3x8x8xf32, #tpu.memory_space<vmem>>, vector<1x8x8xf32>,
    %c1 = arith.constant 1 : index
    %c0_23 = arith.constant 0 : index
    %c0_24 = arith.constant 0 : index
    %33 = vector.load %arg5[%c1, %c0_23, %c0_24] : memref<2x128x256xf32, #tpu.memory_space<vmem>>, vector<1x128x256xf32>
    %34 = vector.shape_cast %33 : vector<1x128x256xf32> to vector<128x256xf32>
    %cst_25 = arith.constant dense<0.000000e+00> : vector<8x256xf32>
    %35 = tpu.matmul %28, %34, %cst_25 {dimension_numbers = #tpu.dot_dimension_numbers<[1], [0], [0], [1], [0, 0, 1, 1], [], []>, precision = #tpu.contract_precision<fp32>} : vector<8x128xf32>, vector<128x256xf32>, vector<8x256xf32> -> vector<8x256xf32>
    %c1_26 = arith.constant 1 : index
    %c0_27 = arith.constant 0 : index
    %c0_28 = arith.constant 0 : index
    %36 = vector.load %arg6[%c1_26, %c0_27, %c0_28] : memref<2x1x256xf32, #tpu.memory_space<vmem>>, vector<1x1x256xf32>
    %37 = vector.shape_cast %36 : vector<1x1x256xf32> to vector<1x256xf32>
    %38 = vector.broadcast %37 : vector<1x256xf32> to vector<8x256xf32>
    %39 = arith.addf %35, %38 : vector<8x256xf32>
    %40 = vector.extract_strided_slice %39 {offsets = [0, 128], sizes = [8, 128], strides = [1, 1]} : vector<8x256xf32> to vector<8x128xf32>
    %41 = vector.extract_strided_slice %39 {offsets = [0, 0], sizes = [8, 128], strides = [1, 1]} : vector<8x256xf32> to vector<8x128xf32>
    %cst_29 = arith.constant 0.000000e+00 : f32
    %42 = vector.broadcast %cst_29 : f32 to vector<8x128xf32>
    %43 = arith.cmpf ogt, %41, %42 : vector<8x128xf32>
    %44 = math.exp %41 : vector<8x128xf32>
    %cst_30 = arith.constant 1.000000e+00 : f32
    %45 = vector.broadcast %cst_30 : f32 to vector<8x128xf32>
    %46 = arith.subf %44, %45 : vector<8x128xf32>
    %47 = arith.select %43, %41, %46 : vector<8x128xi1>, vector<8x128xf32>
    %48 = vector.extract_strided_slice %40 {offsets = [0, 0], sizes = [8, 8], strides = [1, 1]} : vector<8x128xf32> to vector<8x8xf32>
    %c1_31 = arith.constant 1 : index
    %c0_32 = arith.constant 0 : index
    %c0_33 = arith.constant 0 : index
    %49 = vector.load %arg9[%c1_31, %c0_32, %c0_33] : memref<3x8x8xf32, #tpu.memory_space<vmem>>, vector<1x8x8xf32>
    %50 = vector.shape_cast %49 : vector<1x8x8xf32> to vector<8x8xf32>
    %51 = vector.shape_cast %48 : vector<8x8xf32> to vector<1x8x8xf32>
    tpu.vector_store %arg9[%c1_31, %c0_32, %c0_33], %51 {strides = array<i32>} : memref<3x8x8xf32, #tpu.memory_space<vmem>>, vector<1x8x8xf32>,
    %cst_34 = arith.constant dense<0.000000e+00> : vector<8x128xf32>
    %52 = tpu.matmul %47, %2, %cst_34 {dimension_numbers = #tpu.dot_dimension_numbers<[1], [0], [0], [1], [0, 0, 1, 1], [], []>, precision = #tpu.contract_precision<fp32>} : vector<8x128xf32>, vector<128x128xf32>, vector<8x128xf32> -> vector<8x128xf32>
    %53 = vector.broadcast %3 : vector<1x128xf32> to vector<8x128xf32>
    %54 = arith.addf %52, %53 : vector<8x128xf32>
    %55 = vector.extract_strided_slice %54 {offsets = [0, 0], sizes = [8, 8], strides = [1, 1]} : vector<8x128xf32> to vector<8x8xf32>
    %c2 = arith.constant 2 : index
    %c0_35 = arith.constant 0 : index
    %c0_36 = arith.constant 0 : index
    %56 = vector.load %arg9[%c2, %c0_35, %c0_36] : memref<3x8x8xf32, #tpu.memory_space<vmem>>, vector<1x8x8xf32>
    %57 = vector.shape_cast %56 : vector<1x8x8xf32> to vector<8x8xf32>
    %58 = vector.shape_cast %55 : vector<8x8xf32> to vector<1x8x8xf32>
    tpu.vector_store %arg9[%c2, %c0_35, %c0_36], %58 {strides = array<i32>} : memref<3x8x8xf32, #tpu.memory_space<vmem>>, vector<1x8x8xf32>,
    %c0_37 = arith.constant 0 : index
    %c0_38 = arith.constant 0 : index
    %59 = vector.load %arg2[%c0_37, %c0_38] : memref<8x16xf32, #tpu.memory_space<vmem>>, vector<8x16xf32>
    %cst_39 = arith.constant dense<0.000000e+00> : vector<8x128xf32>
    %60 = tpu.matmul %59, %0, %cst_39 {dimension_numbers = #tpu.dot_dimension_numbers<[1], [0], [0], [1], [0, 0, 1, 1], [], []>, precision = #tpu.contract_precision<fp32>} : vector<8x16xf32>, vector<16x128xf32>, vector<8x128xf32> -> vector<8x128xf32>
    %61 = vector.broadcast %1 : vector<1x128xf32> to vector<8x128xf32>
    %62 = arith.addf %60, %61 : vector<8x128xf32>
    %cst_40 = arith.constant 0.000000e+00 : f32
    %63 = vector.broadcast %cst_40 : f32 to vector<8x128xf32>
    %64 = arith.cmpf ogt, %62, %63 : vector<8x128xf32>
    %65 = math.exp %62 : vector<8x128xf32>
    %cst_41 = arith.constant 1.000000e+00 : f32
    %66 = vector.broadcast %cst_41 : f32 to vector<8x128xf32>
    %67 = arith.subf %65, %66 : vector<8x128xf32>
    %68 = arith.select %64, %62, %67 : vector<8x128xi1>, vector<8x128xf32>
    %c0_42 = arith.constant 0 : index
    %c0_43 = arith.constant 0 : index
    %c0_44 = arith.constant 0 : index
    %69 = vector.load %arg5[%c0_42, %c0_43, %c0_44] : memref<2x128x256xf32, #tpu.memory_space<vmem>>, vector<1x128x256xf32>
    %70 = vector.shape_cast %69 : vector<1x128x256xf32> to vector<128x256xf32>
    %cst_45 = arith.constant dense<0.000000e+00> : vector<8x256xf32>
    %71 = tpu.matmul %68, %70, %cst_45 {dimension_numbers = #tpu.dot_dimension_numbers<[1], [0], [0], [1], [0, 0, 1, 1], [], []>, precision = #tpu.contract_precision<fp32>} : vector<8x128xf32>, vector<128x256xf32>, vector<8x256xf32> -> vector<8x256xf32>
    %c0_46 = arith.constant 0 : index
    %c0_47 = arith.constant 0 : index
    %c0_48 = arith.constant 0 : index
    %72 = vector.load %arg6[%c0_46, %c0_47, %c0_48] : memref<2x1x256xf32, #tpu.memory_space<vmem>>, vector<1x1x256xf32>
    %73 = vector.shape_cast %72 : vector<1x1x256xf32> to vector<1x256xf32>
    %74 = vector.broadcast %73 : vector<1x256xf32> to vector<8x256xf32>
    %75 = arith.addf %71, %74 : vector<8x256xf32>
    %76 = vector.extract_strided_slice %75 {offsets = [0, 128], sizes = [8, 128], strides = [1, 1]} : vector<8x256xf32> to vector<8x128xf32>
    %77 = vector.extract_strided_slice %75 {offsets = [0, 0], sizes = [8, 128], strides = [1, 1]} : vector<8x256xf32> to vector<8x128xf32>
    %cst_49 = arith.constant 0.000000e+00 : f32
    %78 = vector.broadcast %cst_49 : f32 to vector<8x128xf32>
    %79 = arith.cmpf ogt, %77, %78 : vector<8x128xf32>
    %80 = math.exp %77 : vector<8x128xf32>
    %cst_50 = arith.constant 1.000000e+00 : f32
    %81 = vector.broadcast %cst_50 : f32 to vector<8x128xf32>
    %82 = arith.subf %80, %81 : vector<8x128xf32>
    %83 = arith.select %79, %77, %82 : vector<8x128xi1>, vector<8x128xf32>
    %84 = vector.extract_strided_slice %76 {offsets = [0, 0], sizes = [8, 8], strides = [1, 1]} : vector<8x128xf32> to vector<8x8xf32>
    %c0_51 = arith.constant 0 : index
    %c0_52 = arith.constant 0 : index
    %c0_53 = arith.constant 0 : index
    %85 = vector.load %arg10[%c0_51, %c0_52, %c0_53] : memref<3x8x8xf32, #tpu.memory_space<vmem>>, vector<1x8x8xf32>
    %86 = vector.shape_cast %85 : vector<1x8x8xf32> to vector<8x8xf32>
    %87 = vector.shape_cast %84 : vector<8x8xf32> to vector<1x8x8xf32>
    tpu.vector_store %arg10[%c0_51, %c0_52, %c0_53], %87 {strides = array<i32>} : memref<3x8x8xf32, #tpu.memory_space<vmem>>, vector<1x8x8xf32>,
    %c1_54 = arith.constant 1 : index
    %c0_55 = arith.constant 0 : index
    %c0_56 = arith.constant 0 : index
    %88 = vector.load %arg5[%c1_54, %c0_55, %c0_56] : memref<2x128x256xf32, #tpu.memory_space<vmem>>, vector<1x128x256xf32>
    %89 = vector.shape_cast %88 : vector<1x128x256xf32> to vector<128x256xf32>
    %cst_57 = arith.constant dense<0.000000e+00> : vector<8x256xf32>
    %90 = tpu.matmul %83, %89, %cst_57 {dimension_numbers = #tpu.dot_dimension_numbers<[1], [0], [0], [1], [0, 0, 1, 1], [], []>, precision = #tpu.contract_precision<fp32>} : vector<8x128xf32>, vector<128x256xf32>, vector<8x256xf32> -> vector<8x256xf32>
    %c1_58 = arith.constant 1 : index
    %c0_59 = arith.constant 0 : index
    %c0_60 = arith.constant 0 : index
    %91 = vector.load %arg6[%c1_58, %c0_59, %c0_60] : memref<2x1x256xf32, #tpu.memory_space<vmem>>, vector<1x1x256xf32>
    %92 = vector.shape_cast %91 : vector<1x1x256xf32> to vector<1x256xf32>
    %93 = vector.broadcast %92 : vector<1x256xf32> to vector<8x256xf32>
    %94 = arith.addf %90, %93 : vector<8x256xf32>
    %95 = vector.extract_strided_slice %94 {offsets = [0, 128], sizes = [8, 128], strides = [1, 1]} : vector<8x256xf32> to vector<8x128xf32>
    %96 = vector.extract_strided_slice %94 {offsets = [0, 0], sizes = [8, 128], strides = [1, 1]} : vector<8x256xf32> to vector<8x128xf32>
    %cst_61 = arith.constant 0.000000e+00 : f32
    %97 = vector.broadcast %cst_61 : f32 to vector<8x128xf32>
    %98 = arith.cmpf ogt, %96, %97 : vector<8x128xf32>
    %99 = math.exp %96 : vector<8x128xf32>
    %cst_62 = arith.constant 1.000000e+00 : f32
    %100 = vector.broadcast %cst_62 : f32 to vector<8x128xf32>
    %101 = arith.subf %99, %100 : vector<8x128xf32>
    %102 = arith.select %98, %96, %101 : vector<8x128xi1>, vector<8x128xf32>
    %103 = vector.extract_strided_slice %95 {offsets = [0, 0], sizes = [8, 8], strides = [1, 1]} : vector<8x128xf32> to vector<8x8xf32>
    %c1_63 = arith.constant 1 : index
    %c0_64 = arith.constant 0 : index
    %c0_65 = arith.constant 0 : index
    %104 = vector.load %arg10[%c1_63, %c0_64, %c0_65] : memref<3x8x8xf32, #tpu.memory_space<vmem>>, vector<1x8x8xf32>
    %105 = vector.shape_cast %104 : vector<1x8x8xf32> to vector<8x8xf32>
    %106 = vector.shape_cast %103 : vector<8x8xf32> to vector<1x8x8xf32>
    tpu.vector_store %arg10[%c1_63, %c0_64, %c0_65], %106 {strides = array<i32>} : memref<3x8x8xf32, #tpu.memory_space<vmem>>, vector<1x8x8xf32>,
    %cst_66 = arith.constant dense<0.000000e+00> : vector<8x128xf32>
    %107 = tpu.matmul %102, %2, %cst_66 {dimension_numbers = #tpu.dot_dimension_numbers<[1], [0], [0], [1], [0, 0, 1, 1], [], []>, precision = #tpu.contract_precision<fp32>} : vector<8x128xf32>, vector<128x128xf32>, vector<8x128xf32> -> vector<8x128xf32>
    %108 = vector.broadcast %3 : vector<1x128xf32> to vector<8x128xf32>
    %109 = arith.addf %107, %108 : vector<8x128xf32>
    %110 = vector.extract_strided_slice %109 {offsets = [0, 0], sizes = [8, 8], strides = [1, 1]} : vector<8x128xf32> to vector<8x8xf32>
    %c2_67 = arith.constant 2 : index
    %c0_68 = arith.constant 0 : index
    %c0_69 = arith.constant 0 : index
    %111 = vector.load %arg10[%c2_67, %c0_68, %c0_69] : memref<3x8x8xf32, #tpu.memory_space<vmem>>, vector<1x8x8xf32>
    %112 = vector.shape_cast %111 : vector<1x8x8xf32> to vector<8x8xf32>
    %113 = vector.shape_cast %110 : vector<8x8xf32> to vector<1x8x8xf32>
    tpu.vector_store %arg10[%c2_67, %c0_68, %c0_69], %113 {strides = array<i32>} : memref<3x8x8xf32, #tpu.memory_space<vmem>>, vector<1x8x8xf32>,
    return
  }
  func.func @transform_0(%arg0: i32) -> (i32, i32) {
    %c0_i32 = arith.constant 0 : i32
    %c0_i32_0 = arith.constant 0 : i32
    return %arg0, %c0_i32 : i32, i32
  }
  func.func @transform_1(%arg0: i32) -> (i32, i32) {
    %c0_i32 = arith.constant 0 : i32
    %c0_i32_0 = arith.constant 0 : i32
    return %arg0, %c0_i32 : i32, i32
  }
  func.func @transform_2(%arg0: i32) -> (i32, i32) {
    %c0_i32 = arith.constant 0 : i32
    %c0_i32_0 = arith.constant 0 : i32
    %c0_i32_1 = arith.constant 0 : i32
    return %c0_i32, %c0_i32_0 : i32, i32
  }
  func.func @transform_3(%arg0: i32) -> (i32, i32) {
    %c0_i32 = arith.constant 0 : i32
    %c0_i32_0 = arith.constant 0 : i32
    %c0_i32_1 = arith.constant 0 : i32
    return %c0_i32, %c0_i32_0 : i32, i32
  }
  func.func @transform_4(%arg0: i32) -> (i32, i32, i32) {
    %c0_i32 = arith.constant 0 : i32
    %c0_i32_0 = arith.constant 0 : i32
    %c0_i32_1 = arith.constant 0 : i32
    %c0_i32_2 = arith.constant 0 : i32
    return %c0_i32, %c0_i32_0, %c0_i32_1 : i32, i32, i32
  }
  func.func @transform_5(%arg0: i32) -> (i32, i32, i32) {
    %c0_i32 = arith.constant 0 : i32
    %c0_i32_0 = arith.constant 0 : i32
    %c0_i32_1 = arith.constant 0 : i32
    %c0_i32_2 = arith.constant 0 : i32
    return %c0_i32, %c0_i32_0, %c0_i32_1 : i32, i32, i32
  }
  func.func @transform_6(%arg0: i32) -> (i32, i32) {
    %c0_i32 = arith.constant 0 : i32
    %c0_i32_0 = arith.constant 0 : i32
    %c0_i32_1 = arith.constant 0 : i32
    return %c0_i32, %c0_i32_0 : i32, i32
  }
  func.func @transform_7(%arg0: i32) -> (i32, i32) {
    %c0_i32 = arith.constant 0 : i32
    %c0_i32_0 = arith.constant 0 : i32
    %c0_i32_1 = arith.constant 0 : i32
    return %c0_i32, %c0_i32_0 : i32, i32
  }
  func.func @transform_8(%arg0: i32) -> (i32, i32, i32) {
    %c0_i32 = arith.constant 0 : i32
    %c0_i32_0 = arith.constant 0 : i32
    %c0_i32_1 = arith.constant 0 : i32
    return %c0_i32, %arg0, %c0_i32_0 : i32, i32, i32
  }
  func.func @transform_9(%arg0: i32) -> (i32, i32, i32) {
    %c0_i32 = arith.constant 0 : i32
    %c0_i32_0 = arith.constant 0 : i32
    %c0_i32_1 = arith.constant 0 : i32
    return %c0_i32, %arg0, %c0_i32_0 : i32, i32, i32
  }
}

</mosaic_0001>

<bundles_post_ra>
// kernel: tpu_custom_call.1
= control target key start
LH: loop header
LB: loop body
LE: loop exit
PB: predicated region body
PF: predicated region fallthrough
CT: control target
= control target key end

     0   :  { %15 = vsyncpa [#allocation3], 0  ;;  %s6912_s0 = inlined_call_operand.hbm [shape: f32[8,16], index: 0, kind: input, shape index: {}]   ;;  %s6913_s1 = inlined_call_operand.hbm [shape: f32[8,16], index: 1, kind: input, shape index: {}]   ;;  %s6914_s2 = inlined_call_operand.hbm [shape: f32[16,128], index: 2, kind: input, shape index: {}]   ;;  %s6915_s3 = inlined_call_operand.hbm [shape: f32[1,128], index: 3, kind: input, shape index: {}]   ;;  %s6916_s4 = inlined_call_operand.hbm [shape: f32[2,128,256], index: 4, kind: input, shape index: {}]   ;;  %s6917_s5 = inlined_call_operand.vmem [shape: f32[2,1,256], index: 5, kind: input, shape index: {}]   ;;  %s6918_s6 = inlined_call_operand.hbm [shape: f32[128,128], index: 6, kind: input, shape index: {}]   ;;  %s6919_s7 = inlined_call_operand.vmem [shape: f32[1,128], index: 7, kind: input, shape index: {}]   ;;  %s6920_s8 = inlined_call_operand.hbm [shape: f32[3,8,8], index: 8, kind: output, shape index: {0}]   ;;  %s6921_s9 = inlined_call_operand.hbm [shape: f32[3,8,8], index: 9, kind: output, shape index: {1}]  }
   0x1   :  { %16 = vsyncpa [#allocation6], 0 }
   0x2   :  { %17 = vsyncpa [#allocation9], 0 }
   0x3   :  { %18 = vsyncpa [#allocation12], 0 }
   0x4   :  { %19 = vsyncpa [#allocation4], 0  ;;  %s37_s11 = sshll.u32 %s6913_s1, 4  ;;  %s38_s11 = int_to_ptr.hbm [resolvable:$true] %s37_s11 }
   0x5   :  { %20 = vsyncpa [#allocation15], 0  ;;  %s4359_s12 = smov [#allocation5]   ;;  %s61_s16 = sshll.u32 %s6915_s3, 4  ;;  %s62_s16 = int_to_ptr.hbm [resolvable:$true] %s61_s16 }
   0x6   :  { %s39_s13 = sshll.u32 %s4359_s12, 4  ;;  %s4360_s17 = smov [#allocation8]   ;;  %s40_s13 = int_to_ptr.vmem [resolvable:$true] %s39_s13 }
   0x7   :  { %42 = dma.hbm_to_vmem [thread:$0]  %s38_s11, 128, %s40_s13, [#allocation6]  }
   0x8   :  { %s63_s18 = sshll.u32 %s4360_s17, 4  ;;  %s26_s21 = sshll.u32 %s6912_s0, 4  ;;  %s64_s18 = int_to_ptr.vmem [resolvable:$true] %s63_s18  ;;  %s27_s21 = int_to_ptr.hbm [resolvable:$true] %s26_s21 }
   0x9   :  { %66 = dma.hbm_to_vmem [thread:$0]  %s62_s16, 16, %s64_s18, [#allocation9]  }
   0xa   :  { %s47_s23 = sshll.u32 %s6914_s2, 4  ;;  %s4361_s24 = smov [#allocation2]   ;;  %s48_s23 = int_to_ptr.hbm [resolvable:$true] %s47_s23 }
   0xb   :  { %s28_s25 = sshll.u32 %s4361_s24, 4  ;;  %s4362_s3 = smov [#allocation7]   ;;  %s29_s25 = int_to_ptr.vmem [resolvable:$true] %s28_s25 }
   0xc   :  { %31 = dma.hbm_to_vmem [thread:$0]  %s27_s21, 128, %s29_s25, [#allocation3]  }
   0xd   :  { %s49_s26 = sshll.u32 %s4362_s3, 4  ;;  %s4363_s27 = smov 128   ;;  %s50_s26 = int_to_ptr.vmem [resolvable:$true] %s49_s26 }
   0xe   :  { %s4364_s28 = smov 8   ;;  %s71_s30 = sshll.u32 %s6916_s4, 4  ;;  %s72_s30 = int_to_ptr.hbm [resolvable:$true] %s71_s30 }
   0xf   :  { %55 = dma.hbm_to_vmem [thread:$0]  %s48_s23, 256, %s50_s26, [#allocation6], %s4363_s27, %s4363_s27, %s4364_s28  }
  0x10   :  { %s4365_s2 = smov [#allocation10]   ;;  %s86_s13 = sshll.u32 %s6918_s6, 4  ;;  %s87_s13 = int_to_ptr.hbm [resolvable:$true] %s86_s13 }
  0x11   :  { %s73_s10 = sshll.u32 %s4365_s2, 4  ;;  %s4366_s14 = smov 256   ;;  %s74_s10 = int_to_ptr.vmem [resolvable:$true] %s73_s10 }
  0x12   :  { %s4367_s15 = smov 16   ;;  %s4368_s16 = smov [#allocation11]  }
  0x13   :  { %79 = dma.hbm_to_vmem [thread:$0]  %s72_s30, 8192, %s74_s10, [#allocation9], %s4366_s14, %s4366_s14, %s4367_s15  }
  0x14   :  { %s88_s17 = sshll.u32 %s4368_s16, 4  ;;  %s89_s17 = int_to_ptr.vmem [resolvable:$true] %s88_s17 }
  0x15   :  { %94 = dma.hbm_to_vmem [thread:$0]  %s87_s13, 2048, %s89_s17, [#allocation12], %s4363_s27, %s4363_s27, %s4364_s28  }
  0x16   :  { %4347 = dma.done.wait [#allocation3], 128  }
  0x17   :  { %4348 = vsyncadd [#allocation3], 4294967168 }
  0x18   :  { %4349 = dma.done.wait [#allocation6], 384  }
  0x19   :  { %4350 = vsyncadd [#allocation6], 4294966912 }
  0x1a   :  { %4351 = dma.done.wait [#allocation9], 8208  }
  0x1b   :  { %4352 = vsyncadd [#allocation9], 4294959088 }
  0x1c   :  { %4353 = dma.done.wait [#allocation12], 2048  }
  0x1d   :  { %4354 = vsyncadd [#allocation12], 4294965248  ;;  %vm145_vm0 = vcmask 130048   ;;  %v122_v0 = vld [vmem:[#allocation7 + $0x8] sm:$0xff]  ;;  %v121_v1 = vld [vmem:[#allocation7] sm:$0xff]  ;;  %vm1038_vm3 = vcmask 64512  }
  0x1e   :  { %v141_v2 = vld [vmem:[#allocation2] sm:$0xff]  ;;  %v4445_v3 = vand.u32 4294901760, %v122_v0  ;;  %v4447_v4 = vand.u32 4294901760, %v121_v1  ;;  %v343_v6 = vld [vmem:[#allocation10 + $0xf0] sm:$0xff]  ;;  %s4085_s3 = sshll.u32 %s6920_s8, 4  ;;  %s4369_s26 = smov [#allocation13]   ;;  %s4086_s3 = int_to_ptr.hbm [resolvable:$true] %s4085_s3 }
  0x1f   :  { %v147_v5 = vsel %vm145_vm0, %v141_v2, 0  ;;  %v341_v7 = vld [vmem:[#allocation10 + $0xe0] sm:$0xff]  ;;  %v4450_v9 = vand.u32 4294901760, %v343_v6  ;;  %v339_v11 = vld [vmem:[#allocation10 + $0xd0] sm:$0xff]  ;;  %s4083_s0 = sshll.u32 %s4369_s26, 4  ;;  %s4370_s8 = smov [#allocation14]   ;;  %s4084_s0 = int_to_ptr.vmem [resolvable:$true] %s4083_s0 }
  0x20   :  { %v167_v8 = vand.u32 4294901760, %v147_v5  ;;  %v4452_v10 = vand.u32 4294901760, %v341_v7  ;;  %v337_v12 = vld [vmem:[#allocation10 + $0xc0] sm:$0xff]  ;;  %164 = vmatpush.msra.mxu2 %v4445_v3  ;;  %v4456_v13 = vsub.f32 %v122_v0, %v4445_v3  ;;  %v4459_v14 = vsub.f32 %v121_v1, %v4447_v4  ;;  %300 = vmatpush.msra.mxu1 %v4445_v3  ;;  %v335_v19 = vld [vmem:[#allocation10 + $0xb0] sm:$0xff]  ;;  %s4096_s2 = sshll.u32 %s4370_s8, 4  ;;  %s4098_s12 = sshll.u32 %s6921_s9, 4  ;;  %s4097_s2 = int_to_ptr.vmem [resolvable:$true] %s4096_s2  ;;  %s4099_s12 = int_to_ptr.hbm [resolvable:$true] %s4098_s12 }
  0x21   :  { %v4462_v15 = vand.u32 4294901760, %v339_v11  ;;  %v4467_v17 = vsub.f32 %v343_v6, %v4450_v9  ;;  %v4480_v22 = vand.u32 4294901760, %v337_v12  ;;  %v4494_v28 = vand.u32 4294901760, %v335_v19  ;;  %v333_v31 = vld [vmem:[#allocation10 + $0xa0] sm:$0xff]  ;;  %v331_v32 = vld [vmem:[#allocation10 + $0x90] sm:$0xff] }
  0x22   :  { %v4464_v16 = vsub.f32 %v147_v5, %v167_v8  ;;  %v4470_v18 = vsub.f32 %v341_v7, %v4452_v10  ;;  %166 = vmatpush.msra.mxu2 %v4447_v4  ;;  %v4474_v20 = vand.u32 4294901760, %v4456_v13  ;;  %v4477_v21 = vand.u32 4294901760, %v4459_v14  ;;  %302 = vmatpush.msra.mxu1 %v4447_v4  ;;  %v329_v38 = vld [vmem:[#allocation10 + $0x80] sm:$0xff]  ;;  %v327_v44 = vld [vmem:[#allocation10 + $0x70] sm:$0xff] }
  0x23   :  { %304 = vmatmul.f32.vlgmr.msra.gmra.mxu1 %v167_v8  ;;  %v394_v24 = vand.u32 4294901760, %v4467_v17  ;;  %v4491_v27 = vsub.f32 %v339_v11, %v4462_v15  ;;  %v4507_v35 = vsub.f32 %v337_v12, %v4480_v22  ;;  %v4517_v40 = vsub.f32 %v335_v19, %v4494_v28  ;;  %v325_v48 = vld [vmem:[#allocation10 + $0x60] sm:$0xff]  ;;  %v323_v54 = vld [vmem:[#allocation10 + $0x50] sm:$0xff] }
  0x24   :  { %v169_v23 = vand.u32 4294901760, %v4464_v16  ;;  %223 = vmatpush.msrb.mxu2 %v4456_v13  ;;  %v193_v25 = vsub.f32 %v4456_v13, %v4474_v20  ;;  %v199_v26 = vsub.f32 %v4459_v14, %v4477_v21  ;;  %275 = vmatpush.msra.mxu0 %v4474_v20  ;;  %v400_v30 = vand.u32 4294901760, %v4470_v18  ;;  %v321_v61 = vld [vmem:[#allocation10 + $0x40] sm:$0xff]  ;;  %v319_v5 = vld [vmem:[#allocation10 + $0x30] sm:$0xff] }
  0x25   :  { %548 = vmatpush.msrb.mxu1 %v4450_v9  ;;  %v395_v37 = vsub.f32 %v4467_v17, %v394_v24  ;;  %v406_v39 = vand.u32 4294901760, %v4491_v27  ;;  %v4519_v41 = vand.u32 4294901760, %v333_v31  ;;  %v4521_v42 = vand.u32 4294901760, %v331_v32  ;;  %v317_v19 = vld [vmem:[#allocation10 + $0x20] sm:$0xff] }
  0x26   :  { %v170_v29 = vsub.f32 %v4464_v16, %v169_v23  ;;  %226 = vmatpush.msrb.mxu2 %v4459_v14  ;;  %v4501_v33 = vand.u32 4294901760, %v193_v25  ;;  %v4503_v34 = vand.u32 4294901760, %v199_v26  ;;  %279 = vmatpush.msra.mxu0 %v4477_v21  ;;  %v401_v43 = vsub.f32 %v4470_v18, %v400_v30 }
  0x27   :  { %550 = vmatpush.msrb.mxu1 %v4452_v10  ;;  %281 = vmatmul.f32.vlgmr.msra.gmra.mxu0 %v167_v8  ;;  %v412_v45 = vand.u32 4294901760, %v4507_v35  ;;  %v4531_v46 = vsub.f32 %v333_v31, %v4519_v41  ;;  %v4533_v47 = vand.u32 4294901760, %v329_v38  ;;  %v396_v49 = vand.u32 4294901760, %v395_v37 }
  0x28   :  { %v171_v36 = vand.u32 4294901760, %v170_v29  ;;  %195 = vmatpush.msra.mxu3 %v4501_v33  ;;  %495 = vmatpush.msrb.mxu0 %v4467_v17  ;;  %v407_v50 = vsub.f32 %v4491_v27, %v406_v39  ;;  %v418_v51 = vand.u32 4294901760, %v4517_v40  ;;  %v4543_v52 = vsub.f32 %v331_v32, %v4521_v42 }
  0x29   :  { %552 = vmatpush.msrb.mxu1 %v4462_v15  ;;  %v4545_v53 = vand.u32 4294901760, %v327_v44  ;;  %v402_v55 = vand.u32 4294901760, %v401_v43  ;;  %v4549_v56 = vand.u32 4294901760, %v325_v48  ;;  %v413_v57 = vsub.f32 %v4507_v35, %v412_v45 }
  0x2a   :  { %172 = vmatmul.f32.vlgmr.msra.gmra.mxu2 %v171_v36  ;;  %201 = vmatpush.msra.mxu3 %v4503_v34  ;;  %v424_v58 = vand.u32 4294901760, %v4531_v46  ;;  %v4558_v59 = vsub.f32 %v329_v38, %v4533_v47  ;;  %v4561_v60 = vand.u32 4294901760, %v323_v54  ;;  %v408_v62 = vand.u32 4294901760, %v407_v50 }
  0x2b   :  { %498 = vmatpush.msrb.mxu0 %v4470_v18  ;;  %203 = vmatmul.f32.vlgmr.msra.gmra.mxu3 %v167_v8  ;;  %v419_v63 = vsub.f32 %v4517_v40, %v418_v51  ;;  %v430_v0 = vand.u32 4294901760, %v4543_v52  ;;  %v4570_v1 = vsub.f32 %v327_v44, %v4545_v53  ;;  %v4574_v2 = vsub.f32 %v325_v48, %v4549_v56  ;;  %v313_v44 = vld [vmem:[#allocation10] sm:$0xff] }
  0x2c   :  { %352 = vmatpush.msra.mxu2 %v4450_v9  ;;  %248 = vmatpush.msrb.mxu3 %v4445_v3  ;;  %v414_v6 = vand.u32 4294901760, %v413_v57  ;;  %v425_v7 = vsub.f32 %v4531_v46, %v424_v58  ;;  %v436_v8 = vand.u32 4294901760, %v4558_v59  ;;  %v4582_v11 = vand.u32 4294901760, %v321_v61 }
  0x2d   :  { %501 = vmatpush.msrb.mxu0 %v4491_v27  ;;  %554 = vmatpush.msrb.mxu1 %v4480_v22  ;;  %v4588_v12 = vsub.f32 %v323_v54, %v4561_v60  ;;  %v420_v25 = vand.u32 4294901760, %v419_v63  ;;  %v431_v26 = vsub.f32 %v4543_v52, %v430_v0  ;;  %v442_v29 = vand.u32 4294901760, %v4570_v1 }
  0x2e   :  { %354 = vmatpush.msra.mxu2 %v4452_v10  ;;  %250 = vmatpush.msrb.mxu3 %v4447_v4  ;;  %v4595_v31 = vand.u32 4294901760, %v319_v5  ;;  %v426_v32 = vand.u32 4294901760, %v425_v7  ;;  %v437_v36 = vsub.f32 %v4558_v59, %v436_v8  ;;  %v4605_v37 = vsub.f32 %v321_v61, %v4582_v11 }
  0x2f   :  { %504 = vmatpush.msrb.mxu0 %v4507_v35  ;;  %556 = vmatpush.msrb.mxu1 %v4494_v28  ;;  %v4607_v38 = vand.u32 4294901760, %v317_v19  ;;  %v454_v43 = vand.u32 4294901760, %v4588_v12  ;;  %v432_v48 = vand.u32 4294901760, %v431_v26  ;;  %v4631_v63 = vand.u32 4294901760, %v313_v44 }
  0x30   :  { %397 = vmatpush.msra.mxu3 %v396_v49  ;;  %356 = vmatpush.msra.mxu2 %v4462_v15  ;;  %v443_v49 = vsub.f32 %v4570_v1, %v442_v29  ;;  %v4617_v50 = vsub.f32 %v319_v5, %v4595_v31  ;;  %v438_v57 = vand.u32 4294901760, %v437_v36  ;;  %v460_v61 = vand.u32 4294901760, %v4605_v37 }
  0x31   :  { %507 = vmatpush.msrb.mxu0 %v4517_v40  ;;  %558 = vmatpush.msrb.mxu1 %v4519_v41  ;;  %v4651_v36 = vsub.f32 %v313_v44, %v4631_v63 }
  0x32   :  { %229 = vmatmul.f32.vlgmr.msrb.gmra.mxu2 %v4464_v16  ;;  %403 = vmatpush.msra.mxu3 %v402_v55  ;;  %v448_v16 = vand.u32 4294901760, %v4574_v2  ;;  %v444_v5 = vand.u32 4294901760, %v443_v49  ;;  %v466_v7 = vand.u32 4294901760, %v4617_v50  ;;  %v461_v26 = vsub.f32 %v4605_v37, %v460_v61 }
  0x33   :  { %510 = vmatpush.msrb.mxu0 %v4531_v46  ;;  %358 = vmatpush.msra.mxu2 %v4480_v22 }
  0x34   :  { %254 = vmatmul.f32.vlgmr.msrb.gmra.mxu3 %v169_v23  ;;  %560 = vmatpush.msrb.mxu1 %v4521_v42  ;;  %v315_v23 = vld [vmem:[#allocation10 + $0x10] sm:$0xff]  ;;  %v449_v55 = vsub.f32 %v4574_v2, %v448_v16  ;;  %v462_v44 = vand.u32 4294901760, %v461_v26 }
  0x35   :  { %409 = vmatpush.msra.mxu3 %v408_v62  ;;  %513 = vmatpush.msrb.mxu0 %v4543_v52  ;;  %v4619_v54 = vand.u32 4294901760, %v315_v23  ;;  %v4629_v62 = vsub.f32 %v317_v19, %v4607_v38 }
  0x36   :  { %360 = vmatpush.msra.mxu2 %v4494_v28  ;;  %562 = vmatpush.msrb.mxu1 %v4533_v47  ;;  %v450_v19 = vand.u32 4294901760, %v449_v55 }
  0x37   :  { %415 = vmatpush.msra.mxu3 %v414_v6  ;;  %516 = vmatpush.msrb.mxu0 %v4558_v59  ;;  %v455_v6 = vsub.f32 %v4588_v12, %v454_v43 }
  0x38   :  { %362 = vmatpush.msra.mxu2 %v4519_v41  ;;  %564 = vmatpush.msrb.mxu1 %v4545_v53 }
  0x39   :  { %421 = vmatpush.msra.mxu3 %v420_v25  ;;  %519 = vmatpush.msrb.mxu0 %v4570_v1  ;;  %v4641_v25 = vsub.f32 %v315_v23, %v4619_v54  ;;  %v456_v23 = vand.u32 4294901760, %v455_v6  ;;  %v332_v1 = vld [vmem:[#allocation10 + $0x98] sm:$0xff] }
  0x3a   :  { %364 = vmatpush.msra.mxu2 %v4521_v42  ;;  %566 = vmatpush.msrb.mxu1 %v4549_v56 }
  0x3b   :  { %427 = vmatpush.msra.mxu3 %v426_v32  ;;  %522 = vmatpush.msrb.mxu0 %v4574_v2  ;;  %v472_v32 = vand.u32 4294901760, %v4629_v62  ;;  %v478_v49 = vand.u32 4294901760, %v4641_v25 }
  0x3c   :  { %366 = vmatpush.msra.mxu2 %v4533_v47  ;;  %568 = vmatpush.msrb.mxu1 %v4561_v60 }
  0x3d   :  { %433 = vmatpush.msra.mxu3 %v432_v48  ;;  %525 = vmatpush.msrb.mxu0 %v4588_v12  ;;  %v467_v48 = vsub.f32 %v4617_v50, %v466_v7  ;;  %v473_v55 = vsub.f32 %v4629_v62, %v472_v32  ;;  %v479_v6 = vsub.f32 %v4641_v25, %v478_v49 }
  0x3e   :  { %368 = vmatpush.msra.mxu2 %v4545_v53  ;;  %570 = vmatpush.msrb.mxu1 %v4582_v11 }
  0x3f   :  { %439 = vmatpush.msra.mxu3 %v438_v57  ;;  %528 = vmatpush.msrb.mxu0 %v4605_v37  ;;  %v484_v57 = vand.u32 4294901760, %v4651_v36  ;;  %v480_v26 = vand.u32 4294901760, %v479_v6 }
  0x40   :  { %370 = vmatpush.msra.mxu2 %v4549_v56  ;;  %572 = vmatpush.msrb.mxu1 %v4595_v31 }
  0x41   :  { %445 = vmatpush.msra.mxu3 %v444_v5  ;;  %531 = vmatpush.msrb.mxu0 %v4617_v50  ;;  %v468_v5 = vand.u32 4294901760, %v467_v48 }
  0x42   :  { %372 = vmatpush.msra.mxu2 %v4561_v60  ;;  %574 = vmatpush.msrb.mxu1 %v4607_v38 }
  0x43   :  { %451 = vmatpush.msra.mxu3 %v450_v19  ;;  %534 = vmatpush.msrb.mxu0 %v4629_v62  ;;  %v474_v19 = vand.u32 4294901760, %v473_v55  ;;  %v485_v62 = vsub.f32 %v4651_v36, %v484_v57 }
  0x44   :  { %374 = vmatpush.msra.mxu2 %v4582_v11  ;;  %576 = vmatpush.msrb.mxu1 %v4619_v54 }
  0x45   :  { %457 = vmatpush.msra.mxu3 %v456_v23  ;;  %537 = vmatpush.msrb.mxu0 %v4641_v25  ;;  %v486_v25 = vand.u32 4294901760, %v485_v62  ;;  %v326_v23 = vld [vmem:[#allocation10 + $0x68] sm:$0xff] }
  0x46   :  { %376 = vmatpush.msra.mxu2 %v4595_v31  ;;  %578 = vmatpush.msrb.mxu1 %v4631_v63 }
  0x47   :  { %463 = vmatpush.msra.mxu3 %v462_v44  ;;  %540 = vmatpush.msrb.mxu0 %v4651_v36  ;;  %v4798_v44 = vand.u32 4294901760, %v326_v23 }
  0x48   :  { %378 = vmatpush.msra.mxu2 %v4607_v38 }
  0x49   :  { %469 = vmatpush.msra.mxu3 %v468_v5  ;;  %v324_v5 = vld [vmem:[#allocation10 + $0x58] sm:$0xff] }
  0x4a   :  { %380 = vmatpush.msra.mxu2 %v4619_v54  ;;  %v4806_v62 = vand.u32 4294901760, %v324_v5 }
  0x4b   :  { %475 = vmatpush.msra.mxu3 %v474_v19 }
  0x4c   :  { %382 = vmatpush.msra.mxu2 %v4631_v63 }
  0x4d   :  { %481 = vmatpush.msra.mxu3 %v480_v26  ;;  %v4809_v26 = vsub.f32 %v326_v23, %v4798_v44 }
  0x4e   :  { %589 = vmatpush.msrb.mxu2 %v394_v24 }
  0x4f   :  { %487 = vmatpush.msra.mxu3 %v486_v25 }
  0x50   :  { %593 = vmatpush.msrb.mxu2 %v400_v30  ;;  %v338_v30 = vld [vmem:[#allocation10 + $0xc8] sm:$0xff] }
  0x51   :  { %656 = vmatpush.msrb.mxu3 %v4450_v9  ;;  %v344_v9 = vld [vmem:[#allocation10 + $0xf8] sm:$0xff]  ;;  %v4739_v40 = vand.u32 4294901760, %v338_v30 }
  0x52   :  { %597 = vmatpush.msrb.mxu2 %v406_v39 }
  0x53   :  { %658 = vmatpush.msrb.mxu3 %v4452_v10  ;;  %v4719_v10 = vand.u32 4294901760, %v344_v9  ;;  %v4752_v52 = vsub.f32 %v338_v30, %v4739_v40 }
  0x54   :  { %601 = vmatpush.msrb.mxu2 %v412_v45 }
  0x55   :  { %660 = vmatpush.msrb.mxu3 %v4462_v15  ;;  %v342_v15 = vld [vmem:[#allocation10 + $0xe8] sm:$0xff]  ;;  %693 = vmatpush.msra.mxu0 %v4719_v10  ;;  %v4723_v17 = vsub.f32 %v344_v9, %v4719_v10 }
  0x56   :  { %605 = vmatpush.msrb.mxu2 %v418_v51  ;;  %v4725_v18 = vand.u32 4294901760, %v342_v15  ;;  %v322_v9 = vld [vmem:[#allocation10 + $0x48] sm:$0xff] }
  0x57   :  { %662 = vmatpush.msrb.mxu3 %v4480_v22  ;;  %v340_v22 = vld [vmem:[#allocation10 + $0xd8] sm:$0xff]  ;;  %v735_v24 = vand.u32 4294901760, %v4723_v17  ;;  %v4819_v30 = vand.u32 4294901760, %v322_v9 }
  0x58   :  { %609 = vmatpush.msrb.mxu2 %v424_v58  ;;  %695 = vmatpush.msra.mxu0 %v4725_v18  ;;  %v4729_v27 = vand.u32 4294901760, %v340_v22 }
  0x59   :  { %664 = vmatpush.msrb.mxu3 %v4494_v28  ;;  %v4732_v28 = vsub.f32 %v342_v15, %v4725_v18  ;;  %v736_v35 = vsub.f32 %v4723_v17, %v735_v24 }
  0x5a   :  { %613 = vmatpush.msrb.mxu2 %v430_v0  ;;  %697 = vmatpush.msra.mxu0 %v4729_v27  ;;  %v753_v0 = vand.u32 4294901760, %v4752_v52 }
  0x5b   :  { %666 = vmatpush.msrb.mxu3 %v4519_v41  ;;  %v741_v39 = vand.u32 4294901760, %v4732_v28  ;;  %v4742_v41 = vsub.f32 %v340_v22, %v4729_v27  ;;  %v737_v45 = vand.u32 4294901760, %v736_v35  ;;  %v6926_v22 = vand.u32 4294901760, %v4809_v26 }
  0x5c   :  { %617 = vmatpush.msrb.mxu2 %v436_v8  ;;  %699 = vmatpush.msra.mxu0 %v4739_v40  ;;  %v4822_v35 = vsub.f32 %v324_v5, %v4806_v62 }
  0x5d   :  { %668 = vmatpush.msrb.mxu3 %v4521_v42  ;;  %v336_v42 = vld [vmem:[#allocation10 + $0xb8] sm:$0xff]  ;;  %v742_v46 = vsub.f32 %v4732_v28, %v741_v39  ;;  %738 = vmatpush.msra.mxu1 %v737_v45 }
  0x5e   :  { %621 = vmatpush.msrb.mxu2 %v442_v29  ;;  %v4749_v51 = vand.u32 4294901760, %v336_v42  ;;  %v754_v29 = vsub.f32 %v4752_v52, %v753_v0  ;;  %v320_v45 = vld [vmem:[#allocation10 + $0x38] sm:$0xff] }
  0x5f   :  { %670 = vmatpush.msrb.mxu3 %v4533_v47  ;;  %v747_v47 = vand.u32 4294901760, %v4742_v41 }
  0x60   :  { %625 = vmatpush.msrb.mxu2 %v448_v16  ;;  %701 = vmatpush.msra.mxu0 %v4749_v51  ;;  %v755_v50 = vand.u32 4294901760, %v754_v29 }
  0x61   :  { %672 = vmatpush.msrb.mxu3 %v4545_v53  ;;  %v334_v53 = vld [vmem:[#allocation10 + $0xa8] sm:$0xff]  ;;  %v748_v58 = vsub.f32 %v4742_v41, %v747_v47 }
  0x62   :  { %629 = vmatpush.msrb.mxu2 %v454_v43  ;;  %v4758_v59 = vand.u32 4294901760, %v334_v53 }
  0x63   :  { %674 = vmatpush.msrb.mxu3 %v4549_v56  ;;  %v743_v56 = vand.u32 4294901760, %v742_v46  ;;  %v749_v2 = vand.u32 4294901760, %v748_v58  ;;  %v4829_v58 = vand.u32 4294901760, %v320_v45 }
  0x64   :  { %633 = vmatpush.msrb.mxu2 %v460_v61  ;;  %703 = vmatpush.msra.mxu0 %v4758_v59  ;;  %v4769_v12 = vsub.f32 %v334_v53, %v4758_v59  ;;  %v790_v53 = vsub.f32 %v4809_v26, %v6926_v22 }
  0x65   :  { %676 = vmatpush.msrb.mxu3 %v4561_v60  ;;  %v4761_v60 = vsub.f32 %v336_v42, %v4749_v51  ;;  %744 = vmatpush.msra.mxu1 %v743_v56  ;;  %v6925_v56 = vand.u32 4294901760, %v4822_v35 }
  0x66   :  { %637 = vmatpush.msrb.mxu2 %v466_v7  ;;  %v6931_v37 = vand.u32 4294901760, %v4769_v12  ;;  %v791_v29 = vand.u32 4294901760, %v790_v53 }
  0x67   :  { %678 = vmatpush.msrb.mxu3 %v4582_v11  ;;  %v6932_v8 = vand.u32 4294901760, %v4761_v60  ;;  %v4766_v11 = vand.u32 4294901760, %v332_v1  ;;  %750 = vmatpush.msra.mxu1 %v749_v2  ;;  %v318_v2 = vld [vmem:[#allocation10 + $0x28] sm:$0xff] }
  0x68   :  { %641 = vmatpush.msrb.mxu2 %v472_v32 }
  0x69   :  { %680 = vmatpush.msrb.mxu3 %v4595_v31  ;;  %v330_v31 = vld [vmem:[#allocation10 + $0x88] sm:$0xff]  ;;  %v760_v16 = vsub.f32 %v4761_v60, %v6932_v8  ;;  %705 = vmatpush.msra.mxu0 %v4766_v11  ;;  %v4782_v43 = vsub.f32 %v332_v1, %v4766_v11  ;;  %v4832_v1 = vsub.f32 %v322_v9, %v4819_v30 }
  0x6a   :  { %645 = vmatpush.msrb.mxu2 %v478_v49  ;;  %756 = vmatpush.msra.mxu1 %v755_v50  ;;  %v4841_v50 = vsub.f32 %v320_v45, %v4829_v58  ;;  %v314_v9 = vld [vmem:[#allocation10 + $0x8] sm:$0xff] }
  0x6b   :  { %682 = vmatpush.msrb.mxu3 %v4607_v38  ;;  %v4779_v38 = vand.u32 4294901760, %v330_v31  ;;  %v761_v61 = vand.u32 4294901760, %v760_v16  ;;  %v6930_v7 = vand.u32 4294901760, %v4782_v43  ;;  %v4838_v16 = vand.u32 4294901760, %v318_v2 }
  0x6c   :  { %649 = vmatpush.msrb.mxu2 %v484_v57  ;;  %v6923_v23 = vand.u32 4294901760, %v4841_v50 }
  0x6d   :  { %684 = vmatpush.msrb.mxu3 %v4619_v54  ;;  %v328_v54 = vld [vmem:[#allocation10 + $0x78] sm:$0xff]  ;;  %707 = vmatpush.msra.mxu0 %v4779_v38  ;;  %v4792_v36 = vsub.f32 %v330_v31, %v4779_v38  ;;  %v772_v49 = vsub.f32 %v4782_v43, %v6930_v7  ;;  %v796_v31 = vsub.f32 %v4822_v35, %v6925_v56 }
  0x6e   :  { %v4789_v32 = vand.u32 4294901760, %v328_v54  ;;  %762 = vmatpush.msra.mxu1 %v761_v61  ;;  %v316_v61 = vld [vmem:[#allocation10 + $0x18] sm:$0xff] }
  0x6f   :  { %686 = vmatpush.msrb.mxu3 %v4631_v63  ;;  %v766_v63 = vsub.f32 %v4769_v12, %v6931_v37  ;;  %v6929_v57 = vand.u32 4294901760, %v4792_v36  ;;  %v773_v6 = vand.u32 4294901760, %v772_v49  ;;  %v4849_v49 = vsub.f32 %v318_v2, %v4838_v16 }
  0x70   :  { %709 = vmatpush.msra.mxu0 %v4789_v32  ;;  %v4801_v55 = vsub.f32 %v328_v54, %v4789_v32  ;;  %v6924_v54 = vand.u32 4294901760, %v4832_v1 }
  0x71   :  { %v767_v48 = vand.u32 4294901760, %v766_v63  ;;  %v778_v25 = vsub.f32 %v4792_v36, %v6929_v57  ;;  %v797_v63 = vand.u32 4294901760, %v796_v31 }
  0x72   :  { %711 = vmatpush.msra.mxu0 %v4798_v44  ;;  %v6928_v19 = vand.u32 4294901760, %v4801_v55  ;;  %v802_v5 = vsub.f32 %v4832_v1, %v6924_v54 }
  0x73   :  { %768 = vmatpush.msra.mxu1 %v767_v48  ;;  %v779_v42 = vand.u32 4294901760, %v778_v25  ;;  %v4846_v48 = vand.u32 4294901760, %v316_v61  ;;  %v6922_v25 = vand.u32 4294901760, %v4849_v49 }
  0x74   :  { %v784_v15 = vsub.f32 %v4801_v55, %v6928_v19  ;;  %713 = vmatpush.msra.mxu0 %v4806_v62 }
  0x75   :  { %774 = vmatpush.msra.mxu1 %v773_v6  ;;  %v808_v6 = vsub.f32 %v4841_v50, %v6923_v23  ;;  %v4862_v45 = vsub.f32 %v316_v61, %v4846_v48  ;;  %v814_v53 = vsub.f32 %v4849_v49, %v6922_v25 }
  0x76   :  { %v785_v46 = vand.u32 4294901760, %v784_v15  ;;  %715 = vmatpush.msra.mxu0 %v4819_v30  ;;  %v803_v15 = vand.u32 4294901760, %v802_v5  ;;  %v4139_v5 = vld [vmem:[#allocation8] ss:$0 sm:$0xff] }
  0x77   :  { %780 = vmatpush.msra.mxu1 %v779_v42  ;;  %v4859_v42 = vand.u32 4294901760, %v314_v9  ;;  %v6927_v2 = vand.u32 4294901760, %v4862_v45  ;;  %v815_v31 = vand.u32 4294901760, %v814_v53 }
  0x78   :  { %717 = vmatpush.msra.mxu0 %v4829_v58 }
  0x79   :  { %786 = vmatpush.msra.mxu1 %v785_v46  ;;  %v809_v46 = vand.u32 4294901760, %v808_v6  ;;  %v820_v61 = vsub.f32 %v4862_v45, %v6927_v2 }
  0x7a   :  { %719 = vmatpush.msra.mxu0 %v4838_v16 }
  0x7b   :  { %792 = vmatpush.msra.mxu1 %v791_v29  ;;  %v4870_v29 = vsub.f32 %v314_v9, %v4859_v42  ;;  %v821_v6 = vand.u32 4294901760, %v820_v61 }
  0x7c   :  { %721 = vmatpush.msra.mxu0 %v4846_v48 }
  0x7d   :  { %798 = vmatpush.msra.mxu1 %v797_v63  ;;  %v6933_v63 = vand.u32 4294901760, %v4870_v29 }
  0x7e   :  { %723 = vmatpush.msra.mxu0 %v4859_v42 }
  0x7f   :  { %804 = vmatpush.msra.mxu1 %v803_v15  ;;  %v826_v15 = vsub.f32 %v4870_v29, %v6933_v63 }
  0x81   :  { %810 = vmatpush.msra.mxu1 %v809_v46  ;;  %v827_v23 = vand.u32 4294901760, %v826_v15  ;;  %v1055_v15 = vld [vmem:[#allocation10 + $0x170] sm:$0xff] }
  0x83   :  { %816 = vmatpush.msra.mxu1 %v815_v31 }
  0x85   :  { %822 = vmatpush.msra.mxu1 %v821_v6 }
  0x87   :  { %828 = vmatpush.msra.mxu1 %v827_v23  ;;  %v1057_v23 = vld [vmem:[#allocation10 + $0x180] sm:$0xff] }
  0xa0   :  { %v305_v57 = vpop.f32.mrf.mxu1 }
  0xa4   :  { %v282_v2 = vpop.f32.mrf.mxu0 }
  0xad   :  { %v173_v25 = vpop.f32.mrf.mxu2 }
  0xae   :  { %v204_v9 = vpop.f32.mrf.mxu3  ;;  %v174_v54 = vadd.f32 %v4139_v5, %v173_v25 }
  0xb0   :  { %v205_v46 = vadd.f32 %v204_v9, %v174_v54  ;;  %v7074_v9 = vand.u32 4294901760, %v4849_v49 }
  0xb5   :  { %v230_v53 = vpop.f32.mrf.mxu2 }
  0xb6   :  { %v231_v56 = vadd.f32 %v230_v53, %v205_v46  ;;  %v5004_v53 = vand.u32 4294901760, %v1057_v23 }
  0xb7   :  { %v255_v22 = vpop.f32.mrf.mxu3 }
  0xb8   :  { %v256_v19 = vadd.f32 %v255_v22, %v231_v56  ;;  %v7072_v56 = vand.u32 4294901760, %v4832_v1 }
  0xba   :  { %v283_v7 = vadd.f32 %v282_v2, %v256_v19  ;;  %v7073_v2 = vand.u32 4294901760, %v4841_v50 }
  0xbc   :  { %v306_v31 = vadd.f32 %v305_v57, %v283_v7  ;;  %v7071_v7 = vand.u32 4294901760, %v4822_v35 }
  0xbe   :  { %v309_v61 = vmul.f32 1.442695, %v306_v31  ;;  %vm308_vm1 = vcmp.gt.f32.partialorder %v306_v31, 0.0 }
  0xc0   :  { %4141 = vpow2.f32 %v309_v61 }
  0xc6   :  { %v4142_v37 = vpop.eup %4141 }
  0xc7   :  { %v4119_v8 = vadd.f32 -1.0, %v4142_v37 }
  0xc9   :  { %v312_v63 = vsel %vm308_vm1, %v306_v31, %v4119_v8  ;;  %v1053_v31 = vld [vmem:[#allocation10 + $0x160] sm:$0xff] }
  0xca   :  { %v4879_v6 = vand.u32 4294901760, %v312_v63 }
  0xcc   :  { %v4882_v25 = vsub.f32 %v312_v63, %v4879_v6  ;;  %489 = vmatmul.f32.vlgmr.msra.gmra.mxu3 %v4879_v6 }
  0xcd   :  { %889 = vmatpush.msra.mxu3 %v4719_v10 }
  0xce   :  { %543 = vmatmul.f32.vlgmr.msrb.gmra.mxu0 %v4882_v25  ;;  %v4888_v19 = vand.u32 4294901760, %v4882_v25 }
  0xcf   :  { %891 = vmatpush.msra.mxu3 %v4725_v18  ;;  %930 = vmatpush.msrb.mxu0 %v735_v24  ;;  %v7067_v24 = vand.u32 4294901760, %v4782_v43 }
  0xd0   :  { %582 = vmatmul.f32.vlgmr.msrb.gmra.mxu1 %v4888_v19  ;;  %v386_v8 = vsub.f32 %v4882_v25, %v4888_v19 }
  0xd1   :  { %893 = vmatpush.msra.mxu3 %v4729_v27  ;;  %934 = vmatpush.msrb.mxu0 %v741_v39  ;;  %v1067_v39 = vld [vmem:[#allocation10 + $0x1d0] sm:$0xff] }
  0xd2   :  { %997 = vmatpush.msrb.mxu1 %v4719_v10  ;;  %v387_v37 = vand.u32 4294901760, %v386_v8  ;;  %v7065_v10 = vand.u32 4294901760, %v4761_v60 }
  0xd3   :  { %895 = vmatpush.msra.mxu3 %v4739_v40  ;;  %938 = vmatpush.msrb.mxu0 %v747_v47  ;;  %v1065_v47 = vld [vmem:[#allocation10 + $0x1c0] sm:$0xff] }
  0xd4   :  { %999 = vmatpush.msrb.mxu1 %v4725_v18  ;;  %388 = vmatmul.f32.vlgmr.msra.gmra.mxu2 %v387_v37  ;;  %v1071_v18 = vld [vmem:[#allocation10 + $0x1f0] sm:$0xff] }
  0xd5   :  { %688 = vmatmul.f32.vlgmr.msrb.gmra.mxu3 %v4879_v6  ;;  %836 = vmatpush.msra.mxu2 %v4723_v17  ;;  %v7066_v17 = vand.u32 4294901760, %v4769_v12 }
  0xd6   :  { %897 = vmatpush.msra.mxu3 %v4749_v51  ;;  %942 = vmatpush.msrb.mxu0 %v753_v0  ;;  %v1063_v0 = vld [vmem:[#allocation10 + $0x1b0] sm:$0xff] }
  0xd7   :  { %1001 = vmatpush.msrb.mxu1 %v4729_v27  ;;  %729 = vmatmul.f32.vlgmr.msra.gmra.mxu0 %v387_v37  ;;  %v1069_v27 = vld [vmem:[#allocation10 + $0x1e0] sm:$0xff]  ;;  %v4965_v22 = vand.u32 4294901760, %v1063_v0 }
  0xd8   :  { %839 = vmatpush.msra.mxu2 %v4732_v28  ;;  %899 = vmatpush.msra.mxu3 %v4758_v59  ;;  %v4927_v28 = vand.u32 4294901760, %v1071_v18 }
  0xd9   :  { %946 = vmatpush.msrb.mxu0 %v7065_v10  ;;  %1003 = vmatpush.msrb.mxu1 %v4739_v40  ;;  %v7068_v40 = vand.u32 4294901760, %v4792_v36  ;;  %v4988_v63 = vsub.f32 %v1063_v0, %v4965_v22  ;;  %v5018_v10 = vand.u32 4294901760, %v1055_v15 }
  0xda   :  { %830 = vmatmul.f32.vlgmr.msra.gmra.mxu1 %v4879_v6  ;;  %842 = vmatpush.msra.mxu2 %v4742_v41  ;;  %v4934_v41 = vand.u32 4294901760, %v1069_v27 }
  0xdb   :  { %901 = vmatpush.msra.mxu3 %v4766_v11  ;;  %950 = vmatpush.msrb.mxu0 %v7066_v17  ;;  %v1147_v8 = vand.u32 4294901760, %v4988_v63  ;;  %v1051_v17 = vld [vmem:[#allocation10 + $0x150] sm:$0xff] }
  0xdc   :  { %1005 = vmatpush.msrb.mxu1 %v4749_v51  ;;  %845 = vmatpush.msra.mxu2 %v4752_v52  ;;  %v4938_v51 = vand.u32 4294901760, %v1067_v39  ;;  %v7069_v52 = vand.u32 4294901760, %v4801_v55 }
  0xdd   :  { %903 = vmatpush.msra.mxu3 %v4779_v38  ;;  %954 = vmatpush.msrb.mxu0 %v7067_v24 }
  0xde   :  { %1007 = vmatpush.msrb.mxu1 %v4758_v59  ;;  %651 = vmatmul.f32.vlgmr.msrb.gmra.mxu2 %v4879_v6  ;;  %v4944_v59 = vsub.f32 %v1071_v18, %v4927_v28  ;;  %v7076_v18 = vand.u32 4294901760, %v4870_v29 }
  0xdf   :  { %848 = vmatpush.msra.mxu2 %v4761_v60  ;;  %905 = vmatpush.msra.mxu3 %v4789_v32  ;;  %v4948_v60 = vand.u32 4294901760, %v1065_v47 }
  0xe0   :  { %958 = vmatpush.msrb.mxu0 %v7068_v40  ;;  %1009 = vmatpush.msrb.mxu1 %v4766_v11  ;;  %v7070_v11 = vand.u32 4294901760, %v4809_v26  ;;  %v1123_v57 = vand.u32 4294901760, %v4944_v59 }
  0xe1   :  { %851 = vmatpush.msra.mxu2 %v4769_v12  ;;  %907 = vmatpush.msra.mxu3 %v4798_v44  ;;  %v4954_v12 = vsub.f32 %v1069_v27, %v4934_v41  ;;  %v5030_v27 = vsub.f32 %v1057_v23, %v5004_v53 }
  0xe2   :  { %962 = vmatpush.msrb.mxu0 %v7069_v52  ;;  %1011 = vmatpush.msrb.mxu1 %v4779_v38  ;;  %v4959_v38 = vsub.f32 %v1067_v39, %v4938_v51  ;;  %v5032_v39 = vand.u32 4294901760, %v1053_v31  ;;  %v5044_v52 = vand.u32 4294901760, %v1051_v17 }
  0xe3   :  { %854 = vmatpush.msra.mxu2 %v4782_v43  ;;  %909 = vmatpush.msra.mxu3 %v4806_v62  ;;  %v1061_v43 = vld [vmem:[#allocation10 + $0x1a0] sm:$0xff]  ;;  %v1129_v54 = vand.u32 4294901760, %v4954_v12  ;;  %v1165_v0 = vand.u32 4294901760, %v5030_v27 }
  0xe4   :  { %966 = vmatpush.msrb.mxu0 %v7070_v11  ;;  %1013 = vmatpush.msrb.mxu1 %v4789_v32  ;;  %v4970_v32 = vsub.f32 %v1065_v47, %v4948_v60  ;;  %v5042_v47 = vsub.f32 %v1055_v15, %v5018_v10  ;;  %v5054_v11 = vsub.f32 %v1053_v31, %v5032_v39 }
  0xe5   :  { %857 = vmatpush.msra.mxu2 %v4792_v36  ;;  %911 = vmatpush.msra.mxu3 %v4819_v30  ;;  %v1059_v36 = vld [vmem:[#allocation10 + $0x190] sm:$0xff] }
  0xe6   :  { %970 = vmatpush.msrb.mxu0 %v7071_v7  ;;  %1015 = vmatpush.msrb.mxu1 %v4798_v44  ;;  %v4976_v44 = vand.u32 4294901760, %v1061_v43  ;;  %v4990_v5 = vand.u32 4294901760, %v1059_v36  ;;  %v1171_v7 = vand.u32 4294901760, %v5042_v47 }
  0xe7   :  { %860 = vmatpush.msra.mxu2 %v4801_v55  ;;  %913 = vmatpush.msra.mxu3 %v4829_v58  ;;  %v1135_v55 = vand.u32 4294901760, %v4959_v38 }
  0xe8   :  { %974 = vmatpush.msrb.mxu0 %v7072_v56  ;;  %1017 = vmatpush.msrb.mxu1 %v4806_v62  ;;  %v1124_v62 = vsub.f32 %v4944_v59, %v1123_v57  ;;  %v5002_v46 = vsub.f32 %v1061_v43, %v4976_v44  ;;  %v5016_v37 = vsub.f32 %v1059_v36, %v4990_v5  ;;  %v1177_v56 = vand.u32 4294901760, %v5054_v11 }
  0xe9   :  { %863 = vmatpush.msra.mxu2 %v4809_v26  ;;  %915 = vmatpush.msra.mxu3 %v4838_v16  ;;  %v1141_v26 = vand.u32 4294901760, %v4970_v32  ;;  %v5066_v36 = vsub.f32 %v1051_v17, %v5044_v52 }
  0xea   :  { %978 = vmatpush.msrb.mxu0 %v7073_v2  ;;  %1019 = vmatpush.msrb.mxu1 %v4819_v30  ;;  %v1130_v30 = vsub.f32 %v4954_v12, %v1129_v54  ;;  %v1125_v61 = vand.u32 4294901760, %v1124_v62  ;;  %v1153_v24 = vand.u32 4294901760, %v5002_v46  ;;  %v1159_v40 = vand.u32 4294901760, %v5016_v37 }
  0xeb   :  { %866 = vmatpush.msra.mxu2 %v4822_v35  ;;  %917 = vmatpush.msra.mxu3 %v4846_v48  ;;  %v1136_v35 = vsub.f32 %v4959_v38, %v1135_v55  ;;  %v1172_v62 = vsub.f32 %v5042_v47, %v1171_v7  ;;  %v1183_v15 = vand.u32 4294901760, %v5066_v36 }
  0xec   :  { %982 = vmatpush.msrb.mxu0 %v7074_v9  ;;  %1021 = vmatpush.msrb.mxu1 %v4829_v58  ;;  %v7075_v58 = vand.u32 4294901760, %v4862_v45 }
  0xed   :  { %869 = vmatpush.msra.mxu2 %v4832_v1  ;;  %919 = vmatpush.msra.mxu3 %v4859_v42  ;;  %v1142_v1 = vsub.f32 %v4970_v32, %v1141_v26  ;;  %v1173_v31 = vand.u32 4294901760, %v1172_v62 }
  0xee   :  { %986 = vmatpush.msrb.mxu0 %v7075_v58  ;;  %1023 = vmatpush.msrb.mxu1 %v4838_v16  ;;  %v1131_v16 = vand.u32 4294901760, %v1130_v30  ;;  %v1178_v30 = vsub.f32 %v5054_v11, %v1177_v56  ;;  %v1184_v58 = vsub.f32 %v5066_v36, %v1183_v15 }
  0xef   :  { %923 = vmatmul.f32.vlgmr.msra.gmra.mxu3 %v4888_v19  ;;  %872 = vmatpush.msra.mxu2 %v4841_v50  ;;  %v1137_v50 = vand.u32 4294901760, %v1136_v35  ;;  %v1049_v19 = vld [vmem:[#allocation10 + $0x140] sm:$0xff] }
  0xf0   :  { %990 = vmatpush.msrb.mxu0 %v7076_v18  ;;  %1025 = vmatpush.msrb.mxu1 %v4846_v48  ;;  %v1148_v48 = vsub.f32 %v4988_v63, %v1147_v8  ;;  %v5056_v43 = vand.u32 4294901760, %v1049_v19  ;;  %v1185_v17 = vand.u32 4294901760, %v1184_v58 }
  0xf1   :  { %992 = vmatmul.f32.vlgmr.msrb.gmra.mxu0 %v4879_v6  ;;  %875 = vmatpush.msra.mxu2 %v4849_v49  ;;  %v1143_v49 = vand.u32 4294901760, %v1142_v1 }
  0xf2   :  { %1027 = vmatpush.msrb.mxu1 %v4859_v42  ;;  %1126 = vmatpush.msrb.mxu3 %v1125_v61  ;;  %v1154_v42 = vsub.f32 %v5002_v46, %v1153_v24  ;;  %v5076_v23 = vsub.f32 %v1049_v19, %v5056_v43  ;;  %v1179_v61 = vand.u32 4294901760, %v1178_v30  ;;  %v1045_v19 = vld [vmem:[#allocation10 + $0x120] sm:$0xff] }
  0xf3   :  { %1029 = vmatmul.f32.vlgmr.msrb.gmra.mxu1 %v4879_v6  ;;  %878 = vmatpush.msra.mxu2 %v4862_v45  ;;  %v1149_v45 = vand.u32 4294901760, %v1148_v48  ;;  %v1160_v6 = vsub.f32 %v5016_v37, %v1159_v40 }
  0xf4   :  { %1132 = vmatpush.msrb.mxu3 %v1131_v16  ;;  %1224 = vmatpush.msra.mxu0 %v4944_v59  ;;  %v1189_v35 = vand.u32 4294901760, %v5076_v23  ;;  %v1047_v16 = vld [vmem:[#allocation10 + $0x130] sm:$0xff] }
  0xf5   :  { %881 = vmatpush.msra.mxu2 %v4870_v29  ;;  %1277 = vmatpush.msra.mxu1 %v4927_v28  ;;  %v1155_v29 = vand.u32 4294901760, %v1154_v42  ;;  %v1161_v2 = vand.u32 4294901760, %v1160_v6  ;;  %v1043_v42 = vld [vmem:[#allocation10 + $0x110] sm:$0xff] }
  0xf6   :  { %884 = vmatmul.f32.vlgmr.msra.gmra.mxu2 %v4882_v25  ;;  %1138 = vmatpush.msrb.mxu3 %v1137_v50  ;;  %v1166_v25 = vsub.f32 %v5030_v27, %v1165_v0  ;;  %v1190_v1 = vsub.f32 %v5076_v23, %v1189_v35  ;;  %v5123_v50 = vand.u32 4294901760, %v1047_v16 }
  0xf7   :  { %1227 = vmatpush.msra.mxu0 %v4954_v12  ;;  %1279 = vmatpush.msra.mxu1 %v4934_v41 }
  0xf8   :  { %1144 = vmatpush.msrb.mxu3 %v1143_v49  ;;  %1081 = vmatpush.msrb.mxu2 %v4927_v28  ;;  %v1167_v9 = vand.u32 4294901760, %v1166_v25  ;;  %v1191_v18 = vand.u32 4294901760, %v1190_v1  ;;  %v5126_v48 = vsub.f32 %v1047_v16, %v5123_v50  ;;  %v5128_v49 = vand.u32 4294901760, %v1045_v19  ;;  %v1041_v25 = vld [vmem:[#allocation10 + $0x100] sm:$0xff] }
  0xf9   :  { %1230 = vmatpush.msra.mxu0 %v4959_v38  ;;  %1281 = vmatpush.msra.mxu1 %v4938_v51  ;;  %v5149_v30 = vand.u32 4294901760, %v1041_v25 }
  0xfa   :  { %1150 = vmatpush.msrb.mxu3 %v1149_v45  ;;  %1083 = vmatpush.msrb.mxu2 %v4934_v41  ;;  %v1195_v45 = vand.u32 4294901760, %v5126_v48  ;;  %v5134_v6 = vsub.f32 %v1045_v19, %v5128_v49  ;;  %v1072_v19 = vld [vmem:[#allocation10 + $0x1f8] sm:$0xff] }
  0xfb   :  { %1233 = vmatpush.msra.mxu0 %v4970_v32  ;;  %1283 = vmatpush.msra.mxu1 %v4948_v60  ;;  %v5158_v1 = vsub.f32 %v1041_v25, %v5149_v30 }
  0xfc   :  { %1156 = vmatpush.msrb.mxu3 %v1155_v29  ;;  %1085 = vmatpush.msrb.mxu2 %v4938_v51  ;;  %v5137_v29 = vand.u32 4294901760, %v1043_v42  ;;  %v1201_v62 = vand.u32 4294901760, %v5134_v6 }
  0xfd   :  { %1236 = vmatpush.msra.mxu0 %v4988_v63  ;;  %1285 = vmatpush.msra.mxu1 %v4965_v22  ;;  %v6935_v16 = vand.u32 4294901760, %v5158_v1 }
  0xfe   :  { %1162 = vmatpush.msrb.mxu3 %v1161_v2  ;;  %1087 = vmatpush.msrb.mxu2 %v4948_v60  ;;  %v1196_v2 = vsub.f32 %v5126_v48, %v1195_v45  ;;  %v1202_v58 = vsub.f32 %v5134_v6, %v1201_v62 }
  0xff   :  { %1239 = vmatpush.msra.mxu0 %v5002_v46  ;;  %1287 = vmatpush.msra.mxu1 %v4976_v44 }
 0x100   :  { %1168 = vmatpush.msrb.mxu3 %v1167_v9  ;;  %1089 = vmatpush.msrb.mxu2 %v4965_v22  ;;  %v5146_v9 = vsub.f32 %v1043_v42, %v5137_v29  ;;  %v5168_v42 = vand.u32 4294901760, %v1072_v19 }
 0x101   :  { %1242 = vmatpush.msra.mxu0 %v5016_v37  ;;  %1289 = vmatpush.msra.mxu1 %v4990_v5 }
 0x102   :  { %1174 = vmatpush.msrb.mxu3 %v1173_v31  ;;  %1091 = vmatpush.msrb.mxu2 %v4976_v44  ;;  %v1197_v31 = vand.u32 4294901760, %v1196_v2  ;;  %v1214_v2 = vsub.f32 %v5158_v1, %v6935_v16 }
 0x103   :  { %1245 = vmatpush.msra.mxu0 %v5030_v27  ;;  %1291 = vmatpush.msra.mxu1 %v5004_v53 }
 0x104   :  { %1180 = vmatpush.msrb.mxu3 %v1179_v61  ;;  %1093 = vmatpush.msrb.mxu2 %v4990_v5  ;;  %v6934_v61 = vand.u32 4294901760, %v5146_v9  ;;  %v1215_v59 = vand.u32 4294901760, %v1214_v2 }
 0x105   :  { %1248 = vmatpush.msra.mxu0 %v5042_v47  ;;  %1293 = vmatpush.msra.mxu1 %v5018_v10 }
 0x106   :  { %1186 = vmatpush.msrb.mxu3 %v1185_v17  ;;  %1095 = vmatpush.msrb.mxu2 %v5004_v53  ;;  %v1203_v17 = vand.u32 4294901760, %v1202_v58  ;;  %v5177_v58 = vsub.f32 %v1072_v19, %v5168_v42  ;;  %v1066_v19 = vld [vmem:[#allocation10 + $0x1c8] sm:$0xff] }
 0x107   :  { %1251 = vmatpush.msra.mxu0 %v5054_v11  ;;  %1295 = vmatpush.msra.mxu1 %v5032_v39 }
 0x108   :  { %1192 = vmatpush.msrb.mxu3 %v1191_v18  ;;  %1097 = vmatpush.msrb.mxu2 %v5018_v10  ;;  %v1208_v18 = vsub.f32 %v5146_v9, %v6934_v61 }
 0x109   :  { %1254 = vmatpush.msra.mxu0 %v5066_v36  ;;  %1297 = vmatpush.msra.mxu1 %v5044_v52 }
 0x10a   :  { %1099 = vmatpush.msrb.mxu2 %v5032_v39  ;;  %1198 = vmatpush.msrb.mxu3 %v1197_v31  ;;  %v1209_v25 = vand.u32 4294901760, %v1208_v18  ;;  %v1070_v31 = vld [vmem:[#allocation10 + $0x1e8] sm:$0xff] }
 0x10b   :  { %1257 = vmatpush.msra.mxu0 %v5076_v23  ;;  %1299 = vmatpush.msra.mxu1 %v5056_v43  ;;  %v5179_v61 = vand.u32 4294901760, %v1070_v31 }
 0x10c   :  { %1101 = vmatpush.msrb.mxu2 %v5044_v52  ;;  %1204 = vmatpush.msrb.mxu3 %v1203_v17  ;;  %v6936_v17 = vand.u32 4294901760, %v5177_v58 }
 0x10d   :  { %1301 = vmatpush.msra.mxu1 %v5123_v50  ;;  %1260 = vmatpush.msra.mxu0 %v5126_v48  ;;  %v5188_v16 = vsub.f32 %v1070_v31, %v5179_v61  ;;  %v1064_v31 = vld [vmem:[#allocation10 + $0x1b8] sm:$0xff] }
 0x10e   :  { %1103 = vmatpush.msrb.mxu2 %v5056_v43  ;;  %1210 = vmatpush.msrb.mxu3 %v1209_v25  ;;  %v1465_v12 = vsub.f32 %v5177_v58, %v6936_v17  ;;  %v5198_v25 = vand.u32 4294901760, %v1066_v19  ;;  %v1062_v17 = vld [vmem:[#allocation10 + $0x1a8] sm:$0xff] }
 0x10f   :  { %1303 = vmatpush.msra.mxu1 %v5128_v49  ;;  %1263 = vmatpush.msra.mxu0 %v5134_v6 }
 0x110   :  { %1105 = vmatpush.msrb.mxu2 %v5123_v50  ;;  %1216 = vmatpush.msrb.mxu3 %v1215_v59  ;;  %v5211_v59 = vand.u32 4294901760, %v1064_v31 }
 0x111   :  { %1305 = vmatpush.msra.mxu1 %v5137_v29  ;;  %1266 = vmatpush.msra.mxu0 %v5146_v9 }
 0x112   :  { %1107 = vmatpush.msrb.mxu2 %v5128_v49  ;;  %1385 = vmatpush.msra.mxu3 %v4927_v28  ;;  %v1466_v28 = vand.u32 4294901760, %v1465_v12  ;;  %v5225_v12 = vsub.f32 %v1064_v31, %v5211_v59 }
 0x113   :  { %1307 = vmatpush.msra.mxu1 %v5149_v30  ;;  %1269 = vmatpush.msra.mxu0 %v5158_v1 }
 0x114   :  { %1109 = vmatpush.msrb.mxu2 %v5137_v29  ;;  %1387 = vmatpush.msra.mxu3 %v4934_v41  ;;  %v1488_v63 = vand.u32 4294901760, %v5225_v12 }
 0x115   :  { %1422 = vmatpush.msrb.mxu0 %v5168_v42  ;;  %1467 = vmatpush.msrb.mxu1 %v1466_v28 }
 0x116   :  { %1111 = vmatpush.msrb.mxu2 %v5149_v30  ;;  %1389 = vmatpush.msra.mxu3 %v4938_v51 }
 0x117   :  { %1424 = vmatpush.msrb.mxu0 %v5179_v61 }
 0x118   :  { %1318 = vmatpush.msra.mxu2 %v1123_v57  ;;  %v1068_v57 = vld [vmem:[#allocation10 + $0x1d8] sm:$0xff]  ;;  %1391 = vmatpush.msra.mxu3 %v4948_v60  ;;  %v1489_v60 = vsub.f32 %v5225_v12, %v1488_v63 }
 0x119   :  { %v5185_v18 = vand.u32 4294901760, %v1068_v57 }
 0x11a   :  { %1322 = vmatpush.msra.mxu2 %v1129_v54  ;;  %v6937_v54 = vand.u32 4294901760, %v5188_v16  ;;  %1393 = vmatpush.msra.mxu3 %v4965_v22  ;;  %v1490_v22 = vand.u32 4294901760, %v1489_v60 }
 0x11b   :  { %1426 = vmatpush.msrb.mxu0 %v5185_v18  ;;  %v5201_v2 = vsub.f32 %v1068_v57, %v5185_v18  ;;  %v5214_v57 = vsub.f32 %v1066_v19, %v5198_v25 }
 0x11c   :  { %1326 = vmatpush.msra.mxu2 %v1135_v55  ;;  %v1471_v38 = vsub.f32 %v5188_v16, %v6937_v54  ;;  %v1060_v54 = vld [vmem:[#allocation10 + $0x198] sm:$0xff]  ;;  %1395 = vmatpush.msra.mxu3 %v4976_v44 }
 0x11d   :  { %1428 = vmatpush.msrb.mxu0 %v5198_v25  ;;  %v1476_v55 = vand.u32 4294901760, %v5201_v2  ;;  %v1482_v19 = vand.u32 4294901760, %v5214_v57 }
 0x11e   :  { %1330 = vmatpush.msra.mxu2 %v1141_v26  ;;  %v1472_v41 = vand.u32 4294901760, %v1471_v38  ;;  %v5222_v26 = vand.u32 4294901760, %v1062_v17  ;;  %v1058_v38 = vld [vmem:[#allocation10 + $0x188] sm:$0xff]  ;;  %1397 = vmatpush.msra.mxu3 %v4990_v5 }
 0x11f   :  { %v1477_v32 = vsub.f32 %v5201_v2, %v1476_v55  ;;  %1430 = vmatpush.msrb.mxu0 %v5211_v59  ;;  %v1483_v31 = vsub.f32 %v5214_v57, %v1482_v19 }
 0x120   :  { %1334 = vmatpush.msra.mxu2 %v1147_v8  ;;  %1473 = vmatpush.msrb.mxu1 %v1472_v41  ;;  %v5233_v8 = vand.u32 4294901760, %v1060_v54  ;;  %v5236_v28 = vsub.f32 %v1062_v17, %v5222_v26 }
 0x121   :  { %v1478_v51 = vand.u32 4294901760, %v1477_v32  ;;  %1432 = vmatpush.msrb.mxu0 %v5222_v26  ;;  %v1484_v41 = vand.u32 4294901760, %v1483_v31  ;;  %v1056_v32 = vld [vmem:[#allocation10 + $0x178] sm:$0xff]  ;;  %v1054_v31 = vld [vmem:[#allocation10 + $0x168] sm:$0xff]  ;;  %1399 = vmatpush.msra.mxu3 %v5004_v53 }
 0x122   :  { %1338 = vmatpush.msra.mxu2 %v1153_v24  ;;  %v6939_v46 = vand.u32 4294901760, %v5236_v28  ;;  %v5249_v24 = vand.u32 4294901760, %v1058_v38  ;;  %v5252_v17 = vsub.f32 %v1060_v54, %v5233_v8 }
 0x123   :  { %1479 = vmatpush.msrb.mxu1 %v1478_v51  ;;  %1434 = vmatpush.msrb.mxu0 %v5233_v8  ;;  %v5262_v51 = vand.u32 4294901760, %v1056_v32 }
 0x124   :  { %1342 = vmatpush.msra.mxu2 %v1159_v40  ;;  %v1495_v37 = vsub.f32 %v5236_v28, %v6939_v46  ;;  %v6938_v40 = vand.u32 4294901760, %v5252_v17  ;;  %v5266_v54 = vsub.f32 %v1058_v38, %v5249_v24  ;;  %1401 = vmatpush.msra.mxu3 %v5018_v10 }
 0x125   :  { %1485 = vmatpush.msrb.mxu1 %v1484_v41  ;;  %1436 = vmatpush.msrb.mxu0 %v5249_v24  ;;  %v5275_v60 = vsub.f32 %v1056_v32, %v5262_v51  ;;  %v1052_v41 = vld [vmem:[#allocation10 + $0x158] sm:$0xff] }
 0x126   :  { %1346 = vmatpush.msra.mxu2 %v1165_v0  ;;  %v1496_v27 = vand.u32 4294901760, %v1495_v37  ;;  %v1501_v44 = vsub.f32 %v5252_v17, %v6938_v40  ;;  %v5272_v0 = vand.u32 4294901760, %v1054_v31  ;;  %v6947_v38 = vand.u32 4294901760, %v5266_v54  ;;  %1403 = vmatpush.msra.mxu3 %v5032_v39 }
 0x127   :  { %1491 = vmatpush.msrb.mxu1 %v1490_v22  ;;  %1438 = vmatpush.msrb.mxu0 %v5262_v51  ;;  %v6940_v37 = vand.u32 4294901760, %v5275_v60  ;;  %v5283_v40 = vand.u32 4294901760, %v1052_v41 }
 0x128   :  { %1350 = vmatpush.msra.mxu2 %v1171_v7  ;;  %v1502_v5 = vand.u32 4294901760, %v1501_v44  ;;  %v5286_v46 = vsub.f32 %v1054_v31, %v5272_v0  ;;  %v1507_v47 = vsub.f32 %v5266_v54, %v6947_v38  ;;  %v1050_v7 = vld [vmem:[#allocation10 + $0x148] sm:$0xff]  ;;  %v1048_v31 = vld [vmem:[#allocation10 + $0x138] sm:$0xff]  ;;  %1405 = vmatpush.msra.mxu3 %v5044_v52 }
 0x129   :  { %1497 = vmatpush.msrb.mxu1 %v1496_v27  ;;  %1440 = vmatpush.msrb.mxu0 %v5272_v0  ;;  %v1513_v53 = vsub.f32 %v5275_v60, %v6940_v37  ;;  %v5299_v22 = vand.u32 4294901760, %v1050_v7  ;;  %v5302_v11 = vsub.f32 %v1052_v41, %v5283_v40  ;;  %v5312_v37 = vand.u32 4294901760, %v1048_v31 }
 0x12a   :  { %1354 = vmatpush.msra.mxu2 %v1177_v56  ;;  %v6946_v32 = vand.u32 4294901760, %v5286_v46  ;;  %v1508_v56 = vand.u32 4294901760, %v1507_v47  ;;  %1407 = vmatpush.msra.mxu3 %v5056_v43 }
 0x12b   :  { %1503 = vmatpush.msrb.mxu1 %v1502_v5  ;;  %1442 = vmatpush.msrb.mxu0 %v5283_v40  ;;  %v1514_v10 = vand.u32 4294901760, %v1513_v53  ;;  %v6945_v44 = vand.u32 4294901760, %v5302_v11  ;;  %v5318_v36 = vsub.f32 %v1050_v7, %v5299_v22  ;;  %v5327_v47 = vsub.f32 %v1048_v31, %v5312_v37 }
 0x12c   :  { %1358 = vmatpush.msra.mxu2 %v1183_v15  ;;  %v1519_v27 = vsub.f32 %v5286_v46, %v6946_v32  ;;  %v1046_v15 = vld [vmem:[#allocation10 + $0x128] sm:$0xff]  ;;  %1409 = vmatpush.msra.mxu3 %v5123_v50 }
 0x12d   :  { %1509 = vmatpush.msrb.mxu1 %v1508_v56  ;;  %1444 = vmatpush.msrb.mxu0 %v5299_v22  ;;  %v1525_v41 = vsub.f32 %v5302_v11, %v6945_v44  ;;  %v5324_v5 = vand.u32 4294901760, %v1046_v15  ;;  %v6944_v23 = vand.u32 4294901760, %v5318_v36  ;;  %v6943_v7 = vand.u32 4294901760, %v5327_v47 }
 0x12e   :  { %1362 = vmatpush.msra.mxu2 %v1189_v35  ;;  %v1520_v39 = vand.u32 4294901760, %v1519_v27  ;;  %v1044_v35 = vld [vmem:[#allocation10 + $0x118] sm:$0xff]  ;;  %1411 = vmatpush.msra.mxu3 %v5128_v49 }
 0x12f   :  { %1515 = vmatpush.msrb.mxu1 %v1514_v10  ;;  %1446 = vmatpush.msrb.mxu0 %v5312_v37  ;;  %v1526_v52 = vand.u32 4294901760, %v1525_v41  ;;  %v5335_v53 = vand.u32 4294901760, %v1044_v35  ;;  %v5338_v56 = vsub.f32 %v1046_v15, %v5324_v5  ;;  %v1531_v48 = vsub.f32 %v5318_v36, %v6944_v23  ;;  %v345_v49 = vld [vmem:[%s6917_s5] sm:$0x3] }
 0x130   :  { %1366 = vmatpush.msra.mxu2 %v1195_v45  ;;  %v1042_v45 = vld [vmem:[#allocation10 + $0x108] sm:$0xff]  ;;  %v1537_v43 = vsub.f32 %v5327_v47, %v6943_v7  ;;  %1413 = vmatpush.msra.mxu3 %v5137_v29 }
 0x131   :  { %1521 = vmatpush.msrb.mxu1 %v1520_v39  ;;  %1448 = vmatpush.msrb.mxu0 %v5324_v5  ;;  %v6942_v31 = vand.u32 4294901760, %v5338_v56  ;;  %v5351_v10 = vand.u32 4294901760, %v1042_v45  ;;  %v5354_v6 = vsub.f32 %v1044_v35, %v5335_v53  ;;  %v1532_v27 = vand.u32 4294901760, %v1531_v48 }
 0x132   :  { %1370 = vmatpush.msra.mxu2 %v1201_v62  ;;  %v7077_v62 = vand.u32 4294901760, %v5146_v9  ;;  %v1538_v50 = vand.u32 4294901760, %v1537_v43  ;;  %v7078_v35 = vand.u32 4294901760, %v5158_v1  ;;  %1415 = vmatpush.msra.mxu3 %v5149_v30 }
 0x133   :  { %1527 = vmatpush.msrb.mxu1 %v1526_v52  ;;  %1450 = vmatpush.msrb.mxu0 %v5335_v53  ;;  %v1543_v15 = vsub.f32 %v5338_v56, %v6942_v31  ;;  %v6941_v39 = vand.u32 4294901760, %v5354_v6  ;;  %v5365_v41 = vsub.f32 %v1042_v45, %v5351_v10  ;;  %v347_v45 = vperm.slane %v345_v49, 0 }
 0x134   :  { %1374 = vmatpush.msra.mxu2 %v7077_v62 }
 0x135   :  { %1533 = vmatpush.msrb.mxu1 %v1532_v27  ;;  %1452 = vmatpush.msrb.mxu0 %v5351_v10  ;;  %v1544_v9 = vand.u32 4294901760, %v1543_v15  ;;  %v1549_v52 = vsub.f32 %v5354_v6, %v6941_v39  ;;  %v6948_v48 = vand.u32 4294901760, %v5365_v41 }
 0x136   :  { %1378 = vmatpush.msra.mxu2 %v7078_v35 }
 0x137   :  { %1539 = vmatpush.msrb.mxu1 %v1538_v50  ;;  %v1550_v1 = vand.u32 4294901760, %v1549_v52  ;;  %v1555_v43 = vsub.f32 %v5365_v41, %v6948_v48 }
 0x139   :  { %1545 = vmatpush.msrb.mxu1 %v1544_v9  ;;  %v1556_v27 = vand.u32 4294901760, %v1555_v43  ;;  %v348_v9 = vperm.slane %v345_v49, 1  ;;  %v7080_v49 = vand.u32 4294901760, %v5188_v16 }
 0x13b   :  { %1551 = vmatpush.msrb.mxu1 %v1550_v1 }
 0x13d   :  { %1557 = vmatpush.msrb.mxu1 %v1556_v27 }
 0x14b   :  { %v544_v39 = vpop.f32.mrf.mxu0 }
 0x14d   :  { %v583_v7 = vpop.f32.mrf.mxu1 }
 0x14f   :  { %v490_v15 = vpop.f32.mrf.mxu3 }
 0x154   :  { %v730_v43 = vpop.f32.mrf.mxu0 }
 0x157   :  { %v389_v62 = vpop.f32.mrf.mxu2 }
 0x158   :  { %v390_v29 = vadd.f32 %v389_v62, %v347_v45  ;;  %v689_v30 = vpop.f32.mrf.mxu3  ;;  %v731_v62 = vadd.f32 %v730_v43, %v348_v9 }
 0x15a   :  { %v491_v35 = vadd.f32 %v490_v15, %v390_v29 }
 0x15c   :  { %v545_v31 = vadd.f32 %v544_v39, %v491_v35 }
 0x15e   :  { %v584_v23 = vadd.f32 %v583_v7, %v545_v31  ;;  %v831_v7 = vpop.f32.mrf.mxu1 }
 0x161   :  { %v652_v50 = vpop.f32.mrf.mxu2 }
 0x162   :  { %v653_v44 = vadd.f32 %v652_v50, %v584_v23 }
 0x164   :  { %v690_v52 = vadd.f32 %v689_v30, %v653_v44  ;;  %v832_v44 = vadd.f32 %v831_v7, %v731_v62 }
 0x166   :  { %v1034_v32 = vmul.f32 1.442695, %v690_v52  ;;  %vm1033_vm2 = vcmp.gt.f32.partialorder %v690_v52, 0.0 }
 0x168   :  { %4143 = vpow2.f32 %v1034_v32 }
 0x16e   :  { %v4144_v38 = vpop.eup %4143  ;;  %v993_v35 = vpop.f32.mrf.mxu0 }
 0x16f   :  { %v4120_v48 = vadd.f32 -1.0, %v4144_v38  ;;  %v7079_v38 = vand.u32 4294901760, %v5177_v58 }
 0x171   :  { %v1037_v45 = vsel %vm1033_vm2, %v690_v52, %v4120_v48 }
 0x172   :  { %v5382_v1 = vand.u32 4294901760, %v1037_v45  ;;  %v924_v29 = vpop.f32.mrf.mxu3 }
 0x174   :  { %1218 = vmatmul.f32.vlgmr.msrb.gmra.mxu3 %v5382_v1  ;;  %v5386_v39 = vsub.f32 %v1037_v45, %v5382_v1  ;;  %v7090_v45 = vand.u32 4294901760, %v5318_v36 }
 0x175   :  { %1618 = vmatpush.msrb.mxu3 %v5168_v42 }
 0x176   :  { %1272 = vmatmul.f32.vlgmr.msra.gmra.mxu0 %v5386_v39  ;;  %v5391_v32 = vand.u32 4294901760, %v5386_v39 }
 0x177   :  { %1620 = vmatpush.msrb.mxu3 %v5179_v61  ;;  %1659 = vmatpush.msra.mxu0 %v7079_v38  ;;  %v7094_v38 = vand.u32 4294901760, %v5327_v47 }
 0x178   :  { %1311 = vmatmul.f32.vlgmr.msra.gmra.mxu1 %v5391_v32  ;;  %v1115_v23 = vsub.f32 %v5386_v39, %v5391_v32 }
 0x179   :  { %v885_v31 = vpop.f32.mrf.mxu2  ;;  %1622 = vmatpush.msrb.mxu3 %v5185_v18  ;;  %1663 = vmatpush.msra.mxu0 %v7080_v49 }
 0x17a   :  { %v886_v48 = vadd.f32 %v885_v31, %v832_v44  ;;  %1726 = vmatpush.msra.mxu1 %v5168_v42  ;;  %v1116_v27 = vand.u32 4294901760, %v1115_v23  ;;  %v1030_v42 = vpop.f32.mrf.mxu1 }
 0x17b   :  { %1624 = vmatpush.msrb.mxu3 %v5198_v25  ;;  %1667 = vmatpush.msra.mxu0 %v1476_v55 }
 0x17c   :  { %v925_v15 = vadd.f32 %v924_v29, %v886_v48  ;;  %1728 = vmatpush.msra.mxu1 %v5179_v61  ;;  %1117 = vmatmul.f32.vlgmr.msrb.gmra.mxu2 %v1116_v27  ;;  %v7081_v61 = vand.u32 4294901760, %v5236_v28 }
 0x17d   :  { %1417 = vmatmul.f32.vlgmr.msra.gmra.mxu3 %v5382_v1  ;;  %1565 = vmatpush.msrb.mxu2 %v5177_v58  ;;  %v139_v58 = vld [vmem:[#allocation11 + $0x78] sm:$0xff] }
 0x17e   :  { %v994_v50 = vadd.f32 %v993_v35, %v925_v15  ;;  %1626 = vmatpush.msrb.mxu3 %v5211_v59  ;;  %1671 = vmatpush.msra.mxu0 %v1482_v19  ;;  %v7084_v19 = vand.u32 4294901760, %v5275_v60 }
 0x17f   :  { %1730 = vmatpush.msra.mxu1 %v5185_v18  ;;  %1458 = vmatmul.f32.vlgmr.msrb.gmra.mxu0 %v1116_v27  ;;  %v138_v18 = vld [vmem:[#allocation11 + $0x70] sm:$0xff] }
 0x180   :  { %v1031_v55 = vadd.f32 %v1030_v42, %v994_v50  ;;  %1568 = vmatpush.msrb.mxu2 %v5188_v16  ;;  %1628 = vmatpush.msrb.mxu3 %v5222_v26  ;;  %v7082_v16 = vand.u32 4294901760, %v5252_v17 }
 0x181   :  { %1675 = vmatpush.msra.mxu0 %v1488_v63  ;;  %1732 = vmatpush.msra.mxu1 %v5198_v25  ;;  %v5431_v25 = vand.u32 4294901760, %v139_v58 }
 0x182   :  { %1559 = vmatmul.f32.vlgmr.msrb.gmra.mxu1 %v5382_v1  ;;  %1571 = vmatpush.msrb.mxu2 %v5201_v2  ;;  %1039 = vst.msk [vmem:[#allocation13] sm:$0xff] %vm1038_vm3, %v1031_v55  ;;  %v137_v2 = vld [vmem:[#allocation11 + $0x68] sm:$0xff] }
 0x183   :  { %1630 = vmatpush.msrb.mxu3 %v5233_v8  ;;  %1679 = vmatpush.msra.mxu0 %v7081_v61  ;;  %v5448_v63 = vand.u32 4294901760, %v137_v2 }
 0x184   :  { %1734 = vmatpush.msra.mxu1 %v5211_v59  ;;  %1574 = vmatpush.msrb.mxu2 %v5214_v57  ;;  %v7083_v59 = vand.u32 4294901760, %v5266_v54  ;;  %v5438_v57 = vand.u32 4294901760, %v138_v18 }
 0x185   :  { %1632 = vmatpush.msrb.mxu3 %v5249_v24  ;;  %1683 = vmatpush.msra.mxu0 %v7082_v16 }
 0x186   :  { %1736 = vmatpush.msra.mxu1 %v5222_v26  ;;  %1380 = vmatmul.f32.vlgmr.msra.gmra.mxu2 %v5382_v1  ;;  %v136_v26 = vld [vmem:[#allocation11 + $0x60] sm:$0xff]  ;;  %v5456_v30 = vsub.f32 %v138_v18, %v5438_v57  ;;  %v131_v18 = vld [vmem:[#allocation11 + $0x38] sm:$0xff] }
 0x187   :  { %1577 = vmatpush.msrb.mxu2 %v5225_v12  ;;  %1634 = vmatpush.msrb.mxu3 %v5262_v51  ;;  %v5446_v12 = vsub.f32 %v139_v58, %v5431_v25  ;;  %v5458_v52 = vand.u32 4294901760, %v136_v26 }
 0x188   :  { %1687 = vmatpush.msra.mxu0 %v7083_v59  ;;  %1738 = vmatpush.msra.mxu1 %v5233_v8  ;;  %v135_v8 = vld [vmem:[#allocation11 + $0x58] sm:$0xff]  ;;  %v130_v59 = vld [vmem:[#allocation11 + $0x30] sm:$0xff] }
 0x189   :  { %1580 = vmatpush.msrb.mxu2 %v5236_v28  ;;  %1636 = vmatpush.msrb.mxu3 %v5272_v0  ;;  %v7085_v28 = vand.u32 4294901760, %v5286_v46  ;;  %7086 = vst [vmem:[#allocation22_spill] sm:$0xff] %v5458_v52  ;;  %v5466_v9 = vand.u32 4294901760, %v5446_v12  ;;  %v5471_v43 = vand.u32 4294901760, %v135_v8  ;;  %v5482_v62 = vsub.f32 %v136_v26, %v5458_v52 }
 0x18a   :  { %1691 = vmatpush.msra.mxu0 %v7084_v19  ;;  %1740 = vmatpush.msra.mxu1 %v5249_v24  ;;  %v134_v24 = vld [vmem:[#allocation11 + $0x50] sm:$0xff]  ;;  %v5616_v19 = vand.u32 4294901760, %v130_v59 }
 0x18b   :  { %1583 = vmatpush.msrb.mxu2 %v5252_v17  ;;  %1638 = vmatpush.msrb.mxu3 %v5283_v40  ;;  %v7087_v17 = vand.u32 4294901760, %v5302_v11  ;;  %7088 = vst [vmem:[#allocation23_spill] sm:$0xff] %v5466_v9  ;;  %v5484_v7 = vand.u32 4294901760, %v134_v24  ;;  %v5497_v23 = vsub.f32 %v135_v8, %v5471_v43  ;;  %v5509_v49 = vand.u32 4294901760, %v5482_v62  ;;  %v129_v8 = vld [vmem:[#allocation11 + $0x28] sm:$0xff] }
 0x18c   :  { %1695 = vmatpush.msra.mxu0 %v7085_v28  ;;  %1742 = vmatpush.msra.mxu1 %v5262_v51  ;;  %v5469_v51 = vsub.f32 %v137_v2, %v5448_v63  ;;  %7089 = vst [vmem:[#allocation24_spill] sm:$0xff] %v5471_v43  ;;  %v5611_v2 = vand.u32 4294901760, %v131_v18 }
 0x18d   :  { %1586 = vmatpush.msrb.mxu2 %v5266_v54  ;;  %1640 = vmatpush.msrb.mxu3 %v5299_v22  ;;  %v133_v54 = vld [vmem:[#allocation11 + $0x48] sm:$0xff]  ;;  %7092 = vst [vmem:[#allocation26_spill] sm:$0xff] %v5482_v62  ;;  %v5512_v48 = vsub.f32 %v134_v24, %v5484_v7  ;;  %v5526_v15 = vand.u32 4294901760, %v5497_v23  ;;  %v1834_v50 = vsub.f32 %v5482_v62, %v5509_v49 }
 0x18e   :  { %1699 = vmatpush.msra.mxu0 %v7087_v17  ;;  %1744 = vmatpush.msra.mxu1 %v5272_v0  ;;  %v5479_v0 = vand.u32 4294901760, %v5456_v30  ;;  %7093 = vst [vmem:[#allocation27_spill] sm:$0xff] %v5484_v7  ;;  %v5494_v44 = vand.u32 4294901760, %v5469_v51  ;;  %v5499_v31 = vand.u32 4294901760, %v133_v54  ;;  %v5614_v26 = vsub.f32 %v131_v18, %v5611_v2 }
 0x18f   :  { %1589 = vmatpush.msrb.mxu2 %v5275_v60  ;;  %1642 = vmatpush.msrb.mxu3 %v5312_v37  ;;  %v132_v60 = vld [vmem:[#allocation11 + $0x40] sm:$0xff]  ;;  %7096 = vst [vmem:[#allocation29_spill] sm:$0xff] %v5497_v23  ;;  %v5541_v42 = vand.u32 4294901760, %v5512_v48  ;;  %v5560_v61 = vand.u32 4294901760, %v1834_v50  ;;  %v5624_v24 = vsub.f32 %v130_v59, %v5616_v19  ;;  %v5626_v17 = vand.u32 4294901760, %v129_v8 }
 0x190   :  { %1703 = vmatpush.msra.mxu0 %v7090_v45  ;;  %1746 = vmatpush.msra.mxu1 %v5283_v40  ;;  %7091 = vst [vmem:[#allocation25_spill] sm:$0xff] %v5479_v0  ;;  %v1816_v40 = vsub.f32 %v5446_v12, %v5466_v9  ;;  %v5514_v27 = vand.u32 4294901760, %v132_v60  ;;  %v1828_v29 = vsub.f32 %v5469_v51, %v5494_v44  ;;  %v5621_v28 = vand.u32 4294901760, %v5614_v26 }
 0x191   :  { %1592 = vmatpush.msrb.mxu2 %v5286_v46  ;;  %1644 = vmatpush.msrb.mxu3 %v5324_v5  ;;  %7095 = vst [vmem:[#allocation28_spill] sm:$0xff] %v5494_v44  ;;  %v7098_v46 = vand.u32 4294901760, %v5338_v56  ;;  %v5529_v35 = vsub.f32 %v133_v54, %v5499_v31  ;;  %v128_v54 = vld [vmem:[#allocation11 + $0x20] sm:$0xff] }
 0x192   :  { %1707 = vmatpush.msra.mxu0 %v7094_v38  ;;  %1748 = vmatpush.msra.mxu1 %v5299_v22  ;;  %7097 = vst [vmem:[#allocation30_spill] sm:$0xff] %v5499_v31  ;;  %v1822_v22 = vsub.f32 %v5456_v30, %v5479_v0  ;;  %v5544_v55 = vsub.f32 %v132_v60, %v5514_v27  ;;  %v5634_v60 = vand.u32 4294901760, %v5624_v24 }
 0x193   :  { %1595 = vmatpush.msrb.mxu2 %v5302_v11  ;;  %1646 = vmatpush.msrb.mxu3 %v5335_v53  ;;  %7099 = vst [vmem:[#allocation31_spill] sm:$0xff] %v5509_v49  ;;  %v7102_v11 = vand.u32 4294901760, %v5354_v6  ;;  %v1864_v45 = vsub.f32 %v5614_v26, %v5621_v28  ;;  %v5637_v38 = vsub.f32 %v129_v8, %v5626_v17  ;;  %v125_v8 = vld [vmem:[#allocation11 + $0x8] sm:$0xff] }
 0x194   :  { %1711 = vmatpush.msra.mxu0 %v7098_v46  ;;  %1750 = vmatpush.msra.mxu1 %v5312_v37  ;;  %7100 = vst [vmem:[#allocation32_spill] sm:$0xff] %v5512_v48  ;;  %v5521_v37 = vand.u32 4294901760, %v1816_v40  ;;  %v5639_v40 = vand.u32 4294901760, %v128_v54  ;;  %v127_v46 = vld [vmem:[#allocation11 + $0x18] sm:$0xff] }
 0x195   :  { %7101 = vst [vmem:[#allocation33_spill] sm:$0xff] %v5514_v27  ;;  %1598 = vmatpush.msrb.mxu2 %v5318_v36  ;;  %1648 = vmatpush.msrb.mxu3 %v5351_v10  ;;  %v7105_v36 = vand.u32 4294901760, %v5365_v41  ;;  %v5656_v50 = vand.u32 4294901760, %v127_v46 }
 0x196   :  { %1715 = vmatpush.msra.mxu0 %v7102_v11  ;;  %1752 = vmatpush.msra.mxu1 %v5324_v5  ;;  %7103 = vst [vmem:[#allocation34_spill] sm:$0xff] %v5526_v15  ;;  %v5536_v5 = vand.u32 4294901760, %v1822_v22  ;;  %v5644_v22 = vand.u32 4294901760, %v1864_v45  ;;  %v1870_v11 = vsub.f32 %v5624_v24, %v5634_v60 }
 0x197   :  { %7104 = vst [vmem:[#allocation35_spill] sm:$0xff] %v5529_v35  ;;  %1652 = vmatmul.f32.vlgmr.msrb.gmra.mxu3 %v5391_v32  ;;  %1601 = vmatpush.msrb.mxu2 %v5327_v47  ;;  %v5550_v47 = vand.u32 4294901760, %v1828_v29  ;;  %v5555_v32 = vand.u32 4294901760, %v5529_v35  ;;  %v5649_v29 = vand.u32 4294901760, %v5637_v38  ;;  %v5669_v18 = vsub.f32 %v127_v46, %v5656_v50 }
 0x198   :  { %1719 = vmatpush.msra.mxu0 %v7105_v36  ;;  %1754 = vmatpush.msra.mxu1 %v5335_v53  ;;  %7106 = vst [vmem:[#allocation36_spill] sm:$0xff] %v5541_v42  ;;  %v1840_v53 = vsub.f32 %v5497_v23, %v5526_v15  ;;  %v5652_v36 = vsub.f32 %v128_v54, %v5639_v40 }
 0x199   :  { %7107 = vst [vmem:[#allocation37_spill] sm:$0xff] %v5544_v55  ;;  %1721 = vmatmul.f32.vlgmr.msra.gmra.mxu0 %v5382_v1  ;;  %1604 = vmatpush.msrb.mxu2 %v5338_v56  ;;  %v1846_v56 = vsub.f32 %v5512_v48, %v5541_v42 }
 0x19a   :  { %1756 = vmatpush.msra.mxu1 %v5351_v10  ;;  %1818 = vmatpush.msra.mxu3 %v5521_v37  ;;  %7108 = vst [vmem:[#allocation38_spill] sm:$0xff] %v5555_v32  ;;  %v5565_v10 = vand.u32 4294901760, %v5544_v55 }
 0x19b   :  { %1758 = vmatmul.f32.vlgmr.msra.gmra.mxu1 %v5382_v1  ;;  %1607 = vmatpush.msrb.mxu2 %v5354_v6  ;;  %v5572_v6 = vand.u32 4294901760, %v1840_v53  ;;  %v1852_v1 = vsub.f32 %v5529_v35, %v5555_v32  ;;  %v5579_v58 = vand.u32 4294901760, %v1846_v56  ;;  %7113 = vst [vmem:[#allocation43_spill] sm:$0xff] %v5611_v2  ;;  %v126_v53 = vld [vmem:[#allocation11 + $0x10] sm:$0xff]  ;;  %v5660_v56 = vand.u32 4294901760, %v1870_v11 }
 0x19c   :  { %1824 = vmatpush.msra.mxu3 %v5536_v5  ;;  %7109 = vst [vmem:[#allocation39_spill] sm:$0xff] %v5565_v10  ;;  %1916 = vmatpush.msrb.mxu0 %v5446_v12  ;;  %v5671_v59 = vand.u32 4294901760, %v126_v53  ;;  %v5680_v11 = vand.u32 4294901760, %v125_v8 }
 0x19d   :  { %1610 = vmatpush.msrb.mxu2 %v5365_v41  ;;  %1969 = vmatpush.msrb.mxu1 %v5431_v25  ;;  %7110 = vst [vmem:[#allocation40_spill] sm:$0xff] %v5579_v58  ;;  %v1858_v41 = vsub.f32 %v5544_v55, %v5565_v10 }
 0x19e   :  { %1613 = vmatmul.f32.vlgmr.msrb.gmra.mxu2 %v5386_v39  ;;  %1830 = vmatpush.msra.mxu3 %v5550_v47  ;;  %v5587_v39 = vand.u32 4294901760, %v1852_v1  ;;  %7114 = vst [vmem:[#allocation44_spill] sm:$0xff] %v5614_v26  ;;  %v1876_v1 = vsub.f32 %v5637_v38, %v5649_v29  ;;  %v5686_v46 = vsub.f32 %v126_v53, %v5671_v59 }
 0x19f   :  { %1773 = vmatpush.msra.mxu2 %v5431_v25  ;;  %1919 = vmatpush.msrb.mxu0 %v5456_v30  ;;  %v5593_v16 = vand.u32 4294901760, %v1858_v41  ;;  %7115 = vst [vmem:[#allocation45_spill] sm:$0xff] %v5616_v19  ;;  %v5665_v41 = vand.u32 4294901760, %v5652_v36 }
 0x1a0   :  { %1836 = vmatpush.msra.mxu3 %v5560_v61  ;;  %1971 = vmatpush.msrb.mxu1 %v5438_v57  ;;  %7111 = vst [vmem:[#allocation41_spill] sm:$0xff] %v5587_v39  ;;  %v5676_v54 = vand.u32 4294901760, %v1876_v1 }
 0x1a1   :  { %1775 = vmatpush.msra.mxu2 %v5438_v57  ;;  %1922 = vmatpush.msrb.mxu0 %v5469_v51  ;;  %7112 = vst [vmem:[#allocation42_spill] sm:$0xff] %v5593_v16  ;;  %v1882_v45 = vsub.f32 %v5652_v36, %v5665_v41 }
 0x1a2   :  { %1842 = vmatpush.msra.mxu3 %v5572_v6  ;;  %1973 = vmatpush.msrb.mxu1 %v5448_v63  ;;  %7116 = vst [vmem:[#allocation46_spill] sm:$0xff] %v5621_v28 }
 0x1a3   :  { %1777 = vmatpush.msra.mxu2 %v5448_v63  ;;  %1925 = vmatpush.msrb.mxu0 %v5482_v62  ;;  %7117 = vst [vmem:[#allocation47_spill] sm:$0xff] %v5624_v24  ;;  %v5691_v1 = vand.u32 4294901760, %v1882_v45 }
 0x1a4   :  { %1848 = vmatpush.msra.mxu3 %v5579_v58  ;;  %1975 = vmatpush.msrb.mxu1 %v5458_v52  ;;  %7118 = vst [vmem:[#allocation48_spill] sm:$0xff] %v5626_v17 }
 0x1a5   :  { %1779 = vmatpush.msra.mxu2 %v5458_v52  ;;  %1928 = vmatpush.msrb.mxu0 %v5497_v23  ;;  %7119 = vst [vmem:[#allocation49_spill] sm:$0xff] %v5634_v60 }
 0x1a6   :  { %1854 = vmatpush.msra.mxu3 %v5587_v39  ;;  %1977 = vmatpush.msrb.mxu1 %v5471_v43  ;;  %7120 = vst [vmem:[#allocation50_spill] sm:$0xff] %v5637_v38 }
 0x1a7   :  { %1781 = vmatpush.msra.mxu2 %v5471_v43  ;;  %1931 = vmatpush.msrb.mxu0 %v5512_v48  ;;  %7121 = vst [vmem:[#allocation51_spill] sm:$0xff] %v5639_v40 }
 0x1a8   :  { %1860 = vmatpush.msra.mxu3 %v5593_v16  ;;  %1979 = vmatpush.msrb.mxu1 %v5484_v7  ;;  %7122 = vst [vmem:[#allocation52_spill] sm:$0xff] %v5644_v22 }
 0x1a9   :  { %1783 = vmatpush.msra.mxu2 %v5484_v7  ;;  %1934 = vmatpush.msrb.mxu0 %v5529_v35  ;;  %7123 = vst [vmem:[#allocation53_spill] sm:$0xff] %v5649_v29 }
 0x1aa   :  { %1981 = vmatpush.msrb.mxu1 %v5499_v31  ;;  %7124 = vst [vmem:[#allocation54_spill] sm:$0xff] %v5652_v36  ;;  %1866 = vmatpush.msra.mxu3 %v5644_v22  ;;  %v2312_v22 = vld [vmem:[#allocation10 + $0xe8] sm:$0xff] }
 0x1ab   :  { %1785 = vmatpush.msra.mxu2 %v5499_v31  ;;  %1937 = vmatpush.msrb.mxu0 %v5544_v55  ;;  %7125 = vst [vmem:[#allocation55_spill] sm:$0xff] %v5656_v50 }
 0x1ac   :  { %1983 = vmatpush.msrb.mxu1 %v5514_v27  ;;  %7126 = vst [vmem:[#allocation56_spill] sm:$0xff] %v5660_v56  ;;  %1872 = vmatpush.msra.mxu3 %v5660_v56  ;;  %v5702_v56 = vand.u32 4294901760, %v5686_v46 }
 0x1ad   :  { %1787 = vmatpush.msra.mxu2 %v5514_v27  ;;  %1940 = vmatpush.msrb.mxu0 %v5614_v26  ;;  %7127 = vst [vmem:[#allocation57_spill] sm:$0xff] %v5665_v41  ;;  %v5694_v26 = vsub.f32 %v125_v8, %v5680_v11 }
 0x1ae   :  { %1985 = vmatpush.msrb.mxu1 %v5611_v2  ;;  %7128 = vst [vmem:[#allocation58_spill] sm:$0xff] %v5669_v18  ;;  %1878 = vmatpush.msra.mxu3 %v5676_v54 }
 0x1af   :  { %1789 = vmatpush.msra.mxu2 %v5611_v2  ;;  %1943 = vmatpush.msrb.mxu0 %v5624_v24  ;;  %7129 = vst [vmem:[#allocation59_spill] sm:$0xff] %v5671_v59  ;;  %v124_v24 = vld [vmem:[#allocation11] sm:$0xff]  ;;  %v5708_v45 = vand.u32 4294901760, %v5694_v26 }
 0x1b0   :  { %1987 = vmatpush.msrb.mxu1 %v5616_v19  ;;  %7130 = vst [vmem:[#allocation60_spill] sm:$0xff] %v5676_v54  ;;  %1884 = vmatpush.msra.mxu3 %v5691_v1 }
 0x1b1   :  { %1791 = vmatpush.msra.mxu2 %v5616_v19  ;;  %1946 = vmatpush.msrb.mxu0 %v5637_v38  ;;  %7131 = vst [vmem:[#allocation61_spill] sm:$0xff] %v5680_v11  ;;  %v5683_v38 = vand.u32 4294901760, %v5669_v18 }
 0x1b2   :  { %1989 = vmatpush.msrb.mxu1 %v5626_v17  ;;  %7133 = vst [vmem:[#allocation63_spill] sm:$0xff] %v5686_v46 }
 0x1b3   :  { %1793 = vmatpush.msra.mxu2 %v5626_v17  ;;  %1949 = vmatpush.msrb.mxu0 %v5652_v36  ;;  %7132 = vst [vmem:[#allocation62_spill] sm:$0xff] %v5683_v38  ;;  %v5696_v36 = vand.u32 4294901760, %v124_v24  ;;  %v1888_v53 = vsub.f32 %v5669_v18, %v5683_v38 }
 0x1b4   :  { %1991 = vmatpush.msrb.mxu1 %v5639_v40  ;;  %7134 = vst [vmem:[#allocation64_spill] sm:$0xff] %v5691_v1  ;;  %v1900_v1 = vsub.f32 %v5694_v26, %v5708_v45 }
 0x1b5   :  { %1795 = vmatpush.msra.mxu2 %v5639_v40  ;;  %1952 = vmatpush.msrb.mxu0 %v5669_v18  ;;  %7135 = vst [vmem:[#allocation65_spill] sm:$0xff] %v5694_v26  ;;  %v5711_v8 = vsub.f32 %v124_v24, %v5696_v36  ;;  %v5714_v54 = vand.u32 4294901760, %v1888_v53  ;;  %v1894_v18 = vsub.f32 %v5686_v46, %v5702_v56 }
 0x1b6   :  { %1993 = vmatpush.msrb.mxu1 %v5656_v50  ;;  %7136 = vst [vmem:[#allocation66_spill] sm:$0xff] %v5696_v36  ;;  %v5731_v53 = vand.u32 4294901760, %v1900_v1 }
 0x1b7   :  { %1797 = vmatpush.msra.mxu2 %v5656_v50  ;;  %7137 = vst [vmem:[#allocation67_spill] sm:$0xff] %v5702_v56  ;;  %1955 = vmatpush.msrb.mxu0 %v5686_v46  ;;  %v5723_v55 = vand.u32 4294901760, %v5711_v8  ;;  %v5728_v24 = vand.u32 4294901760, %v1894_v18 }
 0x1b8   :  { %1995 = vmatpush.msrb.mxu1 %v5671_v59  ;;  %7138 = vst [vmem:[#allocation68_spill] sm:$0xff] %v5708_v45  ;;  %1890 = vmatpush.msra.mxu3 %v5714_v54 }
 0x1b9   :  { %1799 = vmatpush.msra.mxu2 %v5671_v59  ;;  %7139 = vst [vmem:[#allocation69_spill] sm:$0xff] %v5711_v8  ;;  %1958 = vmatpush.msrb.mxu0 %v5694_v26  ;;  %v1906_v46 = vsub.f32 %v5711_v8, %v5723_v55 }
 0x1ba   :  { %1997 = vmatpush.msrb.mxu1 %v5680_v11  ;;  %7140 = vst [vmem:[#allocation70_spill] sm:$0xff] %v5714_v54  ;;  %1896 = vmatpush.msra.mxu3 %v5728_v24 }
 0x1bb   :  { %1801 = vmatpush.msra.mxu2 %v5680_v11  ;;  %7141 = vst [vmem:[#allocation71_spill] sm:$0xff] %v5723_v55  ;;  %1961 = vmatpush.msrb.mxu0 %v5711_v8 }
 0x1bc   :  { %1999 = vmatpush.msrb.mxu1 %v5696_v36  ;;  %7142 = vst [vmem:[#allocation72_spill] sm:$0xff] %v5728_v24  ;;  %1902 = vmatpush.msra.mxu3 %v5731_v53  ;;  %v2285_v24 = vld [vmem:[#allocation10 + $0x10] sm:$0xff] }
 0x1bd   :  { %1803 = vmatpush.msra.mxu2 %v5696_v36  ;;  %7143 = vst [vmem:[#allocation73_spill] sm:$0xff] %v5731_v53  ;;  %2193 = vmatpush.msra.mxu0 %v4456_v13  ;;  %v4121_v13 = vld [vmem:[%s6917_s5 + $0x2] sm:$0x3]  ;;  %v5940_v54 = vand.u32 4294901760, %v2285_v24 }
 0x1be   :  { %2218 = vmatpush.msra.mxu1 %v4445_v3  ;;  %v2287_v53 = vld [vmem:[#allocation10 + $0x20] sm:$0xff] }
 0x1bf   :  { %2010 = vmatpush.msrb.mxu2 %v5466_v9  ;;  %v5739_v9 = vand.u32 4294901760, %v1906_v46  ;;  %2196 = vmatpush.msra.mxu0 %v4459_v14  ;;  %v1076_v14 = vperm.slane %v4121_v13, 0 }
 0x1c0   :  { %2220 = vmatpush.msra.mxu1 %v4447_v4 }
 0x1c1   :  { %2014 = vmatpush.msrb.mxu2 %v5479_v0  ;;  %7144 = vst [vmem:[#allocation74_spill] sm:$0xff] %v5739_v9  ;;  %1908 = vmatpush.msra.mxu3 %v5739_v9  ;;  %v2289_v9 = vld [vmem:[#allocation10 + $0x30] sm:$0xff] }
 0x1c3   :  { %2018 = vmatpush.msrb.mxu2 %v5494_v44  ;;  %2077 = vmatpush.msrb.mxu3 %v5431_v25 }
 0x1c5   :  { %2022 = vmatpush.msrb.mxu2 %v5509_v49  ;;  %2079 = vmatpush.msrb.mxu3 %v5438_v57  ;;  %v1077_v49 = vperm.slane %v4121_v13, 1 }
 0x1c7   :  { %2026 = vmatpush.msrb.mxu2 %v5526_v15  ;;  %2081 = vmatpush.msrb.mxu3 %v5448_v63 }
 0x1c9   :  { %2030 = vmatpush.msrb.mxu2 %v5541_v42  ;;  %2083 = vmatpush.msrb.mxu3 %v5458_v52 }
 0x1cb   :  { %2034 = vmatpush.msrb.mxu2 %v5555_v32  ;;  %2085 = vmatpush.msrb.mxu3 %v5471_v43 }
 0x1cd   :  { %2038 = vmatpush.msrb.mxu2 %v5565_v10  ;;  %2087 = vmatpush.msrb.mxu3 %v5484_v7  ;;  %v2310_v7 = vld [vmem:[#allocation10 + $0xd8] sm:$0xff] }
 0x1cf   :  { %2042 = vmatpush.msrb.mxu2 %v5621_v28  ;;  %2089 = vmatpush.msrb.mxu3 %v5499_v31 }
 0x1d1   :  { %2046 = vmatpush.msrb.mxu2 %v5634_v60  ;;  %2091 = vmatpush.msrb.mxu3 %v5514_v27 }
 0x1d3   :  { %2050 = vmatpush.msrb.mxu2 %v5649_v29  ;;  %2093 = vmatpush.msrb.mxu3 %v5611_v2 }
 0x1d5   :  { %2054 = vmatpush.msrb.mxu2 %v5665_v41  ;;  %2095 = vmatpush.msrb.mxu3 %v5616_v19  ;;  %v5952_v19 = vsub.f32 %v2285_v24, %v5940_v54 }
 0x1d7   :  { %2058 = vmatpush.msrb.mxu2 %v5683_v38  ;;  %2097 = vmatpush.msrb.mxu3 %v5626_v17 }
 0x1d9   :  { %2062 = vmatpush.msrb.mxu2 %v5702_v56  ;;  %2099 = vmatpush.msrb.mxu3 %v5639_v40 }
 0x1db   :  { %2066 = vmatpush.msrb.mxu2 %v5708_v45  ;;  %2101 = vmatpush.msrb.mxu3 %v5656_v50  ;;  %v5920_v50 = vand.u32 4294901760, %v2289_v9 }
 0x1dd   :  { %2070 = vmatpush.msrb.mxu2 %v5723_v55  ;;  %2103 = vmatpush.msrb.mxu3 %v5671_v59 }
 0x1df   :  { %2105 = vmatpush.msrb.mxu3 %v5680_v11 }
 0x1e1   :  { %2107 = vmatpush.msrb.mxu3 %v5696_v36 }
 0x1f3   :  { %v1273_v56 = vpop.f32.mrf.mxu0 }
 0x1f5   :  { %v1312_v29 = vpop.f32.mrf.mxu1 }
 0x1f7   :  { %v1219_v1 = vpop.f32.mrf.mxu3 }
 0x1ff   :  { %v1118_v18 = vpop.f32.mrf.mxu2  ;;  %v1560_v36 = vpop.f32.mrf.mxu1 }
 0x200   :  { %v1119_v46 = vadd.f32 %v1118_v18, %v1076_v14  ;;  %v1418_v10 = vpop.f32.mrf.mxu3  ;;  %v2313_v14 = vld [vmem:[#allocation10 + $0xf0] sm:$0xff]  ;;  %v2311_v18 = vld [vmem:[#allocation10 + $0xe0] sm:$0xff] }
 0x201   :  { %v5778_v42 = vand.u32 4294901760, %v2313_v14 }
 0x202   :  { %v1220_v38 = vadd.f32 %v1219_v1, %v1119_v46  ;;  %v2309_v1 = vld [vmem:[#allocation10 + $0xd0] sm:$0xff] }
 0x204   :  { %v1274_v41 = vadd.f32 %v1273_v56, %v1220_v38  ;;  %v5780_v38 = vand.u32 4294901760, %v2311_v18  ;;  %v2115_v56 = vld [vmem:[#allocation5] sm:$0xff] }
 0x206   :  { %v1313_v60 = vadd.f32 %v1312_v29, %v1274_v41  ;;  %v2307_v29 = vld [vmem:[#allocation10 + $0xc0] sm:$0xff]  ;;  %v1459_v41 = vpop.f32.mrf.mxu0 }
 0x207   :  { %v1460_v0 = vadd.f32 %v1459_v41, %v1077_v49 }
 0x209   :  { %v1381_v45 = vpop.f32.mrf.mxu2 }
 0x20a   :  { %v1382_v28 = vadd.f32 %v1381_v45, %v1313_v60  ;;  %v5783_v60 = vsub.f32 %v2313_v14, %v5778_v42  ;;  %v5789_v45 = vsub.f32 %v2311_v18, %v5780_v38 }
 0x20c   :  { %v1419_v55 = vadd.f32 %v1418_v10, %v1382_v28  ;;  %v5785_v10 = vand.u32 4294901760, %v2309_v1  ;;  %v2117_v28 = vsel %vm145_vm0, %v2115_v56, 0 }
 0x20d   :  { %v2137_v14 = vand.u32 4294901760, %v2117_v28 }
 0x20e   :  { %v1763_v32 = vmul.f32 1.442695, %v1419_v55  ;;  %vm1762_vm4 = vcmp.gt.f32.partialorder %v1419_v55, 0.0 }
 0x210   :  { %4145 = vpow2.f32 %v1763_v32 }
 0x216   :  { %v4146_v46 = vpop.eup %4145 }
 0x217   :  { %v4122_v15 = vadd.f32 -1.0, %v4146_v46  ;;  %v5791_v46 = vand.u32 4294901760, %v2307_v29 }
 0x219   :  { %v1766_v44 = vsel %vm1762_vm4, %v1419_v55, %v4122_v15  ;;  %v6985_v15 = vand.u32 4294901760, %v5783_v60  ;;  %v5796_v55 = vsub.f32 %v2309_v1, %v5785_v10  ;;  %v5802_v49 = vsub.f32 %v2307_v29, %v5791_v46 }
 0x21a   :  { %v1804_v32 = vand.u32 4294901760, %v1766_v44  ;;  %v1653_v11 = vpop.f32.mrf.mxu3 }
 0x21b   :  { %v2365_v1 = vsub.f32 %v5783_v60, %v6985_v15 }
 0x21c   :  { %1910 = vmatmul.f32.vlgmr.msra.gmra.mxu3 %v1804_v32  ;;  %v1805_v13 = vsub.f32 %v1766_v44, %v1804_v32  ;;  %v1561_v44 = vadd.f32 %v1560_v36, %v1460_v0  ;;  %v7145_v0 = vand.u32 4294901760, %v5789_v45 }
 0x21d   :  { %2165 = vmatpush.msra.mxu3 %v4501_v33 }
 0x21e   :  { %1964 = vmatmul.f32.vlgmr.msrb.gmra.mxu0 %v1805_v13  ;;  %v1806_v8 = vand.u32 4294901760, %v1805_v13  ;;  %v2371_v36 = vsub.f32 %v5789_v45, %v7145_v0 }
 0x21f   :  { %2171 = vmatpush.msra.mxu3 %v4503_v34  ;;  %2245 = vmatpush.msrb.mxu0 %v4474_v20  ;;  %v6983_v34 = vand.u32 4294901760, %v5796_v55  ;;  %v2138_v20 = vsub.f32 %v2117_v28, %v2137_v14 }
 0x220   :  { %2003 = vmatmul.f32.vlgmr.msrb.gmra.mxu1 %v1806_v8  ;;  %v1807_v33 = vsub.f32 %v1805_v13, %v1806_v8  ;;  %v6982_v8 = vand.u32 4294901760, %v5802_v49  ;;  %v2366_v13 = vand.u32 4294901760, %v2365_v1  ;;  %v2372_v0 = vand.u32 4294901760, %v2371_v36  ;;  %v2303_v36 = vld [vmem:[#allocation10 + $0xa0] sm:$0xff] }
 0x221   :  { %v1614_v56 = vpop.f32.mrf.mxu2  ;;  %2270 = vmatpush.msrb.mxu1 %v4445_v3  ;;  %2249 = vmatpush.msrb.mxu0 %v4477_v21  ;;  %v1722_v21 = vpop.f32.mrf.mxu0  ;;  %v2377_v28 = vsub.f32 %v5796_v55, %v6983_v34  ;;  %v2293_v34 = vld [vmem:[#allocation10 + $0x50] sm:$0xff] }
 0x222   :  { %v1615_v41 = vadd.f32 %v1614_v56, %v1561_v44  ;;  %v1808_v18 = vand.u32 4294901760, %v1807_v33  ;;  %v2139_v33 = vand.u32 4294901760, %v2138_v20  ;;  %v1759_v56 = vpop.f32.mrf.mxu1  ;;  %v5896_v15 = vand.u32 4294901760, %v2293_v34 }
 0x223   :  { %2272 = vmatpush.msrb.mxu1 %v4447_v4 }
 0x224   :  { %v1654_v29 = vadd.f32 %v1653_v11, %v1615_v41  ;;  %1809 = vmatmul.f32.vlgmr.msra.gmra.mxu2 %v1808_v18  ;;  %2109 = vmatmul.f32.vlgmr.msrb.gmra.mxu3 %v1804_v32  ;;  %v2383_v11 = vsub.f32 %v5802_v49, %v6982_v8  ;;  %v2378_v18 = vand.u32 4294901760, %v2377_v28  ;;  %v2140_v1 = vsub.f32 %v2138_v20, %v2139_v33 }
 0x225   :  { %2134 = vmatpush.msra.mxu2 %v4445_v3  ;;  %2518 = vmatpush.msrb.mxu3 %v5778_v42 }
 0x226   :  { %v1723_v44 = vadd.f32 %v1722_v21, %v1654_v29  ;;  %2199 = vmatmul.f32.vlgmr.msra.gmra.mxu0 %v2138_v20  ;;  %v2141_v41 = vand.u32 4294901760, %v2140_v1  ;;  %v5841_v21 = vand.u32 4294901760, %v2303_v36 }
 0x227   :  { %2136 = vmatpush.msra.mxu2 %v4447_v4  ;;  %2520 = vmatpush.msrb.mxu3 %v5780_v38  ;;  %v2384_v4 = vand.u32 4294901760, %v2383_v11 }
 0x228   :  { %v1760_v3 = vadd.f32 %v1759_v56, %v1723_v44  ;;  %2224 = vmatmul.f32.vlgmr.msra.gmra.mxu1 %v2139_v33  ;;  %2322 = vmatpush.msra.mxu0 %v5778_v42  ;;  %v5847_v28 = vsub.f32 %v2303_v36, %v5841_v21  ;;  %v2299_v33 = vld [vmem:[#allocation10 + $0x80] sm:$0xff] }
 0x229   :  { %2367 = vmatpush.msra.mxu1 %v2366_v13  ;;  %2522 = vmatpush.msrb.mxu3 %v5785_v10 }
 0x22a   :  { %2324 = vmatpush.msra.mxu0 %v5780_v38  ;;  %1768 = vst.msk [vmem:[#allocation13 + $0x8] sm:$0xff] %vm1038_vm3, %v1760_v3  ;;  %v5862_v3 = vand.u32 4294901760, %v2299_v33 }
 0x22b   :  { %2373 = vmatpush.msra.mxu1 %v2372_v0  ;;  %2524 = vmatpush.msrb.mxu3 %v5791_v46  ;;  %v6980_v0 = vand.u32 4294901760, %v5847_v28 }
 0x22c   :  { %2072 = vmatmul.f32.vlgmr.msrb.gmra.mxu2 %v1804_v32  ;;  %2173 = vmatmul.f32.vlgmr.msra.gmra.mxu3 %v2137_v14  ;;  %v2305_v32 = vld [vmem:[#allocation10 + $0xb0] sm:$0xff] }
 0x22d   :  { %2465 = vmatpush.msrb.mxu2 %v5783_v60  ;;  %2379 = vmatpush.msra.mxu1 %v2378_v18  ;;  %v5836_v20 = vand.u32 4294901760, %v2305_v32  ;;  %v2297_v18 = vld [vmem:[#allocation10 + $0x70] sm:$0xff]  ;;  %v2395_v1 = vsub.f32 %v5847_v28, %v6980_v0 }
 0x22e   :  { %2251 = vmatmul.f32.vlgmr.msrb.gmra.mxu0 %v2137_v14  ;;  %v5875_v36 = vand.u32 4294901760, %v2297_v18 }
 0x22f   :  { %2468 = vmatpush.msrb.mxu2 %v5789_v45  ;;  %2385 = vmatpush.msra.mxu1 %v2384_v4  ;;  %v5839_v29 = vsub.f32 %v2305_v32, %v5836_v20  ;;  %v5871_v32 = vsub.f32 %v2299_v33, %v5862_v3 }
 0x230   :  { %2274 = vmatmul.f32.vlgmr.msrb.gmra.mxu1 %v2137_v14  ;;  %2326 = vmatpush.msra.mxu0 %v5785_v10  ;;  %v2301_v14 = vld [vmem:[#allocation10 + $0x90] sm:$0xff]  ;;  %v5886_v8 = vsub.f32 %v2297_v18, %v5875_v36  ;;  %v2291_v18 = vld [vmem:[#allocation10 + $0x40] sm:$0xff] }
 0x231   :  { %2471 = vmatpush.msrb.mxu2 %v5796_v55  ;;  %2526 = vmatpush.msrb.mxu3 %v5836_v20  ;;  %v6981_v13 = vand.u32 4294901760, %v5839_v29  ;;  %v5850_v44 = vand.u32 4294901760, %v2301_v14 }
 0x232   :  { %2328 = vmatpush.msra.mxu0 %v5791_v46  ;;  %v6993_v26 = vand.u32 4294901760, %v5886_v8 }
 0x233   :  { %2474 = vmatpush.msrb.mxu2 %v5802_v49  ;;  %2528 = vmatpush.msrb.mxu3 %v5841_v21  ;;  %v2389_v56 = vsub.f32 %v5839_v29, %v6981_v13  ;;  %v5859_v11 = vsub.f32 %v2301_v14, %v5850_v44  ;;  %v2295_v14 = vld [vmem:[#allocation10 + $0x60] sm:$0xff]  ;;  %v6989_v13 = vand.u32 4294901760, %v5871_v32 }
 0x234   :  { %2142 = vmatmul.f32.vlgmr.msra.gmra.mxu2 %v2141_v41  ;;  %2330 = vmatpush.msra.mxu0 %v5836_v20  ;;  %v5883_v33 = vand.u32 4294901760, %v2295_v14 }
 0x235   :  { %2477 = vmatpush.msrb.mxu2 %v5839_v29  ;;  %2530 = vmatpush.msrb.mxu3 %v5850_v44  ;;  %v2390_v4 = vand.u32 4294901760, %v2389_v56  ;;  %v6984_v41 = vand.u32 4294901760, %v5859_v11  ;;  %v2396_v56 = vand.u32 4294901760, %v2395_v1  ;;  %v2407_v1 = vsub.f32 %v5871_v32, %v6989_v13 }
 0x236   :  { %2332 = vmatpush.msra.mxu0 %v5841_v21  ;;  %v5905_v13 = vand.u32 4294901760, %v2291_v18 }
 0x237   :  { %2480 = vmatpush.msrb.mxu2 %v5847_v28  ;;  %2532 = vmatpush.msrb.mxu3 %v5862_v3  ;;  %v2401_v0 = vsub.f32 %v5859_v11, %v6984_v41  ;;  %v5894_v41 = vsub.f32 %v2295_v14, %v5883_v33  ;;  %v2408_v59 = vand.u32 4294901760, %v2407_v1  ;;  %v2413_v14 = vsub.f32 %v5886_v8, %v6993_v26 }
 0x238   :  { %2334 = vmatpush.msra.mxu0 %v5850_v44  ;;  %2391 = vmatpush.msra.mxu1 %v2390_v4  ;;  %v5918_v1 = vsub.f32 %v2291_v18, %v5905_v13  ;;  %v5930_v18 = vsub.f32 %v2289_v9, %v5920_v50 }
 0x239   :  { %2483 = vmatpush.msrb.mxu2 %v5859_v11  ;;  %2534 = vmatpush.msrb.mxu3 %v5875_v36  ;;  %v2402_v4 = vand.u32 4294901760, %v2401_v0  ;;  %v6995_v0 = vand.u32 4294901760, %v5894_v41  ;;  %v2414_v26 = vand.u32 4294901760, %v2413_v14  ;;  %v5934_v14 = vand.u32 4294901760, %v2287_v53 }
 0x23a   :  { %2336 = vmatpush.msra.mxu0 %v5862_v3  ;;  %2397 = vmatpush.msra.mxu1 %v2396_v56  ;;  %v5903_v56 = vsub.f32 %v2293_v34, %v5896_v15  ;;  %v7003_v40 = vand.u32 4294901760, %v5918_v1 }
 0x23b   :  { %2486 = vmatpush.msrb.mxu2 %v5871_v32  ;;  %2536 = vmatpush.msrb.mxu3 %v5883_v33  ;;  %v5945_v9 = vsub.f32 %v2287_v53, %v5934_v14 }
 0x23c   :  { %2338 = vmatpush.msra.mxu0 %v5875_v36  ;;  %2403 = vmatpush.msra.mxu1 %v2402_v4  ;;  %v2419_v4 = vsub.f32 %v5894_v41, %v6995_v0  ;;  %v7001_v34 = vand.u32 4294901760, %v5903_v56 }
 0x23d   :  { %2489 = vmatpush.msrb.mxu2 %v5886_v8  ;;  %2538 = vmatpush.msrb.mxu3 %v5896_v15  ;;  %v7011_v53 = vand.u32 4294901760, %v5945_v9 }
 0x23e   :  { %2340 = vmatpush.msra.mxu0 %v5883_v33  ;;  %2409 = vmatpush.msra.mxu1 %v2408_v59  ;;  %v2420_v59 = vand.u32 4294901760, %v2419_v4  ;;  %v2425_v0 = vsub.f32 %v5903_v56, %v7001_v34  ;;  %v2431_v4 = vsub.f32 %v5918_v1, %v7003_v40  ;;  %v7010_v34 = vand.u32 4294901760, %v5930_v18 }
 0x23f   :  { %2492 = vmatpush.msrb.mxu2 %v5894_v41  ;;  %2540 = vmatpush.msrb.mxu3 %v5905_v13  ;;  %v2443_v24 = vsub.f32 %v5945_v9, %v7011_v53 }
 0x240   :  { %2342 = vmatpush.msra.mxu0 %v5896_v15  ;;  %2415 = vmatpush.msra.mxu1 %v2414_v26  ;;  %v2426_v17 = vand.u32 4294901760, %v2425_v0  ;;  %v2283_v26 = vld [vmem:[#allocation10] sm:$0xff]  ;;  %v2432_v0 = vand.u32 4294901760, %v2431_v4  ;;  %v2437_v40 = vsub.f32 %v5930_v18, %v7010_v34  ;;  %v7015_v4 = vand.u32 4294901760, %v5952_v19  ;;  %v2314_v34 = vld [vmem:[#allocation10 + $0xf8] sm:$0xff] }
 0x241   :  { %2495 = vmatpush.msrb.mxu2 %v5903_v56  ;;  %2542 = vmatpush.msrb.mxu3 %v5920_v50  ;;  %v5954_v2 = vand.u32 4294901760, %v2283_v26 }
 0x242   :  { %2344 = vmatpush.msra.mxu0 %v5905_v13  ;;  %2421 = vmatpush.msra.mxu1 %v2420_v59  ;;  %v2438_v59 = vand.u32 4294901760, %v2437_v40 }
 0x243   :  { %2498 = vmatpush.msrb.mxu2 %v5918_v1  ;;  %2544 = vmatpush.msrb.mxu3 %v5934_v14  ;;  %v5962_v27 = vsub.f32 %v2283_v26, %v5954_v2  ;;  %v2444_v26 = vand.u32 4294901760, %v2443_v24 }
 0x244   :  { %2346 = vmatpush.msra.mxu0 %v5920_v50  ;;  %2427 = vmatpush.msra.mxu1 %v2426_v17  ;;  %v2449_v17 = vsub.f32 %v5952_v19, %v7015_v4  ;;  %v7146_v4 = vand.u32 4294901760, %v5783_v60  ;;  %v5994_v60 = vand.u32 4294901760, %v2310_v7 }
 0x245   :  { %2501 = vmatpush.msrb.mxu2 %v5930_v18  ;;  %2546 = vmatpush.msrb.mxu3 %v5940_v54  ;;  %v7019_v40 = vand.u32 4294901760, %v5962_v27 }
 0x246   :  { %2348 = vmatpush.msra.mxu0 %v5934_v14  ;;  %2433 = vmatpush.msra.mxu1 %v2432_v0  ;;  %v5977_v0 = vand.u32 4294901760, %v2314_v34  ;;  %v2450_v53 = vand.u32 4294901760, %v2449_v17  ;;  %v7147_v17 = vand.u32 4294901760, %v5789_v45 }
 0x247   :  { %2504 = vmatpush.msrb.mxu2 %v5945_v9  ;;  %2548 = vmatpush.msrb.mxu3 %v5954_v2  ;;  %v2455_v31 = vsub.f32 %v5962_v27, %v7019_v40 }
 0x248   :  { %2350 = vmatpush.msra.mxu0 %v5940_v54  ;;  %2439 = vmatpush.msra.mxu1 %v2438_v59  ;;  %v5986_v35 = vsub.f32 %v2314_v34, %v5977_v0  ;;  %v5988_v59 = vand.u32 4294901760, %v2312_v22  ;;  %v7148_v34 = vand.u32 4294901760, %v5796_v55  ;;  %v7149_v55 = vand.u32 4294901760, %v5802_v49 }
 0x249   :  { %2507 = vmatpush.msrb.mxu2 %v5952_v19  ;;  %v2456_v24 = vand.u32 4294901760, %v2455_v31  ;;  %v7150_v49 = vand.u32 4294901760, %v5839_v29  ;;  %v7151_v29 = vand.u32 4294901760, %v5847_v28  ;;  %v7152_v28 = vand.u32 4294901760, %v5859_v11 }
 0x24a   :  { %2352 = vmatpush.msra.mxu0 %v5954_v2  ;;  %2445 = vmatpush.msra.mxu1 %v2444_v26  ;;  %v7020_v40 = vand.u32 4294901760, %v5986_v35  ;;  %v2308_v26 = vld [vmem:[#allocation10 + $0xc8] sm:$0xff]  ;;  %v7153_v11 = vand.u32 4294901760, %v5871_v32 }
 0x24b   :  { %2510 = vmatpush.msrb.mxu2 %v5962_v27 }
 0x24c   :  { %2559 = vmatpush.msrb.mxu0 %v7146_v4  ;;  %2451 = vmatpush.msra.mxu1 %v2450_v53  ;;  %v5997_v4 = vsub.f32 %v2312_v22, %v5988_v59  ;;  %v2706_v31 = vsub.f32 %v5986_v35, %v7020_v40  ;;  %v6006_v53 = vand.u32 4294901760, %v2308_v26  ;;  %v2306_v22 = vld [vmem:[#allocation10 + $0xb8] sm:$0xff] }
 0x24d   :  { %2663 = vmatpush.msra.mxu2 %v5977_v0  ;;  %v6019_v16 = vand.u32 4294901760, %v2306_v22 }
 0x24e   :  { %2563 = vmatpush.msrb.mxu0 %v7147_v17  ;;  %2457 = vmatpush.msra.mxu1 %v2456_v24  ;;  %v7022_v45 = vand.u32 4294901760, %v5997_v4  ;;  %v6009_v17 = vsub.f32 %v2310_v7, %v5994_v60  ;;  %v2707_v24 = vand.u32 4294901760, %v2706_v31  ;;  %v6023_v7 = vsub.f32 %v2308_v26, %v6006_v53  ;;  %v2302_v26 = vld [vmem:[#allocation10 + $0x98] sm:$0xff] }
 0x24f   :  { %2665 = vmatpush.msra.mxu2 %v5988_v59  ;;  %v6034_v48 = vsub.f32 %v2306_v22, %v6019_v16  ;;  %v2300_v22 = vld [vmem:[#allocation10 + $0x88] sm:$0xff] }
 0x250   :  { %2567 = vmatpush.msrb.mxu0 %v7148_v34  ;;  %2626 = vmatpush.msrb.mxu1 %v5778_v42  ;;  %v2712_v34 = vsub.f32 %v5997_v4, %v7022_v45  ;;  %v7024_v40 = vand.u32 4294901760, %v6009_v17  ;;  %v2304_v42 = vld [vmem:[#allocation10 + $0xa8] sm:$0xff] }
 0x251   :  { %2667 = vmatpush.msra.mxu2 %v5994_v60  ;;  %2708 = vmatpush.msra.mxu3 %v2707_v24  ;;  %v6031_v45 = vand.u32 4294901760, %v2304_v42 }
 0x252   :  { %2571 = vmatpush.msrb.mxu0 %v7149_v55  ;;  %2628 = vmatpush.msrb.mxu1 %v5780_v38  ;;  %v2713_v31 = vand.u32 4294901760, %v2712_v34  ;;  %v2718_v55 = vsub.f32 %v6009_v17, %v7024_v40  ;;  %v7025_v38 = vand.u32 4294901760, %v6023_v7  ;;  %v7026_v34 = vand.u32 4294901760, %v6034_v48 }
 0x253   :  { %2669 = vmatpush.msra.mxu2 %v6006_v53  ;;  %v6045_v40 = vsub.f32 %v2304_v42, %v6031_v45 }
 0x254   :  { %2575 = vmatpush.msrb.mxu0 %v7150_v49  ;;  %2630 = vmatpush.msrb.mxu1 %v5785_v10  ;;  %v2719_v24 = vand.u32 4294901760, %v2718_v55  ;;  %v6042_v49 = vand.u32 4294901760, %v2302_v26  ;;  %v2724_v10 = vsub.f32 %v6023_v7, %v7025_v38  ;;  %v6058_v55 = vand.u32 4294901760, %v2300_v22  ;;  %v2298_v38 = vld [vmem:[#allocation10 + $0x78] sm:$0xff] }
 0x255   :  { %2671 = vmatpush.msra.mxu2 %v6019_v16  ;;  %2714 = vmatpush.msra.mxu3 %v2713_v31  ;;  %v2730_v31 = vsub.f32 %v6034_v48, %v7026_v34  ;;  %v7029_v42 = vand.u32 4294901760, %v6045_v40  ;;  %v6071_v43 = vand.u32 4294901760, %v2298_v38 }
 0x256   :  { %2579 = vmatpush.msrb.mxu0 %v7151_v29  ;;  %2632 = vmatpush.msrb.mxu1 %v5791_v46  ;;  %v6061_v46 = vsub.f32 %v2302_v26, %v6042_v49  ;;  %v2725_v29 = vand.u32 4294901760, %v2724_v10  ;;  %v2296_v26 = vld [vmem:[#allocation10 + $0x68] sm:$0xff] }
 0x257   :  { %2673 = vmatpush.msra.mxu2 %v6031_v45  ;;  %2720 = vmatpush.msra.mxu3 %v2719_v24  ;;  %v2731_v24 = vand.u32 4294901760, %v2730_v31  ;;  %v6081_v31 = vand.u32 4294901760, %v2296_v26 }
 0x258   :  { %2583 = vmatpush.msrb.mxu0 %v7152_v28  ;;  %2634 = vmatpush.msrb.mxu1 %v5836_v20  ;;  %v2736_v28 = vsub.f32 %v6045_v40, %v7029_v42  ;;  %v7030_v34 = vand.u32 4294901760, %v6061_v46  ;;  %v6075_v20 = vsub.f32 %v2300_v22, %v6058_v55  ;;  %v7154_v42 = vand.u32 4294901760, %v5886_v8  ;;  %v2294_v22 = vld [vmem:[#allocation10 + $0x58] sm:$0xff] }
 0x259   :  { %2675 = vmatpush.msra.mxu2 %v6042_v49  ;;  %2726 = vmatpush.msra.mxu3 %v2725_v29  ;;  %v6095_v39 = vsub.f32 %v2296_v26, %v6081_v31  ;;  %v4140_v8 = vld [vmem:[%s6919_s7] ss:$0 sm:$0xff] }
 0x25a   :  { %2587 = vmatpush.msrb.mxu0 %v7153_v11  ;;  %2636 = vmatpush.msrb.mxu1 %v5841_v21  ;;  %v2737_v32 = vand.u32 4294901760, %v2736_v28  ;;  %v2742_v10 = vsub.f32 %v6061_v46, %v7030_v34  ;;  %v6084_v11 = vsub.f32 %v2298_v38, %v6071_v43  ;;  %v7032_v21 = vand.u32 4294901760, %v6075_v20 }
 0x25b   :  { %2677 = vmatpush.msra.mxu2 %v6058_v55  ;;  %2732 = vmatpush.msra.mxu3 %v2731_v24  ;;  %v6092_v34 = vand.u32 4294901760, %v2294_v22  ;;  %v7155_v38 = vand.u32 4294901760, %v5894_v41  ;;  %v7038_v41 = vand.u32 4294901760, %v6095_v39 }
 0x25c   :  { %2591 = vmatpush.msrb.mxu0 %v7154_v42  ;;  %2638 = vmatpush.msrb.mxu1 %v5850_v44  ;;  %v2743_v29 = vand.u32 4294901760, %v2742_v10  ;;  %v7036_v28 = vand.u32 4294901760, %v6084_v11  ;;  %v2748_v44 = vsub.f32 %v6075_v20, %v7032_v21  ;;  %v2292_v42 = vld [vmem:[#allocation10 + $0x48] sm:$0xff]  ;;  %v2290_v21 = vld [vmem:[#allocation10 + $0x38] sm:$0xff] }
 0x25d   :  { %2679 = vmatpush.msra.mxu2 %v6071_v43  ;;  %2738 = vmatpush.msra.mxu3 %v2737_v32  ;;  %v6111_v10 = vand.u32 4294901760, %v2292_v42 }
 0x25e   :  { %2595 = vmatpush.msrb.mxu0 %v7155_v38  ;;  %2640 = vmatpush.msrb.mxu1 %v5862_v3  ;;  %v2754_v26 = vsub.f32 %v6084_v11, %v7036_v28  ;;  %v6114_v38 = vsub.f32 %v2294_v22, %v6092_v34  ;;  %v7156_v3 = vand.u32 4294901760, %v5903_v56  ;;  %v2749_v32 = vand.u32 4294901760, %v2748_v44 }
 0x25f   :  { %2681 = vmatpush.msra.mxu2 %v6081_v31  ;;  %2744 = vmatpush.msra.mxu3 %v2743_v29  ;;  %v2760_v28 = vsub.f32 %v6095_v39, %v7038_v41  ;;  %v6124_v22 = vand.u32 4294901760, %v2290_v21  ;;  %v7157_v56 = vand.u32 4294901760, %v5918_v1  ;;  %v2288_v29 = vld [vmem:[#allocation10 + $0x28] sm:$0xff] }
 0x260   :  { %2599 = vmatpush.msrb.mxu0 %v7156_v3  ;;  %2642 = vmatpush.msrb.mxu1 %v5875_v36  ;;  %v2755_v52 = vand.u32 4294901760, %v2754_v26  ;;  %v7039_v58 = vand.u32 4294901760, %v6114_v38  ;;  %v6130_v36 = vsub.f32 %v2292_v42, %v6111_v10  ;;  %v6136_v41 = vand.u32 4294901760, %v2288_v29 }
 0x261   :  { %2683 = vmatpush.msra.mxu2 %v6092_v34  ;;  %2750 = vmatpush.msra.mxu3 %v2749_v32  ;;  %v2761_v44 = vand.u32 4294901760, %v2760_v28  ;;  %v6139_v1 = vsub.f32 %v2290_v21, %v6124_v22 }
 0x262   :  { %2603 = vmatpush.msrb.mxu0 %v7157_v56  ;;  %2644 = vmatpush.msrb.mxu1 %v5883_v33  ;;  %v2766_v26 = vsub.f32 %v6114_v38, %v7039_v58  ;;  %v7041_v28 = vand.u32 4294901760, %v6130_v36  ;;  %v6150_v21 = vsub.f32 %v2288_v29, %v6136_v41 }
 0x263   :  { %2685 = vmatpush.msra.mxu2 %v6111_v10  ;;  %2756 = vmatpush.msra.mxu3 %v2755_v52  ;;  %v7040_v56 = vand.u32 4294901760, %v6139_v1 }
 0x264   :  { %2646 = vmatpush.msrb.mxu1 %v5896_v15  ;;  %v2767_v32 = vand.u32 4294901760, %v2766_v26  ;;  %v2772_v52 = vsub.f32 %v6130_v36, %v7041_v28  ;;  %v2284_v15 = vld [vmem:[#allocation10 + $0x8] sm:$0xff]  ;;  %v2783_v29 = vand.u32 4294901760, %v6150_v21 }
 0x265   :  { %2687 = vmatpush.msra.mxu2 %v6124_v22  ;;  %2762 = vmatpush.msra.mxu3 %v2761_v44  ;;  %v2778_v26 = vsub.f32 %v6139_v1, %v7040_v56 }
 0x266   :  { %2648 = vmatpush.msrb.mxu1 %v5905_v13  ;;  %v7160_v13 = vand.u32 4294901760, %v5952_v19  ;;  %v2784_v28 = vsub.f32 %v6150_v21, %v2783_v29  ;;  %v7161_v19 = vand.u32 4294901760, %v5962_v27 }
 0x267   :  { %2689 = vmatpush.msra.mxu2 %v6136_v41  ;;  %2768 = vmatpush.msra.mxu3 %v2767_v32  ;;  %v2779_v56 = vand.u32 4294901760, %v2778_v26 }
 0x268   :  { %2650 = vmatpush.msrb.mxu1 %v5920_v50  ;;  %v2785_v32 = vand.u32 4294901760, %v2784_v28 }
 0x26a   :  { %2652 = vmatpush.msrb.mxu1 %v5934_v14 }
 0x26c   :  { %2654 = vmatpush.msrb.mxu1 %v5940_v54 }
 0x26e   :  { %2656 = vmatpush.msrb.mxu1 %v5954_v2 }
 0x29b   :  { %v1965_v42 = vpop.f32.mrf.mxu0 }
 0x29f   :  { %v1911_v24 = vpop.f32.mrf.mxu3 }
 0x2a7   :  { %v1810_v23 = vpop.f32.mrf.mxu2 }
 0x2a8   :  { %v1811_v3 = vadd.f32 %v4140_v8, %v1810_v23  ;;  %v7158_v23 = vand.u32 4294901760, %v5930_v18  ;;  %v2286_v8 = vld [vmem:[#allocation10 + $0x18] sm:$0xff]  ;;  %v7159_v18 = vand.u32 4294901760, %v5945_v9  ;;  %v6163_v9 = vand.u32 4294901760, %v2284_v15 }
 0x2a9   :  { %v6147_v58 = vand.u32 4294901760, %v2286_v8 }
 0x2aa   :  { %2607 = vmatpush.msrb.mxu0 %v7158_v23  ;;  %v1912_v33 = vadd.f32 %v1911_v24, %v1811_v3  ;;  %v2004_v3 = vpop.f32.mrf.mxu1  ;;  %v6177_v62 = vsub.f32 %v2284_v15, %v6163_v9  ;;  %v2200_v15 = vpop.f32.mrf.mxu0 }
 0x2ab   :  { %2691 = vmatpush.msra.mxu2 %v6147_v58  ;;  %v6166_v23 = vsub.f32 %v2286_v8, %v6147_v58 }
 0x2ac   :  { %2611 = vmatpush.msrb.mxu0 %v7159_v18  ;;  %v1966_v24 = vadd.f32 %v1965_v42, %v1912_v33  ;;  %v2773_v33 = vand.u32 4294901760, %v2772_v52  ;;  %v2110_v42 = vpop.f32.mrf.mxu3  ;;  %v7043_v52 = vand.u32 4294901760, %v6177_v62 }
 0x2ad   :  { %2693 = vmatpush.msra.mxu2 %v6163_v9  ;;  %v7044_v8 = vand.u32 4294901760, %v6166_v23 }
 0x2ae   :  { %2615 = vmatpush.msrb.mxu0 %v7160_v13  ;;  %v2005_v44 = vadd.f32 %v2004_v3, %v1966_v24  ;;  %2774 = vmatpush.msra.mxu3 %v2773_v33  ;;  %v2796_v27 = vsub.f32 %v6177_v62, %v7043_v52  ;;  %v4153_v33 = vld [vmem:[#allocation8] ss:$0 sm:$0xff] }
 0x2af   :  { %v2073_v18 = vpop.f32.mrf.mxu2  ;;  %v2790_v24 = vsub.f32 %v6166_v23, %v7044_v8 }
 0x2b0   :  { %2619 = vmatpush.msrb.mxu0 %v7161_v19  ;;  %v2074_v50 = vadd.f32 %v2073_v18, %v2005_v44  ;;  %2780 = vmatpush.msra.mxu3 %v2779_v56  ;;  %v2797_v28 = vand.u32 4294901760, %v2796_v27 }
 0x2b1   :  { %v2791_v26 = vand.u32 4294901760, %v2790_v24 }
 0x2b2   :  { %v2111_v3 = vadd.f32 %v2110_v42, %v2074_v50  ;;  %2786 = vmatpush.msra.mxu3 %v2785_v32  ;;  %v2225_v14 = vpop.f32.mrf.mxu1  ;;  %v2252_v18 = vpop.f32.mrf.mxu0 }
 0x2b4   :  { %2114 = vst.msk [vmem:[#allocation13 + $0x10] sm:$0xff] %vm1038_vm3, %v2111_v3  ;;  %2792 = vmatpush.msra.mxu3 %v2791_v26  ;;  %v2174_v44 = vpop.f32.mrf.mxu3 }
 0x2b5   :  { %4091 = dma.vmem_to_hbm [thread:$0]  %s4084_s0, 384, %s4086_s3, [#allocation4], %s4363_s27, %s4363_s27, %s4364_s28  }
 0x2b6   :  { %2798 = vmatpush.msra.mxu3 %v2797_v28 }
 0x2b7   :  { %v2143_v13 = vpop.f32.mrf.mxu2 }
 0x2b8   :  { %v2144_v42 = vadd.f32 %v4153_v33, %v2143_v13  ;;  %v7164_v13 = vand.u32 4294901760, %v6009_v17  ;;  %v7170_v33 = vand.u32 4294901760, %v6084_v11 }
 0x2ba   :  { %v2175_v54 = vadd.f32 %v2174_v44, %v2144_v42  ;;  %v2275_v50 = vpop.f32.mrf.mxu1  ;;  %v7165_v44 = vand.u32 4294901760, %v6023_v7 }
 0x2bc   :  { %v2201_v56 = vadd.f32 %v2200_v15, %v2175_v54  ;;  %v3031_v54 = vld [vmem:[#allocation10 + $0x1b0] sm:$0xff] }
 0x2be   :  { %v2226_v19 = vadd.f32 %v2225_v14, %v2201_v56  ;;  %v7163_v14 = vand.u32 4294901760, %v5997_v4 }
 0x2c0   :  { %v2253_v24 = vadd.f32 %v2252_v18, %v2226_v19  ;;  %v6271_v18 = vand.u32 4294901760, %v3031_v54 }
 0x2c2   :  { %v2276_v52 = vadd.f32 %v2275_v50, %v2253_v24  ;;  %v7173_v24 = vand.u32 4294901760, %v6130_v36 }
 0x2c4   :  { %v2279_v8 = vmul.f32 1.442695, %v2276_v52  ;;  %vm2278_vm5 = vcmp.gt.f32.partialorder %v2276_v52, 0.0 }
 0x2c6   :  { %4147 = vpow2.f32 %v2279_v8  ;;  %v7162_v8 = vand.u32 4294901760, %v5986_v35 }
 0x2cc   :  { %v4148_v3 = vpop.eup %4147 }
 0x2cd   :  { %v4123_v2 = vadd.f32 -1.0, %v4148_v3 }
 0x2cf   :  { %v2282_v32 = vsel %vm2278_vm5, %v2276_v52, %v4123_v2  ;;  %v3025_v2 = vld [vmem:[#allocation10 + $0x180] sm:$0xff] }
 0x2d0   :  { %v6192_v27 = vand.u32 4294901760, %v2282_v32 }
 0x2d2   :  { %v6195_v26 = vsub.f32 %v2282_v32, %v6192_v27  ;;  %2459 = vmatmul.f32.vlgmr.msra.gmra.mxu1 %v6192_v27  ;;  %v7174_v32 = vand.u32 4294901760, %v6139_v1 }
 0x2d3   :  { %2859 = vmatpush.msra.mxu1 %v5977_v0 }
 0x2d4   :  { %2513 = vmatmul.f32.vlgmr.msrb.gmra.mxu2 %v6195_v26  ;;  %v6201_v15 = vand.u32 4294901760, %v6195_v26 }
 0x2d5   :  { %2861 = vmatpush.msra.mxu1 %v5988_v59  ;;  %2900 = vmatpush.msrb.mxu2 %v7162_v8 }
 0x2d6   :  { %2552 = vmatmul.f32.vlgmr.msrb.gmra.mxu3 %v6201_v15  ;;  %v2356_v52 = vsub.f32 %v6195_v26, %v6201_v15 }
 0x2d7   :  { %2863 = vmatpush.msra.mxu1 %v5994_v60  ;;  %2904 = vmatpush.msrb.mxu2 %v7163_v14  ;;  %v3023_v14 = vld [vmem:[#allocation10 + $0x170] sm:$0xff] }
 0x2d8   :  { %2967 = vmatpush.msrb.mxu3 %v5977_v0  ;;  %v2357_v28 = vand.u32 4294901760, %v2356_v52  ;;  %v7166_v0 = vand.u32 4294901760, %v6034_v48 }
 0x2d9   :  { %2865 = vmatpush.msra.mxu1 %v6006_v53  ;;  %2908 = vmatpush.msrb.mxu2 %v7164_v13  ;;  %v6317_v13 = vand.u32 4294901760, %v3025_v2 }
 0x2da   :  { %2969 = vmatpush.msrb.mxu3 %v5988_v59  ;;  %2358 = vmatmul.f32.vlgmr.msra.gmra.mxu0 %v2357_v28  ;;  %v3039_v59 = vld [vmem:[#allocation10 + $0x1f0] sm:$0xff] }
 0x2db   :  { %2658 = vmatmul.f32.vlgmr.msrb.gmra.mxu1 %v6192_v27  ;;  %2806 = vmatpush.msra.mxu0 %v5986_v35  ;;  %v7167_v35 = vand.u32 4294901760, %v6045_v40 }
 0x2dc   :  { %2867 = vmatpush.msra.mxu1 %v6019_v16  ;;  %2912 = vmatpush.msrb.mxu2 %v7165_v44  ;;  %v3021_v44 = vld [vmem:[#allocation10 + $0x160] sm:$0xff] }
 0x2dd   :  { %2971 = vmatpush.msrb.mxu3 %v5994_v60  ;;  %2699 = vmatmul.f32.vlgmr.msra.gmra.mxu2 %v2357_v28  ;;  %v7168_v60 = vand.u32 4294901760, %v6061_v46 }
 0x2de   :  { %2809 = vmatpush.msra.mxu0 %v5997_v4  ;;  %2869 = vmatpush.msra.mxu1 %v6031_v45  ;;  %v3037_v4 = vld [vmem:[#allocation10 + $0x1e0] sm:$0xff] }
 0x2df   :  { %2916 = vmatpush.msrb.mxu2 %v7166_v0  ;;  %2973 = vmatpush.msrb.mxu3 %v6006_v53  ;;  %v6240_v53 = vand.u32 4294901760, %v3039_v59  ;;  %v7175_v0 = vand.u32 4294901760, %v6166_v23 }
 0x2e0   :  { %2800 = vmatmul.f32.vlgmr.msra.gmra.mxu3 %v6192_v27  ;;  %2812 = vmatpush.msra.mxu0 %v6009_v17  ;;  %v3035_v17 = vld [vmem:[#allocation10 + $0x1d0] sm:$0xff] }
 0x2e1   :  { %2871 = vmatpush.msra.mxu1 %v6042_v49  ;;  %2920 = vmatpush.msrb.mxu2 %v7167_v35  ;;  %v6257_v42 = vand.u32 4294901760, %v3035_v17 }
 0x2e2   :  { %2975 = vmatpush.msrb.mxu3 %v6019_v16  ;;  %2815 = vmatpush.msra.mxu0 %v6023_v7  ;;  %v7169_v16 = vand.u32 4294901760, %v6075_v20  ;;  %v6247_v7 = vand.u32 4294901760, %v3037_v4 }
 0x2e3   :  { %2873 = vmatpush.msra.mxu1 %v6058_v55  ;;  %2924 = vmatpush.msrb.mxu2 %v7168_v60  ;;  %v3019_v60 = vld [vmem:[#allocation10 + $0x150] sm:$0xff] }
 0x2e4   :  { %2977 = vmatpush.msrb.mxu3 %v6031_v45  ;;  %2621 = vmatmul.f32.vlgmr.msrb.gmra.mxu0 %v6192_v27  ;;  %v3033_v45 = vld [vmem:[#allocation10 + $0x1c0] sm:$0xff] }
 0x2e5   :  { %2818 = vmatpush.msra.mxu0 %v6034_v48  ;;  %2875 = vmatpush.msra.mxu1 %v6071_v43  ;;  %v6255_v48 = vsub.f32 %v3039_v59, %v6240_v53  ;;  %v6267_v56 = vand.u32 4294901760, %v3033_v45  ;;  %v6331_v59 = vand.u32 4294901760, %v3023_v14 }
 0x2e6   :  { %2928 = vmatpush.msrb.mxu2 %v7169_v16  ;;  %2979 = vmatpush.msrb.mxu3 %v6042_v49  ;;  %v6265_v49 = vsub.f32 %v3037_v4, %v6247_v7  ;;  %v7176_v4 = vand.u32 4294901760, %v6177_v62  ;;  %v6343_v16 = vsub.f32 %v3025_v2, %v6317_v13 }
 0x2e7   :  { %2821 = vmatpush.msra.mxu0 %v6045_v40  ;;  %2877 = vmatpush.msra.mxu1 %v6081_v31  ;;  %v7171_v40 = vand.u32 4294901760, %v6095_v39  ;;  %v3090_v19 = vand.u32 4294901760, %v6255_v48 }
 0x2e8   :  { %2932 = vmatpush.msrb.mxu2 %v7170_v33  ;;  %2981 = vmatpush.msrb.mxu3 %v6058_v55  ;;  %v3029_v55 = vld [vmem:[#allocation10 + $0x1a0] sm:$0xff]  ;;  %v3096_v3 = vand.u32 4294901760, %v6265_v49 }
 0x2e9   :  { %2824 = vmatpush.msra.mxu0 %v6061_v46  ;;  %2879 = vmatpush.msra.mxu1 %v6092_v34  ;;  %v7172_v46 = vand.u32 4294901760, %v6114_v38  ;;  %v6282_v50 = vand.u32 4294901760, %v3029_v55 }
 0x2ea   :  { %2936 = vmatpush.msrb.mxu2 %v7171_v40  ;;  %2983 = vmatpush.msrb.mxu3 %v6071_v43  ;;  %v6278_v43 = vsub.f32 %v3035_v17, %v6257_v42  ;;  %v6357_v40 = vand.u32 4294901760, %v3019_v60 }
 0x2eb   :  { %2827 = vmatpush.msra.mxu0 %v6075_v20  ;;  %2881 = vmatpush.msra.mxu1 %v6111_v10  ;;  %v3027_v20 = vld [vmem:[#allocation10 + $0x190] sm:$0xff] }
 0x2ec   :  { %2940 = vmatpush.msrb.mxu2 %v7172_v46  ;;  %2985 = vmatpush.msrb.mxu3 %v6081_v31  ;;  %v6289_v31 = vsub.f32 %v3033_v45, %v6267_v56  ;;  %v3102_v8 = vand.u32 4294901760, %v6278_v43  ;;  %v6303_v52 = vand.u32 4294901760, %v3027_v20  ;;  %v6345_v45 = vand.u32 4294901760, %v3021_v44 }
 0x2ed   :  { %2830 = vmatpush.msra.mxu0 %v6084_v11  ;;  %2883 = vmatpush.msra.mxu1 %v6124_v22  ;;  %v6294_v11 = vsub.f32 %v3031_v54, %v6271_v18  ;;  %v6355_v54 = vsub.f32 %v3023_v14, %v6331_v59  ;;  %v3132_v46 = vand.u32 4294901760, %v6343_v16 }
 0x2ee   :  { %2944 = vmatpush.msrb.mxu2 %v7173_v24  ;;  %2987 = vmatpush.msrb.mxu3 %v6092_v34  ;;  %v3091_v34 = vsub.f32 %v6255_v48, %v3090_v19  ;;  %v3108_v28 = vand.u32 4294901760, %v6289_v31  ;;  %v6329_v35 = vsub.f32 %v3027_v20, %v6303_v52  ;;  %v6367_v20 = vsub.f32 %v3021_v44, %v6345_v45 }
 0x2ef   :  { %2833 = vmatpush.msra.mxu0 %v6095_v39  ;;  %2885 = vmatpush.msra.mxu1 %v6136_v41  ;;  %v6308_v39 = vsub.f32 %v3029_v55, %v6282_v50  ;;  %v3015_v55 = vld [vmem:[#allocation10 + $0x130] sm:$0xff] }
 0x2f0   :  { %2948 = vmatpush.msrb.mxu2 %v7174_v32  ;;  %2989 = vmatpush.msrb.mxu3 %v6111_v10  ;;  %v3097_v10 = vsub.f32 %v6265_v49, %v3096_v3  ;;  %v3109_v17 = vsub.f32 %v6289_v31, %v3108_v28  ;;  %v3126_v33 = vand.u32 4294901760, %v6329_v35  ;;  %v3138_v32 = vand.u32 4294901760, %v6355_v54 }
 0x2f1   :  { %2836 = vmatpush.msra.mxu0 %v6114_v38  ;;  %2887 = vmatpush.msra.mxu1 %v6147_v58  ;;  %v3114_v38 = vand.u32 4294901760, %v6294_v11  ;;  %v6381_v14 = vand.u32 4294901760, %v3015_v55 }
 0x2f2   :  { %2952 = vmatpush.msrb.mxu2 %v2783_v29  ;;  %2991 = vmatpush.msrb.mxu3 %v6124_v22  ;;  %v3092_v22 = vand.u32 4294901760, %v3091_v34  ;;  %v3103_v29 = vsub.f32 %v6278_v43, %v3102_v8  ;;  %v3127_v2 = vsub.f32 %v6329_v35, %v3126_v33  ;;  %v6379_v34 = vsub.f32 %v3019_v60, %v6357_v40 }
 0x2f3   :  { %2839 = vmatpush.msra.mxu0 %v6130_v36  ;;  %2889 = vmatpush.msra.mxu1 %v6163_v9  ;;  %v3120_v36 = vand.u32 4294901760, %v6308_v39 }
 0x2f4   :  { %2956 = vmatpush.msrb.mxu2 %v7175_v0  ;;  %2993 = vmatpush.msrb.mxu3 %v6136_v41  ;;  %v3098_v41 = vand.u32 4294901760, %v3097_v10  ;;  %v3144_v10 = vand.u32 4294901760, %v6367_v20  ;;  %v3150_v60 = vand.u32 4294901760, %v6379_v34 }
 0x2f5   :  { %2893 = vmatmul.f32.vlgmr.msra.gmra.mxu1 %v6201_v15  ;;  %2842 = vmatpush.msra.mxu0 %v6139_v1  ;;  %v3115_v1 = vsub.f32 %v6294_v11, %v3114_v38  ;;  %v3017_v15 = vld [vmem:[#allocation10 + $0x140] sm:$0xff] }
 0x2f6   :  { %2960 = vmatpush.msrb.mxu2 %v7176_v4  ;;  %2995 = vmatpush.msrb.mxu3 %v6147_v58  ;;  %v3104_v58 = vand.u32 4294901760, %v3103_v29  ;;  %v6369_v24 = vand.u32 4294901760, %v3017_v15  ;;  %v3139_v29 = vsub.f32 %v6355_v54, %v3138_v32  ;;  %v6403_v4 = vsub.f32 %v3015_v55, %v6381_v14 }
 0x2f7   :  { %2962 = vmatmul.f32.vlgmr.msrb.gmra.mxu2 %v6192_v27  ;;  %2845 = vmatpush.msra.mxu0 %v6150_v21  ;;  %v3121_v21 = vsub.f32 %v6308_v39, %v3120_v36 }
 0x2f8   :  { %2997 = vmatpush.msrb.mxu3 %v6163_v9  ;;  %3093 = vmatpush.msrb.mxu1 %v3092_v22  ;;  %v3110_v9 = vand.u32 4294901760, %v3109_v17  ;;  %v6391_v44 = vsub.f32 %v3017_v15, %v6369_v24  ;;  %v3128_v22 = vand.u32 4294901760, %v3127_v2  ;;  %v3145_v17 = vsub.f32 %v6367_v20, %v3144_v10 }
 0x2f9   :  { %2999 = vmatmul.f32.vlgmr.msrb.gmra.mxu3 %v6192_v27  ;;  %2848 = vmatpush.msra.mxu0 %v6166_v23  ;;  %v3116_v23 = vand.u32 4294901760, %v3115_v1  ;;  %v3013_v27 = vld [vmem:[#allocation10 + $0x120] sm:$0xff]  ;;  %v7047_v55 = vand.u32 4294901760, %v6403_v4 }
 0x2fa   :  { %3099 = vmatpush.msrb.mxu1 %v3098_v41  ;;  %3191 = vmatpush.msra.mxu2 %v6255_v48  ;;  %v6393_v0 = vand.u32 4294901760, %v3013_v27  ;;  %v7048_v1 = vand.u32 4294901760, %v6391_v44  ;;  %v3036_v48 = vld [vmem:[#allocation10 + $0x1d8] sm:$0xff] }
 0x2fb   :  { %2851 = vmatpush.msra.mxu0 %v6177_v62  ;;  %3244 = vmatpush.msra.mxu3 %v6240_v53  ;;  %v3122_v62 = vand.u32 4294901760, %v3121_v21  ;;  %v3151_v21 = vsub.f32 %v6379_v34, %v3150_v60 }
 0x2fc   :  { %2854 = vmatmul.f32.vlgmr.msra.gmra.mxu0 %v6195_v26  ;;  %3105 = vmatpush.msrb.mxu1 %v3104_v58  ;;  %v3133_v26 = vsub.f32 %v6343_v16, %v3132_v46  ;;  %v6413_v15 = vsub.f32 %v3013_v27, %v6393_v0  ;;  %v3140_v58 = vand.u32 4294901760, %v3139_v29 }
 0x2fd   :  { %3194 = vmatpush.msra.mxu2 %v6265_v49  ;;  %3246 = vmatpush.msra.mxu3 %v6247_v7  ;;  %v3152_v2 = vand.u32 4294901760, %v3151_v21  ;;  %v3009_v21 = vld [vmem:[#allocation10 + $0x100] sm:$0xff]  ;;  %v3034_v49 = vld [vmem:[#allocation10 + $0x1c8] sm:$0xff] }
 0x2fe   :  { %3111 = vmatpush.msrb.mxu1 %v3110_v9  ;;  %3048 = vmatpush.msrb.mxu0 %v6240_v53  ;;  %v3134_v41 = vand.u32 4294901760, %v3133_v26  ;;  %v3146_v9 = vand.u32 4294901760, %v3145_v17  ;;  %v7045_v27 = vand.u32 4294901760, %v6413_v15  ;;  %v3011_v17 = vld [vmem:[#allocation10 + $0x110] sm:$0xff] }
 0x2ff   :  { %3197 = vmatpush.msra.mxu2 %v6278_v43  ;;  %3248 = vmatpush.msra.mxu3 %v6257_v42 }
 0x300   :  { %3117 = vmatpush.msrb.mxu1 %v3116_v23  ;;  %3050 = vmatpush.msrb.mxu0 %v6247_v7  ;;  %v3157_v23 = vsub.f32 %v6391_v44, %v7048_v1 }
 0x301   :  { %3200 = vmatpush.msra.mxu2 %v6289_v31  ;;  %3250 = vmatpush.msra.mxu3 %v6267_v56 }
 0x302   :  { %3123 = vmatpush.msrb.mxu1 %v3122_v62  ;;  %3052 = vmatpush.msrb.mxu0 %v6257_v42  ;;  %v3163_v62 = vsub.f32 %v6403_v4, %v7047_v55  ;;  %v3158_v26 = vand.u32 4294901760, %v3157_v23  ;;  %v6465_v23 = vand.u32 4294901760, %v3009_v21 }
 0x303   :  { %3203 = vmatpush.msra.mxu2 %v6294_v11  ;;  %3252 = vmatpush.msra.mxu3 %v6271_v18 }
 0x304   :  { %3129 = vmatpush.msrb.mxu1 %v3128_v22  ;;  %3054 = vmatpush.msrb.mxu0 %v6267_v56  ;;  %v3169_v22 = vsub.f32 %v6413_v15, %v7045_v27  ;;  %v3164_v29 = vand.u32 4294901760, %v3163_v62  ;;  %v6471_v62 = vsub.f32 %v3009_v21, %v6465_v23 }
 0x305   :  { %3206 = vmatpush.msra.mxu2 %v6308_v39  ;;  %3254 = vmatpush.msra.mxu3 %v6282_v50 }
 0x306   :  { %3135 = vmatpush.msrb.mxu1 %v3134_v41  ;;  %3056 = vmatpush.msrb.mxu0 %v6271_v18  ;;  %v3170_v41 = vand.u32 4294901760, %v3169_v22 }
 0x307   :  { %3209 = vmatpush.msra.mxu2 %v6329_v35  ;;  %3256 = vmatpush.msra.mxu3 %v6303_v52 }
 0x308   :  { %3141 = vmatpush.msrb.mxu1 %v3140_v58  ;;  %3058 = vmatpush.msrb.mxu0 %v6282_v50  ;;  %v6460_v58 = vand.u32 4294901760, %v3011_v17 }
 0x309   :  { %3212 = vmatpush.msra.mxu2 %v6343_v16  ;;  %3258 = vmatpush.msra.mxu3 %v6317_v13 }
 0x30a   :  { %3147 = vmatpush.msrb.mxu1 %v3146_v9  ;;  %3060 = vmatpush.msrb.mxu0 %v6303_v52  ;;  %v6463_v9 = vsub.f32 %v3011_v17, %v6460_v58 }
 0x30b   :  { %3215 = vmatpush.msra.mxu2 %v6355_v54  ;;  %3260 = vmatpush.msra.mxu3 %v6331_v59 }
 0x30c   :  { %3153 = vmatpush.msrb.mxu1 %v3152_v2  ;;  %3062 = vmatpush.msrb.mxu0 %v6317_v13  ;;  %v7046_v2 = vand.u32 4294901760, %v6463_v9 }
 0x30d   :  { %3218 = vmatpush.msra.mxu2 %v6367_v20  ;;  %3262 = vmatpush.msra.mxu3 %v6345_v45 }
 0x30e   :  { %3159 = vmatpush.msrb.mxu1 %v3158_v26  ;;  %3064 = vmatpush.msrb.mxu0 %v6331_v59  ;;  %v3040_v26 = vld [vmem:[#allocation10 + $0x1f8] sm:$0xff]  ;;  %v3175_v22 = vsub.f32 %v6463_v9, %v7046_v2  ;;  %v3038_v2 = vld [vmem:[#allocation10 + $0x1e8] sm:$0xff] }
 0x30f   :  { %3221 = vmatpush.msra.mxu2 %v6379_v34  ;;  %3264 = vmatpush.msra.mxu3 %v6357_v40  ;;  %v6494_v55 = vand.u32 4294901760, %v3038_v2 }
 0x310   :  { %3165 = vmatpush.msrb.mxu1 %v3164_v29  ;;  %3066 = vmatpush.msrb.mxu0 %v6345_v45  ;;  %v3180_v29 = vand.u32 4294901760, %v6471_v62  ;;  %v3176_v17 = vand.u32 4294901760, %v3175_v22  ;;  %v6500_v22 = vand.u32 4294901760, %v3036_v48 }
 0x311   :  { %3224 = vmatpush.msra.mxu2 %v6391_v44  ;;  %3266 = vmatpush.msra.mxu3 %v6369_v24 }
 0x312   :  { %3171 = vmatpush.msrb.mxu1 %v3170_v41  ;;  %3068 = vmatpush.msrb.mxu0 %v6357_v40  ;;  %v6481_v41 = vand.u32 4294901760, %v3040_v26  ;;  %v3181_v21 = vsub.f32 %v6471_v62, %v3180_v29 }
 0x313   :  { %3227 = vmatpush.msra.mxu2 %v6403_v4  ;;  %3268 = vmatpush.msra.mxu3 %v6381_v14 }
 0x314   :  { %3070 = vmatpush.msrb.mxu0 %v6369_v24  ;;  %v6490_v27 = vsub.f32 %v3040_v26, %v6481_v41  ;;  %3177 = vmatpush.msrb.mxu1 %v3176_v17  ;;  %v3182_v1 = vand.u32 4294901760, %v3181_v21  ;;  %v6503_v26 = vsub.f32 %v3038_v2, %v6494_v55  ;;  %v6516_v2 = vsub.f32 %v3036_v48, %v6500_v22  ;;  %v3030_v48 = vld [vmem:[#allocation10 + $0x1a8] sm:$0xff] }
 0x315   :  { %3230 = vmatpush.msra.mxu2 %v6413_v15  ;;  %3270 = vmatpush.msra.mxu3 %v6393_v0 }
 0x316   :  { %3072 = vmatpush.msrb.mxu0 %v6381_v14  ;;  %3183 = vmatpush.msrb.mxu1 %v3182_v1  ;;  %v3032_v1 = vld [vmem:[#allocation10 + $0x1b8] sm:$0xff] }
 0x317   :  { %3272 = vmatpush.msra.mxu3 %v6460_v58  ;;  %3233 = vmatpush.msra.mxu2 %v6463_v9  ;;  %v6526_v17 = vand.u32 4294901760, %v3032_v1 }
 0x318   :  { %3074 = vmatpush.msrb.mxu0 %v6393_v0  ;;  %3352 = vmatpush.msra.mxu1 %v6240_v53 }
 0x319   :  { %3274 = vmatpush.msra.mxu3 %v6465_v23  ;;  %3236 = vmatpush.msra.mxu2 %v6471_v62 }
 0x31a   :  { %3076 = vmatpush.msrb.mxu0 %v6460_v58  ;;  %3354 = vmatpush.msra.mxu1 %v6247_v7 }
 0x31b   :  { %3389 = vmatpush.msrb.mxu2 %v6481_v41 }
 0x31c   :  { %3078 = vmatpush.msrb.mxu0 %v6465_v23  ;;  %3356 = vmatpush.msra.mxu1 %v6257_v42 }
 0x31d   :  { %3391 = vmatpush.msrb.mxu2 %v6494_v55 }
 0x31e   :  { %3285 = vmatpush.msra.mxu0 %v3090_v19  ;;  %v7063_v19 = vand.u32 4294901760, %v6490_v27  ;;  %3358 = vmatpush.msra.mxu1 %v6267_v56 }
 0x31f   :  { %3393 = vmatpush.msrb.mxu2 %v6500_v22 }
 0x320   :  { %3289 = vmatpush.msra.mxu0 %v3096_v3  ;;  %v3432_v43 = vsub.f32 %v6490_v27, %v7063_v19  ;;  %v7049_v3 = vand.u32 4294901760, %v6503_v26  ;;  %3360 = vmatpush.msra.mxu1 %v6271_v18 }
 0x322   :  { %3293 = vmatpush.msra.mxu0 %v3102_v8  ;;  %v6513_v8 = vand.u32 4294901760, %v3034_v49  ;;  %v3433_v53 = vand.u32 4294901760, %v3432_v43  ;;  %v3438_v31 = vsub.f32 %v6503_v26, %v7049_v3  ;;  %v6540_v43 = vsub.f32 %v3032_v1, %v6526_v17  ;;  %v3028_v3 = vld [vmem:[#allocation10 + $0x198] sm:$0xff]  ;;  %3362 = vmatpush.msra.mxu1 %v6282_v50 }
 0x324   :  { %3297 = vmatpush.msra.mxu0 %v3108_v28  ;;  %3395 = vmatpush.msrb.mxu2 %v6513_v8  ;;  %v7062_v28 = vand.u32 4294901760, %v6516_v2  ;;  %v6529_v21 = vsub.f32 %v3034_v49, %v6513_v8  ;;  %v3439_v7 = vand.u32 4294901760, %v3438_v31  ;;  %v7060_v39 = vand.u32 4294901760, %v6540_v43  ;;  %v3026_v31 = vld [vmem:[#allocation10 + $0x188] sm:$0xff] }
 0x325   :  { %3434 = vmatpush.msrb.mxu3 %v3433_v53  ;;  %3364 = vmatpush.msra.mxu1 %v6303_v52 }
 0x326   :  { %3301 = vmatpush.msra.mxu0 %v3114_v38  ;;  %v3444_v11 = vsub.f32 %v6516_v2, %v7062_v28  ;;  %v6537_v38 = vand.u32 4294901760, %v3030_v48  ;;  %3397 = vmatpush.msrb.mxu2 %v6526_v17  ;;  %v7061_v49 = vand.u32 4294901760, %v6529_v21  ;;  %v3456_v56 = vsub.f32 %v6540_v43, %v7060_v39 }
 0x327   :  { %3440 = vmatpush.msrb.mxu3 %v3439_v7  ;;  %3366 = vmatpush.msra.mxu1 %v6317_v13 }
 0x328   :  { %3305 = vmatpush.msra.mxu0 %v3120_v36  ;;  %v3445_v42 = vand.u32 4294901760, %v3444_v11  ;;  %v6548_v36 = vand.u32 4294901760, %v3028_v3  ;;  %v6551_v53 = vsub.f32 %v3030_v48, %v6537_v38  ;;  %v3450_v1 = vsub.f32 %v6529_v21, %v7061_v49  ;;  %3399 = vmatpush.msrb.mxu2 %v6537_v38  ;;  %v3024_v11 = vld [vmem:[#allocation10 + $0x178] sm:$0xff] }
 0x329   :  { %v3457_v18 = vand.u32 4294901760, %v3456_v56  ;;  %3368 = vmatpush.msra.mxu1 %v6331_v59 }
 0x32a   :  { %3309 = vmatpush.msra.mxu0 %v3126_v33  ;;  %3446 = vmatpush.msrb.mxu3 %v3445_v42  ;;  %v7051_v35 = vand.u32 4294901760, %v6551_v53  ;;  %v6564_v33 = vand.u32 4294901760, %v3026_v31  ;;  %v6567_v48 = vsub.f32 %v3028_v3, %v6548_v36  ;;  %v3451_v7 = vand.u32 4294901760, %v3450_v1  ;;  %v3022_v1 = vld [vmem:[#allocation10 + $0x168] sm:$0xff] }
 0x32b   :  { %3401 = vmatpush.msrb.mxu2 %v6548_v36  ;;  %v6577_v42 = vand.u32 4294901760, %v3024_v11  ;;  %3370 = vmatpush.msra.mxu1 %v6345_v45 }
 0x32c   :  { %3313 = vmatpush.msra.mxu0 %v3132_v46  ;;  %v3462_v16 = vsub.f32 %v6551_v53, %v7051_v35  ;;  %v7050_v46 = vand.u32 4294901760, %v6567_v48  ;;  %3452 = vmatpush.msrb.mxu3 %v3451_v7  ;;  %v6581_v3 = vsub.f32 %v3026_v31, %v6564_v33  ;;  %v3020_v7 = vld [vmem:[#allocation10 + $0x158] sm:$0xff] }
 0x32d   :  { %3403 = vmatpush.msrb.mxu2 %v6564_v33  ;;  %v6590_v56 = vsub.f32 %v3024_v11, %v6577_v42  ;;  %3372 = vmatpush.msra.mxu1 %v6357_v40 }
 0x32e   :  { %3317 = vmatpush.msra.mxu0 %v3138_v32  ;;  %v3463_v54 = vand.u32 4294901760, %v3462_v16  ;;  %v3468_v50 = vsub.f32 %v6567_v48, %v7050_v46  ;;  %v6587_v32 = vand.u32 4294901760, %v3022_v1  ;;  %3458 = vmatpush.msrb.mxu3 %v3457_v18  ;;  %v7053_v31 = vand.u32 4294901760, %v6581_v3 }
 0x32f   :  { %3405 = vmatpush.msrb.mxu2 %v6577_v42  ;;  %v7052_v16 = vand.u32 4294901760, %v6590_v56  ;;  %v6598_v46 = vand.u32 4294901760, %v3020_v7  ;;  %3374 = vmatpush.msra.mxu1 %v6369_v24 }
 0x330   :  { %3321 = vmatpush.msra.mxu0 %v3144_v10  ;;  %v3469_v52 = vand.u32 4294901760, %v3468_v50  ;;  %v6601_v35 = vsub.f32 %v3022_v1, %v6587_v32  ;;  %3464 = vmatpush.msrb.mxu3 %v3463_v54  ;;  %v3474_v20 = vsub.f32 %v6581_v3, %v7053_v31  ;;  %v3018_v10 = vld [vmem:[#allocation10 + $0x148] sm:$0xff]  ;;  %v3016_v54 = vld [vmem:[#allocation10 + $0x138] sm:$0xff] }
 0x331   :  { %3407 = vmatpush.msrb.mxu2 %v6587_v32  ;;  %v3480_v13 = vsub.f32 %v6590_v56, %v7052_v16  ;;  %v6614_v18 = vand.u32 4294901760, %v3018_v10  ;;  %v6617_v34 = vsub.f32 %v3020_v7, %v6598_v46  ;;  %v6627_v31 = vand.u32 4294901760, %v3016_v54  ;;  %3376 = vmatpush.msra.mxu1 %v6381_v14  ;;  %v2315_v14 = vld [vmem:[%s6917_s5] sm:$0x3] }
 0x332   :  { %3325 = vmatpush.msra.mxu0 %v3150_v60  ;;  %v7059_v11 = vand.u32 4294901760, %v6601_v35  ;;  %v7177_v60 = vand.u32 4294901760, %v6391_v44  ;;  %3470 = vmatpush.msrb.mxu3 %v3469_v52  ;;  %v3475_v1 = vand.u32 4294901760, %v3474_v20  ;;  %v7178_v7 = vand.u32 4294901760, %v6403_v4  ;;  %v3014_v52 = vld [vmem:[#allocation10 + $0x128] sm:$0xff] }
 0x333   :  { %3409 = vmatpush.msrb.mxu2 %v6598_v46  ;;  %v3481_v59 = vand.u32 4294901760, %v3480_v13  ;;  %v7054_v16 = vand.u32 4294901760, %v6617_v34  ;;  %v6633_v44 = vsub.f32 %v3018_v10, %v6614_v18  ;;  %v6639_v13 = vand.u32 4294901760, %v3014_v52  ;;  %3378 = vmatpush.msra.mxu1 %v6393_v0 }
 0x334   :  { %3329 = vmatpush.msra.mxu0 %v7177_v60  ;;  %v3486_v50 = vsub.f32 %v6601_v35, %v7059_v11  ;;  %3476 = vmatpush.msrb.mxu3 %v3475_v1  ;;  %v6642_v60 = vsub.f32 %v3016_v54, %v6627_v31  ;;  %v7179_v4 = vand.u32 4294901760, %v6413_v15  ;;  %v3012_v1 = vld [vmem:[#allocation10 + $0x118] sm:$0xff]  ;;  %v7180_v54 = vand.u32 4294901760, %v6463_v9 }
 0x335   :  { %3411 = vmatpush.msrb.mxu2 %v6614_v18  ;;  %v3492_v20 = vsub.f32 %v6617_v34, %v7054_v16  ;;  %v7058_v10 = vand.u32 4294901760, %v6633_v44  ;;  %v6653_v16 = vsub.f32 %v3014_v52, %v6639_v13  ;;  %3380 = vmatpush.msra.mxu1 %v6460_v58 }
 0x336   :  { %3333 = vmatpush.msra.mxu0 %v7178_v7  ;;  %v3487_v45 = vand.u32 4294901760, %v3486_v50  ;;  %3482 = vmatpush.msrb.mxu3 %v3481_v59  ;;  %v7056_v50 = vand.u32 4294901760, %v6642_v60  ;;  %v6650_v7 = vand.u32 4294901760, %v3012_v1  ;;  %v3010_v59 = vld [vmem:[#allocation10 + $0x108] sm:$0xff] }
 0x337   :  { %3413 = vmatpush.msrb.mxu2 %v6627_v31  ;;  %v3493_v40 = vand.u32 4294901760, %v3492_v20  ;;  %v3498_v15 = vsub.f32 %v6633_v44, %v7058_v10  ;;  %v7055_v52 = vand.u32 4294901760, %v6653_v16  ;;  %v6666_v20 = vand.u32 4294901760, %v3010_v59  ;;  %3382 = vmatpush.msra.mxu1 %v6465_v23 }
 0x338   :  { %3337 = vmatpush.msra.mxu0 %v7179_v4  ;;  %3488 = vmatpush.msrb.mxu3 %v3487_v45  ;;  %v3504_v24 = vsub.f32 %v6642_v60, %v7056_v50  ;;  %v6669_v9 = vsub.f32 %v3012_v1, %v6650_v7 }
 0x339   :  { %3415 = vmatpush.msrb.mxu2 %v6639_v13  ;;  %v3499_v45 = vand.u32 4294901760, %v3498_v15  ;;  %v6683_v62 = vsub.f32 %v3010_v59, %v6666_v20  ;;  %v2317_v15 = vperm.slane %v2315_v14, 0 }
 0x33a   :  { %3341 = vmatpush.msra.mxu0 %v7180_v54  ;;  %3494 = vmatpush.msrb.mxu3 %v3493_v40  ;;  %v3505_v4 = vand.u32 4294901760, %v3504_v24  ;;  %v3510_v54 = vsub.f32 %v6653_v16, %v7055_v52  ;;  %v7057_v1 = vand.u32 4294901760, %v6669_v9 }
 0x33b   :  { %3417 = vmatpush.msrb.mxu2 %v6650_v7  ;;  %v7064_v40 = vand.u32 4294901760, %v6683_v62 }
 0x33c   :  { %3345 = vmatpush.msra.mxu0 %v3180_v29  ;;  %3500 = vmatpush.msrb.mxu3 %v3499_v45  ;;  %v3511_v29 = vand.u32 4294901760, %v3510_v54  ;;  %v3516_v0 = vsub.f32 %v6669_v9, %v7057_v1 }
 0x33d   :  { %3419 = vmatpush.msrb.mxu2 %v6666_v20  ;;  %v3522_v59 = vsub.f32 %v6683_v62, %v7064_v40 }
 0x33e   :  { %3506 = vmatpush.msrb.mxu3 %v3505_v4  ;;  %v3517_v24 = vand.u32 4294901760, %v3516_v0 }
 0x33f   :  { %v3523_v52 = vand.u32 4294901760, %v3522_v59 }
 0x340   :  { %3512 = vmatpush.msrb.mxu3 %v3511_v29  ;;  %v2318_v29 = vperm.slane %v2315_v14, 1 }
 0x342   :  { %3518 = vmatpush.msrb.mxu3 %v3517_v24 }
 0x344   :  { %3524 = vmatpush.msrb.mxu3 %v3523_v52  ;;  %v7182_v52 = vand.u32 4294901760, %v6503_v26 }
 0x34f   :  { %v2460_v54 = vpop.f32.mrf.mxu1 }
 0x357   :  { %v2359_v45 = vpop.f32.mrf.mxu0  ;;  %v2514_v1 = vpop.f32.mrf.mxu2 }
 0x358   :  { %v2360_v58 = vadd.f32 %v2359_v45, %v2317_v15  ;;  %v2659_v23 = vpop.f32.mrf.mxu1 }
 0x359   :  { %v2553_v11 = vpop.f32.mrf.mxu3 }
 0x35a   :  { %v2461_v50 = vadd.f32 %v2460_v54, %v2360_v58  ;;  %v7183_v58 = vand.u32 4294901760, %v6516_v2 }
 0x35c   :  { %v2515_v10 = vadd.f32 %v2514_v1, %v2461_v50 }
 0x35e   :  { %v2554_v39 = vadd.f32 %v2553_v11, %v2515_v10 }
 0x360   :  { %v2700_v15 = vpop.f32.mrf.mxu2 }
 0x361   :  { %v2622_v4 = vpop.f32.mrf.mxu0  ;;  %v2701_v45 = vadd.f32 %v2700_v15, %v2318_v29  ;;  %v7225_v15 = vld [vmem:[#allocation73_spill] sm:$0xff] }
 0x362   :  { %v2623_v49 = vadd.f32 %v2622_v4, %v2554_v39 }
 0x363   :  { %v2801_v11 = vpop.f32.mrf.mxu3 }
 0x364   :  { %v2660_v0 = vadd.f32 %v2659_v23, %v2623_v49  ;;  %v2802_v49 = vadd.f32 %v2801_v11, %v2701_v45  ;;  %v7227_v45 = vld [vmem:[#allocation63_spill] sm:$0xff] }
 0x365   :  { %v7229_v11 = vld [vmem:[#allocation59_spill] sm:$0xff] }
 0x366   :  { %v3004_v28 = vmul.f32 1.442695, %v2660_v0  ;;  %vm3003_vm6 = vcmp.gt.f32.partialorder %v2660_v0, 0.0 }
 0x368   :  { %4149 = vpow2.f32 %v3004_v28 }
 0x36e   :  { %v4150_v19 = vpop.eup %4149 }
 0x36f   :  { %v4124_v40 = vadd.f32 -1.0, %v4150_v19  ;;  %v7181_v19 = vand.u32 4294901760, %v6490_v27 }
 0x371   :  { %v3007_v59 = vsel %vm3003_vm6, %v2660_v0, %v4124_v40 }
 0x372   :  { %v6695_v24 = vand.u32 4294901760, %v3007_v59  ;;  %v2894_v40 = vpop.f32.mrf.mxu1 }
 0x374   :  { %3185 = vmatmul.f32.vlgmr.msrb.gmra.mxu1 %v6695_v24  ;;  %v6699_v50 = vsub.f32 %v3007_v59, %v6695_v24  ;;  %v7224_v59 = vld [vmem:[#allocation58_spill] sm:$0xff] }
 0x375   :  { %3585 = vmatpush.msrb.mxu1 %v6481_v41 }
 0x376   :  { %3239 = vmatmul.f32.vlgmr.msra.gmra.mxu2 %v6699_v50  ;;  %v6704_v28 = vand.u32 4294901760, %v6699_v50 }
 0x377   :  { %3587 = vmatpush.msrb.mxu1 %v6494_v55  ;;  %3626 = vmatpush.msra.mxu2 %v7181_v19  ;;  %v7231_v19 = vld [vmem:[#allocation61_spill] sm:$0xff] }
 0x378   :  { %3278 = vmatmul.f32.vlgmr.msra.gmra.mxu3 %v6704_v28  ;;  %v3082_v39 = vsub.f32 %v6699_v50, %v6704_v28 }
 0x379   :  { %v2855_v10 = vpop.f32.mrf.mxu0  ;;  %3589 = vmatpush.msrb.mxu1 %v6500_v22  ;;  %3630 = vmatpush.msra.mxu2 %v7182_v52  ;;  %v7236_v52 = vld [vmem:[#allocation28_spill] sm:$0xff] }
 0x37a   :  { %v2856_v14 = vadd.f32 %v2855_v10, %v2802_v49  ;;  %3693 = vmatpush.msra.mxu3 %v6481_v41  ;;  %v3083_v1 = vand.u32 4294901760, %v3082_v39  ;;  %v2963_v4 = vpop.f32.mrf.mxu2  ;;  %v7184_v41 = vand.u32 4294901760, %v6529_v21  ;;  %v7232_v49 = vld [vmem:[#allocation69_spill] sm:$0xff]  ;;  %v7233_v39 = vld [vmem:[#allocation66_spill] sm:$0xff]  ;;  %v7234_v10 = vld [vmem:[#allocation23_spill] sm:$0xff] }
 0x37b   :  { %3591 = vmatpush.msrb.mxu1 %v6513_v8  ;;  %3634 = vmatpush.msra.mxu2 %v7183_v58  ;;  %v7242_v58 = vld [vmem:[#allocation46_spill] sm:$0xff] }
 0x37c   :  { %v2895_v54 = vadd.f32 %v2894_v40, %v2856_v14  ;;  %3695 = vmatpush.msra.mxu3 %v6494_v55  ;;  %3084 = vmatmul.f32.vlgmr.msrb.gmra.mxu0 %v3083_v1  ;;  %v3000_v0 = vpop.f32.mrf.mxu3  ;;  %v7185_v55 = vand.u32 4294901760, %v6540_v43  ;;  %v7238_v14 = vld [vmem:[#allocation34_spill] sm:$0xff]  ;;  %v7241_v40 = vld [vmem:[#allocation39_spill] sm:$0xff] }
 0x37d   :  { %3384 = vmatmul.f32.vlgmr.msra.gmra.mxu1 %v6695_v24  ;;  %3532 = vmatpush.msrb.mxu0 %v6490_v27  ;;  %v7186_v27 = vand.u32 4294901760, %v6551_v53 }
 0x37e   :  { %v2964_v23 = vadd.f32 %v2963_v4, %v2895_v54  ;;  %3593 = vmatpush.msrb.mxu1 %v6526_v17  ;;  %3638 = vmatpush.msra.mxu2 %v7184_v41  ;;  %v7243_v54 = vld [vmem:[#allocation49_spill] sm:$0xff]  ;;  %v7246_v41 = vld [vmem:[#allocation62_spill] sm:$0xff] }
 0x37f   :  { %3697 = vmatpush.msra.mxu3 %v6500_v22  ;;  %3425 = vmatmul.f32.vlgmr.msrb.gmra.mxu2 %v3083_v1  ;;  %v7187_v22 = vand.u32 4294901760, %v6567_v48  ;;  %v7240_v1 = vld [vmem:[#allocation38_spill] sm:$0xff]  ;;  %v7244_v4 = vld [vmem:[#allocation53_spill] sm:$0xff] }
 0x380   :  { %v3001_v29 = vadd.f32 %v3000_v0, %v2964_v23  ;;  %3535 = vmatpush.msrb.mxu0 %v6503_v26  ;;  %3595 = vmatpush.msrb.mxu1 %v6537_v38  ;;  %v7188_v26 = vand.u32 4294901760, %v6581_v3  ;;  %v7245_v23 = vld [vmem:[#allocation57_spill] sm:$0xff]  ;;  %v7247_v0 = vld [vmem:[#allocation67_spill] sm:$0xff] }
 0x381   :  { %3642 = vmatpush.msra.mxu2 %v7185_v55  ;;  %3699 = vmatpush.msra.mxu3 %v6513_v8  ;;  %v7189_v8 = vand.u32 4294901760, %v6590_v56  ;;  %v7249_v55 = vld [vmem:[#allocation71_spill] sm:$0xff] }
 0x382   :  { %3008 = vst.msk [vmem:[#allocation14] sm:$0xff] %vm1038_vm3, %v3001_v29  ;;  %3526 = vmatmul.f32.vlgmr.msrb.gmra.mxu3 %v6695_v24  ;;  %3538 = vmatpush.msrb.mxu0 %v6516_v2  ;;  %v7190_v2 = vand.u32 4294901760, %v6601_v35  ;;  %v7248_v29 = vld [vmem:[#allocation68_spill] sm:$0xff] }
 0x383   :  { %3597 = vmatpush.msrb.mxu1 %v6548_v36  ;;  %3646 = vmatpush.msra.mxu2 %v7186_v27  ;;  %v4125_v27 = vld [vmem:[%s6917_s5 + $0x2] sm:$0x3] }
 0x384   :  { %3701 = vmatpush.msra.mxu3 %v6526_v17  ;;  %3541 = vmatpush.msrb.mxu0 %v6529_v21  ;;  %v7191_v17 = vand.u32 4294901760, %v6617_v34  ;;  %v7192_v21 = vand.u32 4294901760, %v6633_v44 }
 0x385   :  { %3599 = vmatpush.msrb.mxu1 %v6564_v33  ;;  %3650 = vmatpush.msra.mxu2 %v7187_v22  ;;  %v3043_v22 = vperm.slane %v4125_v27, 0 }
 0x386   :  { %3703 = vmatpush.msra.mxu3 %v6537_v38  ;;  %3347 = vmatmul.f32.vlgmr.msra.gmra.mxu0 %v6695_v24  ;;  %v7193_v38 = vand.u32 4294901760, %v6642_v60 }
 0x387   :  { %3544 = vmatpush.msrb.mxu0 %v6540_v43  ;;  %3601 = vmatpush.msrb.mxu1 %v6577_v42  ;;  %v7194_v43 = vand.u32 4294901760, %v6653_v16 }
 0x388   :  { %3654 = vmatpush.msra.mxu2 %v7188_v26  ;;  %3705 = vmatpush.msra.mxu3 %v6548_v36  ;;  %v7195_v36 = vand.u32 4294901760, %v6669_v9 }
 0x389   :  { %3547 = vmatpush.msrb.mxu0 %v6551_v53  ;;  %3603 = vmatpush.msrb.mxu1 %v6587_v32  ;;  %v7196_v53 = vand.u32 4294901760, %v6683_v62 }
 0x38a   :  { %3658 = vmatpush.msra.mxu2 %v7189_v8  ;;  %3707 = vmatpush.msra.mxu3 %v6564_v33  ;;  %v7206_v33 = vld [vmem:[#allocation35_spill] sm:$0xff] }
 0x38b   :  { %3550 = vmatpush.msrb.mxu0 %v6567_v48  ;;  %3605 = vmatpush.msrb.mxu1 %v6598_v46  ;;  %v7207_v48 = vld [vmem:[#allocation52_spill] sm:$0xff] }
 0x38c   :  { %3662 = vmatpush.msra.mxu2 %v7190_v2  ;;  %3709 = vmatpush.msra.mxu3 %v6577_v42  ;;  %v7209_v42 = vld [vmem:[#allocation37_spill] sm:$0xff] }
 0x38d   :  { %3553 = vmatpush.msrb.mxu0 %v6581_v3  ;;  %3607 = vmatpush.msrb.mxu1 %v6614_v18  ;;  %v7210_v3 = vld [vmem:[#allocation56_spill] sm:$0xff] }
 0x38e   :  { %3666 = vmatpush.msra.mxu2 %v7191_v17  ;;  %3711 = vmatpush.msra.mxu3 %v6587_v32  ;;  %v7211_v32 = vld [vmem:[#allocation33_spill] sm:$0xff] }
 0x38f   :  { %3556 = vmatpush.msrb.mxu0 %v6590_v56  ;;  %3609 = vmatpush.msrb.mxu1 %v6627_v31  ;;  %v7212_v56 = vld [vmem:[#allocation44_spill] sm:$0xff] }
 0x390   :  { %3670 = vmatpush.msra.mxu2 %v7192_v21  ;;  %3713 = vmatpush.msra.mxu3 %v6598_v46  ;;  %v7208_v46 = vld [vmem:[#allocation30_spill] sm:$0xff] }
 0x391   :  { %3559 = vmatpush.msrb.mxu0 %v6601_v35  ;;  %3611 = vmatpush.msrb.mxu1 %v6639_v13  ;;  %v7205_v35 = vld [vmem:[#allocation27_spill] sm:$0xff] }
 0x392   :  { %3674 = vmatpush.msra.mxu2 %v7193_v38  ;;  %3715 = vmatpush.msra.mxu3 %v6614_v18  ;;  %v7215_v18 = vld [vmem:[#allocation47_spill] sm:$0xff] }
 0x393   :  { %3562 = vmatpush.msrb.mxu0 %v6617_v34  ;;  %3613 = vmatpush.msrb.mxu1 %v6650_v7  ;;  %v7216_v34 = vld [vmem:[#allocation64_spill] sm:$0xff] }
 0x394   :  { %3678 = vmatpush.msra.mxu2 %v7194_v43  ;;  %3717 = vmatpush.msra.mxu3 %v6627_v31  ;;  %v7213_v31 = vld [vmem:[#allocation60_spill] sm:$0xff] }
 0x395   :  { %3565 = vmatpush.msrb.mxu0 %v6633_v44  ;;  %3615 = vmatpush.msrb.mxu1 %v6666_v20  ;;  %v7217_v44 = vld [vmem:[#allocation45_spill] sm:$0xff] }
 0x396   :  { %3682 = vmatpush.msra.mxu2 %v7195_v36  ;;  %3719 = vmatpush.msra.mxu3 %v6639_v13  ;;  %v7218_v13 = vld [vmem:[#allocation50_spill] sm:$0xff] }
 0x397   :  { %3619 = vmatmul.f32.vlgmr.msrb.gmra.mxu1 %v6704_v28  ;;  %3568 = vmatpush.msrb.mxu0 %v6642_v60  ;;  %v7219_v60 = vld [vmem:[#allocation70_spill] sm:$0xff]  ;;  %v7230_v28 = vld [vmem:[#allocation65_spill] sm:$0xff] }
 0x398   :  { %3686 = vmatpush.msra.mxu2 %v7196_v53  ;;  %3721 = vmatpush.msra.mxu3 %v6650_v7  ;;  %v7220_v7 = vld [vmem:[#allocation48_spill] sm:$0xff] }
 0x399   :  { %3688 = vmatmul.f32.vlgmr.msra.gmra.mxu2 %v6695_v24  ;;  %3571 = vmatpush.msrb.mxu0 %v6653_v16  ;;  %v7214_v16 = vld [vmem:[#allocation43_spill] sm:$0xff] }
 0x39a   :  { %3723 = vmatpush.msra.mxu3 %v6666_v20  ;;  %3782 = vmatpush.msra.mxu1 %v5521_v37  ;;  %v7198_v37 = vld [vmem:[#allocation40_spill] sm:$0xff]  ;;  %v7221_v20 = vld [vmem:[#allocation54_spill] sm:$0xff] }
 0x39b   :  { %3725 = vmatmul.f32.vlgmr.msra.gmra.mxu3 %v6695_v24  ;;  %3574 = vmatpush.msrb.mxu0 %v6669_v9  ;;  %v7222_v9 = vld [vmem:[#allocation72_spill] sm:$0xff]  ;;  %v7226_v24 = vld [vmem:[#allocation55_spill] sm:$0xff] }
 0x39c   :  { %3788 = vmatpush.msra.mxu1 %v5536_v5  ;;  %3880 = vmatpush.msrb.mxu2 %v5446_v12  ;;  %v7197_v12 = vld [vmem:[#allocation26_spill] sm:$0xff] }
 0x39d   :  { %3577 = vmatpush.msrb.mxu0 %v6683_v62  ;;  %3933 = vmatpush.msrb.mxu3 %v5431_v25  ;;  %v7199_v5 = vld [vmem:[#allocation22_spill] sm:$0xff]  ;;  %v7223_v62 = vld [vmem:[#allocation51_spill] sm:$0xff] }
 0x39e   :  { %3580 = vmatmul.f32.vlgmr.msrb.gmra.mxu0 %v6699_v50  ;;  %3794 = vmatpush.msra.mxu1 %v5550_v47  ;;  %v7201_v47 = vld [vmem:[#allocation41_spill] sm:$0xff]  ;;  %v7228_v50 = vld [vmem:[#allocation74_spill] sm:$0xff] }
 0x39f   :  { %3737 = vmatpush.msra.mxu0 %v5431_v25  ;;  %3883 = vmatpush.msrb.mxu2 %v5456_v30  ;;  %v7200_v30 = vld [vmem:[#allocation29_spill] sm:$0xff] }
 0x3a0   :  { %3800 = vmatpush.msra.mxu1 %v5560_v61  ;;  %3935 = vmatpush.msrb.mxu3 %v5438_v57  ;;  %v7202_v61 = vld [vmem:[#allocation24_spill] sm:$0xff] }
 0x3a1   :  { %3739 = vmatpush.msra.mxu0 %v5438_v57  ;;  %3886 = vmatpush.msrb.mxu2 %v5469_v51  ;;  %v7203_v51 = vld [vmem:[#allocation32_spill] sm:$0xff] }
 0x3a2   :  { %3806 = vmatpush.msra.mxu1 %v5572_v6  ;;  %3937 = vmatpush.msrb.mxu3 %v5448_v63  ;;  %v7204_v6 = vld [vmem:[#allocation42_spill] sm:$0xff] }
 0x3a3   :  { %3741 = vmatpush.msra.mxu0 %v5448_v63  ;;  %3889 = vmatpush.msrb.mxu2 %v7197_v12 }
 0x3a4   :  { %3812 = vmatpush.msra.mxu1 %v7198_v37  ;;  %3939 = vmatpush.msrb.mxu3 %v7199_v5 }
 0x3a5   :  { %3743 = vmatpush.msra.mxu0 %v7199_v5  ;;  %3892 = vmatpush.msrb.mxu2 %v7200_v30 }
 0x3a6   :  { %3818 = vmatpush.msra.mxu1 %v7201_v47  ;;  %3941 = vmatpush.msrb.mxu3 %v7202_v61 }
 0x3a7   :  { %3745 = vmatpush.msra.mxu0 %v7202_v61  ;;  %3895 = vmatpush.msrb.mxu2 %v7203_v51  ;;  %v3044_v51 = vperm.slane %v4125_v27, 1 }
 0x3a8   :  { %3824 = vmatpush.msra.mxu1 %v7204_v6  ;;  %3943 = vmatpush.msrb.mxu3 %v7205_v35 }
 0x3a9   :  { %3747 = vmatpush.msra.mxu0 %v7205_v35  ;;  %3898 = vmatpush.msrb.mxu2 %v7206_v33 }
 0x3aa   :  { %3830 = vmatpush.msra.mxu1 %v7207_v48  ;;  %3945 = vmatpush.msrb.mxu3 %v7208_v46 }
 0x3ab   :  { %3749 = vmatpush.msra.mxu0 %v7208_v46  ;;  %3901 = vmatpush.msrb.mxu2 %v7209_v42 }
 0x3ac   :  { %3836 = vmatpush.msra.mxu1 %v7210_v3  ;;  %3947 = vmatpush.msrb.mxu3 %v7211_v32 }
 0x3ad   :  { %3751 = vmatpush.msra.mxu0 %v7211_v32  ;;  %3904 = vmatpush.msrb.mxu2 %v7212_v56 }
 0x3ae   :  { %3842 = vmatpush.msra.mxu1 %v7213_v31  ;;  %3949 = vmatpush.msrb.mxu3 %v7214_v16 }
 0x3af   :  { %3753 = vmatpush.msra.mxu0 %v7214_v16  ;;  %3907 = vmatpush.msrb.mxu2 %v7215_v18 }
 0x3b0   :  { %3848 = vmatpush.msra.mxu1 %v7216_v34  ;;  %3951 = vmatpush.msrb.mxu3 %v7217_v44 }
 0x3b1   :  { %3755 = vmatpush.msra.mxu0 %v7217_v44  ;;  %3910 = vmatpush.msrb.mxu2 %v7218_v13 }
 0x3b2   :  { %3854 = vmatpush.msra.mxu1 %v7219_v60  ;;  %3953 = vmatpush.msrb.mxu3 %v7220_v7 }
 0x3b3   :  { %3757 = vmatpush.msra.mxu0 %v7220_v7  ;;  %3913 = vmatpush.msrb.mxu2 %v7221_v20 }
 0x3b4   :  { %3860 = vmatpush.msra.mxu1 %v7222_v9  ;;  %3955 = vmatpush.msrb.mxu3 %v7223_v62 }
 0x3b5   :  { %3759 = vmatpush.msra.mxu0 %v7223_v62  ;;  %3916 = vmatpush.msrb.mxu2 %v7224_v59  ;;  %v4154_v59 = vld [vmem:[%s6919_s7] ss:$0 sm:$0xff] }
 0x3b6   :  { %3866 = vmatpush.msra.mxu1 %v7225_v15  ;;  %3957 = vmatpush.msrb.mxu3 %v7226_v24 }
 0x3b7   :  { %3761 = vmatpush.msra.mxu0 %v7226_v24  ;;  %3919 = vmatpush.msrb.mxu2 %v7227_v45 }
 0x3b8   :  { %3872 = vmatpush.msra.mxu1 %v7228_v50  ;;  %3959 = vmatpush.msrb.mxu3 %v7229_v11 }
 0x3b9   :  { %3763 = vmatpush.msra.mxu0 %v7229_v11  ;;  %3922 = vmatpush.msrb.mxu2 %v7230_v28 }
 0x3ba   :  { %4041 = vmatpush.msrb.mxu1 %v5431_v25  ;;  %3961 = vmatpush.msrb.mxu3 %v7231_v19  ;;  %v7235_v25 = vld [vmem:[#allocation25_spill] sm:$0xff] }
 0x3bb   :  { %3765 = vmatpush.msra.mxu0 %v7231_v19  ;;  %3925 = vmatpush.msrb.mxu2 %v7232_v49 }
 0x3bc   :  { %4043 = vmatpush.msrb.mxu1 %v5438_v57  ;;  %3963 = vmatpush.msrb.mxu3 %v7233_v39  ;;  %v7237_v57 = vld [vmem:[#allocation31_spill] sm:$0xff] }
 0x3bd   :  { %3767 = vmatpush.msra.mxu0 %v7233_v39 }
 0x3be   :  { %4045 = vmatpush.msrb.mxu1 %v5448_v63  ;;  %v7239_v63 = vld [vmem:[#allocation36_spill] sm:$0xff] }
 0x3bf   :  { %3974 = vmatpush.msrb.mxu0 %v7234_v10 }
 0x3c0   :  { %4047 = vmatpush.msrb.mxu1 %v7199_v5 }
 0x3c1   :  { %3978 = vmatpush.msrb.mxu0 %v7235_v25 }
 0x3c2   :  { %4049 = vmatpush.msrb.mxu1 %v7202_v61 }
 0x3c3   :  { %3982 = vmatpush.msrb.mxu0 %v7236_v52 }
 0x3c4   :  { %4051 = vmatpush.msrb.mxu1 %v7205_v35 }
 0x3c5   :  { %3986 = vmatpush.msrb.mxu0 %v7237_v57 }
 0x3c6   :  { %4053 = vmatpush.msrb.mxu1 %v7208_v46 }
 0x3c7   :  { %3990 = vmatpush.msrb.mxu0 %v7238_v14 }
 0x3c8   :  { %4055 = vmatpush.msrb.mxu1 %v7211_v32 }
 0x3c9   :  { %3994 = vmatpush.msrb.mxu0 %v7239_v63 }
 0x3ca   :  { %4057 = vmatpush.msrb.mxu1 %v7214_v16 }
 0x3cb   :  { %3998 = vmatpush.msrb.mxu0 %v7240_v1 }
 0x3cc   :  { %4059 = vmatpush.msrb.mxu1 %v7217_v44 }
 0x3cd   :  { %4002 = vmatpush.msrb.mxu0 %v7241_v40 }
 0x3ce   :  { %4061 = vmatpush.msrb.mxu1 %v7220_v7 }
 0x3cf   :  { %4006 = vmatpush.msrb.mxu0 %v7242_v58 }
 0x3d0   :  { %4063 = vmatpush.msrb.mxu1 %v7223_v62 }
 0x3d1   :  { %4010 = vmatpush.msrb.mxu0 %v7243_v54 }
 0x3d2   :  { %4065 = vmatpush.msrb.mxu1 %v7226_v24 }
 0x3d3   :  { %4014 = vmatpush.msrb.mxu0 %v7244_v4 }
 0x3d4   :  { %4067 = vmatpush.msrb.mxu1 %v7229_v11 }
 0x3d5   :  { %4018 = vmatpush.msrb.mxu0 %v7245_v23 }
 0x3d6   :  { %4069 = vmatpush.msrb.mxu1 %v7231_v19 }
 0x3d7   :  { %4022 = vmatpush.msrb.mxu0 %v7246_v41 }
 0x3d8   :  { %4071 = vmatpush.msrb.mxu1 %v7233_v39 }
 0x3d9   :  { %4026 = vmatpush.msrb.mxu0 %v7247_v0 }
 0x3db   :  { %4030 = vmatpush.msrb.mxu0 %v7248_v29 }
 0x3dd   :  { %4034 = vmatpush.msrb.mxu0 %v7249_v55 }
 0x3f1   :  { %v3186_v2 = vpop.f32.mrf.mxu1 }
 0x3f9   :  { %v3085_v26 = vpop.f32.mrf.mxu0  ;;  %v3240_v21 = vpop.f32.mrf.mxu2 }
 0x3fa   :  { %v3086_v8 = vadd.f32 %v3085_v26, %v3043_v22  ;;  %v3385_v37 = vpop.f32.mrf.mxu1 }
 0x3fb   :  { %v3279_v43 = vpop.f32.mrf.mxu3 }
 0x3fc   :  { %v3187_v17 = vadd.f32 %v3186_v2, %v3086_v8 }
 0x3fe   :  { %v3241_v38 = vadd.f32 %v3240_v21, %v3187_v17 }
 0x400   :  { %v3280_v36 = vadd.f32 %v3279_v43, %v3241_v38 }
 0x402   :  { %v3426_v35 = vpop.f32.mrf.mxu2 }
 0x403   :  { %v3348_v53 = vpop.f32.mrf.mxu0  ;;  %v3427_v48 = vadd.f32 %v3426_v35, %v3044_v51 }
 0x404   :  { %v3349_v12 = vadd.f32 %v3348_v53, %v3280_v36 }
 0x405   :  { %v3527_v42 = vpop.f32.mrf.mxu3 }
 0x406   :  { %v3386_v5 = vadd.f32 %v3385_v37, %v3349_v12  ;;  %v3528_v32 = vadd.f32 %v3527_v42, %v3427_v48 }
 0x408   :  { %v3730_v30 = vmul.f32 1.442695, %v3386_v5  ;;  %vm3729_vm7 = vcmp.gt.f32.partialorder %v3386_v5, 0.0 }
 0x40a   :  { %4151 = vpow2.f32 %v3730_v30 }
 0x410   :  { %v4152_v47 = vpop.eup %4151 }
 0x411   :  { %v4126_v61 = vadd.f32 -1.0, %v4152_v47 }
 0x413   :  { %v3733_v6 = vsel %vm3729_vm7, %v3386_v5, %v4126_v61 }
 0x414   :  { %v3768_v33 = vand.u32 4294901760, %v3733_v6  ;;  %v3620_v34 = vpop.f32.mrf.mxu1 }
 0x416   :  { %3874 = vmatmul.f32.vlgmr.msra.gmra.mxu1 %v3768_v33  ;;  %v3769_v46 = vsub.f32 %v3733_v6, %v3768_v33 }
 0x418   :  { %3928 = vmatmul.f32.vlgmr.msrb.gmra.mxu2 %v3769_v46  ;;  %v3770_v3 = vand.u32 4294901760, %v3769_v46 }
 0x41a   :  { %3967 = vmatmul.f32.vlgmr.msrb.gmra.mxu3 %v3770_v3  ;;  %v3771_v56 = vsub.f32 %v3769_v46, %v3770_v3 }
 0x41b   :  { %v3581_v31 = vpop.f32.mrf.mxu0 }
 0x41c   :  { %v3582_v16 = vadd.f32 %v3581_v31, %v3528_v32  ;;  %v3772_v18 = vand.u32 4294901760, %v3771_v56  ;;  %v3689_v13 = vpop.f32.mrf.mxu2 }
 0x41e   :  { %v3621_v44 = vadd.f32 %v3620_v34, %v3582_v16  ;;  %3773 = vmatmul.f32.vlgmr.msra.gmra.mxu0 %v3772_v18  ;;  %4073 = vmatmul.f32.vlgmr.msrb.gmra.mxu1 %v3768_v33  ;;  %v3726_v7 = vpop.f32.mrf.mxu3 }
 0x420   :  { %v3690_v60 = vadd.f32 %v3689_v13, %v3621_v44 }
 0x422   :  { %v3727_v20 = vadd.f32 %v3726_v7, %v3690_v60 }
 0x424   :  { %3735 = vst.msk [vmem:[#allocation14 + $0x8] sm:$0xff] %vm1038_vm3, %v3727_v20 }
 0x426   :  { %4036 = vmatmul.f32.vlgmr.msrb.gmra.mxu0 %v3768_v33 }
 0x493   :  { %v3875_v9 = vpop.f32.mrf.mxu1 }
 0x49b   :  { %v3774_v62 = vpop.f32.mrf.mxu0  ;;  %v3929_v45 = vpop.f32.mrf.mxu2 }
 0x49c   :  { %v3775_v15 = vadd.f32 %v4154_v59, %v3774_v62  ;;  %v4074_v39 = vpop.f32.mrf.mxu1 }
 0x49d   :  { %v3968_v11 = vpop.f32.mrf.mxu3 }
 0x49e   :  { %v3876_v24 = vadd.f32 %v3875_v9, %v3775_v15 }
 0x4a0   :  { %v3930_v50 = vadd.f32 %v3929_v45, %v3876_v24 }
 0x4a2   :  { %v3969_v28 = vadd.f32 %v3968_v11, %v3930_v50 }
 0x4a3   :  { %v4037_v19 = vpop.f32.mrf.mxu0 }
 0x4a4   :  { %v4038_v49 = vadd.f32 %v4037_v19, %v3969_v28 }
 0x4a6   :  { %v4075_v10 = vadd.f32 %v4074_v39, %v4038_v49 }
 0x4a8   :  { %4078 = vst.msk [vmem:[#allocation14 + $0x10] sm:$0xff] %vm1038_vm3, %v4075_v10 }
 0x4a9   :  { %4104 = dma.vmem_to_hbm [thread:$0]  %s4097_s2, 384, %s4099_s12, [#allocation15], %s4363_s27, %s4363_s27, %s4364_s28  }
 0x4aa   :  { %4355 = dma.done.wait [#allocation4], 384  }
 0x4ab   :  { %4356 = vsyncadd [#allocation4], 4294966912 }
 0x4ac   :  { %4357 = dma.done.wait [#allocation15], 384  }
 0x4ad   :  { %4358 = vsyncadd [#allocation15], 4294966912 }
 0x4ae   :  { %4113 = vsyncpa [#allocation3], 1 }
 0x4af   :  { %4114 = vsyncpa [#allocation6], 1 }
 0x4b0   :  { %4115 = vsyncpa [#allocation9], 1 }
 0x4b1   :  { %4116 = vsyncpa [#allocation12], 1 }
 0x4b2   :  { %4117 = vsyncpa [#allocation4], 1 }
 0x4b3   :  { %4118 = vsyncpa [#allocation15], 1 }

// kernel: tpu_custom_call.1
= control target key start
LH: loop header
LB: loop body
LE: loop exit
PB: predicated region body
PF: predicated region fallthrough
CT: control target
= control target key end

     0   :  { %15 = vsyncpa [#allocation3], 0  ;;  %s6912_s0 = inlined_call_operand.hbm [shape: f32[8,16], index: 0, kind: input, shape index: {}]   ;;  %s6913_s1 = inlined_call_operand.hbm [shape: f32[8,16], index: 1, kind: input, shape index: {}]   ;;  %s6914_s2 = inlined_call_operand.hbm [shape: f32[16,128], index: 2, kind: input, shape index: {}]   ;;  %s6915_s3 = inlined_call_operand.hbm [shape: f32[1,128], index: 3, kind: input, shape index: {}]   ;;  %s6916_s4 = inlined_call_operand.hbm [shape: f32[2,128,256], index: 4, kind: input, shape index: {}]   ;;  %s6917_s5 = inlined_call_operand.vmem [shape: f32[2,1,256], index: 5, kind: input, shape index: {}]   ;;  %s6918_s6 = inlined_call_operand.hbm [shape: f32[128,128], index: 6, kind: input, shape index: {}]   ;;  %s6919_s7 = inlined_call_operand.vmem [shape: f32[1,128], index: 7, kind: input, shape index: {}]   ;;  %s6920_s8 = inlined_call_operand.hbm [shape: f32[3,8,8], index: 8, kind: output, shape index: {0}]   ;;  %s6921_s9 = inlined_call_operand.hbm [shape: f32[3,8,8], index: 9, kind: output, shape index: {1}]  }
   0x1   :  { %16 = vsyncpa [#allocation6], 0 }
   0x2   :  { %17 = vsyncpa [#allocation9], 0 }
   0x3   :  { %18 = vsyncpa [#allocation12], 0 }
   0x4   :  { %19 = vsyncpa [#allocation4], 0  ;;  %s37_s11 = sshll.u32 %s6913_s1, 4  ;;  %s38_s11 = int_to_ptr.hbm [resolvable:$true] %s37_s11 }
   0x5   :  { %20 = vsyncpa [#allocation15], 0  ;;  %s4359_s12 = smov [#allocation5]   ;;  %s61_s16 = sshll.u32 %s6915_s3, 4  ;;  %s62_s16 = int_to_ptr.hbm [resolvable:$true] %s61_s16 }
   0x6   :  { %s39_s13 = sshll.u32 %s4359_s12, 4  ;;  %s4360_s17 = smov [#allocation8]   ;;  %s40_s13 = int_to_ptr.vmem [resolvable:$true] %s39_s13 }
   0x7   :  { %42 = dma.hbm_to_vmem [thread:$0]  %s38_s11, 128, %s40_s13, [#allocation6]  }
   0x8   :  { %s63_s18 = sshll.u32 %s4360_s17, 4  ;;  %s26_s21 = sshll.u32 %s6912_s0, 4  ;;  %s64_s18 = int_to_ptr.vmem [resolvable:$true] %s63_s18  ;;  %s27_s21 = int_to_ptr.hbm [resolvable:$true] %s26_s21 }
   0x9   :  { %66 = dma.hbm_to_vmem [thread:$0]  %s62_s16, 16, %s64_s18, [#allocation9]  }
   0xa   :  { %s47_s23 = sshll.u32 %s6914_s2, 4  ;;  %s4361_s24 = smov [#allocation2]   ;;  %s48_s23 = int_to_ptr.hbm [resolvable:$true] %s47_s23 }
   0xb   :  { %s28_s25 = sshll.u32 %s4361_s24, 4  ;;  %s4362_s3 = smov [#allocation7]   ;;  %s29_s25 = int_to_ptr.vmem [resolvable:$true] %s28_s25 }
   0xc   :  { %31 = dma.hbm_to_vmem [thread:$0]  %s27_s21, 128, %s29_s25, [#allocation3]  }
   0xd   :  { %s49_s26 = sshll.u32 %s4362_s3, 4  ;;  %s4363_s27 = smov 128   ;;  %s50_s26 = int_to_ptr.vmem [resolvable:$true] %s49_s26 }
   0xe   :  { %s4364_s28 = smov 8   ;;  %s71_s30 = sshll.u32 %s6916_s4, 4  ;;  %s72_s30 = int_to_ptr.hbm [resolvable:$true] %s71_s30 }
   0xf   :  { %55 = dma.hbm_to_vmem [thread:$0]  %s48_s23, 256, %s50_s26, [#allocation6], %s4363_s27, %s4363_s27, %s4364_s28  }
  0x10   :  { %s4365_s2 = smov [#allocation10]   ;;  %s86_s13 = sshll.u32 %s6918_s6, 4  ;;  %s87_s13 = int_to_ptr.hbm [resolvable:$true] %s86_s13 }
  0x11   :  { %s73_s10 = sshll.u32 %s4365_s2, 4  ;;  %s4366_s14 = smov 256   ;;  %s74_s10 = int_to_ptr.vmem [resolvable:$true] %s73_s10 }
  0x12   :  { %s4367_s15 = smov 16   ;;  %s4368_s16 = smov [#allocation11]  }
  0x13   :  { %79 = dma.hbm_to_vmem [thread:$0]  %s72_s30, 8192, %s74_s10, [#allocation9], %s4366_s14, %s4366_s14, %s4367_s15  }
  0x14   :  { %s88_s17 = sshll.u32 %s4368_s16, 4  ;;  %s89_s17 = int_to_ptr.vmem [resolvable:$true] %s88_s17 }
  0x15   :  { %94 = dma.hbm_to_vmem [thread:$0]  %s87_s13, 2048, %s89_s17, [#allocation12], %s4363_s27, %s4363_s27, %s4364_s28  }
  0x16   :  { %4347 = dma.done.wait [#allocation3], 128  }
  0x17   :  { %4348 = vsyncadd [#allocation3], 4294967168 }
  0x18   :  { %4349 = dma.done.wait [#allocation6], 384  }
  0x19   :  { %4350 = vsyncadd [#allocation6], 4294966912 }
  0x1a   :  { %4351 = dma.done.wait [#allocation9], 8208  }
  0x1b   :  { %4352 = vsyncadd [#allocation9], 4294959088 }
  0x1c   :  { %4353 = dma.done.wait [#allocation12], 2048  }
  0x1d   :  { %4354 = vsyncadd [#allocation12], 4294965248  ;;  %vm145_vm0 = vcmask 130048   ;;  %v122_v0 = vld [vmem:[#allocation7 + $0x8] sm:$0xff]  ;;  %v121_v1 = vld [vmem:[#allocation7] sm:$0xff]  ;;  %vm1038_vm3 = vcmask 64512  }
  0x1e   :  { %v141_v2 = vld [vmem:[#allocation2] sm:$0xff]  ;;  %v4445_v3 = vand.u32 4294901760, %v122_v0  ;;  %v4447_v4 = vand.u32 4294901760, %v121_v1  ;;  %v343_v6 = vld [vmem:[#allocation10 + $0xf0] sm:$0xff]  ;;  %s4085_s3 = sshll.u32 %s6920_s8, 4  ;;  %s4369_s26 = smov [#allocation13]   ;;  %s4086_s3 = int_to_ptr.hbm [resolvable:$true] %s4085_s3 }
  0x1f   :  { %v147_v5 = vsel %vm145_vm0, %v141_v2, 0  ;;  %v341_v7 = vld [vmem:[#allocation10 + $0xe0] sm:$0xff]  ;;  %v4450_v9 = vand.u32 4294901760, %v343_v6  ;;  %v339_v11 = vld [vmem:[#allocation10 + $0xd0] sm:$0xff]  ;;  %s4083_s0 = sshll.u32 %s4369_s26, 4  ;;  %s4370_s8 = smov [#allocation14]   ;;  %s4084_s0 = int_to_ptr.vmem [resolvable:$true] %s4083_s0 }
  0x20   :  { %v167_v8 = vand.u32 4294901760, %v147_v5  ;;  %v4452_v10 = vand.u32 4294901760, %v341_v7  ;;  %v337_v12 = vld [vmem:[#allocation10 + $0xc0] sm:$0xff]  ;;  %164 = vmatpush.msra.mxu2 %v4445_v3  ;;  %v4456_v13 = vsub.f32 %v122_v0, %v4445_v3  ;;  %v4459_v14 = vsub.f32 %v121_v1, %v4447_v4  ;;  %300 = vmatpush.msra.mxu1 %v4445_v3  ;;  %v335_v19 = vld [vmem:[#allocation10 + $0xb0] sm:$0xff]  ;;  %s4096_s2 = sshll.u32 %s4370_s8, 4  ;;  %s4098_s12 = sshll.u32 %s6921_s9, 4  ;;  %s4097_s2 = int_to_ptr.vmem [resolvable:$true] %s4096_s2  ;;  %s4099_s12 = int_to_ptr.hbm [resolvable:$true] %s4098_s12 }
  0x21   :  { %v4462_v15 = vand.u32 4294901760, %v339_v11  ;;  %v4467_v17 = vsub.f32 %v343_v6, %v4450_v9  ;;  %v4480_v22 = vand.u32 4294901760, %v337_v12  ;;  %v4494_v28 = vand.u32 4294901760, %v335_v19  ;;  %v333_v31 = vld [vmem:[#allocation10 + $0xa0] sm:$0xff]  ;;  %v331_v32 = vld [vmem:[#allocation10 + $0x90] sm:$0xff] }
  0x22   :  { %v4464_v16 = vsub.f32 %v147_v5, %v167_v8  ;;  %v4470_v18 = vsub.f32 %v341_v7, %v4452_v10  ;;  %166 = vmatpush.msra.mxu2 %v4447_v4  ;;  %v4474_v20 = vand.u32 4294901760, %v4456_v13  ;;  %v4477_v21 = vand.u32 4294901760, %v4459_v14  ;;  %302 = vmatpush.msra.mxu1 %v4447_v4  ;;  %v329_v38 = vld [vmem:[#allocation10 + $0x80] sm:$0xff]  ;;  %v327_v44 = vld [vmem:[#allocation10 + $0x70] sm:$0xff] }
  0x23   :  { %304 = vmatmul.f32.vlgmr.msra.gmra.mxu1 %v167_v8  ;;  %v394_v24 = vand.u32 4294901760, %v4467_v17  ;;  %v4491_v27 = vsub.f32 %v339_v11, %v4462_v15  ;;  %v4507_v35 = vsub.f32 %v337_v12, %v4480_v22  ;;  %v4517_v40 = vsub.f32 %v335_v19, %v4494_v28  ;;  %v325_v48 = vld [vmem:[#allocation10 + $0x60] sm:$0xff]  ;;  %v323_v54 = vld [vmem:[#allocation10 + $0x50] sm:$0xff] }
  0x24   :  { %v169_v23 = vand.u32 4294901760, %v4464_v16  ;;  %223 = vmatpush.msrb.mxu2 %v4456_v13  ;;  %v193_v25 = vsub.f32 %v4456_v13, %v4474_v20  ;;  %v199_v26 = vsub.f32 %v4459_v14, %v4477_v21  ;;  %275 = vmatpush.msra.mxu0 %v4474_v20  ;;  %v400_v30 = vand.u32 4294901760, %v4470_v18  ;;  %v321_v61 = vld [vmem:[#allocation10 + $0x40] sm:$0xff]  ;;  %v319_v5 = vld [vmem:[#allocation10 + $0x30] sm:$0xff] }
  0x25   :  { %548 = vmatpush.msrb.mxu1 %v4450_v9  ;;  %v395_v37 = vsub.f32 %v4467_v17, %v394_v24  ;;  %v406_v39 = vand.u32 4294901760, %v4491_v27  ;;  %v4519_v41 = vand.u32 4294901760, %v333_v31  ;;  %v4521_v42 = vand.u32 4294901760, %v331_v32  ;;  %v317_v19 = vld [vmem:[#allocation10 + $0x20] sm:$0xff] }
  0x26   :  { %v170_v29 = vsub.f32 %v4464_v16, %v169_v23  ;;  %226 = vmatpush.msrb.mxu2 %v4459_v14  ;;  %v4501_v33 = vand.u32 4294901760, %v193_v25  ;;  %v4503_v34 = vand.u32 4294901760, %v199_v26  ;;  %279 = vmatpush.msra.mxu0 %v4477_v21  ;;  %v401_v43 = vsub.f32 %v4470_v18, %v400_v30 }
  0x27   :  { %550 = vmatpush.msrb.mxu1 %v4452_v10  ;;  %281 = vmatmul.f32.vlgmr.msra.gmra.mxu0 %v167_v8  ;;  %v412_v45 = vand.u32 4294901760, %v4507_v35  ;;  %v4531_v46 = vsub.f32 %v333_v31, %v4519_v41  ;;  %v4533_v47 = vand.u32 4294901760, %v329_v38  ;;  %v396_v49 = vand.u32 4294901760, %v395_v37 }
  0x28   :  { %v171_v36 = vand.u32 4294901760, %v170_v29  ;;  %195 = vmatpush.msra.mxu3 %v4501_v33  ;;  %495 = vmatpush.msrb.mxu0 %v4467_v17  ;;  %v407_v50 = vsub.f32 %v4491_v27, %v406_v39  ;;  %v418_v51 = vand.u32 4294901760, %v4517_v40  ;;  %v4543_v52 = vsub.f32 %v331_v32, %v4521_v42 }
  0x29   :  { %552 = vmatpush.msrb.mxu1 %v4462_v15  ;;  %v4545_v53 = vand.u32 4294901760, %v327_v44  ;;  %v402_v55 = vand.u32 4294901760, %v401_v43  ;;  %v4549_v56 = vand.u32 4294901760, %v325_v48  ;;  %v413_v57 = vsub.f32 %v4507_v35, %v412_v45 }
  0x2a   :  { %172 = vmatmul.f32.vlgmr.msra.gmra.mxu2 %v171_v36  ;;  %201 = vmatpush.msra.mxu3 %v4503_v34  ;;  %v424_v58 = vand.u32 4294901760, %v4531_v46  ;;  %v4558_v59 = vsub.f32 %v329_v38, %v4533_v47  ;;  %v4561_v60 = vand.u32 4294901760, %v323_v54  ;;  %v408_v62 = vand.u32 4294901760, %v407_v50 }
  0x2b   :  { %498 = vmatpush.msrb.mxu0 %v4470_v18  ;;  %203 = vmatmul.f32.vlgmr.msra.gmra.mxu3 %v167_v8  ;;  %v419_v63 = vsub.f32 %v4517_v40, %v418_v51  ;;  %v430_v0 = vand.u32 4294901760, %v4543_v52  ;;  %v4570_v1 = vsub.f32 %v327_v44, %v4545_v53  ;;  %v4574_v2 = vsub.f32 %v325_v48, %v4549_v56  ;;  %v313_v44 = vld [vmem:[#allocation10] sm:$0xff] }
  0x2c   :  { %352 = vmatpush.msra.mxu2 %v4450_v9  ;;  %248 = vmatpush.msrb.mxu3 %v4445_v3  ;;  %v414_v6 = vand.u32 4294901760, %v413_v57  ;;  %v425_v7 = vsub.f32 %v4531_v46, %v424_v58  ;;  %v436_v8 = vand.u32 4294901760, %v4558_v59  ;;  %v4582_v11 = vand.u32 4294901760, %v321_v61 }
  0x2d   :  { %501 = vmatpush.msrb.mxu0 %v4491_v27  ;;  %554 = vmatpush.msrb.mxu1 %v4480_v22  ;;  %v4588_v12 = vsub.f32 %v323_v54, %v4561_v60  ;;  %v420_v25 = vand.u32 4294901760, %v419_v63  ;;  %v431_v26 = vsub.f32 %v4543_v52, %v430_v0  ;;  %v442_v29 = vand.u32 4294901760, %v4570_v1 }
  0x2e   :  { %354 = vmatpush.msra.mxu2 %v4452_v10  ;;  %250 = vmatpush.msrb.mxu3 %v4447_v4  ;;  %v4595_v31 = vand.u32 4294901760, %v319_v5  ;;  %v426_v32 = vand.u32 4294901760, %v425_v7  ;;  %v437_v36 = vsub.f32 %v4558_v59, %v436_v8  ;;  %v4605_v37 = vsub.f32 %v321_v61, %v4582_v11 }
  0x2f   :  { %504 = vmatpush.msrb.mxu0 %v4507_v35  ;;  %556 = vmatpush.msrb.mxu1 %v4494_v28  ;;  %v4607_v38 = vand.u32 4294901760, %v317_v19  ;;  %v454_v43 = vand.u32 4294901760, %v4588_v12  ;;  %v432_v48 = vand.u32 4294901760, %v431_v26  ;;  %v4631_v63 = vand.u32 4294901760, %v313_v44 }
  0x30   :  { %397 = vmatpush.msra.mxu3 %v396_v49  ;;  %356 = vmatpush.msra.mxu2 %v4462_v15  ;;  %v443_v49 = vsub.f32 %v4570_v1, %v442_v29  ;;  %v4617_v50 = vsub.f32 %v319_v5, %v4595_v31  ;;  %v438_v57 = vand.u32 4294901760, %v437_v36  ;;  %v460_v61 = vand.u32 4294901760, %v4605_v37 }
  0x31   :  { %507 = vmatpush.msrb.mxu0 %v4517_v40  ;;  %558 = vmatpush.msrb.mxu1 %v4519_v41  ;;  %v4651_v36 = vsub.f32 %v313_v44, %v4631_v63 }
  0x32   :  { %229 = vmatmul.f32.vlgmr.msrb.gmra.mxu2 %v4464_v16  ;;  %403 = vmatpush.msra.mxu3 %v402_v55  ;;  %v448_v16 = vand.u32 4294901760, %v4574_v2  ;;  %v444_v5 = vand.u32 4294901760, %v443_v49  ;;  %v466_v7 = vand.u32 4294901760, %v4617_v50  ;;  %v461_v26 = vsub.f32 %v4605_v37, %v460_v61 }
  0x33   :  { %510 = vmatpush.msrb.mxu0 %v4531_v46  ;;  %358 = vmatpush.msra.mxu2 %v4480_v22 }
  0x34   :  { %254 = vmatmul.f32.vlgmr.msrb.gmra.mxu3 %v169_v23  ;;  %560 = vmatpush.msrb.mxu1 %v4521_v42  ;;  %v315_v23 = vld [vmem:[#allocation10 + $0x10] sm:$0xff]  ;;  %v449_v55 = vsub.f32 %v4574_v2, %v448_v16  ;;  %v462_v44 = vand.u32 4294901760, %v461_v26 }
  0x35   :  { %409 = vmatpush.msra.mxu3 %v408_v62  ;;  %513 = vmatpush.msrb.mxu0 %v4543_v52  ;;  %v4619_v54 = vand.u32 4294901760, %v315_v23  ;;  %v4629_v62 = vsub.f32 %v317_v19, %v4607_v38 }
  0x36   :  { %360 = vmatpush.msra.mxu2 %v4494_v28  ;;  %562 = vmatpush.msrb.mxu1 %v4533_v47  ;;  %v450_v19 = vand.u32 4294901760, %v449_v55 }
  0x37   :  { %415 = vmatpush.msra.mxu3 %v414_v6  ;;  %516 = vmatpush.msrb.mxu0 %v4558_v59  ;;  %v455_v6 = vsub.f32 %v4588_v12, %v454_v43 }
  0x38   :  { %362 = vmatpush.msra.mxu2 %v4519_v41  ;;  %564 = vmatpush.msrb.mxu1 %v4545_v53 }
  0x39   :  { %421 = vmatpush.msra.mxu3 %v420_v25  ;;  %519 = vmatpush.msrb.mxu0 %v4570_v1  ;;  %v4641_v25 = vsub.f32 %v315_v23, %v4619_v54  ;;  %v456_v23 = vand.u32 4294901760, %v455_v6  ;;  %v332_v1 = vld [vmem:[#allocation10 + $0x98] sm:$0xff] }
  0x3a   :  { %364 = vmatpush.msra.mxu2 %v4521_v42  ;;  %566 = vmatpush.msrb.mxu1 %v4549_v56 }
  0x3b   :  { %427 = vmatpush.msra.mxu3 %v426_v32  ;;  %522 = vmatpush.msrb.mxu0 %v4574_v2  ;;  %v472_v32 = vand.u32 4294901760, %v4629_v62  ;;  %v478_v49 = vand.u32 4294901760, %v4641_v25 }
  0x3c   :  { %366 = vmatpush.msra.mxu2 %v4533_v47  ;;  %568 = vmatpush.msrb.mxu1 %v4561_v60 }
  0x3d   :  { %433 = vmatpush.msra.mxu3 %v432_v48  ;;  %525 = vmatpush.msrb.mxu0 %v4588_v12  ;;  %v467_v48 = vsub.f32 %v4617_v50, %v466_v7  ;;  %v473_v55 = vsub.f32 %v4629_v62, %v472_v32  ;;  %v479_v6 = vsub.f32 %v4641_v25, %v478_v49 }
  0x3e   :  { %368 = vmatpush.msra.mxu2 %v4545_v53  ;;  %570 = vmatpush.msrb.mxu1 %v4582_v11 }
  0x3f   :  { %439 = vmatpush.msra.mxu3 %v438_v57  ;;  %528 = vmatpush.msrb.mxu0 %v4605_v37  ;;  %v484_v57 = vand.u32 4294901760, %v4651_v36  ;;  %v480_v26 = vand.u32 4294901760, %v479_v6 }
  0x40   :  { %370 = vmatpush.msra.mxu2 %v4549_v56  ;;  %572 = vmatpush.msrb.mxu1 %v4595_v31 }
  0x41   :  { %445 = vmatpush.msra.mxu3 %v444_v5  ;;  %531 = vmatpush.msrb.mxu0 %v4617_v50  ;;  %v468_v5 = vand.u32 4294901760, %v467_v48 }
  0x42   :  { %372 = vmatpush.msra.mxu2 %v4561_v60  ;;  %574 = vmatpush.msrb.mxu1 %v4607_v38 }
  0x43   :  { %451 = vmatpush.msra.mxu3 %v450_v19  ;;  %534 = vmatpush.msrb.mxu0 %v4629_v62  ;;  %v474_v19 = vand.u32 4294901760, %v473_v55  ;;  %v485_v62 = vsub.f32 %v4651_v36, %v484_v57 }
  0x44   :  { %374 = vmatpush.msra.mxu2 %v4582_v11  ;;  %576 = vmatpush.msrb.mxu1 %v4619_v54 }
  0x45   :  { %457 = vmatpush.msra.mxu3 %v456_v23  ;;  %537 = vmatpush.msrb.mxu0 %v4641_v25  ;;  %v486_v25 = vand.u32 4294901760, %v485_v62  ;;  %v326_v23 = vld [vmem:[#allocation10 + $0x68] sm:$0xff] }
  0x46   :  { %376 = vmatpush.msra.mxu2 %v4595_v31  ;;  %578 = vmatpush.msrb.mxu1 %v4631_v63 }
  0x47   :  { %463 = vmatpush.msra.mxu3 %v462_v44  ;;  %540 = vmatpush.msrb.mxu0 %v4651_v36  ;;  %v4798_v44 = vand.u32 4294901760, %v326_v23 }
  0x48   :  { %378 = vmatpush.msra.mxu2 %v4607_v38 }
  0x49   :  { %469 = vmatpush.msra.mxu3 %v468_v5  ;;  %v324_v5 = vld [vmem:[#allocation10 + $0x58] sm:$0xff] }
  0x4a   :  { %380 = vmatpush.msra.mxu2 %v4619_v54  ;;  %v4806_v62 = vand.u32 4294901760, %v324_v5 }
  0x4b   :  { %475 = vmatpush.msra.mxu3 %v474_v19 }
  0x4c   :  { %382 = vmatpush.msra.mxu2 %v4631_v63 }
  0x4d   :  { %481 = vmatpush.msra.mxu3 %v480_v26  ;;  %v4809_v26 = vsub.f32 %v326_v23, %v4798_v44 }
  0x4e   :  { %589 = vmatpush.msrb.mxu2 %v394_v24 }
  0x4f   :  { %487 = vmatpush.msra.mxu3 %v486_v25 }
  0x50   :  { %593 = vmatpush.msrb.mxu2 %v400_v30  ;;  %v338_v30 = vld [vmem:[#allocation10 + $0xc8] sm:$0xff] }
  0x51   :  { %656 = vmatpush.msrb.mxu3 %v4450_v9  ;;  %v344_v9 = vld [vmem:[#allocation10 + $0xf8] sm:$0xff]  ;;  %v4739_v40 = vand.u32 4294901760, %v338_v30 }
  0x52   :  { %597 = vmatpush.msrb.mxu2 %v406_v39 }
  0x53   :  { %658 = vmatpush.msrb.mxu3 %v4452_v10  ;;  %v4719_v10 = vand.u32 4294901760, %v344_v9  ;;  %v4752_v52 = vsub.f32 %v338_v30, %v4739_v40 }
  0x54   :  { %601 = vmatpush.msrb.mxu2 %v412_v45 }
  0x55   :  { %660 = vmatpush.msrb.mxu3 %v4462_v15  ;;  %v342_v15 = vld [vmem:[#allocation10 + $0xe8] sm:$0xff]  ;;  %693 = vmatpush.msra.mxu0 %v4719_v10  ;;  %v4723_v17 = vsub.f32 %v344_v9, %v4719_v10 }
  0x56   :  { %605 = vmatpush.msrb.mxu2 %v418_v51  ;;  %v4725_v18 = vand.u32 4294901760, %v342_v15  ;;  %v322_v9 = vld [vmem:[#allocation10 + $0x48] sm:$0xff] }
  0x57   :  { %662 = vmatpush.msrb.mxu3 %v4480_v22  ;;  %v340_v22 = vld [vmem:[#allocation10 + $0xd8] sm:$0xff]  ;;  %v735_v24 = vand.u32 4294901760, %v4723_v17  ;;  %v4819_v30 = vand.u32 4294901760, %v322_v9 }
  0x58   :  { %609 = vmatpush.msrb.mxu2 %v424_v58  ;;  %695 = vmatpush.msra.mxu0 %v4725_v18  ;;  %v4729_v27 = vand.u32 4294901760, %v340_v22 }
  0x59   :  { %664 = vmatpush.msrb.mxu3 %v4494_v28  ;;  %v4732_v28 = vsub.f32 %v342_v15, %v4725_v18  ;;  %v736_v35 = vsub.f32 %v4723_v17, %v735_v24 }
  0x5a   :  { %613 = vmatpush.msrb.mxu2 %v430_v0  ;;  %697 = vmatpush.msra.mxu0 %v4729_v27  ;;  %v753_v0 = vand.u32 4294901760, %v4752_v52 }
  0x5b   :  { %666 = vmatpush.msrb.mxu3 %v4519_v41  ;;  %v741_v39 = vand.u32 4294901760, %v4732_v28  ;;  %v4742_v41 = vsub.f32 %v340_v22, %v4729_v27  ;;  %v737_v45 = vand.u32 4294901760, %v736_v35  ;;  %v6926_v22 = vand.u32 4294901760, %v4809_v26 }
  0x5c   :  { %617 = vmatpush.msrb.mxu2 %v436_v8  ;;  %699 = vmatpush.msra.mxu0 %v4739_v40  ;;  %v4822_v35 = vsub.f32 %v324_v5, %v4806_v62 }
  0x5d   :  { %668 = vmatpush.msrb.mxu3 %v4521_v42  ;;  %v336_v42 = vld [vmem:[#allocation10 + $0xb8] sm:$0xff]  ;;  %v742_v46 = vsub.f32 %v4732_v28, %v741_v39  ;;  %738 = vmatpush.msra.mxu1 %v737_v45 }
  0x5e   :  { %621 = vmatpush.msrb.mxu2 %v442_v29  ;;  %v4749_v51 = vand.u32 4294901760, %v336_v42  ;;  %v754_v29 = vsub.f32 %v4752_v52, %v753_v0  ;;  %v320_v45 = vld [vmem:[#allocation10 + $0x38] sm:$0xff] }
  0x5f   :  { %670 = vmatpush.msrb.mxu3 %v4533_v47  ;;  %v747_v47 = vand.u32 4294901760, %v4742_v41 }
  0x60   :  { %625 = vmatpush.msrb.mxu2 %v448_v16  ;;  %701 = vmatpush.msra.mxu0 %v4749_v51  ;;  %v755_v50 = vand.u32 4294901760, %v754_v29 }
  0x61   :  { %672 = vmatpush.msrb.mxu3 %v4545_v53  ;;  %v334_v53 = vld [vmem:[#allocation10 + $0xa8] sm:$0xff]  ;;  %v748_v58 = vsub.f32 %v4742_v41, %v747_v47 }
  0x62   :  { %629 = vmatpush.msrb.mxu2 %v454_v43  ;;  %v4758_v59 = vand.u32 4294901760, %v334_v53 }
  0x63   :  { %674 = vmatpush.msrb.mxu3 %v4549_v56  ;;  %v743_v56 = vand.u32 4294901760, %v742_v46  ;;  %v749_v2 = vand.u32 4294901760, %v748_v58  ;;  %v4829_v58 = vand.u32 4294901760, %v320_v45 }
  0x64   :  { %633 = vmatpush.msrb.mxu2 %v460_v61  ;;  %703 = vmatpush.msra.mxu0 %v4758_v59  ;;  %v4769_v12 = vsub.f32 %v334_v53, %v4758_v59  ;;  %v790_v53 = vsub.f32 %v4809_v26, %v6926_v22 }
  0x65   :  { %676 = vmatpush.msrb.mxu3 %v4561_v60  ;;  %v4761_v60 = vsub.f32 %v336_v42, %v4749_v51  ;;  %744 = vmatpush.msra.mxu1 %v743_v56  ;;  %v6925_v56 = vand.u32 4294901760, %v4822_v35 }
  0x66   :  { %637 = vmatpush.msrb.mxu2 %v466_v7  ;;  %v6931_v37 = vand.u32 4294901760, %v4769_v12  ;;  %v791_v29 = vand.u32 4294901760, %v790_v53 }
  0x67   :  { %678 = vmatpush.msrb.mxu3 %v4582_v11  ;;  %v6932_v8 = vand.u32 4294901760, %v4761_v60  ;;  %v4766_v11 = vand.u32 4294901760, %v332_v1  ;;  %750 = vmatpush.msra.mxu1 %v749_v2  ;;  %v318_v2 = vld [vmem:[#allocation10 + $0x28] sm:$0xff] }
  0x68   :  { %641 = vmatpush.msrb.mxu2 %v472_v32 }
  0x69   :  { %680 = vmatpush.msrb.mxu3 %v4595_v31  ;;  %v330_v31 = vld [vmem:[#allocation10 + $0x88] sm:$0xff]  ;;  %v760_v16 = vsub.f32 %v4761_v60, %v6932_v8  ;;  %705 = vmatpush.msra.mxu0 %v4766_v11  ;;  %v4782_v43 = vsub.f32 %v332_v1, %v4766_v11  ;;  %v4832_v1 = vsub.f32 %v322_v9, %v4819_v30 }
  0x6a   :  { %645 = vmatpush.msrb.mxu2 %v478_v49  ;;  %756 = vmatpush.msra.mxu1 %v755_v50  ;;  %v4841_v50 = vsub.f32 %v320_v45, %v4829_v58  ;;  %v314_v9 = vld [vmem:[#allocation10 + $0x8] sm:$0xff] }
  0x6b   :  { %682 = vmatpush.msrb.mxu3 %v4607_v38  ;;  %v4779_v38 = vand.u32 4294901760, %v330_v31  ;;  %v761_v61 = vand.u32 4294901760, %v760_v16  ;;  %v6930_v7 = vand.u32 4294901760, %v4782_v43  ;;  %v4838_v16 = vand.u32 4294901760, %v318_v2 }
  0x6c   :  { %649 = vmatpush.msrb.mxu2 %v484_v57  ;;  %v6923_v23 = vand.u32 4294901760, %v4841_v50 }
  0x6d   :  { %684 = vmatpush.msrb.mxu3 %v4619_v54  ;;  %v328_v54 = vld [vmem:[#allocation10 + $0x78] sm:$0xff]  ;;  %707 = vmatpush.msra.mxu0 %v4779_v38  ;;  %v4792_v36 = vsub.f32 %v330_v31, %v4779_v38  ;;  %v772_v49 = vsub.f32 %v4782_v43, %v6930_v7  ;;  %v796_v31 = vsub.f32 %v4822_v35, %v6925_v56 }
  0x6e   :  { %v4789_v32 = vand.u32 4294901760, %v328_v54  ;;  %762 = vmatpush.msra.mxu1 %v761_v61  ;;  %v316_v61 = vld [vmem:[#allocation10 + $0x18] sm:$0xff] }
  0x6f   :  { %686 = vmatpush.msrb.mxu3 %v4631_v63  ;;  %v766_v63 = vsub.f32 %v4769_v12, %v6931_v37  ;;  %v6929_v57 = vand.u32 4294901760, %v4792_v36  ;;  %v773_v6 = vand.u32 4294901760, %v772_v49  ;;  %v4849_v49 = vsub.f32 %v318_v2, %v4838_v16 }
  0x70   :  { %709 = vmatpush.msra.mxu0 %v4789_v32  ;;  %v4801_v55 = vsub.f32 %v328_v54, %v4789_v32  ;;  %v6924_v54 = vand.u32 4294901760, %v4832_v1 }
  0x71   :  { %v767_v48 = vand.u32 4294901760, %v766_v63  ;;  %v778_v25 = vsub.f32 %v4792_v36, %v6929_v57  ;;  %v797_v63 = vand.u32 4294901760, %v796_v31 }
  0x72   :  { %711 = vmatpush.msra.mxu0 %v4798_v44  ;;  %v6928_v19 = vand.u32 4294901760, %v4801_v55  ;;  %v802_v5 = vsub.f32 %v4832_v1, %v6924_v54 }
  0x73   :  { %768 = vmatpush.msra.mxu1 %v767_v48  ;;  %v779_v42 = vand.u32 4294901760, %v778_v25  ;;  %v4846_v48 = vand.u32 4294901760, %v316_v61  ;;  %v6922_v25 = vand.u32 4294901760, %v4849_v49 }
  0x74   :  { %v784_v15 = vsub.f32 %v4801_v55, %v6928_v19  ;;  %713 = vmatpush.msra.mxu0 %v4806_v62 }
  0x75   :  { %774 = vmatpush.msra.mxu1 %v773_v6  ;;  %v808_v6 = vsub.f32 %v4841_v50, %v6923_v23  ;;  %v4862_v45 = vsub.f32 %v316_v61, %v4846_v48  ;;  %v814_v53 = vsub.f32 %v4849_v49, %v6922_v25 }
  0x76   :  { %v785_v46 = vand.u32 4294901760, %v784_v15  ;;  %715 = vmatpush.msra.mxu0 %v4819_v30  ;;  %v803_v15 = vand.u32 4294901760, %v802_v5  ;;  %v4139_v5 = vld [vmem:[#allocation8] ss:$0 sm:$0xff] }
  0x77   :  { %780 = vmatpush.msra.mxu1 %v779_v42  ;;  %v4859_v42 = vand.u32 4294901760, %v314_v9  ;;  %v6927_v2 = vand.u32 4294901760, %v4862_v45  ;;  %v815_v31 = vand.u32 4294901760, %v814_v53 }
  0x78   :  { %717 = vmatpush.msra.mxu0 %v4829_v58 }
  0x79   :  { %786 = vmatpush.msra.mxu1 %v785_v46  ;;  %v809_v46 = vand.u32 4294901760, %v808_v6  ;;  %v820_v61 = vsub.f32 %v4862_v45, %v6927_v2 }
  0x7a   :  { %719 = vmatpush.msra.mxu0 %v4838_v16 }
  0x7b   :  { %792 = vmatpush.msra.mxu1 %v791_v29  ;;  %v4870_v29 = vsub.f32 %v314_v9, %v4859_v42  ;;  %v821_v6 = vand.u32 4294901760, %v820_v61 }
  0x7c   :  { %721 = vmatpush.msra.mxu0 %v4846_v48 }
  0x7d   :  { %798 = vmatpush.msra.mxu1 %v797_v63  ;;  %v6933_v63 = vand.u32 4294901760, %v4870_v29 }
  0x7e   :  { %723 = vmatpush.msra.mxu0 %v4859_v42 }
  0x7f   :  { %804 = vmatpush.msra.mxu1 %v803_v15  ;;  %v826_v15 = vsub.f32 %v4870_v29, %v6933_v63 }
  0x81   :  { %810 = vmatpush.msra.mxu1 %v809_v46  ;;  %v827_v23 = vand.u32 4294901760, %v826_v15  ;;  %v1055_v15 = vld [vmem:[#allocation10 + $0x170] sm:$0xff] }
  0x83   :  { %816 = vmatpush.msra.mxu1 %v815_v31 }
  0x85   :  { %822 = vmatpush.msra.mxu1 %v821_v6 }
  0x87   :  { %828 = vmatpush.msra.mxu1 %v827_v23  ;;  %v1057_v23 = vld [vmem:[#allocation10 + $0x180] sm:$0xff] }
  0xa0   :  { %v305_v57 = vpop.f32.mrf.mxu1 }
  0xa4   :  { %v282_v2 = vpop.f32.mrf.mxu0 }
  0xad   :  { %v173_v25 = vpop.f32.mrf.mxu2 }
  0xae   :  { %v204_v9 = vpop.f32.mrf.mxu3  ;;  %v174_v54 = vadd.f32 %v4139_v5, %v173_v25 }
  0xb0   :  { %v205_v46 = vadd.f32 %v204_v9, %v174_v54  ;;  %v7074_v9 = vand.u32 4294901760, %v4849_v49 }
  0xb5   :  { %v230_v53 = vpop.f32.mrf.mxu2 }
  0xb6   :  { %v231_v56 = vadd.f32 %v230_v53, %v205_v46  ;;  %v5004_v53 = vand.u32 4294901760, %v1057_v23 }
  0xb7   :  { %v255_v22 = vpop.f32.mrf.mxu3 }
  0xb8   :  { %v256_v19 = vadd.f32 %v255_v22, %v231_v56  ;;  %v7072_v56 = vand.u32 4294901760, %v4832_v1 }
  0xba   :  { %v283_v7 = vadd.f32 %v282_v2, %v256_v19  ;;  %v7073_v2 = vand.u32 4294901760, %v4841_v50 }
  0xbc   :  { %v306_v31 = vadd.f32 %v305_v57, %v283_v7  ;;  %v7071_v7 = vand.u32 4294901760, %v4822_v35 }
  0xbe   :  { %v309_v61 = vmul.f32 1.442695, %v306_v31  ;;  %vm308_vm1 = vcmp.gt.f32.partialorder %v306_v31, 0.0 }
  0xc0   :  { %4141 = vpow2.f32 %v309_v61 }
  0xc6   :  { %v4142_v37 = vpop.eup %4141 }
  0xc7   :  { %v4119_v8 = vadd.f32 -1.0, %v4142_v37 }
  0xc9   :  { %v312_v63 = vsel %vm308_vm1, %v306_v31, %v4119_v8  ;;  %v1053_v31 = vld [vmem:[#allocation10 + $0x160] sm:$0xff] }
  0xca   :  { %v4879_v6 = vand.u32 4294901760, %v312_v63 }
  0xcc   :  { %v4882_v25 = vsub.f32 %v312_v63, %v4879_v6  ;;  %489 = vmatmul.f32.vlgmr.msra.gmra.mxu3 %v4879_v6 }
  0xcd   :  { %889 = vmatpush.msra.mxu3 %v4719_v10 }
  0xce   :  { %543 = vmatmul.f32.vlgmr.msrb.gmra.mxu0 %v4882_v25  ;;  %v4888_v19 = vand.u32 4294901760, %v4882_v25 }
  0xcf   :  { %891 = vmatpush.msra.mxu3 %v4725_v18  ;;  %930 = vmatpush.msrb.mxu0 %v735_v24  ;;  %v7067_v24 = vand.u32 4294901760, %v4782_v43 }
  0xd0   :  { %582 = vmatmul.f32.vlgmr.msrb.gmra.mxu1 %v4888_v19  ;;  %v386_v8 = vsub.f32 %v4882_v25, %v4888_v19 }
  0xd1   :  { %893 = vmatpush.msra.mxu3 %v4729_v27  ;;  %934 = vmatpush.msrb.mxu0 %v741_v39  ;;  %v1067_v39 = vld [vmem:[#allocation10 + $0x1d0] sm:$0xff] }
  0xd2   :  { %997 = vmatpush.msrb.mxu1 %v4719_v10  ;;  %v387_v37 = vand.u32 4294901760, %v386_v8  ;;  %v7065_v10 = vand.u32 4294901760, %v4761_v60 }
  0xd3   :  { %895 = vmatpush.msra.mxu3 %v4739_v40  ;;  %938 = vmatpush.msrb.mxu0 %v747_v47  ;;  %v1065_v47 = vld [vmem:[#allocation10 + $0x1c0] sm:$0xff] }
  0xd4   :  { %999 = vmatpush.msrb.mxu1 %v4725_v18  ;;  %388 = vmatmul.f32.vlgmr.msra.gmra.mxu2 %v387_v37  ;;  %v1071_v18 = vld [vmem:[#allocation10 + $0x1f0] sm:$0xff] }
  0xd5   :  { %688 = vmatmul.f32.vlgmr.msrb.gmra.mxu3 %v4879_v6  ;;  %836 = vmatpush.msra.mxu2 %v4723_v17  ;;  %v7066_v17 = vand.u32 4294901760, %v4769_v12 }
  0xd6   :  { %897 = vmatpush.msra.mxu3 %v4749_v51  ;;  %942 = vmatpush.msrb.mxu0 %v753_v0  ;;  %v1063_v0 = vld [vmem:[#allocation10 + $0x1b0] sm:$0xff] }
  0xd7   :  { %1001 = vmatpush.msrb.mxu1 %v4729_v27  ;;  %729 = vmatmul.f32.vlgmr.msra.gmra.mxu0 %v387_v37  ;;  %v1069_v27 = vld [vmem:[#allocation10 + $0x1e0] sm:$0xff]  ;;  %v4965_v22 = vand.u32 4294901760, %v1063_v0 }
  0xd8   :  { %839 = vmatpush.msra.mxu2 %v4732_v28  ;;  %899 = vmatpush.msra.mxu3 %v4758_v59  ;;  %v4927_v28 = vand.u32 4294901760, %v1071_v18 }
  0xd9   :  { %946 = vmatpush.msrb.mxu0 %v7065_v10  ;;  %1003 = vmatpush.msrb.mxu1 %v4739_v40  ;;  %v7068_v40 = vand.u32 4294901760, %v4792_v36  ;;  %v4988_v63 = vsub.f32 %v1063_v0, %v4965_v22  ;;  %v5018_v10 = vand.u32 4294901760, %v1055_v15 }
  0xda   :  { %830 = vmatmul.f32.vlgmr.msra.gmra.mxu1 %v4879_v6  ;;  %842 = vmatpush.msra.mxu2 %v4742_v41  ;;  %v4934_v41 = vand.u32 4294901760, %v1069_v27 }
  0xdb   :  { %901 = vmatpush.msra.mxu3 %v4766_v11  ;;  %950 = vmatpush.msrb.mxu0 %v7066_v17  ;;  %v1147_v8 = vand.u32 4294901760, %v4988_v63  ;;  %v1051_v17 = vld [vmem:[#allocation10 + $0x150] sm:$0xff] }
  0xdc   :  { %1005 = vmatpush.msrb.mxu1 %v4749_v51  ;;  %845 = vmatpush.msra.mxu2 %v4752_v52  ;;  %v4938_v51 = vand.u32 4294901760, %v1067_v39  ;;  %v7069_v52 = vand.u32 4294901760, %v4801_v55 }
  0xdd   :  { %903 = vmatpush.msra.mxu3 %v4779_v38  ;;  %954 = vmatpush.msrb.mxu0 %v7067_v24 }
  0xde   :  { %1007 = vmatpush.msrb.mxu1 %v4758_v59  ;;  %651 = vmatmul.f32.vlgmr.msrb.gmra.mxu2 %v4879_v6  ;;  %v4944_v59 = vsub.f32 %v1071_v18, %v4927_v28  ;;  %v7076_v18 = vand.u32 4294901760, %v4870_v29 }
  0xdf   :  { %848 = vmatpush.msra.mxu2 %v4761_v60  ;;  %905 = vmatpush.msra.mxu3 %v4789_v32  ;;  %v4948_v60 = vand.u32 4294901760, %v1065_v47 }
  0xe0   :  { %958 = vmatpush.msrb.mxu0 %v7068_v40  ;;  %1009 = vmatpush.msrb.mxu1 %v4766_v11  ;;  %v7070_v11 = vand.u32 4294901760, %v4809_v26  ;;  %v1123_v57 = vand.u32 4294901760, %v4944_v59 }
  0xe1   :  { %851 = vmatpush.msra.mxu2 %v4769_v12  ;;  %907 = vmatpush.msra.mxu3 %v4798_v44  ;;  %v4954_v12 = vsub.f32 %v1069_v27, %v4934_v41  ;;  %v5030_v27 = vsub.f32 %v1057_v23, %v5004_v53 }
  0xe2   :  { %962 = vmatpush.msrb.mxu0 %v7069_v52  ;;  %1011 = vmatpush.msrb.mxu1 %v4779_v38  ;;  %v4959_v38 = vsub.f32 %v1067_v39, %v4938_v51  ;;  %v5032_v39 = vand.u32 4294901760, %v1053_v31  ;;  %v5044_v52 = vand.u32 4294901760, %v1051_v17 }
  0xe3   :  { %854 = vmatpush.msra.mxu2 %v4782_v43  ;;  %909 = vmatpush.msra.mxu3 %v4806_v62  ;;  %v1061_v43 = vld [vmem:[#allocation10 + $0x1a0] sm:$0xff]  ;;  %v1129_v54 = vand.u32 4294901760, %v4954_v12  ;;  %v1165_v0 = vand.u32 4294901760, %v5030_v27 }
  0xe4   :  { %966 = vmatpush.msrb.mxu0 %v7070_v11  ;;  %1013 = vmatpush.msrb.mxu1 %v4789_v32  ;;  %v4970_v32 = vsub.f32 %v1065_v47, %v4948_v60  ;;  %v5042_v47 = vsub.f32 %v1055_v15, %v5018_v10  ;;  %v5054_v11 = vsub.f32 %v1053_v31, %v5032_v39 }
  0xe5   :  { %857 = vmatpush.msra.mxu2 %v4792_v36  ;;  %911 = vmatpush.msra.mxu3 %v4819_v30  ;;  %v1059_v36 = vld [vmem:[#allocation10 + $0x190] sm:$0xff] }
  0xe6   :  { %970 = vmatpush.msrb.mxu0 %v7071_v7  ;;  %1015 = vmatpush.msrb.mxu1 %v4798_v44  ;;  %v4976_v44 = vand.u32 4294901760, %v1061_v43  ;;  %v4990_v5 = vand.u32 4294901760, %v1059_v36  ;;  %v1171_v7 = vand.u32 4294901760, %v5042_v47 }
  0xe7   :  { %860 = vmatpush.msra.mxu2 %v4801_v55  ;;  %913 = vmatpush.msra.mxu3 %v4829_v58  ;;  %v1135_v55 = vand.u32 4294901760, %v4959_v38 }
  0xe8   :  { %974 = vmatpush.msrb.mxu0 %v7072_v56  ;;  %1017 = vmatpush.msrb.mxu1 %v4806_v62  ;;  %v1124_v62 = vsub.f32 %v4944_v59, %v1123_v57  ;;  %v5002_v46 = vsub.f32 %v1061_v43, %v4976_v44  ;;  %v5016_v37 = vsub.f32 %v1059_v36, %v4990_v5  ;;  %v1177_v56 = vand.u32 4294901760, %v5054_v11 }
  0xe9   :  { %863 = vmatpush.msra.mxu2 %v4809_v26  ;;  %915 = vmatpush.msra.mxu3 %v4838_v16  ;;  %v1141_v26 = vand.u32 4294901760, %v4970_v32  ;;  %v5066_v36 = vsub.f32 %v1051_v17, %v5044_v52 }
  0xea   :  { %978 = vmatpush.msrb.mxu0 %v7073_v2  ;;  %1019 = vmatpush.msrb.mxu1 %v4819_v30  ;;  %v1130_v30 = vsub.f32 %v4954_v12, %v1129_v54  ;;  %v1125_v61 = vand.u32 4294901760, %v1124_v62  ;;  %v1153_v24 = vand.u32 4294901760, %v5002_v46  ;;  %v1159_v40 = vand.u32 4294901760, %v5016_v37 }
  0xeb   :  { %866 = vmatpush.msra.mxu2 %v4822_v35  ;;  %917 = vmatpush.msra.mxu3 %v4846_v48  ;;  %v1136_v35 = vsub.f32 %v4959_v38, %v1135_v55  ;;  %v1172_v62 = vsub.f32 %v5042_v47, %v1171_v7  ;;  %v1183_v15 = vand.u32 4294901760, %v5066_v36 }
  0xec   :  { %982 = vmatpush.msrb.mxu0 %v7074_v9  ;;  %1021 = vmatpush.msrb.mxu1 %v4829_v58  ;;  %v7075_v58 = vand.u32 4294901760, %v4862_v45 }
  0xed   :  { %869 = vmatpush.msra.mxu2 %v4832_v1  ;;  %919 = vmatpush.msra.mxu3 %v4859_v42  ;;  %v1142_v1 = vsub.f32 %v4970_v32, %v1141_v26  ;;  %v1173_v31 = vand.u32 4294901760, %v1172_v62 }
  0xee   :  { %986 = vmatpush.msrb.mxu0 %v7075_v58  ;;  %1023 = vmatpush.msrb.mxu1 %v4838_v16  ;;  %v1131_v16 = vand.u32 4294901760, %v1130_v30  ;;  %v1178_v30 = vsub.f32 %v5054_v11, %v1177_v56  ;;  %v1184_v58 = vsub.f32 %v5066_v36, %v1183_v15 }
  0xef   :  { %923 = vmatmul.f32.vlgmr.msra.gmra.mxu3 %v4888_v19  ;;  %872 = vmatpush.msra.mxu2 %v4841_v50  ;;  %v1137_v50 = vand.u32 4294901760, %v1136_v35  ;;  %v1049_v19 = vld [vmem:[#allocation10 + $0x140] sm:$0xff] }
  0xf0   :  { %990 = vmatpush.msrb.mxu0 %v7076_v18  ;;  %1025 = vmatpush.msrb.mxu1 %v4846_v48  ;;  %v1148_v48 = vsub.f32 %v4988_v63, %v1147_v8  ;;  %v5056_v43 = vand.u32 4294901760, %v1049_v19  ;;  %v1185_v17 = vand.u32 4294901760, %v1184_v58 }
  0xf1   :  { %992 = vmatmul.f32.vlgmr.msrb.gmra.mxu0 %v4879_v6  ;;  %875 = vmatpush.msra.mxu2 %v4849_v49  ;;  %v1143_v49 = vand.u32 4294901760, %v1142_v1 }
  0xf2   :  { %1027 = vmatpush.msrb.mxu1 %v4859_v42  ;;  %1126 = vmatpush.msrb.mxu3 %v1125_v61  ;;  %v1154_v42 = vsub.f32 %v5002_v46, %v1153_v24  ;;  %v5076_v23 = vsub.f32 %v1049_v19, %v5056_v43  ;;  %v1179_v61 = vand.u32 4294901760, %v1178_v30  ;;  %v1045_v19 = vld [vmem:[#allocation10 + $0x120] sm:$0xff] }
  0xf3   :  { %1029 = vmatmul.f32.vlgmr.msrb.gmra.mxu1 %v4879_v6  ;;  %878 = vmatpush.msra.mxu2 %v4862_v45  ;;  %v1149_v45 = vand.u32 4294901760, %v1148_v48  ;;  %v1160_v6 = vsub.f32 %v5016_v37, %v1159_v40 }
  0xf4   :  { %1132 = vmatpush.msrb.mxu3 %v1131_v16  ;;  %1224 = vmatpush.msra.mxu0 %v4944_v59  ;;  %v1189_v35 = vand.u32 4294901760, %v5076_v23  ;;  %v1047_v16 = vld [vmem:[#allocation10 + $0x130] sm:$0xff] }
  0xf5   :  { %881 = vmatpush.msra.mxu2 %v4870_v29  ;;  %1277 = vmatpush.msra.mxu1 %v4927_v28  ;;  %v1155_v29 = vand.u32 4294901760, %v1154_v42  ;;  %v1161_v2 = vand.u32 4294901760, %v1160_v6  ;;  %v1043_v42 = vld [vmem:[#allocation10 + $0x110] sm:$0xff] }
  0xf6   :  { %884 = vmatmul.f32.vlgmr.msra.gmra.mxu2 %v4882_v25  ;;  %1138 = vmatpush.msrb.mxu3 %v1137_v50  ;;  %v1166_v25 = vsub.f32 %v5030_v27, %v1165_v0  ;;  %v1190_v1 = vsub.f32 %v5076_v23, %v1189_v35  ;;  %v5123_v50 = vand.u32 4294901760, %v1047_v16 }
  0xf7   :  { %1227 = vmatpush.msra.mxu0 %v4954_v12  ;;  %1279 = vmatpush.msra.mxu1 %v4934_v41 }
  0xf8   :  { %1144 = vmatpush.msrb.mxu3 %v1143_v49  ;;  %1081 = vmatpush.msrb.mxu2 %v4927_v28  ;;  %v1167_v9 = vand.u32 4294901760, %v1166_v25  ;;  %v1191_v18 = vand.u32 4294901760, %v1190_v1  ;;  %v5126_v48 = vsub.f32 %v1047_v16, %v5123_v50  ;;  %v5128_v49 = vand.u32 4294901760, %v1045_v19  ;;  %v1041_v25 = vld [vmem:[#allocation10 + $0x100] sm:$0xff] }
  0xf9   :  { %1230 = vmatpush.msra.mxu0 %v4959_v38  ;;  %1281 = vmatpush.msra.mxu1 %v4938_v51  ;;  %v5149_v30 = vand.u32 4294901760, %v1041_v25 }
  0xfa   :  { %1150 = vmatpush.msrb.mxu3 %v1149_v45  ;;  %1083 = vmatpush.msrb.mxu2 %v4934_v41  ;;  %v1195_v45 = vand.u32 4294901760, %v5126_v48  ;;  %v5134_v6 = vsub.f32 %v1045_v19, %v5128_v49  ;;  %v1072_v19 = vld [vmem:[#allocation10 + $0x1f8] sm:$0xff] }
  0xfb   :  { %1233 = vmatpush.msra.mxu0 %v4970_v32  ;;  %1283 = vmatpush.msra.mxu1 %v4948_v60  ;;  %v5158_v1 = vsub.f32 %v1041_v25, %v5149_v30 }
  0xfc   :  { %1156 = vmatpush.msrb.mxu3 %v1155_v29  ;;  %1085 = vmatpush.msrb.mxu2 %v4938_v51  ;;  %v5137_v29 = vand.u32 4294901760, %v1043_v42  ;;  %v1201_v62 = vand.u32 4294901760, %v5134_v6 }
  0xfd   :  { %1236 = vmatpush.msra.mxu0 %v4988_v63  ;;  %1285 = vmatpush.msra.mxu1 %v4965_v22  ;;  %v6935_v16 = vand.u32 4294901760, %v5158_v1 }
  0xfe   :  { %1162 = vmatpush.msrb.mxu3 %v1161_v2  ;;  %1087 = vmatpush.msrb.mxu2 %v4948_v60  ;;  %v1196_v2 = vsub.f32 %v5126_v48, %v1195_v45  ;;  %v1202_v58 = vsub.f32 %v5134_v6, %v1201_v62 }
  0xff   :  { %1239 = vmatpush.msra.mxu0 %v5002_v46  ;;  %1287 = vmatpush.msra.mxu1 %v4976_v44 }
 0x100   :  { %1168 = vmatpush.msrb.mxu3 %v1167_v9  ;;  %1089 = vmatpush.msrb.mxu2 %v4965_v22  ;;  %v5146_v9 = vsub.f32 %v1043_v42, %v5137_v29  ;;  %v5168_v42 = vand.u32 4294901760, %v1072_v19 }
 0x101   :  { %1242 = vmatpush.msra.mxu0 %v5016_v37  ;;  %1289 = vmatpush.msra.mxu1 %v4990_v5 }
 0x102   :  { %1174 = vmatpush.msrb.mxu3 %v1173_v31  ;;  %1091 = vmatpush.msrb.mxu2 %v4976_v44  ;;  %v1197_v31 = vand.u32 4294901760, %v1196_v2  ;;  %v1214_v2 = vsub.f32 %v5158_v1, %v6935_v16 }
 0x103   :  { %1245 = vmatpush.msra.mxu0 %v5030_v27  ;;  %1291 = vmatpush.msra.mxu1 %v5004_v53 }
 0x104   :  { %1180 = vmatpush.msrb.mxu3 %v1179_v61  ;;  %1093 = vmatpush.msrb.mxu2 %v4990_v5  ;;  %v6934_v61 = vand.u32 4294901760, %v5146_v9  ;;  %v1215_v59 = vand.u32 4294901760, %v1214_v2 }
 0x105   :  { %1248 = vmatpush.msra.mxu0 %v5042_v47  ;;  %1293 = vmatpush.msra.mxu1 %v5018_v10 }
 0x106   :  { %1186 = vmatpush.msrb.mxu3 %v1185_v17  ;;  %1095 = vmatpush.msrb.mxu2 %v5004_v53  ;;  %v1203_v17 = vand.u32 4294901760, %v1202_v58  ;;  %v5177_v58 = vsub.f32 %v1072_v19, %v5168_v42  ;;  %v1066_v19 = vld [vmem:[#allocation10 + $0x1c8] sm:$0xff] }
 0x107   :  { %1251 = vmatpush.msra.mxu0 %v5054_v11  ;;  %1295 = vmatpush.msra.mxu1 %v5032_v39 }
 0x108   :  { %1192 = vmatpush.msrb.mxu3 %v1191_v18  ;;  %1097 = vmatpush.msrb.mxu2 %v5018_v10  ;;  %v1208_v18 = vsub.f32 %v5146_v9, %v6934_v61 }
 0x109   :  { %1254 = vmatpush.msra.mxu0 %v5066_v36  ;;  %1297 = vmatpush.msra.mxu1 %v5044_v52 }
 0x10a   :  { %1099 = vmatpush.msrb.mxu2 %v5032_v39  ;;  %1198 = vmatpush.msrb.mxu3 %v1197_v31  ;;  %v1209_v25 = vand.u32 4294901760, %v1208_v18  ;;  %v1070_v31 = vld [vmem:[#allocation10 + $0x1e8] sm:$0xff] }
 0x10b   :  { %1257 = vmatpush.msra.mxu0 %v5076_v23  ;;  %1299 = vmatpush.msra.mxu1 %v5056_v43  ;;  %v5179_v61 = vand.u32 4294901760, %v1070_v31 }
 0x10c   :  { %1101 = vmatpush.msrb.mxu2 %v5044_v52  ;;  %1204 = vmatpush.msrb.mxu3 %v1203_v17  ;;  %v6936_v17 = vand.u32 4294901760, %v5177_v58 }
 0x10d   :  { %1301 = vmatpush.msra.mxu1 %v5123_v50  ;;  %1260 = vmatpush.msra.mxu0 %v5126_v48  ;;  %v5188_v16 = vsub.f32 %v1070_v31, %v5179_v61  ;;  %v1064_v31 = vld [vmem:[#allocation10 + $0x1b8] sm:$0xff] }
 0x10e   :  { %1103 = vmatpush.msrb.mxu2 %v5056_v43  ;;  %1210 = vmatpush.msrb.mxu3 %v1209_v25  ;;  %v1465_v12 = vsub.f32 %v5177_v58, %v6936_v17  ;;  %v5198_v25 = vand.u32 4294901760, %v1066_v19  ;;  %v1062_v17 = vld [vmem:[#allocation10 + $0x1a8] sm:$0xff] }
 0x10f   :  { %1303 = vmatpush.msra.mxu1 %v5128_v49  ;;  %1263 = vmatpush.msra.mxu0 %v5134_v6 }
 0x110   :  { %1105 = vmatpush.msrb.mxu2 %v5123_v50  ;;  %1216 = vmatpush.msrb.mxu3 %v1215_v59  ;;  %v5211_v59 = vand.u32 4294901760, %v1064_v31 }
 0x111   :  { %1305 = vmatpush.msra.mxu1 %v5137_v29  ;;  %1266 = vmatpush.msra.mxu0 %v5146_v9 }
 0x112   :  { %1107 = vmatpush.msrb.mxu2 %v5128_v49  ;;  %1385 = vmatpush.msra.mxu3 %v4927_v28  ;;  %v1466_v28 = vand.u32 4294901760, %v1465_v12  ;;  %v5225_v12 = vsub.f32 %v1064_v31, %v5211_v59 }
 0x113   :  { %1307 = vmatpush.msra.mxu1 %v5149_v30  ;;  %1269 = vmatpush.msra.mxu0 %v5158_v1 }
 0x114   :  { %1109 = vmatpush.msrb.mxu2 %v5137_v29  ;;  %1387 = vmatpush.msra.mxu3 %v4934_v41  ;;  %v1488_v63 = vand.u32 4294901760, %v5225_v12 }
 0x115   :  { %1422 = vmatpush.msrb.mxu0 %v5168_v42  ;;  %1467 = vmatpush.msrb.mxu1 %v1466_v28 }
 0x116   :  { %1111 = vmatpush.msrb.mxu2 %v5149_v30  ;;  %1389 = vmatpush.msra.mxu3 %v4938_v51 }
 0x117   :  { %1424 = vmatpush.msrb.mxu0 %v5179_v61 }
 0x118   :  { %1318 = vmatpush.msra.mxu2 %v1123_v57  ;;  %v1068_v57 = vld [vmem:[#allocation10 + $0x1d8] sm:$0xff]  ;;  %1391 = vmatpush.msra.mxu3 %v4948_v60  ;;  %v1489_v60 = vsub.f32 %v5225_v12, %v1488_v63 }
 0x119   :  { %v5185_v18 = vand.u32 4294901760, %v1068_v57 }
 0x11a   :  { %1322 = vmatpush.msra.mxu2 %v1129_v54  ;;  %v6937_v54 = vand.u32 4294901760, %v5188_v16  ;;  %1393 = vmatpush.msra.mxu3 %v4965_v22  ;;  %v1490_v22 = vand.u32 4294901760, %v1489_v60 }
 0x11b   :  { %1426 = vmatpush.msrb.mxu0 %v5185_v18  ;;  %v5201_v2 = vsub.f32 %v1068_v57, %v5185_v18  ;;  %v5214_v57 = vsub.f32 %v1066_v19, %v5198_v25 }
 0x11c   :  { %1326 = vmatpush.msra.mxu2 %v1135_v55  ;;  %v1471_v38 = vsub.f32 %v5188_v16, %v6937_v54  ;;  %v1060_v54 = vld [vmem:[#allocation10 + $0x198] sm:$0xff]  ;;  %1395 = vmatpush.msra.mxu3 %v4976_v44 }
 0x11d   :  { %1428 = vmatpush.msrb.mxu0 %v5198_v25  ;;  %v1476_v55 = vand.u32 4294901760, %v5201_v2  ;;  %v1482_v19 = vand.u32 4294901760, %v5214_v57 }
 0x11e   :  { %1330 = vmatpush.msra.mxu2 %v1141_v26  ;;  %v1472_v41 = vand.u32 4294901760, %v1471_v38  ;;  %v5222_v26 = vand.u32 4294901760, %v1062_v17  ;;  %v1058_v38 = vld [vmem:[#allocation10 + $0x188] sm:$0xff]  ;;  %1397 = vmatpush.msra.mxu3 %v4990_v5 }
 0x11f   :  { %v1477_v32 = vsub.f32 %v5201_v2, %v1476_v55  ;;  %1430 = vmatpush.msrb.mxu0 %v5211_v59  ;;  %v1483_v31 = vsub.f32 %v5214_v57, %v1482_v19 }
 0x120   :  { %1334 = vmatpush.msra.mxu2 %v1147_v8  ;;  %1473 = vmatpush.msrb.mxu1 %v1472_v41  ;;  %v5233_v8 = vand.u32 4294901760, %v1060_v54  ;;  %v5236_v28 = vsub.f32 %v1062_v17, %v5222_v26 }
 0x121   :  { %v1478_v51 = vand.u32 4294901760, %v1477_v32  ;;  %1432 = vmatpush.msrb.mxu0 %v5222_v26  ;;  %v1484_v41 = vand.u32 4294901760, %v1483_v31  ;;  %v1056_v32 = vld [vmem:[#allocation10 + $0x178] sm:$0xff]  ;;  %v1054_v31 = vld [vmem:[#allocation10 + $0x168] sm:$0xff]  ;;  %1399 = vmatpush.msra.mxu3 %v5004_v53 }
 0x122   :  { %1338 = vmatpush.msra.mxu2 %v1153_v24  ;;  %v6939_v46 = vand.u32 4294901760, %v5236_v28  ;;  %v5249_v24 = vand.u32 4294901760, %v1058_v38  ;;  %v5252_v17 = vsub.f32 %v1060_v54, %v5233_v8 }
 0x123   :  { %1479 = vmatpush.msrb.mxu1 %v1478_v51  ;;  %1434 = vmatpush.msrb.mxu0 %v5233_v8  ;;  %v5262_v51 = vand.u32 4294901760, %v1056_v32 }
 0x124   :  { %1342 = vmatpush.msra.mxu2 %v1159_v40  ;;  %v1495_v37 = vsub.f32 %v5236_v28, %v6939_v46  ;;  %v6938_v40 = vand.u32 4294901760, %v5252_v17  ;;  %v5266_v54 = vsub.f32 %v1058_v38, %v5249_v24  ;;  %1401 = vmatpush.msra.mxu3 %v5018_v10 }
 0x125   :  { %1485 = vmatpush.msrb.mxu1 %v1484_v41  ;;  %1436 = vmatpush.msrb.mxu0 %v5249_v24  ;;  %v5275_v60 = vsub.f32 %v1056_v32, %v5262_v51  ;;  %v1052_v41 = vld [vmem:[#allocation10 + $0x158] sm:$0xff] }
 0x126   :  { %1346 = vmatpush.msra.mxu2 %v1165_v0  ;;  %v1496_v27 = vand.u32 4294901760, %v1495_v37  ;;  %v1501_v44 = vsub.f32 %v5252_v17, %v6938_v40  ;;  %v5272_v0 = vand.u32 4294901760, %v1054_v31  ;;  %v6947_v38 = vand.u32 4294901760, %v5266_v54  ;;  %1403 = vmatpush.msra.mxu3 %v5032_v39 }
 0x127   :  { %1491 = vmatpush.msrb.mxu1 %v1490_v22  ;;  %1438 = vmatpush.msrb.mxu0 %v5262_v51  ;;  %v6940_v37 = vand.u32 4294901760, %v5275_v60  ;;  %v5283_v40 = vand.u32 4294901760, %v1052_v41 }
 0x128   :  { %1350 = vmatpush.msra.mxu2 %v1171_v7  ;;  %v1502_v5 = vand.u32 4294901760, %v1501_v44  ;;  %v5286_v46 = vsub.f32 %v1054_v31, %v5272_v0  ;;  %v1507_v47 = vsub.f32 %v5266_v54, %v6947_v38  ;;  %v1050_v7 = vld [vmem:[#allocation10 + $0x148] sm:$0xff]  ;;  %v1048_v31 = vld [vmem:[#allocation10 + $0x138] sm:$0xff]  ;;  %1405 = vmatpush.msra.mxu3 %v5044_v52 }
 0x129   :  { %1497 = vmatpush.msrb.mxu1 %v1496_v27  ;;  %1440 = vmatpush.msrb.mxu0 %v5272_v0  ;;  %v1513_v53 = vsub.f32 %v5275_v60, %v6940_v37  ;;  %v5299_v22 = vand.u32 4294901760, %v1050_v7  ;;  %v5302_v11 = vsub.f32 %v1052_v41, %v5283_v40  ;;  %v5312_v37 = vand.u32 4294901760, %v1048_v31 }
 0x12a   :  { %1354 = vmatpush.msra.mxu2 %v1177_v56  ;;  %v6946_v32 = vand.u32 4294901760, %v5286_v46  ;;  %v1508_v56 = vand.u32 4294901760, %v1507_v47  ;;  %1407 = vmatpush.msra.mxu3 %v5056_v43 }
 0x12b   :  { %1503 = vmatpush.msrb.mxu1 %v1502_v5  ;;  %1442 = vmatpush.msrb.mxu0 %v5283_v40  ;;  %v1514_v10 = vand.u32 4294901760, %v1513_v53  ;;  %v6945_v44 = vand.u32 4294901760, %v5302_v11  ;;  %v5318_v36 = vsub.f32 %v1050_v7, %v5299_v22  ;;  %v5327_v47 = vsub.f32 %v1048_v31, %v5312_v37 }
 0x12c   :  { %1358 = vmatpush.msra.mxu2 %v1183_v15  ;;  %v1519_v27 = vsub.f32 %v5286_v46, %v6946_v32  ;;  %v1046_v15 = vld [vmem:[#allocation10 + $0x128] sm:$0xff]  ;;  %1409 = vmatpush.msra.mxu3 %v5123_v50 }
 0x12d   :  { %1509 = vmatpush.msrb.mxu1 %v1508_v56  ;;  %1444 = vmatpush.msrb.mxu0 %v5299_v22  ;;  %v1525_v41 = vsub.f32 %v5302_v11, %v6945_v44  ;;  %v5324_v5 = vand.u32 4294901760, %v1046_v15  ;;  %v6944_v23 = vand.u32 4294901760, %v5318_v36  ;;  %v6943_v7 = vand.u32 4294901760, %v5327_v47 }
 0x12e   :  { %1362 = vmatpush.msra.mxu2 %v1189_v35  ;;  %v1520_v39 = vand.u32 4294901760, %v1519_v27  ;;  %v1044_v35 = vld [vmem:[#allocation10 + $0x118] sm:$0xff]  ;;  %1411 = vmatpush.msra.mxu3 %v5128_v49 }
 0x12f   :  { %1515 = vmatpush.msrb.mxu1 %v1514_v10  ;;  %1446 = vmatpush.msrb.mxu0 %v5312_v37  ;;  %v1526_v52 = vand.u32 4294901760, %v1525_v41  ;;  %v5335_v53 = vand.u32 4294901760, %v1044_v35  ;;  %v5338_v56 = vsub.f32 %v1046_v15, %v5324_v5  ;;  %v1531_v48 = vsub.f32 %v5318_v36, %v6944_v23  ;;  %v345_v49 = vld [vmem:[%s6917_s5] sm:$0x3] }
 0x130   :  { %1366 = vmatpush.msra.mxu2 %v1195_v45  ;;  %v1042_v45 = vld [vmem:[#allocation10 + $0x108] sm:$0xff]  ;;  %v1537_v43 = vsub.f32 %v5327_v47, %v6943_v7  ;;  %1413 = vmatpush.msra.mxu3 %v5137_v29 }
 0x131   :  { %1521 = vmatpush.msrb.mxu1 %v1520_v39  ;;  %1448 = vmatpush.msrb.mxu0 %v5324_v5  ;;  %v6942_v31 = vand.u32 4294901760, %v5338_v56  ;;  %v5351_v10 = vand.u32 4294901760, %v1042_v45  ;;  %v5354_v6 = vsub.f32 %v1044_v35, %v5335_v53  ;;  %v1532_v27 = vand.u32 4294901760, %v1531_v48 }
 0x132   :  { %1370 = vmatpush.msra.mxu2 %v1201_v62  ;;  %v7077_v62 = vand.u32 4294901760, %v5146_v9  ;;  %v1538_v50 = vand.u32 4294901760, %v1537_v43  ;;  %v7078_v35 = vand.u32 4294901760, %v5158_v1  ;;  %1415 = vmatpush.msra.mxu3 %v5149_v30 }
 0x133   :  { %1527 = vmatpush.msrb.mxu1 %v1526_v52  ;;  %1450 = vmatpush.msrb.mxu0 %v5335_v53  ;;  %v1543_v15 = vsub.f32 %v5338_v56, %v6942_v31  ;;  %v6941_v39 = vand.u32 4294901760, %v5354_v6  ;;  %v5365_v41 = vsub.f32 %v1042_v45, %v5351_v10  ;;  %v347_v45 = vperm.slane %v345_v49, 0 }
 0x134   :  { %1374 = vmatpush.msra.mxu2 %v7077_v62 }
 0x135   :  { %1533 = vmatpush.msrb.mxu1 %v1532_v27  ;;  %1452 = vmatpush.msrb.mxu0 %v5351_v10  ;;  %v1544_v9 = vand.u32 4294901760, %v1543_v15  ;;  %v1549_v52 = vsub.f32 %v5354_v6, %v6941_v39  ;;  %v6948_v48 = vand.u32 4294901760, %v5365_v41 }
 0x136   :  { %1378 = vmatpush.msra.mxu2 %v7078_v35 }
 0x137   :  { %1539 = vmatpush.msrb.mxu1 %v1538_v50  ;;  %v1550_v1 = vand.u32 4294901760, %v1549_v52  ;;  %v1555_v43 = vsub.f32 %v5365_v41, %v6948_v48 }
 0x139   :  { %1545 = vmatpush.msrb.mxu1 %v1544_v9  ;;  %v1556_v27 = vand.u32 4294901760, %v1555_v43  ;;  %v348_v9 = vperm.slane %v345_v49, 1  ;;  %v7080_v49 = vand.u32 4294901760, %v5188_v16 }
 0x13b   :  { %1551 = vmatpush.msrb.mxu1 %v1550_v1 }
 0x13d   :  { %1557 = vmatpush.msrb.mxu1 %v1556_v27 }
 0x14b   :  { %v544_v39 = vpop.f32.mrf.mxu0 }
 0x14d   :  { %v583_v7 = vpop.f32.mrf.mxu1 }
 0x14f   :  { %v490_v15 = vpop.f32.mrf.mxu3 }
 0x154   :  { %v730_v43 = vpop.f32.mrf.mxu0 }
 0x157   :  { %v389_v62 = vpop.f32.mrf.mxu2 }
 0x158   :  { %v390_v29 = vadd.f32 %v389_v62, %v347_v45  ;;  %v689_v30 = vpop.f32.mrf.mxu3  ;;  %v731_v62 = vadd.f32 %v730_v43, %v348_v9 }
 0x15a   :  { %v491_v35 = vadd.f32 %v490_v15, %v390_v29 }
 0x15c   :  { %v545_v31 = vadd.f32 %v544_v39, %v491_v35 }
 0x15e   :  { %v584_v23 = vadd.f32 %v583_v7, %v545_v31  ;;  %v831_v7 = vpop.f32.mrf.mxu1 }
 0x161   :  { %v652_v50 = vpop.f32.mrf.mxu2 }
 0x162   :  { %v653_v44 = vadd.f32 %v652_v50, %v584_v23 }
 0x164   :  { %v690_v52 = vadd.f32 %v689_v30, %v653_v44  ;;  %v832_v44 = vadd.f32 %v831_v7, %v731_v62 }
 0x166   :  { %v1034_v32 = vmul.f32 1.442695, %v690_v52  ;;  %vm1033_vm2 = vcmp.gt.f32.partialorder %v690_v52, 0.0 }
 0x168   :  { %4143 = vpow2.f32 %v1034_v32 }
 0x16e   :  { %v4144_v38 = vpop.eup %4143  ;;  %v993_v35 = vpop.f32.mrf.mxu0 }
 0x16f   :  { %v4120_v48 = vadd.f32 -1.0, %v4144_v38  ;;  %v7079_v38 = vand.u32 4294901760, %v5177_v58 }
 0x171   :  { %v1037_v45 = vsel %vm1033_vm2, %v690_v52, %v4120_v48 }
 0x172   :  { %v5382_v1 = vand.u32 4294901760, %v1037_v45  ;;  %v924_v29 = vpop.f32.mrf.mxu3 }
 0x174   :  { %1218 = vmatmul.f32.vlgmr.msrb.gmra.mxu3 %v5382_v1  ;;  %v5386_v39 = vsub.f32 %v1037_v45, %v5382_v1  ;;  %v7090_v45 = vand.u32 4294901760, %v5318_v36 }
 0x175   :  { %1618 = vmatpush.msrb.mxu3 %v5168_v42 }
 0x176   :  { %1272 = vmatmul.f32.vlgmr.msra.gmra.mxu0 %v5386_v39  ;;  %v5391_v32 = vand.u32 4294901760, %v5386_v39 }
 0x177   :  { %1620 = vmatpush.msrb.mxu3 %v5179_v61  ;;  %1659 = vmatpush.msra.mxu0 %v7079_v38  ;;  %v7094_v38 = vand.u32 4294901760, %v5327_v47 }
 0x178   :  { %1311 = vmatmul.f32.vlgmr.msra.gmra.mxu1 %v5391_v32  ;;  %v1115_v23 = vsub.f32 %v5386_v39, %v5391_v32 }
 0x179   :  { %v885_v31 = vpop.f32.mrf.mxu2  ;;  %1622 = vmatpush.msrb.mxu3 %v5185_v18  ;;  %1663 = vmatpush.msra.mxu0 %v7080_v49 }
 0x17a   :  { %v886_v48 = vadd.f32 %v885_v31, %v832_v44  ;;  %1726 = vmatpush.msra.mxu1 %v5168_v42  ;;  %v1116_v27 = vand.u32 4294901760, %v1115_v23  ;;  %v1030_v42 = vpop.f32.mrf.mxu1 }
 0x17b   :  { %1624 = vmatpush.msrb.mxu3 %v5198_v25  ;;  %1667 = vmatpush.msra.mxu0 %v1476_v55 }
 0x17c   :  { %v925_v15 = vadd.f32 %v924_v29, %v886_v48  ;;  %1728 = vmatpush.msra.mxu1 %v5179_v61  ;;  %1117 = vmatmul.f32.vlgmr.msrb.gmra.mxu2 %v1116_v27  ;;  %v7081_v61 = vand.u32 4294901760, %v5236_v28 }
 0x17d   :  { %1417 = vmatmul.f32.vlgmr.msra.gmra.mxu3 %v5382_v1  ;;  %1565 = vmatpush.msrb.mxu2 %v5177_v58  ;;  %v139_v58 = vld [vmem:[#allocation11 + $0x78] sm:$0xff] }
 0x17e   :  { %v994_v50 = vadd.f32 %v993_v35, %v925_v15  ;;  %1626 = vmatpush.msrb.mxu3 %v5211_v59  ;;  %1671 = vmatpush.msra.mxu0 %v1482_v19  ;;  %v7084_v19 = vand.u32 4294901760, %v5275_v60 }
 0x17f   :  { %1730 = vmatpush.msra.mxu1 %v5185_v18  ;;  %1458 = vmatmul.f32.vlgmr.msrb.gmra.mxu0 %v1116_v27  ;;  %v138_v18 = vld [vmem:[#allocation11 + $0x70] sm:$0xff] }
 0x180   :  { %v1031_v55 = vadd.f32 %v1030_v42, %v994_v50  ;;  %1568 = vmatpush.msrb.mxu2 %v5188_v16  ;;  %1628 = vmatpush.msrb.mxu3 %v5222_v26  ;;  %v7082_v16 = vand.u32 4294901760, %v5252_v17 }
 0x181   :  { %1675 = vmatpush.msra.mxu0 %v1488_v63  ;;  %1732 = vmatpush.msra.mxu1 %v5198_v25  ;;  %v5431_v25 = vand.u32 4294901760, %v139_v58 }
 0x182   :  { %1559 = vmatmul.f32.vlgmr.msrb.gmra.mxu1 %v5382_v1  ;;  %1571 = vmatpush.msrb.mxu2 %v5201_v2  ;;  %1039 = vst.msk [vmem:[#allocation13] sm:$0xff] %vm1038_vm3, %v1031_v55  ;;  %v137_v2 = vld [vmem:[#allocation11 + $0x68] sm:$0xff] }
 0x183   :  { %1630 = vmatpush.msrb.mxu3 %v5233_v8  ;;  %1679 = vmatpush.msra.mxu0 %v7081_v61  ;;  %v5448_v63 = vand.u32 4294901760, %v137_v2 }
 0x184   :  { %1734 = vmatpush.msra.mxu1 %v5211_v59  ;;  %1574 = vmatpush.msrb.mxu2 %v5214_v57  ;;  %v7083_v59 = vand.u32 4294901760, %v5266_v54  ;;  %v5438_v57 = vand.u32 4294901760, %v138_v18 }
 0x185   :  { %1632 = vmatpush.msrb.mxu3 %v5249_v24  ;;  %1683 = vmatpush.msra.mxu0 %v7082_v16 }
 0x186   :  { %1736 = vmatpush.msra.mxu1 %v5222_v26  ;;  %1380 = vmatmul.f32.vlgmr.msra.gmra.mxu2 %v5382_v1  ;;  %v136_v26 = vld [vmem:[#allocation11 + $0x60] sm:$0xff]  ;;  %v5456_v30 = vsub.f32 %v138_v18, %v5438_v57  ;;  %v131_v18 = vld [vmem:[#allocation11 + $0x38] sm:$0xff] }
 0x187   :  { %1577 = vmatpush.msrb.mxu2 %v5225_v12  ;;  %1634 = vmatpush.msrb.mxu3 %v5262_v51  ;;  %v5446_v12 = vsub.f32 %v139_v58, %v5431_v25  ;;  %v5458_v52 = vand.u32 4294901760, %v136_v26 }
 0x188   :  { %1687 = vmatpush.msra.mxu0 %v7083_v59  ;;  %1738 = vmatpush.msra.mxu1 %v5233_v8  ;;  %v135_v8 = vld [vmem:[#allocation11 + $0x58] sm:$0xff]  ;;  %v130_v59 = vld [vmem:[#allocation11 + $0x30] sm:$0xff] }
 0x189   :  { %1580 = vmatpush.msrb.mxu2 %v5236_v28  ;;  %1636 = vmatpush.msrb.mxu3 %v5272_v0  ;;  %v7085_v28 = vand.u32 4294901760, %v5286_v46  ;;  %7086 = vst [vmem:[#allocation22_spill] sm:$0xff] %v5458_v52  ;;  %v5466_v9 = vand.u32 4294901760, %v5446_v12  ;;  %v5471_v43 = vand.u32 4294901760, %v135_v8  ;;  %v5482_v62 = vsub.f32 %v136_v26, %v5458_v52 }
 0x18a   :  { %1691 = vmatpush.msra.mxu0 %v7084_v19  ;;  %1740 = vmatpush.msra.mxu1 %v5249_v24  ;;  %v134_v24 = vld [vmem:[#allocation11 + $0x50] sm:$0xff]  ;;  %v5616_v19 = vand.u32 4294901760, %v130_v59 }
 0x18b   :  { %1583 = vmatpush.msrb.mxu2 %v5252_v17  ;;  %1638 = vmatpush.msrb.mxu3 %v5283_v40  ;;  %v7087_v17 = vand.u32 4294901760, %v5302_v11  ;;  %7088 = vst [vmem:[#allocation23_spill] sm:$0xff] %v5466_v9  ;;  %v5484_v7 = vand.u32 4294901760, %v134_v24  ;;  %v5497_v23 = vsub.f32 %v135_v8, %v5471_v43  ;;  %v5509_v49 = vand.u32 4294901760, %v5482_v62  ;;  %v129_v8 = vld [vmem:[#allocation11 + $0x28] sm:$0xff] }
 0x18c   :  { %1695 = vmatpush.msra.mxu0 %v7085_v28  ;;  %1742 = vmatpush.msra.mxu1 %v5262_v51  ;;  %v5469_v51 = vsub.f32 %v137_v2, %v5448_v63  ;;  %7089 = vst [vmem:[#allocation24_spill] sm:$0xff] %v5471_v43  ;;  %v5611_v2 = vand.u32 4294901760, %v131_v18 }
 0x18d   :  { %1586 = vmatpush.msrb.mxu2 %v5266_v54  ;;  %1640 = vmatpush.msrb.mxu3 %v5299_v22  ;;  %v133_v54 = vld [vmem:[#allocation11 + $0x48] sm:$0xff]  ;;  %7092 = vst [vmem:[#allocation26_spill] sm:$0xff] %v5482_v62  ;;  %v5512_v48 = vsub.f32 %v134_v24, %v5484_v7  ;;  %v5526_v15 = vand.u32 4294901760, %v5497_v23  ;;  %v1834_v50 = vsub.f32 %v5482_v62, %v5509_v49 }
 0x18e   :  { %1699 = vmatpush.msra.mxu0 %v7087_v17  ;;  %1744 = vmatpush.msra.mxu1 %v5272_v0  ;;  %v5479_v0 = vand.u32 4294901760, %v5456_v30  ;;  %7093 = vst [vmem:[#allocation27_spill] sm:$0xff] %v5484_v7  ;;  %v5494_v44 = vand.u32 4294901760, %v5469_v51  ;;  %v5499_v31 = vand.u32 4294901760, %v133_v54  ;;  %v5614_v26 = vsub.f32 %v131_v18, %v5611_v2 }
 0x18f   :  { %1589 = vmatpush.msrb.mxu2 %v5275_v60  ;;  %1642 = vmatpush.msrb.mxu3 %v5312_v37  ;;  %v132_v60 = vld [vmem:[#allocation11 + $0x40] sm:$0xff]  ;;  %7096 = vst [vmem:[#allocation29_spill] sm:$0xff] %v5497_v23  ;;  %v5541_v42 = vand.u32 4294901760, %v5512_v48  ;;  %v5560_v61 = vand.u32 4294901760, %v1834_v50  ;;  %v5624_v24 = vsub.f32 %v130_v59, %v5616_v19  ;;  %v5626_v17 = vand.u32 4294901760, %v129_v8 }
 0x190   :  { %1703 = vmatpush.msra.mxu0 %v7090_v45  ;;  %1746 = vmatpush.msra.mxu1 %v5283_v40  ;;  %7091 = vst [vmem:[#allocation25_spill] sm:$0xff] %v5479_v0  ;;  %v1816_v40 = vsub.f32 %v5446_v12, %v5466_v9  ;;  %v5514_v27 = vand.u32 4294901760, %v132_v60  ;;  %v1828_v29 = vsub.f32 %v5469_v51, %v5494_v44  ;;  %v5621_v28 = vand.u32 4294901760, %v5614_v26 }
 0x191   :  { %1592 = vmatpush.msrb.mxu2 %v5286_v46  ;;  %1644 = vmatpush.msrb.mxu3 %v5324_v5  ;;  %7095 = vst [vmem:[#allocation28_spill] sm:$0xff] %v5494_v44  ;;  %v7098_v46 = vand.u32 4294901760, %v5338_v56  ;;  %v5529_v35 = vsub.f32 %v133_v54, %v5499_v31  ;;  %v128_v54 = vld [vmem:[#allocation11 + $0x20] sm:$0xff] }
 0x192   :  { %1707 = vmatpush.msra.mxu0 %v7094_v38  ;;  %1748 = vmatpush.msra.mxu1 %v5299_v22  ;;  %7097 = vst [vmem:[#allocation30_spill] sm:$0xff] %v5499_v31  ;;  %v1822_v22 = vsub.f32 %v5456_v30, %v5479_v0  ;;  %v5544_v55 = vsub.f32 %v132_v60, %v5514_v27  ;;  %v5634_v60 = vand.u32 4294901760, %v5624_v24 }
 0x193   :  { %1595 = vmatpush.msrb.mxu2 %v5302_v11  ;;  %1646 = vmatpush.msrb.mxu3 %v5335_v53  ;;  %7099 = vst [vmem:[#allocation31_spill] sm:$0xff] %v5509_v49  ;;  %v7102_v11 = vand.u32 4294901760, %v5354_v6  ;;  %v1864_v45 = vsub.f32 %v5614_v26, %v5621_v28  ;;  %v5637_v38 = vsub.f32 %v129_v8, %v5626_v17  ;;  %v125_v8 = vld [vmem:[#allocation11 + $0x8] sm:$0xff] }
 0x194   :  { %1711 = vmatpush.msra.mxu0 %v7098_v46  ;;  %1750 = vmatpush.msra.mxu1 %v5312_v37  ;;  %7100 = vst [vmem:[#allocation32_spill] sm:$0xff] %v5512_v48  ;;  %v5521_v37 = vand.u32 4294901760, %v1816_v40  ;;  %v5639_v40 = vand.u32 4294901760, %v128_v54  ;;  %v127_v46 = vld [vmem:[#allocation11 + $0x18] sm:$0xff] }
 0x195   :  { %7101 = vst [vmem:[#allocation33_spill] sm:$0xff] %v5514_v27  ;;  %1598 = vmatpush.msrb.mxu2 %v5318_v36  ;;  %1648 = vmatpush.msrb.mxu3 %v5351_v10  ;;  %v7105_v36 = vand.u32 4294901760, %v5365_v41  ;;  %v5656_v50 = vand.u32 4294901760, %v127_v46 }
 0x196   :  { %1715 = vmatpush.msra.mxu0 %v7102_v11  ;;  %1752 = vmatpush.msra.mxu1 %v5324_v5  ;;  %7103 = vst [vmem:[#allocation34_spill] sm:$0xff] %v5526_v15  ;;  %v5536_v5 = vand.u32 4294901760, %v1822_v22  ;;  %v5644_v22 = vand.u32 4294901760, %v1864_v45  ;;  %v1870_v11 = vsub.f32 %v5624_v24, %v5634_v60 }
 0x197   :  { %7104 = vst [vmem:[#allocation35_spill] sm:$0xff] %v5529_v35  ;;  %1652 = vmatmul.f32.vlgmr.msrb.gmra.mxu3 %v5391_v32  ;;  %1601 = vmatpush.msrb.mxu2 %v5327_v47  ;;  %v5550_v47 = vand.u32 4294901760, %v1828_v29  ;;  %v5555_v32 = vand.u32 4294901760, %v5529_v35  ;;  %v5649_v29 = vand.u32 4294901760, %v5637_v38  ;;  %v5669_v18 = vsub.f32 %v127_v46, %v5656_v50 }
 0x198   :  { %1719 = vmatpush.msra.mxu0 %v7105_v36  ;;  %1754 = vmatpush.msra.mxu1 %v5335_v53  ;;  %7106 = vst [vmem:[#allocation36_spill] sm:$0xff] %v5541_v42  ;;  %v1840_v53 = vsub.f32 %v5497_v23, %v5526_v15  ;;  %v5652_v36 = vsub.f32 %v128_v54, %v5639_v40 }
 0x199   :  { %7107 = vst [vmem:[#allocation37_spill] sm:$0xff] %v5544_v55  ;;  %1721 = vmatmul.f32.vlgmr.msra.gmra.mxu0 %v5382_v1  ;;  %1604 = vmatpush.msrb.mxu2 %v5338_v56  ;;  %v1846_v56 = vsub.f32 %v5512_v48, %v5541_v42 }
 0x19a   :  { %1756 = vmatpush.msra.mxu1 %v5351_v10  ;;  %1818 = vmatpush.msra.mxu3 %v5521_v37  ;;  %7108 = vst [vmem:[#allocation38_spill] sm:$0xff] %v5555_v32  ;;  %v5565_v10 = vand.u32 4294901760, %v5544_v55 }
 0x19b   :  { %1758 = vmatmul.f32.vlgmr.msra.gmra.mxu1 %v5382_v1  ;;  %1607 = vmatpush.msrb.mxu2 %v5354_v6  ;;  %v5572_v6 = vand.u32 4294901760, %v1840_v53  ;;  %v1852_v1 = vsub.f32 %v5529_v35, %v5555_v32  ;;  %v5579_v58 = vand.u32 4294901760, %v1846_v56  ;;  %7113 = vst [vmem:[#allocation43_spill] sm:$0xff] %v5611_v2  ;;  %v126_v53 = vld [vmem:[#allocation11 + $0x10] sm:$0xff]  ;;  %v5660_v56 = vand.u32 4294901760, %v1870_v11 }
 0x19c   :  { %1824 = vmatpush.msra.mxu3 %v5536_v5  ;;  %7109 = vst [vmem:[#allocation39_spill] sm:$0xff] %v5565_v10  ;;  %1916 = vmatpush.msrb.mxu0 %v5446_v12  ;;  %v5671_v59 = vand.u32 4294901760, %v126_v53  ;;  %v5680_v11 = vand.u32 4294901760, %v125_v8 }
 0x19d   :  { %1610 = vmatpush.msrb.mxu2 %v5365_v41  ;;  %1969 = vmatpush.msrb.mxu1 %v5431_v25  ;;  %7110 = vst [vmem:[#allocation40_spill] sm:$0xff] %v5579_v58  ;;  %v1858_v41 = vsub.f32 %v5544_v55, %v5565_v10 }
 0x19e   :  { %1613 = vmatmul.f32.vlgmr.msrb.gmra.mxu2 %v5386_v39  ;;  %1830 = vmatpush.msra.mxu3 %v5550_v47  ;;  %v5587_v39 = vand.u32 4294901760, %v1852_v1  ;;  %7114 = vst [vmem:[#allocation44_spill] sm:$0xff] %v5614_v26  ;;  %v1876_v1 = vsub.f32 %v5637_v38, %v5649_v29  ;;  %v5686_v46 = vsub.f32 %v126_v53, %v5671_v59 }
 0x19f   :  { %1773 = vmatpush.msra.mxu2 %v5431_v25  ;;  %1919 = vmatpush.msrb.mxu0 %v5456_v30  ;;  %v5593_v16 = vand.u32 4294901760, %v1858_v41  ;;  %7115 = vst [vmem:[#allocation45_spill] sm:$0xff] %v5616_v19  ;;  %v5665_v41 = vand.u32 4294901760, %v5652_v36 }
 0x1a0   :  { %1836 = vmatpush.msra.mxu3 %v5560_v61  ;;  %1971 = vmatpush.msrb.mxu1 %v5438_v57  ;;  %7111 = vst [vmem:[#allocation41_spill] sm:$0xff] %v5587_v39  ;;  %v5676_v54 = vand.u32 4294901760, %v1876_v1 }
 0x1a1   :  { %1775 = vmatpush.msra.mxu2 %v5438_v57  ;;  %1922 = vmatpush.msrb.mxu0 %v5469_v51  ;;  %7112 = vst [vmem:[#allocation42_spill] sm:$0xff] %v5593_v16  ;;  %v1882_v45 = vsub.f32 %v5652_v36, %v5665_v41 }
 0x1a2   :  { %1842 = vmatpush.msra.mxu3 %v5572_v6  ;;  %1973 = vmatpush.msrb.mxu1 %v5448_v63  ;;  %7116 = vst [vmem:[#allocation46_spill] sm:$0xff] %v5621_v28 }
 0x1a3   :  { %1777 = vmatpush.msra.mxu2 %v5448_v63  ;;  %1925 = vmatpush.msrb.mxu0 %v5482_v62  ;;  %7117 = vst [vmem:[#allocation47_spill] sm:$0xff] %v5624_v24  ;;  %v5691_v1 = vand.u32 4294901760, %v1882_v45 }
 0x1a4   :  { %1848 = vmatpush.msra.mxu3 %v5579_v58  ;;  %1975 = vmatpush.msrb.mxu1 %v5458_v52  ;;  %7118 = vst [vmem:[#allocation48_spill] sm:$0xff] %v5626_v17 }
 0x1a5   :  { %1779 = vmatpush.msra.mxu2 %v5458_v52  ;;  %1928 = vmatpush.msrb.mxu0 %v5497_v23  ;;  %7119 = vst [vmem:[#allocation49_spill] sm:$0xff] %v5634_v60 }
 0x1a6   :  { %1854 = vmatpush.msra.mxu3 %v5587_v39  ;;  %1977 = vmatpush.msrb.mxu1 %v5471_v43  ;;  %7120 = vst [vmem:[#allocation50_spill] sm:$0xff] %v5637_v38 }
 0x1a7   :  { %1781 = vmatpush.msra.mxu2 %v5471_v43  ;;  %1931 = vmatpush.msrb.mxu0 %v5512_v48  ;;  %7121 = vst [vmem:[#allocation51_spill] sm:$0xff] %v5639_v40 }
 0x1a8   :  { %1860 = vmatpush.msra.mxu3 %v5593_v16  ;;  %1979 = vmatpush.msrb.mxu1 %v5484_v7  ;;  %7122 = vst [vmem:[#allocation52_spill] sm:$0xff] %v5644_v22 }
 0x1a9   :  { %1783 = vmatpush.msra.mxu2 %v5484_v7  ;;  %1934 = vmatpush.msrb.mxu0 %v5529_v35  ;;  %7123 = vst [vmem:[#allocation53_spill] sm:$0xff] %v5649_v29 }
 0x1aa   :  { %1981 = vmatpush.msrb.mxu1 %v5499_v31  ;;  %7124 = vst [vmem:[#allocation54_spill] sm:$0xff] %v5652_v36  ;;  %1866 = vmatpush.msra.mxu3 %v5644_v22  ;;  %v2312_v22 = vld [vmem:[#allocation10 + $0xe8] sm:$0xff] }
 0x1ab   :  { %1785 = vmatpush.msra.mxu2 %v5499_v31  ;;  %1937 = vmatpush.msrb.mxu0 %v5544_v55  ;;  %7125 = vst [vmem:[#allocation55_spill] sm:$0xff] %v5656_v50 }
 0x1ac   :  { %1983 = vmatpush.msrb.mxu1 %v5514_v27  ;;  %7126 = vst [vmem:[#allocation56_spill] sm:$0xff] %v5660_v56  ;;  %1872 = vmatpush.msra.mxu3 %v5660_v56  ;;  %v5702_v56 = vand.u32 4294901760, %v5686_v46 }
 0x1ad   :  { %1787 = vmatpush.msra.mxu2 %v5514_v27  ;;  %1940 = vmatpush.msrb.mxu0 %v5614_v26  ;;  %7127 = vst [vmem:[#allocation57_spill] sm:$0xff] %v5665_v41  ;;  %v5694_v26 = vsub.f32 %v125_v8, %v5680_v11 }
 0x1ae   :  { %1985 = vmatpush.msrb.mxu1 %v5611_v2  ;;  %7128 = vst [vmem:[#allocation58_spill] sm:$0xff] %v5669_v18  ;;  %1878 = vmatpush.msra.mxu3 %v5676_v54 }
 0x1af   :  { %1789 = vmatpush.msra.mxu2 %v5611_v2  ;;  %1943 = vmatpush.msrb.mxu0 %v5624_v24  ;;  %7129 = vst [vmem:[#allocation59_spill] sm:$0xff] %v5671_v59  ;;  %v124_v24 = vld [vmem:[#allocation11] sm:$0xff]  ;;  %v5708_v45 = vand.u32 4294901760, %v5694_v26 }
 0x1b0   :  { %1987 = vmatpush.msrb.mxu1 %v5616_v19  ;;  %7130 = vst [vmem:[#allocation60_spill] sm:$0xff] %v5676_v54  ;;  %1884 = vmatpush.msra.mxu3 %v5691_v1 }
 0x1b1   :  { %1791 = vmatpush.msra.mxu2 %v5616_v19  ;;  %1946 = vmatpush.msrb.mxu0 %v5637_v38  ;;  %7131 = vst [vmem:[#allocation61_spill] sm:$0xff] %v5680_v11  ;;  %v5683_v38 = vand.u32 4294901760, %v5669_v18 }
 0x1b2   :  { %1989 = vmatpush.msrb.mxu1 %v5626_v17  ;;  %7133 = vst [vmem:[#allocation63_spill] sm:$0xff] %v5686_v46 }
 0x1b3   :  { %1793 = vmatpush.msra.mxu2 %v5626_v17  ;;  %1949 = vmatpush.msrb.mxu0 %v5652_v36  ;;  %7132 = vst [vmem:[#allocation62_spill] sm:$0xff] %v5683_v38  ;;  %v5696_v36 = vand.u32 4294901760, %v124_v24  ;;  %v1888_v53 = vsub.f32 %v5669_v18, %v5683_v38 }
 0x1b4   :  { %1991 = vmatpush.msrb.mxu1 %v5639_v40  ;;  %7134 = vst [vmem:[#allocation64_spill] sm:$0xff] %v5691_v1  ;;  %v1900_v1 = vsub.f32 %v5694_v26, %v5708_v45 }
 0x1b5   :  { %1795 = vmatpush.msra.mxu2 %v5639_v40  ;;  %1952 = vmatpush.msrb.mxu0 %v5669_v18  ;;  %7135 = vst [vmem:[#allocation65_spill] sm:$0xff] %v5694_v26  ;;  %v5711_v8 = vsub.f32 %v124_v24, %v5696_v36  ;;  %v5714_v54 = vand.u32 4294901760, %v1888_v53  ;;  %v1894_v18 = vsub.f32 %v5686_v46, %v5702_v56 }
 0x1b6   :  { %1993 = vmatpush.msrb.mxu1 %v5656_v50  ;;  %7136 = vst [vmem:[#allocation66_spill] sm:$0xff] %v5696_v36  ;;  %v5731_v53 = vand.u32 4294901760, %v1900_v1 }
 0x1b7   :  { %1797 = vmatpush.msra.mxu2 %v5656_v50  ;;  %7137 = vst [vmem:[#allocation67_spill] sm:$0xff] %v5702_v56  ;;  %1955 = vmatpush.msrb.mxu0 %v5686_v46  ;;  %v5723_v55 = vand.u32 4294901760, %v5711_v8  ;;  %v5728_v24 = vand.u32 4294901760, %v1894_v18 }
 0x1b8   :  { %1995 = vmatpush.msrb.mxu1 %v5671_v59  ;;  %7138 = vst [vmem:[#allocation68_spill] sm:$0xff] %v5708_v45  ;;  %1890 = vmatpush.msra.mxu3 %v5714_v54 }
 0x1b9   :  { %1799 = vmatpush.msra.mxu2 %v5671_v59  ;;  %7139 = vst [vmem:[#allocation69_spill] sm:$0xff] %v5711_v8  ;;  %1958 = vmatpush.msrb.mxu0 %v5694_v26  ;;  %v1906_v46 = vsub.f32 %v5711_v8, %v5723_v55 }
 0x1ba   :  { %1997 = vmatpush.msrb.mxu1 %v5680_v11  ;;  %7140 = vst [vmem:[#allocation70_spill] sm:$0xff] %v5714_v54  ;;  %1896 = vmatpush.msra.mxu3 %v5728_v24 }
 0x1bb   :  { %1801 = vmatpush.msra.mxu2 %v5680_v11  ;;  %7141 = vst [vmem:[#allocation71_spill] sm:$0xff] %v5723_v55  ;;  %1961 = vmatpush.msrb.mxu0 %v5711_v8 }
 0x1bc   :  { %1999 = vmatpush.msrb.mxu1 %v5696_v36  ;;  %7142 = vst [vmem:[#allocation72_spill] sm:$0xff] %v5728_v24  ;;  %1902 = vmatpush.msra.mxu3 %v5731_v53  ;;  %v2285_v24 = vld [vmem:[#allocation10 + $0x10] sm:$0xff] }
 0x1bd   :  { %1803 = vmatpush.msra.mxu2 %v5696_v36  ;;  %7143 = vst [vmem:[#allocation73_spill] sm:$0xff] %v5731_v53  ;;  %2193 = vmatpush.msra.mxu0 %v4456_v13  ;;  %v4121_v13 = vld [vmem:[%s6917_s5 + $0x2] sm:$0x3]  ;;  %v5940_v54 = vand.u32 4294901760, %v2285_v24 }
 0x1be   :  { %2218 = vmatpush.msra.mxu1 %v4445_v3  ;;  %v2287_v53 = vld [vmem:[#allocation10 + $0x20] sm:$0xff] }
 0x1bf   :  { %2010 = vmatpush.msrb.mxu2 %v5466_v9  ;;  %v5739_v9 = vand.u32 4294901760, %v1906_v46  ;;  %2196 = vmatpush.msra.mxu0 %v4459_v14  ;;  %v1076_v14 = vperm.slane %v4121_v13, 0 }
 0x1c0   :  { %2220 = vmatpush.msra.mxu1 %v4447_v4 }
 0x1c1   :  { %2014 = vmatpush.msrb.mxu2 %v5479_v0  ;;  %7144 = vst [vmem:[#allocation74_spill] sm:$0xff] %v5739_v9  ;;  %1908 = vmatpush.msra.mxu3 %v5739_v9  ;;  %v2289_v9 = vld [vmem:[#allocation10 + $0x30] sm:$0xff] }
 0x1c3   :  { %2018 = vmatpush.msrb.mxu2 %v5494_v44  ;;  %2077 = vmatpush.msrb.mxu3 %v5431_v25 }
 0x1c5   :  { %2022 = vmatpush.msrb.mxu2 %v5509_v49  ;;  %2079 = vmatpush.msrb.mxu3 %v5438_v57  ;;  %v1077_v49 = vperm.slane %v4121_v13, 1 }
 0x1c7   :  { %2026 = vmatpush.msrb.mxu2 %v5526_v15  ;;  %2081 = vmatpush.msrb.mxu3 %v5448_v63 }
 0x1c9   :  { %2030 = vmatpush.msrb.mxu2 %v5541_v42  ;;  %2083 = vmatpush.msrb.mxu3 %v5458_v52 }
 0x1cb   :  { %2034 = vmatpush.msrb.mxu2 %v5555_v32  ;;  %2085 = vmatpush.msrb.mxu3 %v5471_v43 }
 0x1cd   :  { %2038 = vmatpush.msrb.mxu2 %v5565_v10  ;;  %2087 = vmatpush.msrb.mxu3 %v5484_v7  ;;  %v2310_v7 = vld [vmem:[#allocation10 + $0xd8] sm:$0xff] }
 0x1cf   :  { %2042 = vmatpush.msrb.mxu2 %v5621_v28  ;;  %2089 = vmatpush.msrb.mxu3 %v5499_v31 }
 0x1d1   :  { %2046 = vmatpush.msrb.mxu2 %v5634_v60  ;;  %2091 = vmatpush.msrb.mxu3 %v5514_v27 }
 0x1d3   :  { %2050 = vmatpush.msrb.mxu2 %v5649_v29  ;;  %2093 = vmatpush.msrb.mxu3 %v5611_v2 }
 0x1d5   :  { %2054 = vmatpush.msrb.mxu2 %v5665_v41  ;;  %2095 = vmatpush.msrb.mxu3 %v5616_v19  ;;  %v5952_v19 = vsub.f32 %v2285_v24, %v5940_v54 }
 0x1d7   :  { %2058 = vmatpush.msrb.mxu2 %v5683_v38  ;;  %2097 = vmatpush.msrb.mxu3 %v5626_v17 }
 0x1d9   :  { %2062 = vmatpush.msrb.mxu2 %v5702_v56  ;;  %2099 = vmatpush.msrb.mxu3 %v5639_v40 }
 0x1db   :  { %2066 = vmatpush.msrb.mxu2 %v5708_v45  ;;  %2101 = vmatpush.msrb.mxu3 %v5656_v50  ;;  %v5920_v50 = vand.u32 4294901760, %v2289_v9 }
 0x1dd   :  { %2070 = vmatpush.msrb.mxu2 %v5723_v55  ;;  %2103 = vmatpush.msrb.mxu3 %v5671_v59 }
 0x1df   :  { %2105 = vmatpush.msrb.mxu3 %v5680_v11 }
 0x1e1   :  { %2107 = vmatpush.msrb.mxu3 %v5696_v36 }
 0x1f3   :  { %v1273_v56 = vpop.f32.mrf.mxu0 }
 0x1f5   :  { %v1312_v29 = vpop.f32.mrf.mxu1 }
 0x1f7   :  { %v1219_v1 = vpop.f32.mrf.mxu3 }
 0x1ff   :  { %v1118_v18 = vpop.f32.mrf.mxu2  ;;  %v1560_v36 = vpop.f32.mrf.mxu1 }
 0x200   :  { %v1119_v46 = vadd.f32 %v1118_v18, %v1076_v14  ;;  %v1418_v10 = vpop.f32.mrf.mxu3  ;;  %v2313_v14 = vld [vmem:[#allocation10 + $0xf0] sm:$0xff]  ;;  %v2311_v18 = vld [vmem:[#allocation10 + $0xe0] sm:$0xff] }
 0x201   :  { %v5778_v42 = vand.u32 4294901760, %v2313_v14 }
 0x202   :  { %v1220_v38 = vadd.f32 %v1219_v1, %v1119_v46  ;;  %v2309_v1 = vld [vmem:[#allocation10 + $0xd0] sm:$0xff] }
 0x204   :  { %v1274_v41 = vadd.f32 %v1273_v56, %v1220_v38  ;;  %v5780_v38 = vand.u32 4294901760, %v2311_v18  ;;  %v2115_v56 = vld [vmem:[#allocation5] sm:$0xff] }
 0x206   :  { %v1313_v60 = vadd.f32 %v1312_v29, %v1274_v41  ;;  %v2307_v29 = vld [vmem:[#allocation10 + $0xc0] sm:$0xff]  ;;  %v1459_v41 = vpop.f32.mrf.mxu0 }
 0x207   :  { %v1460_v0 = vadd.f32 %v1459_v41, %v1077_v49 }
 0x209   :  { %v1381_v45 = vpop.f32.mrf.mxu2 }
 0x20a   :  { %v1382_v28 = vadd.f32 %v1381_v45, %v1313_v60  ;;  %v5783_v60 = vsub.f32 %v2313_v14, %v5778_v42  ;;  %v5789_v45 = vsub.f32 %v2311_v18, %v5780_v38 }
 0x20c   :  { %v1419_v55 = vadd.f32 %v1418_v10, %v1382_v28  ;;  %v5785_v10 = vand.u32 4294901760, %v2309_v1  ;;  %v2117_v28 = vsel %vm145_vm0, %v2115_v56, 0 }
 0x20d   :  { %v2137_v14 = vand.u32 4294901760, %v2117_v28 }
 0x20e   :  { %v1763_v32 = vmul.f32 1.442695, %v1419_v55  ;;  %vm1762_vm4 = vcmp.gt.f32.partialorder %v1419_v55, 0.0 }
 0x210   :  { %4145 = vpow2.f32 %v1763_v32 }
 0x216   :  { %v4146_v46 = vpop.eup %4145 }
 0x217   :  { %v4122_v15 = vadd.f32 -1.0, %v4146_v46  ;;  %v5791_v46 = vand.u32 4294901760, %v2307_v29 }
 0x219   :  { %v1766_v44 = vsel %vm1762_vm4, %v1419_v55, %v4122_v15  ;;  %v6985_v15 = vand.u32 4294901760, %v5783_v60  ;;  %v5796_v55 = vsub.f32 %v2309_v1, %v5785_v10  ;;  %v5802_v49 = vsub.f32 %v2307_v29, %v5791_v46 }
 0x21a   :  { %v1804_v32 = vand.u32 4294901760, %v1766_v44  ;;  %v1653_v11 = vpop.f32.mrf.mxu3 }
 0x21b   :  { %v2365_v1 = vsub.f32 %v5783_v60, %v6985_v15 }
 0x21c   :  { %1910 = vmatmul.f32.vlgmr.msra.gmra.mxu3 %v1804_v32  ;;  %v1805_v13 = vsub.f32 %v1766_v44, %v1804_v32  ;;  %v1561_v44 = vadd.f32 %v1560_v36, %v1460_v0  ;;  %v7145_v0 = vand.u32 4294901760, %v5789_v45 }
 0x21d   :  { %2165 = vmatpush.msra.mxu3 %v4501_v33 }
 0x21e   :  { %1964 = vmatmul.f32.vlgmr.msrb.gmra.mxu0 %v1805_v13  ;;  %v1806_v8 = vand.u32 4294901760, %v1805_v13  ;;  %v2371_v36 = vsub.f32 %v5789_v45, %v7145_v0 }
 0x21f   :  { %2171 = vmatpush.msra.mxu3 %v4503_v34  ;;  %2245 = vmatpush.msrb.mxu0 %v4474_v20  ;;  %v6983_v34 = vand.u32 4294901760, %v5796_v55  ;;  %v2138_v20 = vsub.f32 %v2117_v28, %v2137_v14 }
 0x220   :  { %2003 = vmatmul.f32.vlgmr.msrb.gmra.mxu1 %v1806_v8  ;;  %v1807_v33 = vsub.f32 %v1805_v13, %v1806_v8  ;;  %v6982_v8 = vand.u32 4294901760, %v5802_v49  ;;  %v2366_v13 = vand.u32 4294901760, %v2365_v1  ;;  %v2372_v0 = vand.u32 4294901760, %v2371_v36  ;;  %v2303_v36 = vld [vmem:[#allocation10 + $0xa0] sm:$0xff] }
 0x221   :  { %v1614_v56 = vpop.f32.mrf.mxu2  ;;  %2270 = vmatpush.msrb.mxu1 %v4445_v3  ;;  %2249 = vmatpush.msrb.mxu0 %v4477_v21  ;;  %v1722_v21 = vpop.f32.mrf.mxu0  ;;  %v2377_v28 = vsub.f32 %v5796_v55, %v6983_v34  ;;  %v2293_v34 = vld [vmem:[#allocation10 + $0x50] sm:$0xff] }
 0x222   :  { %v1615_v41 = vadd.f32 %v1614_v56, %v1561_v44  ;;  %v1808_v18 = vand.u32 4294901760, %v1807_v33  ;;  %v2139_v33 = vand.u32 4294901760, %v2138_v20  ;;  %v1759_v56 = vpop.f32.mrf.mxu1  ;;  %v5896_v15 = vand.u32 4294901760, %v2293_v34 }
 0x223   :  { %2272 = vmatpush.msrb.mxu1 %v4447_v4 }
 0x224   :  { %v1654_v29 = vadd.f32 %v1653_v11, %v1615_v41  ;;  %1809 = vmatmul.f32.vlgmr.msra.gmra.mxu2 %v1808_v18  ;;  %2109 = vmatmul.f32.vlgmr.msrb.gmra.mxu3 %v1804_v32  ;;  %v2383_v11 = vsub.f32 %v5802_v49, %v6982_v8  ;;  %v2378_v18 = vand.u32 4294901760, %v2377_v28  ;;  %v2140_v1 = vsub.f32 %v2138_v20, %v2139_v33 }
 0x225   :  { %2134 = vmatpush.msra.mxu2 %v4445_v3  ;;  %2518 = vmatpush.msrb.mxu3 %v5778_v42 }
 0x226   :  { %v1723_v44 = vadd.f32 %v1722_v21, %v1654_v29  ;;  %2199 = vmatmul.f32.vlgmr.msra.gmra.mxu0 %v2138_v20  ;;  %v2141_v41 = vand.u32 4294901760, %v2140_v1  ;;  %v5841_v21 = vand.u32 4294901760, %v2303_v36 }
 0x227   :  { %2136 = vmatpush.msra.mxu2 %v4447_v4  ;;  %2520 = vmatpush.msrb.mxu3 %v5780_v38  ;;  %v2384_v4 = vand.u32 4294901760, %v2383_v11 }
 0x228   :  { %v1760_v3 = vadd.f32 %v1759_v56, %v1723_v44  ;;  %2224 = vmatmul.f32.vlgmr.msra.gmra.mxu1 %v2139_v33  ;;  %2322 = vmatpush.msra.mxu0 %v5778_v42  ;;  %v5847_v28 = vsub.f32 %v2303_v36, %v5841_v21  ;;  %v2299_v33 = vld [vmem:[#allocation10 + $0x80] sm:$0xff] }
 0x229   :  { %2367 = vmatpush.msra.mxu1 %v2366_v13  ;;  %2522 = vmatpush.msrb.mxu3 %v5785_v10 }
 0x22a   :  { %2324 = vmatpush.msra.mxu0 %v5780_v38  ;;  %1768 = vst.msk [vmem:[#allocation13 + $0x8] sm:$0xff] %vm1038_vm3, %v1760_v3  ;;  %v5862_v3 = vand.u32 4294901760, %v2299_v33 }
 0x22b   :  { %2373 = vmatpush.msra.mxu1 %v2372_v0  ;;  %2524 = vmatpush.msrb.mxu3 %v5791_v46  ;;  %v6980_v0 = vand.u32 4294901760, %v5847_v28 }
 0x22c   :  { %2072 = vmatmul.f32.vlgmr.msrb.gmra.mxu2 %v1804_v32  ;;  %2173 = vmatmul.f32.vlgmr.msra.gmra.mxu3 %v2137_v14  ;;  %v2305_v32 = vld [vmem:[#allocation10 + $0xb0] sm:$0xff] }
 0x22d   :  { %2465 = vmatpush.msrb.mxu2 %v5783_v60  ;;  %2379 = vmatpush.msra.mxu1 %v2378_v18  ;;  %v5836_v20 = vand.u32 4294901760, %v2305_v32  ;;  %v2297_v18 = vld [vmem:[#allocation10 + $0x70] sm:$0xff]  ;;  %v2395_v1 = vsub.f32 %v5847_v28, %v6980_v0 }
 0x22e   :  { %2251 = vmatmul.f32.vlgmr.msrb.gmra.mxu0 %v2137_v14  ;;  %v5875_v36 = vand.u32 4294901760, %v2297_v18 }
 0x22f   :  { %2468 = vmatpush.msrb.mxu2 %v5789_v45  ;;  %2385 = vmatpush.msra.mxu1 %v2384_v4  ;;  %v5839_v29 = vsub.f32 %v2305_v32, %v5836_v20  ;;  %v5871_v32 = vsub.f32 %v2299_v33, %v5862_v3 }
 0x230   :  { %2274 = vmatmul.f32.vlgmr.msrb.gmra.mxu1 %v2137_v14  ;;  %2326 = vmatpush.msra.mxu0 %v5785_v10  ;;  %v2301_v14 = vld [vmem:[#allocation10 + $0x90] sm:$0xff]  ;;  %v5886_v8 = vsub.f32 %v2297_v18, %v5875_v36  ;;  %v2291_v18 = vld [vmem:[#allocation10 + $0x40] sm:$0xff] }
 0x231   :  { %2471 = vmatpush.msrb.mxu2 %v5796_v55  ;;  %2526 = vmatpush.msrb.mxu3 %v5836_v20  ;;  %v6981_v13 = vand.u32 4294901760, %v5839_v29  ;;  %v5850_v44 = vand.u32 4294901760, %v2301_v14 }
 0x232   :  { %2328 = vmatpush.msra.mxu0 %v5791_v46  ;;  %v6993_v26 = vand.u32 4294901760, %v5886_v8 }
 0x233   :  { %2474 = vmatpush.msrb.mxu2 %v5802_v49  ;;  %2528 = vmatpush.msrb.mxu3 %v5841_v21  ;;  %v2389_v56 = vsub.f32 %v5839_v29, %v6981_v13  ;;  %v5859_v11 = vsub.f32 %v2301_v14, %v5850_v44  ;;  %v2295_v14 = vld [vmem:[#allocation10 + $0x60] sm:$0xff]  ;;  %v6989_v13 = vand.u32 4294901760, %v5871_v32 }
 0x234   :  { %2142 = vmatmul.f32.vlgmr.msra.gmra.mxu2 %v2141_v41  ;;  %2330 = vmatpush.msra.mxu0 %v5836_v20  ;;  %v5883_v33 = vand.u32 4294901760, %v2295_v14 }
 0x235   :  { %2477 = vmatpush.msrb.mxu2 %v5839_v29  ;;  %2530 = vmatpush.msrb.mxu3 %v5850_v44  ;;  %v2390_v4 = vand.u32 4294901760, %v2389_v56  ;;  %v6984_v41 = vand.u32 4294901760, %v5859_v11  ;;  %v2396_v56 = vand.u32 4294901760, %v2395_v1  ;;  %v2407_v1 = vsub.f32 %v5871_v32, %v6989_v13 }
 0x236   :  { %2332 = vmatpush.msra.mxu0 %v5841_v21  ;;  %v5905_v13 = vand.u32 4294901760, %v2291_v18 }
 0x237   :  { %2480 = vmatpush.msrb.mxu2 %v5847_v28  ;;  %2532 = vmatpush.msrb.mxu3 %v5862_v3  ;;  %v2401_v0 = vsub.f32 %v5859_v11, %v6984_v41  ;;  %v5894_v41 = vsub.f32 %v2295_v14, %v5883_v33  ;;  %v2408_v59 = vand.u32 4294901760, %v2407_v1  ;;  %v2413_v14 = vsub.f32 %v5886_v8, %v6993_v26 }
 0x238   :  { %2334 = vmatpush.msra.mxu0 %v5850_v44  ;;  %2391 = vmatpush.msra.mxu1 %v2390_v4  ;;  %v5918_v1 = vsub.f32 %v2291_v18, %v5905_v13  ;;  %v5930_v18 = vsub.f32 %v2289_v9, %v5920_v50 }
 0x239   :  { %2483 = vmatpush.msrb.mxu2 %v5859_v11  ;;  %2534 = vmatpush.msrb.mxu3 %v5875_v36  ;;  %v2402_v4 = vand.u32 4294901760, %v2401_v0  ;;  %v6995_v0 = vand.u32 4294901760, %v5894_v41  ;;  %v2414_v26 = vand.u32 4294901760, %v2413_v14  ;;  %v5934_v14 = vand.u32 4294901760, %v2287_v53 }
 0x23a   :  { %2336 = vmatpush.msra.mxu0 %v5862_v3  ;;  %2397 = vmatpush.msra.mxu1 %v2396_v56  ;;  %v5903_v56 = vsub.f32 %v2293_v34, %v5896_v15  ;;  %v7003_v40 = vand.u32 4294901760, %v5918_v1 }
 0x23b   :  { %2486 = vmatpush.msrb.mxu2 %v5871_v32  ;;  %2536 = vmatpush.msrb.mxu3 %v5883_v33  ;;  %v5945_v9 = vsub.f32 %v2287_v53, %v5934_v14 }
 0x23c   :  { %2338 = vmatpush.msra.mxu0 %v5875_v36  ;;  %2403 = vmatpush.msra.mxu1 %v2402_v4  ;;  %v2419_v4 = vsub.f32 %v5894_v41, %v6995_v0  ;;  %v7001_v34 = vand.u32 4294901760, %v5903_v56 }
 0x23d   :  { %2489 = vmatpush.msrb.mxu2 %v5886_v8  ;;  %2538 = vmatpush.msrb.mxu3 %v5896_v15  ;;  %v7011_v53 = vand.u32 4294901760, %v5945_v9 }
 0x23e   :  { %2340 = vmatpush.msra.mxu0 %v5883_v33  ;;  %2409 = vmatpush.msra.mxu1 %v2408_v59  ;;  %v2420_v59 = vand.u32 4294901760, %v2419_v4  ;;  %v2425_v0 = vsub.f32 %v5903_v56, %v7001_v34  ;;  %v2431_v4 = vsub.f32 %v5918_v1, %v7003_v40  ;;  %v7010_v34 = vand.u32 4294901760, %v5930_v18 }
 0x23f   :  { %2492 = vmatpush.msrb.mxu2 %v5894_v41  ;;  %2540 = vmatpush.msrb.mxu3 %v5905_v13  ;;  %v2443_v24 = vsub.f32 %v5945_v9, %v7011_v53 }
 0x240   :  { %2342 = vmatpush.msra.mxu0 %v5896_v15  ;;  %2415 = vmatpush.msra.mxu1 %v2414_v26  ;;  %v2426_v17 = vand.u32 4294901760, %v2425_v0  ;;  %v2283_v26 = vld [vmem:[#allocation10] sm:$0xff]  ;;  %v2432_v0 = vand.u32 4294901760, %v2431_v4  ;;  %v2437_v40 = vsub.f32 %v5930_v18, %v7010_v34  ;;  %v7015_v4 = vand.u32 4294901760, %v5952_v19  ;;  %v2314_v34 = vld [vmem:[#allocation10 + $0xf8] sm:$0xff] }
 0x241   :  { %2495 = vmatpush.msrb.mxu2 %v5903_v56  ;;  %2542 = vmatpush.msrb.mxu3 %v5920_v50  ;;  %v5954_v2 = vand.u32 4294901760, %v2283_v26 }
 0x242   :  { %2344 = vmatpush.msra.mxu0 %v5905_v13  ;;  %2421 = vmatpush.msra.mxu1 %v2420_v59  ;;  %v2438_v59 = vand.u32 4294901760, %v2437_v40 }
 0x243   :  { %2498 = vmatpush.msrb.mxu2 %v5918_v1  ;;  %2544 = vmatpush.msrb.mxu3 %v5934_v14  ;;  %v5962_v27 = vsub.f32 %v2283_v26, %v5954_v2  ;;  %v2444_v26 = vand.u32 4294901760, %v2443_v24 }
 0x244   :  { %2346 = vmatpush.msra.mxu0 %v5920_v50  ;;  %2427 = vmatpush.msra.mxu1 %v2426_v17  ;;  %v2449_v17 = vsub.f32 %v5952_v19, %v7015_v4  ;;  %v7146_v4 = vand.u32 4294901760, %v5783_v60  ;;  %v5994_v60 = vand.u32 4294901760, %v2310_v7 }
 0x245   :  { %2501 = vmatpush.msrb.mxu2 %v5930_v18  ;;  %2546 = vmatpush.msrb.mxu3 %v5940_v54  ;;  %v7019_v40 = vand.u32 4294901760, %v5962_v27 }
 0x246   :  { %2348 = vmatpush.msra.mxu0 %v5934_v14  ;;  %2433 = vmatpush.msra.mxu1 %v2432_v0  ;;  %v5977_v0 = vand.u32 4294901760, %v2314_v34  ;;  %v2450_v53 = vand.u32 4294901760, %v2449_v17  ;;  %v7147_v17 = vand.u32 4294901760, %v5789_v45 }
 0x247   :  { %2504 = vmatpush.msrb.mxu2 %v5945_v9  ;;  %2548 = vmatpush.msrb.mxu3 %v5954_v2  ;;  %v2455_v31 = vsub.f32 %v5962_v27, %v7019_v40 }
 0x248   :  { %2350 = vmatpush.msra.mxu0 %v5940_v54  ;;  %2439 = vmatpush.msra.mxu1 %v2438_v59  ;;  %v5986_v35 = vsub.f32 %v2314_v34, %v5977_v0  ;;  %v5988_v59 = vand.u32 4294901760, %v2312_v22  ;;  %v7148_v34 = vand.u32 4294901760, %v5796_v55  ;;  %v7149_v55 = vand.u32 4294901760, %v5802_v49 }
 0x249   :  { %2507 = vmatpush.msrb.mxu2 %v5952_v19  ;;  %v2456_v24 = vand.u32 4294901760, %v2455_v31  ;;  %v7150_v49 = vand.u32 4294901760, %v5839_v29  ;;  %v7151_v29 = vand.u32 4294901760, %v5847_v28  ;;  %v7152_v28 = vand.u32 4294901760, %v5859_v11 }
 0x24a   :  { %2352 = vmatpush.msra.mxu0 %v5954_v2  ;;  %2445 = vmatpush.msra.mxu1 %v2444_v26  ;;  %v7020_v40 = vand.u32 4294901760, %v5986_v35  ;;  %v2308_v26 = vld [vmem:[#allocation10 + $0xc8] sm:$0xff]  ;;  %v7153_v11 = vand.u32 4294901760, %v5871_v32 }
 0x24b   :  { %2510 = vmatpush.msrb.mxu2 %v5962_v27 }
 0x24c   :  { %2559 = vmatpush.msrb.mxu0 %v7146_v4  ;;  %2451 = vmatpush.msra.mxu1 %v2450_v53  ;;  %v5997_v4 = vsub.f32 %v2312_v22, %v5988_v59  ;;  %v2706_v31 = vsub.f32 %v5986_v35, %v7020_v40  ;;  %v6006_v53 = vand.u32 4294901760, %v2308_v26  ;;  %v2306_v22 = vld [vmem:[#allocation10 + $0xb8] sm:$0xff] }
 0x24d   :  { %2663 = vmatpush.msra.mxu2 %v5977_v0  ;;  %v6019_v16 = vand.u32 4294901760, %v2306_v22 }
 0x24e   :  { %2563 = vmatpush.msrb.mxu0 %v7147_v17  ;;  %2457 = vmatpush.msra.mxu1 %v2456_v24  ;;  %v7022_v45 = vand.u32 4294901760, %v5997_v4  ;;  %v6009_v17 = vsub.f32 %v2310_v7, %v5994_v60  ;;  %v2707_v24 = vand.u32 4294901760, %v2706_v31  ;;  %v6023_v7 = vsub.f32 %v2308_v26, %v6006_v53  ;;  %v2302_v26 = vld [vmem:[#allocation10 + $0x98] sm:$0xff] }
 0x24f   :  { %2665 = vmatpush.msra.mxu2 %v5988_v59  ;;  %v6034_v48 = vsub.f32 %v2306_v22, %v6019_v16  ;;  %v2300_v22 = vld [vmem:[#allocation10 + $0x88] sm:$0xff] }
 0x250   :  { %2567 = vmatpush.msrb.mxu0 %v7148_v34  ;;  %2626 = vmatpush.msrb.mxu1 %v5778_v42  ;;  %v2712_v34 = vsub.f32 %v5997_v4, %v7022_v45  ;;  %v7024_v40 = vand.u32 4294901760, %v6009_v17  ;;  %v2304_v42 = vld [vmem:[#allocation10 + $0xa8] sm:$0xff] }
 0x251   :  { %2667 = vmatpush.msra.mxu2 %v5994_v60  ;;  %2708 = vmatpush.msra.mxu3 %v2707_v24  ;;  %v6031_v45 = vand.u32 4294901760, %v2304_v42 }
 0x252   :  { %2571 = vmatpush.msrb.mxu0 %v7149_v55  ;;  %2628 = vmatpush.msrb.mxu1 %v5780_v38  ;;  %v2713_v31 = vand.u32 4294901760, %v2712_v34  ;;  %v2718_v55 = vsub.f32 %v6009_v17, %v7024_v40  ;;  %v7025_v38 = vand.u32 4294901760, %v6023_v7  ;;  %v7026_v34 = vand.u32 4294901760, %v6034_v48 }
 0x253   :  { %2669 = vmatpush.msra.mxu2 %v6006_v53  ;;  %v6045_v40 = vsub.f32 %v2304_v42, %v6031_v45 }
 0x254   :  { %2575 = vmatpush.msrb.mxu0 %v7150_v49  ;;  %2630 = vmatpush.msrb.mxu1 %v5785_v10  ;;  %v2719_v24 = vand.u32 4294901760, %v2718_v55  ;;  %v6042_v49 = vand.u32 4294901760, %v2302_v26  ;;  %v2724_v10 = vsub.f32 %v6023_v7, %v7025_v38  ;;  %v6058_v55 = vand.u32 4294901760, %v2300_v22  ;;  %v2298_v38 = vld [vmem:[#allocation10 + $0x78] sm:$0xff] }
 0x255   :  { %2671 = vmatpush.msra.mxu2 %v6019_v16  ;;  %2714 = vmatpush.msra.mxu3 %v2713_v31  ;;  %v2730_v31 = vsub.f32 %v6034_v48, %v7026_v34  ;;  %v7029_v42 = vand.u32 4294901760, %v6045_v40  ;;  %v6071_v43 = vand.u32 4294901760, %v2298_v38 }
 0x256   :  { %2579 = vmatpush.msrb.mxu0 %v7151_v29  ;;  %2632 = vmatpush.msrb.mxu1 %v5791_v46  ;;  %v6061_v46 = vsub.f32 %v2302_v26, %v6042_v49  ;;  %v2725_v29 = vand.u32 4294901760, %v2724_v10  ;;  %v2296_v26 = vld [vmem:[#allocation10 + $0x68] sm:$0xff] }
 0x257   :  { %2673 = vmatpush.msra.mxu2 %v6031_v45  ;;  %2720 = vmatpush.msra.mxu3 %v2719_v24  ;;  %v2731_v24 = vand.u32 4294901760, %v2730_v31  ;;  %v6081_v31 = vand.u32 4294901760, %v2296_v26 }
 0x258   :  { %2583 = vmatpush.msrb.mxu0 %v7152_v28  ;;  %2634 = vmatpush.msrb.mxu1 %v5836_v20  ;;  %v2736_v28 = vsub.f32 %v6045_v40, %v7029_v42  ;;  %v7030_v34 = vand.u32 4294901760, %v6061_v46  ;;  %v6075_v20 = vsub.f32 %v2300_v22, %v6058_v55  ;;  %v7154_v42 = vand.u32 4294901760, %v5886_v8  ;;  %v2294_v22 = vld [vmem:[#allocation10 + $0x58] sm:$0xff] }
 0x259   :  { %2675 = vmatpush.msra.mxu2 %v6042_v49  ;;  %2726 = vmatpush.msra.mxu3 %v2725_v29  ;;  %v6095_v39 = vsub.f32 %v2296_v26, %v6081_v31  ;;  %v4140_v8 = vld [vmem:[%s6919_s7] ss:$0 sm:$0xff] }
 0x25a   :  { %2587 = vmatpush.msrb.mxu0 %v7153_v11  ;;  %2636 = vmatpush.msrb.mxu1 %v5841_v21  ;;  %v2737_v32 = vand.u32 4294901760, %v2736_v28  ;;  %v2742_v10 = vsub.f32 %v6061_v46, %v7030_v34  ;;  %v6084_v11 = vsub.f32 %v2298_v38, %v6071_v43  ;;  %v7032_v21 = vand.u32 4294901760, %v6075_v20 }
 0x25b   :  { %2677 = vmatpush.msra.mxu2 %v6058_v55  ;;  %2732 = vmatpush.msra.mxu3 %v2731_v24  ;;  %v6092_v34 = vand.u32 4294901760, %v2294_v22  ;;  %v7155_v38 = vand.u32 4294901760, %v5894_v41  ;;  %v7038_v41 = vand.u32 4294901760, %v6095_v39 }
 0x25c   :  { %2591 = vmatpush.msrb.mxu0 %v7154_v42  ;;  %2638 = vmatpush.msrb.mxu1 %v5850_v44  ;;  %v2743_v29 = vand.u32 4294901760, %v2742_v10  ;;  %v7036_v28 = vand.u32 4294901760, %v6084_v11  ;;  %v2748_v44 = vsub.f32 %v6075_v20, %v7032_v21  ;;  %v2292_v42 = vld [vmem:[#allocation10 + $0x48] sm:$0xff]  ;;  %v2290_v21 = vld [vmem:[#allocation10 + $0x38] sm:$0xff] }
 0x25d   :  { %2679 = vmatpush.msra.mxu2 %v6071_v43  ;;  %2738 = vmatpush.msra.mxu3 %v2737_v32  ;;  %v6111_v10 = vand.u32 4294901760, %v2292_v42 }
 0x25e   :  { %2595 = vmatpush.msrb.mxu0 %v7155_v38  ;;  %2640 = vmatpush.msrb.mxu1 %v5862_v3  ;;  %v2754_v26 = vsub.f32 %v6084_v11, %v7036_v28  ;;  %v6114_v38 = vsub.f32 %v2294_v22, %v6092_v34  ;;  %v7156_v3 = vand.u32 4294901760, %v5903_v56  ;;  %v2749_v32 = vand.u32 4294901760, %v2748_v44 }
 0x25f   :  { %2681 = vmatpush.msra.mxu2 %v6081_v31  ;;  %2744 = vmatpush.msra.mxu3 %v2743_v29  ;;  %v2760_v28 = vsub.f32 %v6095_v39, %v7038_v41  ;;  %v6124_v22 = vand.u32 4294901760, %v2290_v21  ;;  %v7157_v56 = vand.u32 4294901760, %v5918_v1  ;;  %v2288_v29 = vld [vmem:[#allocation10 + $0x28] sm:$0xff] }
 0x260   :  { %2599 = vmatpush.msrb.mxu0 %v7156_v3  ;;  %2642 = vmatpush.msrb.mxu1 %v5875_v36  ;;  %v2755_v52 = vand.u32 4294901760, %v2754_v26  ;;  %v7039_v58 = vand.u32 4294901760, %v6114_v38  ;;  %v6130_v36 = vsub.f32 %v2292_v42, %v6111_v10  ;;  %v6136_v41 = vand.u32 4294901760, %v2288_v29 }
 0x261   :  { %2683 = vmatpush.msra.mxu2 %v6092_v34  ;;  %2750 = vmatpush.msra.mxu3 %v2749_v32  ;;  %v2761_v44 = vand.u32 4294901760, %v2760_v28  ;;  %v6139_v1 = vsub.f32 %v2290_v21, %v6124_v22 }
 0x262   :  { %2603 = vmatpush.msrb.mxu0 %v7157_v56  ;;  %2644 = vmatpush.msrb.mxu1 %v5883_v33  ;;  %v2766_v26 = vsub.f32 %v6114_v38, %v7039_v58  ;;  %v7041_v28 = vand.u32 4294901760, %v6130_v36  ;;  %v6150_v21 = vsub.f32 %v2288_v29, %v6136_v41 }
 0x263   :  { %2685 = vmatpush.msra.mxu2 %v6111_v10  ;;  %2756 = vmatpush.msra.mxu3 %v2755_v52  ;;  %v7040_v56 = vand.u32 4294901760, %v6139_v1 }
 0x264   :  { %2646 = vmatpush.msrb.mxu1 %v5896_v15  ;;  %v2767_v32 = vand.u32 4294901760, %v2766_v26  ;;  %v2772_v52 = vsub.f32 %v6130_v36, %v7041_v28  ;;  %v2284_v15 = vld [vmem:[#allocation10 + $0x8] sm:$0xff]  ;;  %v2783_v29 = vand.u32 4294901760, %v6150_v21 }
 0x265   :  { %2687 = vmatpush.msra.mxu2 %v6124_v22  ;;  %2762 = vmatpush.msra.mxu3 %v2761_v44  ;;  %v2778_v26 = vsub.f32 %v6139_v1, %v7040_v56 }
 0x266   :  { %2648 = vmatpush.msrb.mxu1 %v5905_v13  ;;  %v7160_v13 = vand.u32 4294901760, %v5952_v19  ;;  %v2784_v28 = vsub.f32 %v6150_v21, %v2783_v29  ;;  %v7161_v19 = vand.u32 4294901760, %v5962_v27 }
 0x267   :  { %2689 = vmatpush.msra.mxu2 %v6136_v41  ;;  %2768 = vmatpush.msra.mxu3 %v2767_v32  ;;  %v2779_v56 = vand.u32 4294901760, %v2778_v26 }
 0x268   :  { %2650 = vmatpush.msrb.mxu1 %v5920_v50  ;;  %v2785_v32 = vand.u32 4294901760, %v2784_v28 }
 0x26a   :  { %2652 = vmatpush.msrb.mxu1 %v5934_v14 }
 0x26c   :  { %2654 = vmatpush.msrb.mxu1 %v5940_v54 }
 0x26e   :  { %2656 = vmatpush.msrb.mxu1 %v5954_v2 }
 0x29b   :  { %v1965_v42 = vpop.f32.mrf.mxu0 }
 0x29f   :  { %v1911_v24 = vpop.f32.mrf.mxu3 }
 0x2a7   :  { %v1810_v23 = vpop.f32.mrf.mxu2 }
 0x2a8   :  { %v1811_v3 = vadd.f32 %v4140_v8, %v1810_v23  ;;  %v7158_v23 = vand.u32 4294901760, %v5930_v18  ;;  %v2286_v8 = vld [vmem:[#allocation10 + $0x18] sm:$0xff]  ;;  %v7159_v18 = vand.u32 4294901760, %v5945_v9  ;;  %v6163_v9 = vand.u32 4294901760, %v2284_v15 }
 0x2a9   :  { %v6147_v58 = vand.u32 4294901760, %v2286_v8 }
 0x2aa   :  { %2607 = vmatpush.msrb.mxu0 %v7158_v23  ;;  %v1912_v33 = vadd.f32 %v1911_v24, %v1811_v3  ;;  %v2004_v3 = vpop.f32.mrf.mxu1  ;;  %v6177_v62 = vsub.f32 %v2284_v15, %v6163_v9  ;;  %v2200_v15 = vpop.f32.mrf.mxu0 }
 0x2ab   :  { %2691 = vmatpush.msra.mxu2 %v6147_v58  ;;  %v6166_v23 = vsub.f32 %v2286_v8, %v6147_v58 }
 0x2ac   :  { %2611 = vmatpush.msrb.mxu0 %v7159_v18  ;;  %v1966_v24 = vadd.f32 %v1965_v42, %v1912_v33  ;;  %v2773_v33 = vand.u32 4294901760, %v2772_v52  ;;  %v2110_v42 = vpop.f32.mrf.mxu3  ;;  %v7043_v52 = vand.u32 4294901760, %v6177_v62 }
 0x2ad   :  { %2693 = vmatpush.msra.mxu2 %v6163_v9  ;;  %v7044_v8 = vand.u32 4294901760, %v6166_v23 }
 0x2ae   :  { %2615 = vmatpush.msrb.mxu0 %v7160_v13  ;;  %v2005_v44 = vadd.f32 %v2004_v3, %v1966_v24  ;;  %2774 = vmatpush.msra.mxu3 %v2773_v33  ;;  %v2796_v27 = vsub.f32 %v6177_v62, %v7043_v52  ;;  %v4153_v33 = vld [vmem:[#allocation8] ss:$0 sm:$0xff] }
 0x2af   :  { %v2073_v18 = vpop.f32.mrf.mxu2  ;;  %v2790_v24 = vsub.f32 %v6166_v23, %v7044_v8 }
 0x2b0   :  { %2619 = vmatpush.msrb.mxu0 %v7161_v19  ;;  %v2074_v50 = vadd.f32 %v2073_v18, %v2005_v44  ;;  %2780 = vmatpush.msra.mxu3 %v2779_v56  ;;  %v2797_v28 = vand.u32 4294901760, %v2796_v27 }
 0x2b1   :  { %v2791_v26 = vand.u32 4294901760, %v2790_v24 }
 0x2b2   :  { %v2111_v3 = vadd.f32 %v2110_v42, %v2074_v50  ;;  %2786 = vmatpush.msra.mxu3 %v2785_v32  ;;  %v2225_v14 = vpop.f32.mrf.mxu1  ;;  %v2252_v18 = vpop.f32.mrf.mxu0 }
 0x2b4   :  { %2114 = vst.msk [vmem:[#allocation13 + $0x10] sm:$0xff] %vm1038_vm3, %v2111_v3  ;;  %2792 = vmatpush.msra.mxu3 %v2791_v26  ;;  %v2174_v44 = vpop.f32.mrf.mxu3 }
 0x2b5   :  { %4091 = dma.vmem_to_hbm [thread:$0]  %s4084_s0, 384, %s4086_s3, [#allocation4], %s4363_s27, %s4363_s27, %s4364_s28  }
 0x2b6   :  { %2798 = vmatpush.msra.mxu3 %v2797_v28 }
 0x2b7   :  { %v2143_v13 = vpop.f32.mrf.mxu2 }
 0x2b8   :  { %v2144_v42 = vadd.f32 %v4153_v33, %v2143_v13  ;;  %v7164_v13 = vand.u32 4294901760, %v6009_v17  ;;  %v7170_v33 = vand.u32 4294901760, %v6084_v11 }
 0x2ba   :  { %v2175_v54 = vadd.f32 %v2174_v44, %v2144_v42  ;;  %v2275_v50 = vpop.f32.mrf.mxu1  ;;  %v7165_v44 = vand.u32 4294901760, %v6023_v7 }
 0x2bc   :  { %v2201_v56 = vadd.f32 %v2200_v15, %v2175_v54  ;;  %v3031_v54 = vld [vmem:[#allocation10 + $0x1b0] sm:$0xff] }
 0x2be   :  { %v2226_v19 = vadd.f32 %v2225_v14, %v2201_v56  ;;  %v7163_v14 = vand.u32 4294901760, %v5997_v4 }
 0x2c0   :  { %v2253_v24 = vadd.f32 %v2252_v18, %v2226_v19  ;;  %v6271_v18 = vand.u32 4294901760, %v3031_v54 }
 0x2c2   :  { %v2276_v52 = vadd.f32 %v2275_v50, %v2253_v24  ;;  %v7173_v24 = vand.u32 4294901760, %v6130_v36 }
 0x2c4   :  { %v2279_v8 = vmul.f32 1.442695, %v2276_v52  ;;  %vm2278_vm5 = vcmp.gt.f32.partialorder %v2276_v52, 0.0 }
 0x2c6   :  { %4147 = vpow2.f32 %v2279_v8  ;;  %v7162_v8 = vand.u32 4294901760, %v5986_v35 }
 0x2cc   :  { %v4148_v3 = vpop.eup %4147 }
 0x2cd   :  { %v4123_v2 = vadd.f32 -1.0, %v4148_v3 }
 0x2cf   :  { %v2282_v32 = vsel %vm2278_vm5, %v2276_v52, %v4123_v2  ;;  %v3025_v2 = vld [vmem:[#allocation10 + $0x180] sm:$0xff] }
 0x2d0   :  { %v6192_v27 = vand.u32 4294901760, %v2282_v32 }
 0x2d2   :  { %v6195_v26 = vsub.f32 %v2282_v32, %v6192_v27  ;;  %2459 = vmatmul.f32.vlgmr.msra.gmra.mxu1 %v6192_v27  ;;  %v7174_v32 = vand.u32 4294901760, %v6139_v1 }
 0x2d3   :  { %2859 = vmatpush.msra.mxu1 %v5977_v0 }
 0x2d4   :  { %2513 = vmatmul.f32.vlgmr.msrb.gmra.mxu2 %v6195_v26  ;;  %v6201_v15 = vand.u32 4294901760, %v6195_v26 }
 0x2d5   :  { %2861 = vmatpush.msra.mxu1 %v5988_v59  ;;  %2900 = vmatpush.msrb.mxu2 %v7162_v8 }
 0x2d6   :  { %2552 = vmatmul.f32.vlgmr.msrb.gmra.mxu3 %v6201_v15  ;;  %v2356_v52 = vsub.f32 %v6195_v26, %v6201_v15 }
 0x2d7   :  { %2863 = vmatpush.msra.mxu1 %v5994_v60  ;;  %2904 = vmatpush.msrb.mxu2 %v7163_v14  ;;  %v3023_v14 = vld [vmem:[#allocation10 + $0x170] sm:$0xff] }
 0x2d8   :  { %2967 = vmatpush.msrb.mxu3 %v5977_v0  ;;  %v2357_v28 = vand.u32 4294901760, %v2356_v52  ;;  %v7166_v0 = vand.u32 4294901760, %v6034_v48 }
 0x2d9   :  { %2865 = vmatpush.msra.mxu1 %v6006_v53  ;;  %2908 = vmatpush.msrb.mxu2 %v7164_v13  ;;  %v6317_v13 = vand.u32 4294901760, %v3025_v2 }
 0x2da   :  { %2969 = vmatpush.msrb.mxu3 %v5988_v59  ;;  %2358 = vmatmul.f32.vlgmr.msra.gmra.mxu0 %v2357_v28  ;;  %v3039_v59 = vld [vmem:[#allocation10 + $0x1f0] sm:$0xff] }
 0x2db   :  { %2658 = vmatmul.f32.vlgmr.msrb.gmra.mxu1 %v6192_v27  ;;  %2806 = vmatpush.msra.mxu0 %v5986_v35  ;;  %v7167_v35 = vand.u32 4294901760, %v6045_v40 }
 0x2dc   :  { %2867 = vmatpush.msra.mxu1 %v6019_v16  ;;  %2912 = vmatpush.msrb.mxu2 %v7165_v44  ;;  %v3021_v44 = vld [vmem:[#allocation10 + $0x160] sm:$0xff] }
 0x2dd   :  { %2971 = vmatpush.msrb.mxu3 %v5994_v60  ;;  %2699 = vmatmul.f32.vlgmr.msra.gmra.mxu2 %v2357_v28  ;;  %v7168_v60 = vand.u32 4294901760, %v6061_v46 }
 0x2de   :  { %2809 = vmatpush.msra.mxu0 %v5997_v4  ;;  %2869 = vmatpush.msra.mxu1 %v6031_v45  ;;  %v3037_v4 = vld [vmem:[#allocation10 + $0x1e0] sm:$0xff] }
 0x2df   :  { %2916 = vmatpush.msrb.mxu2 %v7166_v0  ;;  %2973 = vmatpush.msrb.mxu3 %v6006_v53  ;;  %v6240_v53 = vand.u32 4294901760, %v3039_v59  ;;  %v7175_v0 = vand.u32 4294901760, %v6166_v23 }
 0x2e0   :  { %2800 = vmatmul.f32.vlgmr.msra.gmra.mxu3 %v6192_v27  ;;  %2812 = vmatpush.msra.mxu0 %v6009_v17  ;;  %v3035_v17 = vld [vmem:[#allocation10 + $0x1d0] sm:$0xff] }
 0x2e1   :  { %2871 = vmatpush.msra.mxu1 %v6042_v49  ;;  %2920 = vmatpush.msrb.mxu2 %v7167_v35  ;;  %v6257_v42 = vand.u32 4294901760, %v3035_v17 }
 0x2e2   :  { %2975 = vmatpush.msrb.mxu3 %v6019_v16  ;;  %2815 = vmatpush.msra.mxu0 %v6023_v7  ;;  %v7169_v16 = vand.u32 4294901760, %v6075_v20  ;;  %v6247_v7 = vand.u32 4294901760, %v3037_v4 }
 0x2e3   :  { %2873 = vmatpush.msra.mxu1 %v6058_v55  ;;  %2924 = vmatpush.msrb.mxu2 %v7168_v60  ;;  %v3019_v60 = vld [vmem:[#allocation10 + $0x150] sm:$0xff] }
 0x2e4   :  { %2977 = vmatpush.msrb.mxu3 %v6031_v45  ;;  %2621 = vmatmul.f32.vlgmr.msrb.gmra.mxu0 %v6192_v27  ;;  %v3033_v45 = vld [vmem:[#allocation10 + $0x1c0] sm:$0xff] }
 0x2e5   :  { %2818 = vmatpush.msra.mxu0 %v6034_v48  ;;  %2875 = vmatpush.msra.mxu1 %v6071_v43  ;;  %v6255_v48 = vsub.f32 %v3039_v59, %v6240_v53  ;;  %v6267_v56 = vand.u32 4294901760, %v3033_v45  ;;  %v6331_v59 = vand.u32 4294901760, %v3023_v14 }
 0x2e6   :  { %2928 = vmatpush.msrb.mxu2 %v7169_v16  ;;  %2979 = vmatpush.msrb.mxu3 %v6042_v49  ;;  %v6265_v49 = vsub.f32 %v3037_v4, %v6247_v7  ;;  %v7176_v4 = vand.u32 4294901760, %v6177_v62  ;;  %v6343_v16 = vsub.f32 %v3025_v2, %v6317_v13 }
 0x2e7   :  { %2821 = vmatpush.msra.mxu0 %v6045_v40  ;;  %2877 = vmatpush.msra.mxu1 %v6081_v31  ;;  %v7171_v40 = vand.u32 4294901760, %v6095_v39  ;;  %v3090_v19 = vand.u32 4294901760, %v6255_v48 }
 0x2e8   :  { %2932 = vmatpush.msrb.mxu2 %v7170_v33  ;;  %2981 = vmatpush.msrb.mxu3 %v6058_v55  ;;  %v3029_v55 = vld [vmem:[#allocation10 + $0x1a0] sm:$0xff]  ;;  %v3096_v3 = vand.u32 4294901760, %v6265_v49 }
 0x2e9   :  { %2824 = vmatpush.msra.mxu0 %v6061_v46  ;;  %2879 = vmatpush.msra.mxu1 %v6092_v34  ;;  %v7172_v46 = vand.u32 4294901760, %v6114_v38  ;;  %v6282_v50 = vand.u32 4294901760, %v3029_v55 }
 0x2ea   :  { %2936 = vmatpush.msrb.mxu2 %v7171_v40  ;;  %2983 = vmatpush.msrb.mxu3 %v6071_v43  ;;  %v6278_v43 = vsub.f32 %v3035_v17, %v6257_v42  ;;  %v6357_v40 = vand.u32 4294901760, %v3019_v60 }
 0x2eb   :  { %2827 = vmatpush.msra.mxu0 %v6075_v20  ;;  %2881 = vmatpush.msra.mxu1 %v6111_v10  ;;  %v3027_v20 = vld [vmem:[#allocation10 + $0x190] sm:$0xff] }
 0x2ec   :  { %2940 = vmatpush.msrb.mxu2 %v7172_v46  ;;  %2985 = vmatpush.msrb.mxu3 %v6081_v31  ;;  %v6289_v31 = vsub.f32 %v3033_v45, %v6267_v56  ;;  %v3102_v8 = vand.u32 4294901760, %v6278_v43  ;;  %v6303_v52 = vand.u32 4294901760, %v3027_v20  ;;  %v6345_v45 = vand.u32 4294901760, %v3021_v44 }
 0x2ed   :  { %2830 = vmatpush.msra.mxu0 %v6084_v11  ;;  %2883 = vmatpush.msra.mxu1 %v6124_v22  ;;  %v6294_v11 = vsub.f32 %v3031_v54, %v6271_v18  ;;  %v6355_v54 = vsub.f32 %v3023_v14, %v6331_v59  ;;  %v3132_v46 = vand.u32 4294901760, %v6343_v16 }
 0x2ee   :  { %2944 = vmatpush.msrb.mxu2 %v7173_v24  ;;  %2987 = vmatpush.msrb.mxu3 %v6092_v34  ;;  %v3091_v34 = vsub.f32 %v6255_v48, %v3090_v19  ;;  %v3108_v28 = vand.u32 4294901760, %v6289_v31  ;;  %v6329_v35 = vsub.f32 %v3027_v20, %v6303_v52  ;;  %v6367_v20 = vsub.f32 %v3021_v44, %v6345_v45 }
 0x2ef   :  { %2833 = vmatpush.msra.mxu0 %v6095_v39  ;;  %2885 = vmatpush.msra.mxu1 %v6136_v41  ;;  %v6308_v39 = vsub.f32 %v3029_v55, %v6282_v50  ;;  %v3015_v55 = vld [vmem:[#allocation10 + $0x130] sm:$0xff] }
 0x2f0   :  { %2948 = vmatpush.msrb.mxu2 %v7174_v32  ;;  %2989 = vmatpush.msrb.mxu3 %v6111_v10  ;;  %v3097_v10 = vsub.f32 %v6265_v49, %v3096_v3  ;;  %v3109_v17 = vsub.f32 %v6289_v31, %v3108_v28  ;;  %v3126_v33 = vand.u32 4294901760, %v6329_v35  ;;  %v3138_v32 = vand.u32 4294901760, %v6355_v54 }
 0x2f1   :  { %2836 = vmatpush.msra.mxu0 %v6114_v38  ;;  %2887 = vmatpush.msra.mxu1 %v6147_v58  ;;  %v3114_v38 = vand.u32 4294901760, %v6294_v11  ;;  %v6381_v14 = vand.u32 4294901760, %v3015_v55 }
 0x2f2   :  { %2952 = vmatpush.msrb.mxu2 %v2783_v29  ;;  %2991 = vmatpush.msrb.mxu3 %v6124_v22  ;;  %v3092_v22 = vand.u32 4294901760, %v3091_v34  ;;  %v3103_v29 = vsub.f32 %v6278_v43, %v3102_v8  ;;  %v3127_v2 = vsub.f32 %v6329_v35, %v3126_v33  ;;  %v6379_v34 = vsub.f32 %v3019_v60, %v6357_v40 }
 0x2f3   :  { %2839 = vmatpush.msra.mxu0 %v6130_v36  ;;  %2889 = vmatpush.msra.mxu1 %v6163_v9  ;;  %v3120_v36 = vand.u32 4294901760, %v6308_v39 }
 0x2f4   :  { %2956 = vmatpush.msrb.mxu2 %v7175_v0  ;;  %2993 = vmatpush.msrb.mxu3 %v6136_v41  ;;  %v3098_v41 = vand.u32 4294901760, %v3097_v10  ;;  %v3144_v10 = vand.u32 4294901760, %v6367_v20  ;;  %v3150_v60 = vand.u32 4294901760, %v6379_v34 }
 0x2f5   :  { %2893 = vmatmul.f32.vlgmr.msra.gmra.mxu1 %v6201_v15  ;;  %2842 = vmatpush.msra.mxu0 %v6139_v1  ;;  %v3115_v1 = vsub.f32 %v6294_v11, %v3114_v38  ;;  %v3017_v15 = vld [vmem:[#allocation10 + $0x140] sm:$0xff] }
 0x2f6   :  { %2960 = vmatpush.msrb.mxu2 %v7176_v4  ;;  %2995 = vmatpush.msrb.mxu3 %v6147_v58  ;;  %v3104_v58 = vand.u32 4294901760, %v3103_v29  ;;  %v6369_v24 = vand.u32 4294901760, %v3017_v15  ;;  %v3139_v29 = vsub.f32 %v6355_v54, %v3138_v32  ;;  %v6403_v4 = vsub.f32 %v3015_v55, %v6381_v14 }
 0x2f7   :  { %2962 = vmatmul.f32.vlgmr.msrb.gmra.mxu2 %v6192_v27  ;;  %2845 = vmatpush.msra.mxu0 %v6150_v21  ;;  %v3121_v21 = vsub.f32 %v6308_v39, %v3120_v36 }
 0x2f8   :  { %2997 = vmatpush.msrb.mxu3 %v6163_v9  ;;  %3093 = vmatpush.msrb.mxu1 %v3092_v22  ;;  %v3110_v9 = vand.u32 4294901760, %v3109_v17  ;;  %v6391_v44 = vsub.f32 %v3017_v15, %v6369_v24  ;;  %v3128_v22 = vand.u32 4294901760, %v3127_v2  ;;  %v3145_v17 = vsub.f32 %v6367_v20, %v3144_v10 }
 0x2f9   :  { %2999 = vmatmul.f32.vlgmr.msrb.gmra.mxu3 %v6192_v27  ;;  %2848 = vmatpush.msra.mxu0 %v6166_v23  ;;  %v3116_v23 = vand.u32 4294901760, %v3115_v1  ;;  %v3013_v27 = vld [vmem:[#allocation10 + $0x120] sm:$0xff]  ;;  %v7047_v55 = vand.u32 4294901760, %v6403_v4 }
 0x2fa   :  { %3099 = vmatpush.msrb.mxu1 %v3098_v41  ;;  %3191 = vmatpush.msra.mxu2 %v6255_v48  ;;  %v6393_v0 = vand.u32 4294901760, %v3013_v27  ;;  %v7048_v1 = vand.u32 4294901760, %v6391_v44  ;;  %v3036_v48 = vld [vmem:[#allocation10 + $0x1d8] sm:$0xff] }
 0x2fb   :  { %2851 = vmatpush.msra.mxu0 %v6177_v62  ;;  %3244 = vmatpush.msra.mxu3 %v6240_v53  ;;  %v3122_v62 = vand.u32 4294901760, %v3121_v21  ;;  %v3151_v21 = vsub.f32 %v6379_v34, %v3150_v60 }
 0x2fc   :  { %2854 = vmatmul.f32.vlgmr.msra.gmra.mxu0 %v6195_v26  ;;  %3105 = vmatpush.msrb.mxu1 %v3104_v58  ;;  %v3133_v26 = vsub.f32 %v6343_v16, %v3132_v46  ;;  %v6413_v15 = vsub.f32 %v3013_v27, %v6393_v0  ;;  %v3140_v58 = vand.u32 4294901760, %v3139_v29 }
 0x2fd   :  { %3194 = vmatpush.msra.mxu2 %v6265_v49  ;;  %3246 = vmatpush.msra.mxu3 %v6247_v7  ;;  %v3152_v2 = vand.u32 4294901760, %v3151_v21  ;;  %v3009_v21 = vld [vmem:[#allocation10 + $0x100] sm:$0xff]  ;;  %v3034_v49 = vld [vmem:[#allocation10 + $0x1c8] sm:$0xff] }
 0x2fe   :  { %3111 = vmatpush.msrb.mxu1 %v3110_v9  ;;  %3048 = vmatpush.msrb.mxu0 %v6240_v53  ;;  %v3134_v41 = vand.u32 4294901760, %v3133_v26  ;;  %v3146_v9 = vand.u32 4294901760, %v3145_v17  ;;  %v7045_v27 = vand.u32 4294901760, %v6413_v15  ;;  %v3011_v17 = vld [vmem:[#allocation10 + $0x110] sm:$0xff] }
 0x2ff   :  { %3197 = vmatpush.msra.mxu2 %v6278_v43  ;;  %3248 = vmatpush.msra.mxu3 %v6257_v42 }
 0x300   :  { %3117 = vmatpush.msrb.mxu1 %v3116_v23  ;;  %3050 = vmatpush.msrb.mxu0 %v6247_v7  ;;  %v3157_v23 = vsub.f32 %v6391_v44, %v7048_v1 }
 0x301   :  { %3200 = vmatpush.msra.mxu2 %v6289_v31  ;;  %3250 = vmatpush.msra.mxu3 %v6267_v56 }
 0x302   :  { %3123 = vmatpush.msrb.mxu1 %v3122_v62  ;;  %3052 = vmatpush.msrb.mxu0 %v6257_v42  ;;  %v3163_v62 = vsub.f32 %v6403_v4, %v7047_v55  ;;  %v3158_v26 = vand.u32 4294901760, %v3157_v23  ;;  %v6465_v23 = vand.u32 4294901760, %v3009_v21 }
 0x303   :  { %3203 = vmatpush.msra.mxu2 %v6294_v11  ;;  %3252 = vmatpush.msra.mxu3 %v6271_v18 }
 0x304   :  { %3129 = vmatpush.msrb.mxu1 %v3128_v22  ;;  %3054 = vmatpush.msrb.mxu0 %v6267_v56  ;;  %v3169_v22 = vsub.f32 %v6413_v15, %v7045_v27  ;;  %v3164_v29 = vand.u32 4294901760, %v3163_v62  ;;  %v6471_v62 = vsub.f32 %v3009_v21, %v6465_v23 }
 0x305   :  { %3206 = vmatpush.msra.mxu2 %v6308_v39  ;;  %3254 = vmatpush.msra.mxu3 %v6282_v50 }
 0x306   :  { %3135 = vmatpush.msrb.mxu1 %v3134_v41  ;;  %3056 = vmatpush.msrb.mxu0 %v6271_v18  ;;  %v3170_v41 = vand.u32 4294901760, %v3169_v22 }
 0x307   :  { %3209 = vmatpush.msra.mxu2 %v6329_v35  ;;  %3256 = vmatpush.msra.mxu3 %v6303_v52 }
 0x308   :  { %3141 = vmatpush.msrb.mxu1 %v3140_v58  ;;  %3058 = vmatpush.msrb.mxu0 %v6282_v50  ;;  %v6460_v58 = vand.u32 4294901760, %v3011_v17 }
 0x309   :  { %3212 = vmatpush.msra.mxu2 %v6343_v16  ;;  %3258 = vmatpush.msra.mxu3 %v6317_v13 }
 0x30a   :  { %3147 = vmatpush.msrb.mxu1 %v3146_v9  ;;  %3060 = vmatpush.msrb.mxu0 %v6303_v52  ;;  %v6463_v9 = vsub.f32 %v3011_v17, %v6460_v58 }
 0x30b   :  { %3215 = vmatpush.msra.mxu2 %v6355_v54  ;;  %3260 = vmatpush.msra.mxu3 %v6331_v59 }
 0x30c   :  { %3153 = vmatpush.msrb.mxu1 %v3152_v2  ;;  %3062 = vmatpush.msrb.mxu0 %v6317_v13  ;;  %v7046_v2 = vand.u32 4294901760, %v6463_v9 }
 0x30d   :  { %3218 = vmatpush.msra.mxu2 %v6367_v20  ;;  %3262 = vmatpush.msra.mxu3 %v6345_v45 }
 0x30e   :  { %3159 = vmatpush.msrb.mxu1 %v3158_v26  ;;  %3064 = vmatpush.msrb.mxu0 %v6331_v59  ;;  %v3040_v26 = vld [vmem:[#allocation10 + $0x1f8] sm:$0xff]  ;;  %v3175_v22 = vsub.f32 %v6463_v9, %v7046_v2  ;;  %v3038_v2 = vld [vmem:[#allocation10 + $0x1e8] sm:$0xff] }
 0x30f   :  { %3221 = vmatpush.msra.mxu2 %v6379_v34  ;;  %3264 = vmatpush.msra.mxu3 %v6357_v40  ;;  %v6494_v55 = vand.u32 4294901760, %v3038_v2 }
 0x310   :  { %3165 = vmatpush.msrb.mxu1 %v3164_v29  ;;  %3066 = vmatpush.msrb.mxu0 %v6345_v45  ;;  %v3180_v29 = vand.u32 4294901760, %v6471_v62  ;;  %v3176_v17 = vand.u32 4294901760, %v3175_v22  ;;  %v6500_v22 = vand.u32 4294901760, %v3036_v48 }
 0x311   :  { %3224 = vmatpush.msra.mxu2 %v6391_v44  ;;  %3266 = vmatpush.msra.mxu3 %v6369_v24 }
 0x312   :  { %3171 = vmatpush.msrb.mxu1 %v3170_v41  ;;  %3068 = vmatpush.msrb.mxu0 %v6357_v40  ;;  %v6481_v41 = vand.u32 4294901760, %v3040_v26  ;;  %v3181_v21 = vsub.f32 %v6471_v62, %v3180_v29 }
 0x313   :  { %3227 = vmatpush.msra.mxu2 %v6403_v4  ;;  %3268 = vmatpush.msra.mxu3 %v6381_v14 }
 0x314   :  { %3070 = vmatpush.msrb.mxu0 %v6369_v24  ;;  %v6490_v27 = vsub.f32 %v3040_v26, %v6481_v41  ;;  %3177 = vmatpush.msrb.mxu1 %v3176_v17  ;;  %v3182_v1 = vand.u32 4294901760, %v3181_v21  ;;  %v6503_v26 = vsub.f32 %v3038_v2, %v6494_v55  ;;  %v6516_v2 = vsub.f32 %v3036_v48, %v6500_v22  ;;  %v3030_v48 = vld [vmem:[#allocation10 + $0x1a8] sm:$0xff] }
 0x315   :  { %3230 = vmatpush.msra.mxu2 %v6413_v15  ;;  %3270 = vmatpush.msra.mxu3 %v6393_v0 }
 0x316   :  { %3072 = vmatpush.msrb.mxu0 %v6381_v14  ;;  %3183 = vmatpush.msrb.mxu1 %v3182_v1  ;;  %v3032_v1 = vld [vmem:[#allocation10 + $0x1b8] sm:$0xff] }
 0x317   :  { %3272 = vmatpush.msra.mxu3 %v6460_v58  ;;  %3233 = vmatpush.msra.mxu2 %v6463_v9  ;;  %v6526_v17 = vand.u32 4294901760, %v3032_v1 }
 0x318   :  { %3074 = vmatpush.msrb.mxu0 %v6393_v0  ;;  %3352 = vmatpush.msra.mxu1 %v6240_v53 }
 0x319   :  { %3274 = vmatpush.msra.mxu3 %v6465_v23  ;;  %3236 = vmatpush.msra.mxu2 %v6471_v62 }
 0x31a   :  { %3076 = vmatpush.msrb.mxu0 %v6460_v58  ;;  %3354 = vmatpush.msra.mxu1 %v6247_v7 }
 0x31b   :  { %3389 = vmatpush.msrb.mxu2 %v6481_v41 }
 0x31c   :  { %3078 = vmatpush.msrb.mxu0 %v6465_v23  ;;  %3356 = vmatpush.msra.mxu1 %v6257_v42 }
 0x31d   :  { %3391 = vmatpush.msrb.mxu2 %v6494_v55 }
 0x31e   :  { %3285 = vmatpush.msra.mxu0 %v3090_v19  ;;  %v7063_v19 = vand.u32 4294901760, %v6490_v27  ;;  %3358 = vmatpush.msra.mxu1 %v6267_v56 }
 0x31f   :  { %3393 = vmatpush.msrb.mxu2 %v6500_v22 }
 0x320   :  { %3289 = vmatpush.msra.mxu0 %v3096_v3  ;;  %v3432_v43 = vsub.f32 %v6490_v27, %v7063_v19  ;;  %v7049_v3 = vand.u32 4294901760, %v6503_v26  ;;  %3360 = vmatpush.msra.mxu1 %v6271_v18 }
 0x322   :  { %3293 = vmatpush.msra.mxu0 %v3102_v8  ;;  %v6513_v8 = vand.u32 4294901760, %v3034_v49  ;;  %v3433_v53 = vand.u32 4294901760, %v3432_v43  ;;  %v3438_v31 = vsub.f32 %v6503_v26, %v7049_v3  ;;  %v6540_v43 = vsub.f32 %v3032_v1, %v6526_v17  ;;  %v3028_v3 = vld [vmem:[#allocation10 + $0x198] sm:$0xff]  ;;  %3362 = vmatpush.msra.mxu1 %v6282_v50 }
 0x324   :  { %3297 = vmatpush.msra.mxu0 %v3108_v28  ;;  %3395 = vmatpush.msrb.mxu2 %v6513_v8  ;;  %v7062_v28 = vand.u32 4294901760, %v6516_v2  ;;  %v6529_v21 = vsub.f32 %v3034_v49, %v6513_v8  ;;  %v3439_v7 = vand.u32 4294901760, %v3438_v31  ;;  %v7060_v39 = vand.u32 4294901760, %v6540_v43  ;;  %v3026_v31 = vld [vmem:[#allocation10 + $0x188] sm:$0xff] }
 0x325   :  { %3434 = vmatpush.msrb.mxu3 %v3433_v53  ;;  %3364 = vmatpush.msra.mxu1 %v6303_v52 }
 0x326   :  { %3301 = vmatpush.msra.mxu0 %v3114_v38  ;;  %v3444_v11 = vsub.f32 %v6516_v2, %v7062_v28  ;;  %v6537_v38 = vand.u32 4294901760, %v3030_v48  ;;  %3397 = vmatpush.msrb.mxu2 %v6526_v17  ;;  %v7061_v49 = vand.u32 4294901760, %v6529_v21  ;;  %v3456_v56 = vsub.f32 %v6540_v43, %v7060_v39 }
 0x327   :  { %3440 = vmatpush.msrb.mxu3 %v3439_v7  ;;  %3366 = vmatpush.msra.mxu1 %v6317_v13 }
 0x328   :  { %3305 = vmatpush.msra.mxu0 %v3120_v36  ;;  %v3445_v42 = vand.u32 4294901760, %v3444_v11  ;;  %v6548_v36 = vand.u32 4294901760, %v3028_v3  ;;  %v6551_v53 = vsub.f32 %v3030_v48, %v6537_v38  ;;  %v3450_v1 = vsub.f32 %v6529_v21, %v7061_v49  ;;  %3399 = vmatpush.msrb.mxu2 %v6537_v38  ;;  %v3024_v11 = vld [vmem:[#allocation10 + $0x178] sm:$0xff] }
 0x329   :  { %v3457_v18 = vand.u32 4294901760, %v3456_v56  ;;  %3368 = vmatpush.msra.mxu1 %v6331_v59 }
 0x32a   :  { %3309 = vmatpush.msra.mxu0 %v3126_v33  ;;  %3446 = vmatpush.msrb.mxu3 %v3445_v42  ;;  %v7051_v35 = vand.u32 4294901760, %v6551_v53  ;;  %v6564_v33 = vand.u32 4294901760, %v3026_v31  ;;  %v6567_v48 = vsub.f32 %v3028_v3, %v6548_v36  ;;  %v3451_v7 = vand.u32 4294901760, %v3450_v1  ;;  %v3022_v1 = vld [vmem:[#allocation10 + $0x168] sm:$0xff] }
 0x32b   :  { %3401 = vmatpush.msrb.mxu2 %v6548_v36  ;;  %v6577_v42 = vand.u32 4294901760, %v3024_v11  ;;  %3370 = vmatpush.msra.mxu1 %v6345_v45 }
 0x32c   :  { %3313 = vmatpush.msra.mxu0 %v3132_v46  ;;  %v3462_v16 = vsub.f32 %v6551_v53, %v7051_v35  ;;  %v7050_v46 = vand.u32 4294901760, %v6567_v48  ;;  %3452 = vmatpush.msrb.mxu3 %v3451_v7  ;;  %v6581_v3 = vsub.f32 %v3026_v31, %v6564_v33  ;;  %v3020_v7 = vld [vmem:[#allocation10 + $0x158] sm:$0xff] }
 0x32d   :  { %3403 = vmatpush.msrb.mxu2 %v6564_v33  ;;  %v6590_v56 = vsub.f32 %v3024_v11, %v6577_v42  ;;  %3372 = vmatpush.msra.mxu1 %v6357_v40 }
 0x32e   :  { %3317 = vmatpush.msra.mxu0 %v3138_v32  ;;  %v3463_v54 = vand.u32 4294901760, %v3462_v16  ;;  %v3468_v50 = vsub.f32 %v6567_v48, %v7050_v46  ;;  %v6587_v32 = vand.u32 4294901760, %v3022_v1  ;;  %3458 = vmatpush.msrb.mxu3 %v3457_v18  ;;  %v7053_v31 = vand.u32 4294901760, %v6581_v3 }
 0x32f   :  { %3405 = vmatpush.msrb.mxu2 %v6577_v42  ;;  %v7052_v16 = vand.u32 4294901760, %v6590_v56  ;;  %v6598_v46 = vand.u32 4294901760, %v3020_v7  ;;  %3374 = vmatpush.msra.mxu1 %v6369_v24 }
 0x330   :  { %3321 = vmatpush.msra.mxu0 %v3144_v10  ;;  %v3469_v52 = vand.u32 4294901760, %v3468_v50  ;;  %v6601_v35 = vsub.f32 %v3022_v1, %v6587_v32  ;;  %3464 = vmatpush.msrb.mxu3 %v3463_v54  ;;  %v3474_v20 = vsub.f32 %v6581_v3, %v7053_v31  ;;  %v3018_v10 = vld [vmem:[#allocation10 + $0x148] sm:$0xff]  ;;  %v3016_v54 = vld [vmem:[#allocation10 + $0x138] sm:$0xff] }
 0x331   :  { %3407 = vmatpush.msrb.mxu2 %v6587_v32  ;;  %v3480_v13 = vsub.f32 %v6590_v56, %v7052_v16  ;;  %v6614_v18 = vand.u32 4294901760, %v3018_v10  ;;  %v6617_v34 = vsub.f32 %v3020_v7, %v6598_v46  ;;  %v6627_v31 = vand.u32 4294901760, %v3016_v54  ;;  %3376 = vmatpush.msra.mxu1 %v6381_v14  ;;  %v2315_v14 = vld [vmem:[%s6917_s5] sm:$0x3] }
 0x332   :  { %3325 = vmatpush.msra.mxu0 %v3150_v60  ;;  %v7059_v11 = vand.u32 4294901760, %v6601_v35  ;;  %v7177_v60 = vand.u32 4294901760, %v6391_v44  ;;  %3470 = vmatpush.msrb.mxu3 %v3469_v52  ;;  %v3475_v1 = vand.u32 4294901760, %v3474_v20  ;;  %v7178_v7 = vand.u32 4294901760, %v6403_v4  ;;  %v3014_v52 = vld [vmem:[#allocation10 + $0x128] sm:$0xff] }
 0x333   :  { %3409 = vmatpush.msrb.mxu2 %v6598_v46  ;;  %v3481_v59 = vand.u32 4294901760, %v3480_v13  ;;  %v7054_v16 = vand.u32 4294901760, %v6617_v34  ;;  %v6633_v44 = vsub.f32 %v3018_v10, %v6614_v18  ;;  %v6639_v13 = vand.u32 4294901760, %v3014_v52  ;;  %3378 = vmatpush.msra.mxu1 %v6393_v0 }
 0x334   :  { %3329 = vmatpush.msra.mxu0 %v7177_v60  ;;  %v3486_v50 = vsub.f32 %v6601_v35, %v7059_v11  ;;  %3476 = vmatpush.msrb.mxu3 %v3475_v1  ;;  %v6642_v60 = vsub.f32 %v3016_v54, %v6627_v31  ;;  %v7179_v4 = vand.u32 4294901760, %v6413_v15  ;;  %v3012_v1 = vld [vmem:[#allocation10 + $0x118] sm:$0xff]  ;;  %v7180_v54 = vand.u32 4294901760, %v6463_v9 }
 0x335   :  { %3411 = vmatpush.msrb.mxu2 %v6614_v18  ;;  %v3492_v20 = vsub.f32 %v6617_v34, %v7054_v16  ;;  %v7058_v10 = vand.u32 4294901760, %v6633_v44  ;;  %v6653_v16 = vsub.f32 %v3014_v52, %v6639_v13  ;;  %3380 = vmatpush.msra.mxu1 %v6460_v58 }
 0x336   :  { %3333 = vmatpush.msra.mxu0 %v7178_v7  ;;  %v3487_v45 = vand.u32 4294901760, %v3486_v50  ;;  %3482 = vmatpush.msrb.mxu3 %v3481_v59  ;;  %v7056_v50 = vand.u32 4294901760, %v6642_v60  ;;  %v6650_v7 = vand.u32 4294901760, %v3012_v1  ;;  %v3010_v59 = vld [vmem:[#allocation10 + $0x108] sm:$0xff] }
 0x337   :  { %3413 = vmatpush.msrb.mxu2 %v6627_v31  ;;  %v3493_v40 = vand.u32 4294901760, %v3492_v20  ;;  %v3498_v15 = vsub.f32 %v6633_v44, %v7058_v10  ;;  %v7055_v52 = vand.u32 4294901760, %v6653_v16  ;;  %v6666_v20 = vand.u32 4294901760, %v3010_v59  ;;  %3382 = vmatpush.msra.mxu1 %v6465_v23 }
 0x338   :  { %3337 = vmatpush.msra.mxu0 %v7179_v4  ;;  %3488 = vmatpush.msrb.mxu3 %v3487_v45  ;;  %v3504_v24 = vsub.f32 %v6642_v60, %v7056_v50  ;;  %v6669_v9 = vsub.f32 %v3012_v1, %v6650_v7 }
 0x339   :  { %3415 = vmatpush.msrb.mxu2 %v6639_v13  ;;  %v3499_v45 = vand.u32 4294901760, %v3498_v15  ;;  %v6683_v62 = vsub.f32 %v3010_v59, %v6666_v20  ;;  %v2317_v15 = vperm.slane %v2315_v14, 0 }
 0x33a   :  { %3341 = vmatpush.msra.mxu0 %v7180_v54  ;;  %3494 = vmatpush.msrb.mxu3 %v3493_v40  ;;  %v3505_v4 = vand.u32 4294901760, %v3504_v24  ;;  %v3510_v54 = vsub.f32 %v6653_v16, %v7055_v52  ;;  %v7057_v1 = vand.u32 4294901760, %v6669_v9 }
 0x33b   :  { %3417 = vmatpush.msrb.mxu2 %v6650_v7  ;;  %v7064_v40 = vand.u32 4294901760, %v6683_v62 }
 0x33c   :  { %3345 = vmatpush.msra.mxu0 %v3180_v29  ;;  %3500 = vmatpush.msrb.mxu3 %v3499_v45  ;;  %v3511_v29 = vand.u32 4294901760, %v3510_v54  ;;  %v3516_v0 = vsub.f32 %v6669_v9, %v7057_v1 }
 0x33d   :  { %3419 = vmatpush.msrb.mxu2 %v6666_v20  ;;  %v3522_v59 = vsub.f32 %v6683_v62, %v7064_v40 }
 0x33e   :  { %3506 = vmatpush.msrb.mxu3 %v3505_v4  ;;  %v3517_v24 = vand.u32 4294901760, %v3516_v0 }
 0x33f   :  { %v3523_v52 = vand.u32 4294901760, %v3522_v59 }
 0x340   :  { %3512 = vmatpush.msrb.mxu3 %v3511_v29  ;;  %v2318_v29 = vperm.slane %v2315_v14, 1 }
 0x342   :  { %3518 = vmatpush.msrb.mxu3 %v3517_v24 }
 0x344   :  { %3524 = vmatpush.msrb.mxu3 %v3523_v52  ;;  %v7182_v52 = vand.u32 4294901760, %v6503_v26 }
 0x34f   :  { %v2460_v54 = vpop.f32.mrf.mxu1 }
 0x357   :  { %v2359_v45 = vpop.f32.mrf.mxu0  ;;  %v2514_v1 = vpop.f32.mrf.mxu2 }
 0x358   :  { %v2360_v58 = vadd.f32 %v2359_v45, %v2317_v15  ;;  %v2659_v23 = vpop.f32.mrf.mxu1 }
 0x359   :  { %v2553_v11 = vpop.f32.mrf.mxu3 }
 0x35a   :  { %v2461_v50 = vadd.f32 %v2460_v54, %v2360_v58  ;;  %v7183_v58 = vand.u32 4294901760, %v6516_v2 }
 0x35c   :  { %v2515_v10 = vadd.f32 %v2514_v1, %v2461_v50 }
 0x35e   :  { %v2554_v39 = vadd.f32 %v2553_v11, %v2515_v10 }
 0x360   :  { %v2700_v15 = vpop.f32.mrf.mxu2 }
 0x361   :  { %v2622_v4 = vpop.f32.mrf.mxu0  ;;  %v2701_v45 = vadd.f32 %v2700_v15, %v2318_v29  ;;  %v7225_v15 = vld [vmem:[#allocation73_spill] sm:$0xff] }
 0x362   :  { %v2623_v49 = vadd.f32 %v2622_v4, %v2554_v39 }
 0x363   :  { %v2801_v11 = vpop.f32.mrf.mxu3 }
 0x364   :  { %v2660_v0 = vadd.f32 %v2659_v23, %v2623_v49  ;;  %v2802_v49 = vadd.f32 %v2801_v11, %v2701_v45  ;;  %v7227_v45 = vld [vmem:[#allocation63_spill] sm:$0xff] }
 0x365   :  { %v7229_v11 = vld [vmem:[#allocation59_spill] sm:$0xff] }
 0x366   :  { %v3004_v28 = vmul.f32 1.442695, %v2660_v0  ;;  %vm3003_vm6 = vcmp.gt.f32.partialorder %v2660_v0, 0.0 }
 0x368   :  { %4149 = vpow2.f32 %v3004_v28 }
 0x36e   :  { %v4150_v19 = vpop.eup %4149 }
 0x36f   :  { %v4124_v40 = vadd.f32 -1.0, %v4150_v19  ;;  %v7181_v19 = vand.u32 4294901760, %v6490_v27 }
 0x371   :  { %v3007_v59 = vsel %vm3003_vm6, %v2660_v0, %v4124_v40 }
 0x372   :  { %v6695_v24 = vand.u32 4294901760, %v3007_v59  ;;  %v2894_v40 = vpop.f32.mrf.mxu1 }
 0x374   :  { %3185 = vmatmul.f32.vlgmr.msrb.gmra.mxu1 %v6695_v24  ;;  %v6699_v50 = vsub.f32 %v3007_v59, %v6695_v24  ;;  %v7224_v59 = vld [vmem:[#allocation58_spill] sm:$0xff] }
 0x375   :  { %3585 = vmatpush.msrb.mxu1 %v6481_v41 }
 0x376   :  { %3239 = vmatmul.f32.vlgmr.msra.gmra.mxu2 %v6699_v50  ;;  %v6704_v28 = vand.u32 4294901760, %v6699_v50 }
 0x377   :  { %3587 = vmatpush.msrb.mxu1 %v6494_v55  ;;  %3626 = vmatpush.msra.mxu2 %v7181_v19  ;;  %v7231_v19 = vld [vmem:[#allocation61_spill] sm:$0xff] }
 0x378   :  { %3278 = vmatmul.f32.vlgmr.msra.gmra.mxu3 %v6704_v28  ;;  %v3082_v39 = vsub.f32 %v6699_v50, %v6704_v28 }
 0x379   :  { %v2855_v10 = vpop.f32.mrf.mxu0  ;;  %3589 = vmatpush.msrb.mxu1 %v6500_v22  ;;  %3630 = vmatpush.msra.mxu2 %v7182_v52  ;;  %v7236_v52 = vld [vmem:[#allocation28_spill] sm:$0xff] }
 0x37a   :  { %v2856_v14 = vadd.f32 %v2855_v10, %v2802_v49  ;;  %3693 = vmatpush.msra.mxu3 %v6481_v41  ;;  %v3083_v1 = vand.u32 4294901760, %v3082_v39  ;;  %v2963_v4 = vpop.f32.mrf.mxu2  ;;  %v7184_v41 = vand.u32 4294901760, %v6529_v21  ;;  %v7232_v49 = vld [vmem:[#allocation69_spill] sm:$0xff]  ;;  %v7233_v39 = vld [vmem:[#allocation66_spill] sm:$0xff]  ;;  %v7234_v10 = vld [vmem:[#allocation23_spill] sm:$0xff] }
 0x37b   :  { %3591 = vmatpush.msrb.mxu1 %v6513_v8  ;;  %3634 = vmatpush.msra.mxu2 %v7183_v58  ;;  %v7242_v58 = vld [vmem:[#allocation46_spill] sm:$0xff] }
 0x37c   :  { %v2895_v54 = vadd.f32 %v2894_v40, %v2856_v14  ;;  %3695 = vmatpush.msra.mxu3 %v6494_v55  ;;  %3084 = vmatmul.f32.vlgmr.msrb.gmra.mxu0 %v3083_v1  ;;  %v3000_v0 = vpop.f32.mrf.mxu3  ;;  %v7185_v55 = vand.u32 4294901760, %v6540_v43  ;;  %v7238_v14 = vld [vmem:[#allocation34_spill] sm:$0xff]  ;;  %v7241_v40 = vld [vmem:[#allocation39_spill] sm:$0xff] }
 0x37d   :  { %3384 = vmatmul.f32.vlgmr.msra.gmra.mxu1 %v6695_v24  ;;  %3532 = vmatpush.msrb.mxu0 %v6490_v27  ;;  %v7186_v27 = vand.u32 4294901760, %v6551_v53 }
 0x37e   :  { %v2964_v23 = vadd.f32 %v2963_v4, %v2895_v54  ;;  %3593 = vmatpush.msrb.mxu1 %v6526_v17  ;;  %3638 = vmatpush.msra.mxu2 %v7184_v41  ;;  %v7243_v54 = vld [vmem:[#allocation49_spill] sm:$0xff]  ;;  %v7246_v41 = vld [vmem:[#allocation62_spill] sm:$0xff] }
 0x37f   :  { %3697 = vmatpush.msra.mxu3 %v6500_v22  ;;  %3425 = vmatmul.f32.vlgmr.msrb.gmra.mxu2 %v3083_v1  ;;  %v7187_v22 = vand.u32 4294901760, %v6567_v48  ;;  %v7240_v1 = vld [vmem:[#allocation38_spill] sm:$0xff]  ;;  %v7244_v4 = vld [vmem:[#allocation53_spill] sm:$0xff] }
 0x380   :  { %v3001_v29 = vadd.f32 %v3000_v0, %v2964_v23  ;;  %3535 = vmatpush.msrb.mxu0 %v6503_v26  ;;  %3595 = vmatpush.msrb.mxu1 %v6537_v38  ;;  %v7188_v26 = vand.u32 4294901760, %v6581_v3  ;;  %v7245_v23 = vld [vmem:[#allocation57_spill] sm:$0xff]  ;;  %v7247_v0 = vld [vmem:[#allocation67_spill] sm:$0xff] }
 0x381   :  { %3642 = vmatpush.msra.mxu2 %v7185_v55  ;;  %3699 = vmatpush.msra.mxu3 %v6513_v8  ;;  %v7189_v8 = vand.u32 4294901760, %v6590_v56  ;;  %v7249_v55 = vld [vmem:[#allocation71_spill] sm:$0xff] }
 0x382   :  { %3008 = vst.msk [vmem:[#allocation14] sm:$0xff] %vm1038_vm3, %v3001_v29  ;;  %3526 = vmatmul.f32.vlgmr.msrb.gmra.mxu3 %v6695_v24  ;;  %3538 = vmatpush.msrb.mxu0 %v6516_v2  ;;  %v7190_v2 = vand.u32 4294901760, %v6601_v35  ;;  %v7248_v29 = vld [vmem:[#allocation68_spill] sm:$0xff] }
 0x383   :  { %3597 = vmatpush.msrb.mxu1 %v6548_v36  ;;  %3646 = vmatpush.msra.mxu2 %v7186_v27  ;;  %v4125_v27 = vld [vmem:[%s6917_s5 + $0x2] sm:$0x3] }
 0x384   :  { %3701 = vmatpush.msra.mxu3 %v6526_v17  ;;  %3541 = vmatpush.msrb.mxu0 %v6529_v21  ;;  %v7191_v17 = vand.u32 4294901760, %v6617_v34  ;;  %v7192_v21 = vand.u32 4294901760, %v6633_v44 }
 0x385   :  { %3599 = vmatpush.msrb.mxu1 %v6564_v33  ;;  %3650 = vmatpush.msra.mxu2 %v7187_v22  ;;  %v3043_v22 = vperm.slane %v4125_v27, 0 }
 0x386   :  { %3703 = vmatpush.msra.mxu3 %v6537_v38  ;;  %3347 = vmatmul.f32.vlgmr.msra.gmra.mxu0 %v6695_v24  ;;  %v7193_v38 = vand.u32 4294901760, %v6642_v60 }
 0x387   :  { %3544 = vmatpush.msrb.mxu0 %v6540_v43  ;;  %3601 = vmatpush.msrb.mxu1 %v6577_v42  ;;  %v7194_v43 = vand.u32 4294901760, %v6653_v16 }
 0x388   :  { %3654 = vmatpush.msra.mxu2 %v7188_v26  ;;  %3705 = vmatpush.msra.mxu3 %v6548_v36  ;;  %v7195_v36 = vand.u32 4294901760, %v6669_v9 }
 0x389   :  { %3547 = vmatpush.msrb.mxu0 %v6551_v53  ;;  %3603 = vmatpush.msrb.mxu1 %v6587_v32  ;;  %v7196_v53 = vand.u32 4294901760, %v6683_v62 }
 0x38a   :  { %3658 = vmatpush.msra.mxu2 %v7189_v8  ;;  %3707 = vmatpush.msra.mxu3 %v6564_v33  ;;  %v7206_v33 = vld [vmem:[#allocation35_spill] sm:$0xff] }
 0x38b   :  { %3550 = vmatpush.msrb.mxu0 %v6567_v48  ;;  %3605 = vmatpush.msrb.mxu1 %v6598_v46  ;;  %v7207_v48 = vld [vmem:[#allocation52_spill] sm:$0xff] }
 0x38c   :  { %3662 = vmatpush.msra.mxu2 %v7190_v2  ;;  %3709 = vmatpush.msra.mxu3 %v6577_v42  ;;  %v7209_v42 = vld [vmem:[#allocation37_spill] sm:$0xff] }
 0x38d   :  { %3553 = vmatpush.msrb.mxu0 %v6581_v3  ;;  %3607 = vmatpush.msrb.mxu1 %v6614_v18  ;;  %v7210_v3 = vld [vmem:[#allocation56_spill] sm:$0xff] }
 0x38e   :  { %3666 = vmatpush.msra.mxu2 %v7191_v17  ;;  %3711 = vmatpush.msra.mxu3 %v6587_v32  ;;  %v7211_v32 = vld [vmem:[#allocation33_spill] sm:$0xff] }
 0x38f   :  { %3556 = vmatpush.msrb.mxu0 %v6590_v56  ;;  %3609 = vmatpush.msrb.mxu1 %v6627_v31  ;;  %v7212_v56 = vld [vmem:[#allocation44_spill] sm:$0xff] }
 0x390   :  { %3670 = vmatpush.msra.mxu2 %v7192_v21  ;;  %3713 = vmatpush.msra.mxu3 %v6598_v46  ;;  %v7208_v46 = vld [vmem:[#allocation30_spill] sm:$0xff] }
 0x391   :  { %3559 = vmatpush.msrb.mxu0 %v6601_v35  ;;  %3611 = vmatpush.msrb.mxu1 %v6639_v13  ;;  %v7205_v35 = vld [vmem:[#allocation27_spill] sm:$0xff] }
 0x392   :  { %3674 = vmatpush.msra.mxu2 %v7193_v38  ;;  %3715 = vmatpush.msra.mxu3 %v6614_v18  ;;  %v7215_v18 = vld [vmem:[#allocation47_spill] sm:$0xff] }
 0x393   :  { %3562 = vmatpush.msrb.mxu0 %v6617_v34  ;;  %3613 = vmatpush.msrb.mxu1 %v6650_v7  ;;  %v7216_v34 = vld [vmem:[#allocation64_spill] sm:$0xff] }
 0x394   :  { %3678 = vmatpush.msra.mxu2 %v7194_v43  ;;  %3717 = vmatpush.msra.mxu3 %v6627_v31  ;;  %v7213_v31 = vld [vmem:[#allocation60_spill] sm:$0xff] }
 0x395   :  { %3565 = vmatpush.msrb.mxu0 %v6633_v44  ;;  %3615 = vmatpush.msrb.mxu1 %v6666_v20  ;;  %v7217_v44 = vld [vmem:[#allocation45_spill] sm:$0xff] }
 0x396   :  { %3682 = vmatpush.msra.mxu2 %v7195_v36  ;;  %3719 = vmatpush.msra.mxu3 %v6639_v13  ;;  %v7218_v13 = vld [vmem:[#allocation50_spill] sm:$0xff] }
 0x397   :  { %3619 = vmatmul.f32.vlgmr.msrb.gmra.mxu1 %v6704_v28  ;;  %3568 = vmatpush.msrb.mxu0 %v6642_v60  ;;  %v7219_v60 = vld [vmem:[#allocation70_spill] sm:$0xff]  ;;  %v7230_v28 = vld [vmem:[#allocation65_spill] sm:$0xff] }
 0x398   :  { %3686 = vmatpush.msra.mxu2 %v7196_v53  ;;  %3721 = vmatpush.msra.mxu3 %v6650_v7  ;;  %v7220_v7 = vld [vmem:[#allocation48_spill] sm:$0xff] }
 0x399   :  { %3688 = vmatmul.f32.vlgmr.msra.gmra.mxu2 %v6695_v24  ;;  %3571 = vmatpush.msrb.mxu0 %v6653_v16  ;;  %v7214_v16 = vld [vmem:[#allocation43_spill] sm:$0xff] }
 0x39a   :  { %3723 = vmatpush.msra.mxu3 %v6666_v20  ;;  %3782 = vmatpush.msra.mxu1 %v5521_v37  ;;  %v7198_v37 = vld [vmem:[#allocation40_spill] sm:$0xff]  ;;  %v7221_v20 = vld [vmem:[#allocation54_spill] sm:$0xff] }
 0x39b   :  { %3725 = vmatmul.f32.vlgmr.msra.gmra.mxu3 %v6695_v24  ;;  %3574 = vmatpush.msrb.mxu0 %v6669_v9  ;;  %v7222_v9 = vld [vmem:[#allocation72_spill] sm:$0xff]  ;;  %v7226_v24 = vld [vmem:[#allocation55_spill] sm:$0xff] }
 0x39c   :  { %3788 = vmatpush.msra.mxu1 %v5536_v5  ;;  %3880 = vmatpush.msrb.mxu2 %v5446_v12  ;;  %v7197_v12 = vld [vmem:[#allocation26_spill] sm:$0xff] }
 0x39d   :  { %3577 = vmatpush.msrb.mxu0 %v6683_v62  ;;  %3933 = vmatpush.msrb.mxu3 %v5431_v25  ;;  %v7199_v5 = vld [vmem:[#allocation22_spill] sm:$0xff]  ;;  %v7223_v62 = vld [vmem:[#allocation51_spill] sm:$0xff] }
 0x39e   :  { %3580 = vmatmul.f32.vlgmr.msrb.gmra.mxu0 %v6699_v50  ;;  %3794 = vmatpush.msra.mxu1 %v5550_v47  ;;  %v7201_v47 = vld [vmem:[#allocation41_spill] sm:$0xff]  ;;  %v7228_v50 = vld [vmem:[#allocation74_spill] sm:$0xff] }
 0x39f   :  { %3737 = vmatpush.msra.mxu0 %v5431_v25  ;;  %3883 = vmatpush.msrb.mxu2 %v5456_v30  ;;  %v7200_v30 = vld [vmem:[#allocation29_spill] sm:$0xff] }
 0x3a0   :  { %3800 = vmatpush.msra.mxu1 %v5560_v61  ;;  %3935 = vmatpush.msrb.mxu3 %v5438_v57  ;;  %v7202_v61 = vld [vmem:[#allocation24_spill] sm:$0xff] }
 0x3a1   :  { %3739 = vmatpush.msra.mxu0 %v5438_v57  ;;  %3886 = vmatpush.msrb.mxu2 %v5469_v51  ;;  %v7203_v51 = vld [vmem:[#allocation32_spill] sm:$0xff] }
 0x3a2   :  { %3806 = vmatpush.msra.mxu1 %v5572_v6  ;;  %3937 = vmatpush.msrb.mxu3 %v5448_v63  ;;  %v7204_v6 = vld [vmem:[#allocation42_spill] sm:$0xff] }
 0x3a3   :  { %3741 = vmatpush.msra.mxu0 %v5448_v63  ;;  %3889 = vmatpush.msrb.mxu2 %v7197_v12 }
 0x3a4   :  { %3812 = vmatpush.msra.mxu1 %v7198_v37  ;;  %3939 = vmatpush.msrb.mxu3 %v7199_v5 }
 0x3a5   :  { %3743 = vmatpush.msra.mxu0 %v7199_v5  ;;  %3892 = vmatpush.msrb.mxu2 %v7200_v30 }
 0x3a6   :  { %3818 = vmatpush.msra.mxu1 %v7201_v47  ;;  %3941 = vmatpush.msrb.mxu3 %v7202_v61 }
 0x3a7   :  { %3745 = vmatpush.msra.mxu0 %v7202_v61  ;;  %3895 = vmatpush.msrb.mxu2 %v7203_v51  ;;  %v3044_v51 = vperm.slane %v4125_v27, 1 }
 0x3a8   :  { %3824 = vmatpush.msra.mxu1 %v7204_v6  ;;  %3943 = vmatpush.msrb.mxu3 %v7205_v35 }
 0x3a9   :  { %3747 = vmatpush.msra.mxu0 %v7205_v35  ;;  %3898 = vmatpush.msrb.mxu2 %v7206_v33 }
 0x3aa   :  { %3830 = vmatpush.msra.mxu1 %v7207_v48  ;;  %3945 = vmatpush.msrb.mxu3 %v7208_v46 }
 0x3ab   :  { %3749 = vmatpush.msra.mxu0 %v7208_v46  ;;  %3901 = vmatpush.msrb.mxu2 %v7209_v42 }
 0x3ac   :  { %3836 = vmatpush.msra.mxu1 %v7210_v3  ;;  %3947 = vmatpush.msrb.mxu3 %v7211_v32 }
 0x3ad   :  { %3751 = vmatpush.msra.mxu0 %v7211_v32  ;;  %3904 = vmatpush.msrb.mxu2 %v7212_v56 }
 0x3ae   :  { %3842 = vmatpush.msra.mxu1 %v7213_v31  ;;  %3949 = vmatpush.msrb.mxu3 %v7214_v16 }
 0x3af   :  { %3753 = vmatpush.msra.mxu0 %v7214_v16  ;;  %3907 = vmatpush.msrb.mxu2 %v7215_v18 }
 0x3b0   :  { %3848 = vmatpush.msra.mxu1 %v7216_v34  ;;  %3951 = vmatpush.msrb.mxu3 %v7217_v44 }
 0x3b1   :  { %3755 = vmatpush.msra.mxu0 %v7217_v44  ;;  %3910 = vmatpush.msrb.mxu2 %v7218_v13 }
 0x3b2   :  { %3854 = vmatpush.msra.mxu1 %v7219_v60  ;;  %3953 = vmatpush.msrb.mxu3 %v7220_v7 }
 0x3b3   :  { %3757 = vmatpush.msra.mxu0 %v7220_v7  ;;  %3913 = vmatpush.msrb.mxu2 %v7221_v20 }
 0x3b4   :  { %3860 = vmatpush.msra.mxu1 %v7222_v9  ;;  %3955 = vmatpush.msrb.mxu3 %v7223_v62 }
 0x3b5   :  { %3759 = vmatpush.msra.mxu0 %v7223_v62  ;;  %3916 = vmatpush.msrb.mxu2 %v7224_v59  ;;  %v4154_v59 = vld [vmem:[%s6919_s7] ss:$0 sm:$0xff] }
 0x3b6   :  { %3866 = vmatpush.msra.mxu1 %v7225_v15  ;;  %3957 = vmatpush.msrb.mxu3 %v7226_v24 }
 0x3b7   :  { %3761 = vmatpush.msra.mxu0 %v7226_v24  ;;  %3919 = vmatpush.msrb.mxu2 %v7227_v45 }
 0x3b8   :  { %3872 = vmatpush.msra.mxu1 %v7228_v50  ;;  %3959 = vmatpush.msrb.mxu3 %v7229_v11 }
 0x3b9   :  { %3763 = vmatpush.msra.mxu0 %v7229_v11  ;;  %3922 = vmatpush.msrb.mxu2 %v7230_v28 }
 0x3ba   :  { %4041 = vmatpush.msrb.mxu1 %v5431_v25  ;;  %3961 = vmatpush.msrb.mxu3 %v7231_v19  ;;  %v7235_v25 = vld [vmem:[#allocation25_spill] sm:$0xff] }
 0x3bb   :  { %3765 = vmatpush.msra.mxu0 %v7231_v19  ;;  %3925 = vmatpush.msrb.mxu2 %v7232_v49 }
 0x3bc   :  { %4043 = vmatpush.msrb.mxu1 %v5438_v57  ;;  %3963 = vmatpush.msrb.mxu3 %v7233_v39  ;;  %v7237_v57 = vld [vmem:[#allocation31_spill] sm:$0xff] }
 0x3bd   :  { %3767 = vmatpush.msra.mxu0 %v7233_v39 }
 0x3be   :  { %4045 = vmatpush.msrb.mxu1 %v5448_v63  ;;  %v7239_v63 = vld [vmem:[#allocation36_spill] sm:$0xff] }
 0x3bf   :  { %3974 = vmatpush.msrb.mxu0 %v7234_v10 }
 0x3c0   :  { %4047 = vmatpush.msrb.mxu1 %v7199_v5 }
 0x3c1   :  { %3978 = vmatpush.msrb.mxu0 %v7235_v25 }
 0x3c2   :  { %4049 = vmatpush.msrb.mxu1 %v7202_v61 }
 0x3c3   :  { %3982 = vmatpush.msrb.mxu0 %v7236_v52 }
 0x3c4   :  { %4051 = vmatpush.msrb.mxu1 %v7205_v35 }
 0x3c5   :  { %3986 = vmatpush.msrb.mxu0 %v7237_v57 }
 0x3c6   :  { %4053 = vmatpush.msrb.mxu1 %v7208_v46 }
 0x3c7   :  { %3990 = vmatpush.msrb.mxu0 %v7238_v14 }
 0x3c8   :  { %4055 = vmatpush.msrb.mxu1 %v7211_v32 }
 0x3c9   :  { %3994 = vmatpush.msrb.mxu0 %v7239_v63 }
 0x3ca   :  { %4057 = vmatpush.msrb.mxu1 %v7214_v16 }
 0x3cb   :  { %3998 = vmatpush.msrb.mxu0 %v7240_v1 }
 0x3cc   :  { %4059 = vmatpush.msrb.mxu1 %v7217_v44 }
 0x3cd   :  { %4002 = vmatpush.msrb.mxu0 %v7241_v40 }
 0x3ce   :  { %4061 = vmatpush.msrb.mxu1 %v7220_v7 }
 0x3cf   :  { %4006 = vmatpush.msrb.mxu0 %v7242_v58 }
 0x3d0   :  { %4063 = vmatpush.msrb.mxu1 %v7223_v62 }
 0x3d1   :  { %4010 = vmatpush.msrb.mxu0 %v7243_v54 }
 0x3d2   :  { %4065 = vmatpush.msrb.mxu1 %v7226_v24 }
 0x3d3   :  { %4014 = vmatpush.msrb.mxu0 %v7244_v4 }
 0x3d4   :  { %4067 = vmatpush.msrb.mxu1 %v7229_v11 }
 0x3d5   :  { %4018 = vmatpush.msrb.mxu0 %v7245_v23 }
 0x3d6   :  { %4069 = vmatpush.msrb.mxu1 %v7231_v19 }
 0x3d7   :  { %4022 = vmatpush.msrb.mxu0 %v7246_v41 }
 0x3d8   :  { %4071 = vmatpush.msrb.mxu1 %v7233_v39 }
 0x3d9   :  { %4026 = vmatpush.msrb.mxu0 %v7247_v0 }
 0x3db   :  { %4030 = vmatpush.msrb.mxu0 %v7248_v29 }
 0x3dd   :  { %4034 = vmatpush.msrb.mxu0 %v7249_v55 }
 0x3f1   :  { %v3186_v2 = vpop.f32.mrf.mxu1 }
 0x3f9   :  { %v3085_v26 = vpop.f32.mrf.mxu0  ;;  %v3240_v21 = vpop.f32.mrf.mxu2 }
 0x3fa   :  { %v3086_v8 = vadd.f32 %v3085_v26, %v3043_v22  ;;  %v3385_v37 = vpop.f32.mrf.mxu1 }
 0x3fb   :  { %v3279_v43 = vpop.f32.mrf.mxu3 }
 0x3fc   :  { %v3187_v17 = vadd.f32 %v3186_v2, %v3086_v8 }
 0x3fe   :  { %v3241_v38 = vadd.f32 %v3240_v21, %v3187_v17 }
 0x400   :  { %v3280_v36 = vadd.f32 %v3279_v43, %v3241_v38 }
 0x402   :  { %v3426_v35 = vpop.f32.mrf.mxu2 }
 0x403   :  { %v3348_v53 = vpop.f32.mrf.mxu0  ;;  %v3427_v48 = vadd.f32 %v3426_v35, %v3044_v51 }
 0x404   :  { %v3349_v12 = vadd.f32 %v3348_v53, %v3280_v36 }
 0x405   :  { %v3527_v42 = vpop.f32.mrf.mxu3 }
 0x406   :  { %v3386_v5 = vadd.f32 %v3385_v37, %v3349_v12  ;;  %v3528_v32 = vadd.f32 %v3527_v42, %v3427_v48 }
 0x408   :  { %v3730_v30 = vmul.f32 1.442695, %v3386_v5  ;;  %vm3729_vm7 = vcmp.gt.f32.partialorder %v3386_v5, 0.0 }
 0x40a   :  { %4151 = vpow2.f32 %v3730_v30 }
 0x410   :  { %v4152_v47 = vpop.eup %4151 }
 0x411   :  { %v4126_v61 = vadd.f32 -1.0, %v4152_v47 }
 0x413   :  { %v3733_v6 = vsel %vm3729_vm7, %v3386_v5, %v4126_v61 }
 0x414   :  { %v3768_v33 = vand.u32 4294901760, %v3733_v6  ;;  %v3620_v34 = vpop.f32.mrf.mxu1 }
 0x416   :  { %3874 = vmatmul.f32.vlgmr.msra.gmra.mxu1 %v3768_v33  ;;  %v3769_v46 = vsub.f32 %v3733_v6, %v3768_v33 }
 0x418   :  { %3928 = vmatmul.f32.vlgmr.msrb.gmra.mxu2 %v3769_v46  ;;  %v3770_v3 = vand.u32 4294901760, %v3769_v46 }
 0x41a   :  { %3967 = vmatmul.f32.vlgmr.msrb.gmra.mxu3 %v3770_v3  ;;  %v3771_v56 = vsub.f32 %v3769_v46, %v3770_v3 }
 0x41b   :  { %v3581_v31 = vpop.f32.mrf.mxu0 }
 0x41c   :  { %v3582_v16 = vadd.f32 %v3581_v31, %v3528_v32  ;;  %v3772_v18 = vand.u32 4294901760, %v3771_v56  ;;  %v3689_v13 = vpop.f32.mrf.mxu2 }
 0x41e   :  { %v3621_v44 = vadd.f32 %v3620_v34, %v3582_v16  ;;  %3773 = vmatmul.f32.vlgmr.msra.gmra.mxu0 %v3772_v18  ;;  %4073 = vmatmul.f32.vlgmr.msrb.gmra.mxu1 %v3768_v33  ;;  %v3726_v7 = vpop.f32.mrf.mxu3 }
 0x420   :  { %v3690_v60 = vadd.f32 %v3689_v13, %v3621_v44 }
 0x422   :  { %v3727_v20 = vadd.f32 %v3726_v7, %v3690_v60 }
 0x424   :  { %3735 = vst.msk [vmem:[#allocation14 + $0x8] sm:$0xff] %vm1038_vm3, %v3727_v20 }
 0x426   :  { %4036 = vmatmul.f32.vlgmr.msrb.gmra.mxu0 %v3768_v33 }
 0x493   :  { %v3875_v9 = vpop.f32.mrf.mxu1 }
 0x49b   :  { %v3774_v62 = vpop.f32.mrf.mxu0  ;;  %v3929_v45 = vpop.f32.mrf.mxu2 }
 0x49c   :  { %v3775_v15 = vadd.f32 %v4154_v59, %v3774_v62  ;;  %v4074_v39 = vpop.f32.mrf.mxu1 }
 0x49d   :  { %v3968_v11 = vpop.f32.mrf.mxu3 }
 0x49e   :  { %v3876_v24 = vadd.f32 %v3875_v9, %v3775_v15 }
 0x4a0   :  { %v3930_v50 = vadd.f32 %v3929_v45, %v3876_v24 }
 0x4a2   :  { %v3969_v28 = vadd.f32 %v3968_v11, %v3930_v50 }
 0x4a3   :  { %v4037_v19 = vpop.f32.mrf.mxu0 }
 0x4a4   :  { %v4038_v49 = vadd.f32 %v4037_v19, %v3969_v28 }
 0x4a6   :  { %v4075_v10 = vadd.f32 %v4074_v39, %v4038_v49 }
 0x4a8   :  { %4078 = vst.msk [vmem:[#allocation14 + $0x10] sm:$0xff] %vm1038_vm3, %v4075_v10 }
 0x4a9   :  { %4104 = dma.vmem_to_hbm [thread:$0]  %s4097_s2, 384, %s4099_s12, [#allocation15], %s4363_s27, %s4363_s27, %s4364_s28  }
 0x4aa   :  { %4355 = dma.done.wait [#allocation4], 384  }
 0x4ab   :  { %4356 = vsyncadd [#allocation4], 4294966912 }
 0x4ac   :  { %4357 = dma.done.wait [#allocation15], 384  }
 0x4ad   :  { %4358 = vsyncadd [#allocation15], 4294966912 }
 0x4ae   :  { %4113 = vsyncpa [#allocation3], 1 }
 0x4af   :  { %4114 = vsyncpa [#allocation6], 1 }
 0x4b0   :  { %4115 = vsyncpa [#allocation9], 1 }
 0x4b1   :  { %4116 = vsyncpa [#allocation12], 1 }
 0x4b2   :  { %4117 = vsyncpa [#allocation4], 1 }
 0x4b3   :  { %4118 = vsyncpa [#allocation15], 1 }

</bundles_post_ra>
